<compile_context>
chip_gen: v5e
topology: v5e:2x2
jax: 0.10.0
libtpu: 0.0.40
codegen_flags: <defaults>
</compile_context>

<pallas_src>
import functools

import jax
import jax.numpy as jnp
from jax import lax
from jax.experimental import pallas as pl
from jax.experimental.pallas import tpu as pltpu

INFINITY = 1.0e9
TRANSITION = 64  # transition_size inside every MLP
N_TORSIONS = 7


def _qmul(a, b):
  """Quaternion product on component tuples (w, x, y, z)."""
  aw, ax, ay, az = a
  bw, bx, by, bz = b
  return (aw * bw - ax * bx - ay * by - az * bz,
          aw * bx + ax * bw + ay * bz - az * by,
          aw * by - ax * bz + ay * bw + az * bx,
          aw * bz + ax * by - ay * bx + az * bw)


# ----------------------------------------------------------------------------- kernel
def egnn_kernel(all_h_ref, neigh_ref, tor_ref, bias_ref,
                edge_pre_ref, w_h_ref, mW2_ref, mb_ref,
                wbig1_ref, wtor_ref, georow_ref, b1a_ref,
                wbig2_ref, b2s_ref, wf1_ref, fb1_ref, fW2_ref, fb2_ref,
                out_ref, *, N, J, O):
  f32 = jnp.float32
  bf16 = jnp.bfloat16

  Bb, Jp, H = all_h_ref.shape          # batch block, padded neighbours, node feat size
  T = mW2_ref.shape[0]                 # transition size (64)
  M = mW2_ref.shape[1]                 # message size (64)
  C4 = wbig1_ref.shape[1]              # 4*T = 256 fused head width
  SW = wbig2_ref.shape[1]              # 16-wide fused second-layer output
  BNJ = Bb * N * Jp

  def mm(a_bf, b_bf):                  # bf16 MXU operands, f32 accumulation
    return jnp.dot(a_bf, b_bf, preferred_element_type=f32)

  all_h = all_h_ref[...]               # bf16 [Bb, Jp, H]  (peptide | pocket | dummies)
  neigh = neigh_ref[...]               # f32  [Bb, Jp, 8]  (quat wxyz | trans xyz | pad)
  tor = tor_ref[...]                   # f32  [Bb, N, 14]  (sin[7] | cos[7])
  bias = bias_ref[...]                 # f32  [Bb, N, Jp]  (0 / -INF / -2INF)
  edge_pre = edge_pre_ref[...]         # f32  [N, Jp, T]   hoisted relposenc @ W_e

  # ---------------- message MLP: Linear(2H+E -> T) -> ReLU -> Linear(T -> M)
  pre_both = mm(all_h.reshape(Bb * Jp, H), w_h_ref[...]).reshape(Bb, Jp, 2 * T)
  pre_i = pre_both[:, :N, :T]                                  # [Bb, N, T]
  pre_j = pre_both[:, :, T:]                                   # [Bb, Jp, T]
  mb1 = mb_ref[0:1, :]
  mb2 = mb_ref[1:2, :]
  hid = jnp.maximum(pre_i[:, :, None, :] + pre_j[:, None, :, :]
                    + edge_pre[None] + mb1[None, None], 0.0)   # [Bb, N, Jp, T]
  msg_f = mm(hid.astype(bf16).reshape(BNJ, T), mW2_ref[...]) + mb2   # [BNJ, M]
  msg_bf = msg_f.astype(bf16)
  msg4 = msg_f.reshape(Bb, N, Jp, M)

  # ---------------- geometry (lane-dense [Bb, N, Jp] per-edge scalars)
  neigh_t = jnp.swapaxes(neigh, 1, 2)                          # [Bb, 8, Jp]
  qj = tuple(neigh_t[:, k:k + 1, :] for k in range(4))         # each [Bb, 1, Jp]
  ntj = tuple(neigh_t[:, 4 + k:5 + k, :] for k in range(3))    # each [Bb, 1, Jp]
  qi = tuple(neigh[:, :N, k:k + 1] for k in range(4))          # each [Bb, N, 1]
  pti = tuple(neigh[:, :N, 4 + k:5 + k] for k in range(3))     # each [Bb, N, 1]

  diff = tuple(pti[k] - ntj[k] for k in range(3))              # each [Bb, N, Jp]
  d2 = diff[0] * diff[0] + diff[1] * diff[1] + diff[2] * diff[2]
  qdot = qi[0] * qj[0] + qi[1] * qj[1] + qi[2] * qj[2] + qi[3] * qj[3]
  qdot2 = qdot * qdot

  nq2 = qj[0] * qj[0] + qj[1] * qj[1] + qj[2] * qj[2] + qj[3] * qj[3]   # [Bb, 1, Jp]
  inv_qj = (qj[0] / nq2, -qj[1] / nq2, -qj[2] / nq2, -qj[3] / nq2)      # conj / |q|^2
  local = _qmul(inv_qj, _qmul(qi, qj))                         # each [Bb, N, Jp]

  # ---------------- fused first layer of attention/translation/rotation/torsion heads
  node_t = mm(tor.astype(bf16).reshape(Bb * N, 2 * N_TORSIONS), wtor_ref[...])
  node_t = node_t.reshape(Bb, N, C4)                           # nonzero only in t cols

  fused = mm(msg_bf, wbig1_ref[...]).reshape(Bb, N, Jp, C4)    # [Bb, N, Jp, 256]
  fused = fused + node_t[:, :, None, :] + b1a_ref[...][None, None]
  g = georow_ref[...]                                          # [8, 256] coeff rows
  fused = (fused
           + d2[..., None] * g[0:1, :][None, None]
           + qdot2[..., None] * g[1:2, :][None, None]
           + local[0][..., None] * g[2:3, :][None, None]
           + local[1][..., None] * g[3:4, :][None, None]
           + local[2][..., None] * g[4:5, :][None, None]
           + local[3][..., None] * g[5:6, :][None, None])
  relu_bf = jnp.maximum(fused, 0.0).astype(bf16).reshape(BNJ, C4)

  # block-diagonal second layer: one matmul produces all four heads
  small = (mm(relu_bf, wbig2_ref[...]) + b2s_ref[...]).reshape(Bb, N, Jp, SW)

  # ---------------- attention softmax over neighbours (masked via additive bias)
  logits = small[..., 0] + bias                                # [Bb, N, Jp]
  lmax = jnp.max(logits, axis=2, keepdims=True)
  lexp = jnp.exp(logits - lmax)
  lsum = jnp.sum(lexp, axis=2, keepdims=True)
  w3 = lexp / lsum                                             # [Bb, N, Jp]
  w4 = w3[..., None]                                           # [Bb, N, Jp, 1]

  # ---------------- feature MLP: cat(features, sum_j message) over REAL neighbours
  real_mask = (lax.broadcasted_iota(jnp.int32, (Jp, 1), 0) < J).astype(f32)
  msg_sum = jnp.sum(msg4 * real_mask[None, None], axis=2)      # [Bb, N, M]
  f_in = jnp.concatenate([all_h[:, :N, :], msg_sum.astype(bf16)], axis=-1)
  f_hid = jnp.maximum(
      mm(f_in.reshape(Bb * N, H + M), wf1_ref[...]) + fb1_ref[...], 0.0)
  o_feat = (mm(f_hid.astype(bf16), fW2_ref[...]) + fb2_ref[...]).reshape(Bb, N, O)

  # ---------------- rotation update (quaternions as (w, x, y, z))
  ld = tuple(jax.nn.sigmoid(small[..., 2 + k]) for k in range(4))   # each [Bb, N, Jp]
  # NOTE: F.normalize(local_delta_quats) in the reference discards its result -> no-op.
  mglob = _qmul(qj, _qmul(ld, inv_qj))                         # each [Bb, N, Jp]
  gd = [jnp.sum(mglob[k] * w3, axis=2, keepdims=True) for k in range(4)]  # [Bb, N, 1]
  has_any = jnp.max(bias, axis=2, keepdims=True) > (-0.5 * INFINITY)      # [Bb, N, 1]
  ident = (1.0, 0.0, 0.0, 0.0)
  gd = [jnp.where(has_any, gd[k], ident[k]) for k in range(4)]
  gnorm = jnp.maximum(
      jnp.sqrt(gd[0] ** 2 + gd[1] ** 2 + gd[2] ** 2 + gd[3] ** 2), 1e-12)
  gd = [x / gnorm for x in gd]
  upd = _qmul(tuple(gd), qi)                                   # each [Bb, N, 1]
  un = jnp.sqrt(upd[0] ** 2 + upd[1] ** 2 + upd[2] ** 2 + upd[3] ** 2)
  q_out = jnp.concatenate([upd[k] / un for k in range(4)], axis=-1)       # [Bb, N, 4]

  # ---------------- torsion update (angle addition on (sin, cos))
  m_da = small[..., 6:6 + N_TORSIONS]                          # [Bb, N, Jp, 7]
  delta_a = jnp.sum(m_da * w4, axis=2)                         # [Bb, N, 7]
  sin_t = tor[:, :, 0:N_TORSIONS]
  cos_t = tor[:, :, N_TORSIONS:2 * N_TORSIONS]
  ds = jnp.sin(delta_a)
  dc = jnp.cos(delta_a)
  new_sin = ds * cos_t + dc * sin_t
  new_cos = dc * cos_t - ds * sin_t

  # ---------------- translation update
  m_t = small[..., 1]                                          # [Bb, N, Jp]
  wt = m_t * w3
  t_out = jnp.concatenate(
      [pti[k] + jnp.sum(wt * diff[k], axis=2, keepdims=True) for k in range(3)],
      axis=-1)                                                 # [Bb, N, 3]

  # ---------------- single lane-dense output slab
  OUT_W = out_ref.shape[2]
  used = 4 + 3 + 2 * N_TORSIONS + O
  parts = [q_out, t_out, new_sin, new_cos, o_feat]
  if OUT_W > used:
    parts.append(jnp.zeros((Bb, N, OUT_W - used), f32))
  out_ref[...] = jnp.concatenate(parts, axis=-1)


# ----------------------------------------------------------------------------- wrapper
def egnn_layer(params, all_h, neigh, tor_pack, attn_bias, relposenc, n_pocket,
               batch_block=None):
  """One EGNN layer.  all_h/neigh/attn_bias are padded to Jp (multiple of 8) neighbours."""
  f32 = jnp.float32
  bf16 = jnp.bfloat16

  B, Jp, H = all_h.shape
  N = tor_pack.shape[1]
  P = n_pocket
  J = N + P
  E = relposenc.shape[-1]
  T = params['mW1'].shape[1]
  M = params['mW2'].shape[1]
  O = params['fW2'].shape[1]
  C4 = 4 * T

  if batch_block is None:
    # Keep >=2 grid steps (both v7x TensorCores busy); fold the rest of the batch into
    # the block so single-TC v5e/v6e see fewer, larger flat matmuls.
    batch_block = B // 2 if (B % 2 == 0 and B >= 4) else 1
  Bb = batch_block
  assert B % Bb == 0

  # ---- weight packing (aligned, pre-cast to bf16 where used as MXU operands)
  mW1 = params['mW1']
  W_hi, W_hj, W_e = mW1[:H], mW1[H:2 * H], mW1[2 * H:]
  w_h = jnp.concatenate([W_hi, W_hj], axis=1).astype(bf16)            # [H, 2T]
  mW2 = params['mW2'].astype(bf16)                                    # [T, M]
  mb = jnp.concatenate([params['mb1'], params['mb2']], axis=0)        # [2, T]

  aW1, gW1, rW1, tW1 = params['aW1'], params['gW1'], params['rW1'], params['tW1']
  # fused first-layer weight for the message operand: cols [a | g | r | t]
  wbig1 = jnp.concatenate([aW1[:M], gW1[:M], rW1[:M], tW1[:M]],
                          axis=1).astype(bf16)                        # [M, 4T]

  # torsion node rows, reordered (sin rows | cos rows) and embedded in the t columns
  tor_rows = jnp.concatenate([tW1[M:][0::2], tW1[M:][1::2]], axis=0)  # [14, T]
  wtor = jnp.zeros((2 * N_TORSIONS, C4), f32).at[:, 3 * T:].set(tor_rows).astype(bf16)

  # geometry coefficient rows (zero outside their head's column segment)
  georow = jnp.zeros((8, C4), f32)
  georow = georow.at[0, :T].set(-aW1[M])          # multiplied by d2  (i.e. (-d2)*row)
  georow = georow.at[1, :T].set(aW1[M + 1])       # multiplied by qdot^2
  georow = georow.at[2:6, 2 * T:3 * T].set(rW1[M:M + 4])   # local quat w,x,y,z rows

  b1a = jnp.concatenate([params['ab1'], params['gb1'],
                         params['rb1'], params['tb1']], axis=1)       # [1, 4T]

  # block-diagonal fused second layer: cols 0=a, 1=g, 2:6=r, 6:13=t
  wbig2 = jnp.zeros((C4, 16), f32)
  wbig2 = wbig2.at[0:T, 0:1].set(params['aW2'])
  wbig2 = wbig2.at[T:2 * T, 1:2].set(params['gW2'])
  wbig2 = wbig2.at[2 * T:3 * T, 2:6].set(params['rW2'])
  wbig2 = wbig2.at[3 * T:, 6:6 + N_TORSIONS].set(params['tW2'])
  wbig2 = wbig2.astype(bf16)
  b2s = jnp.zeros((1, 16), f32)
  b2s = b2s.at[:, 0:1].set(params['ab2'])
  b2s = b2s.at[:, 1:2].set(params['gb2'])
  b2s = b2s.at[:, 2:6].set(params['rb2'])
  b2s = b2s.at[:, 6:6 + N_TORSIONS].set(params['tb2'])

  wf1 = params['fW1'].astype(bf16)                                    # [H+M, T]
  fb1 = params['fb1']
  fW2 = params['fW2'].astype(bf16)                                    # [T, O]
  fb2 = params['fb2']

  # batch-invariant edge contribution (hoisted; pocket / dummy columns are zero)
  edge_pre = jnp.dot(relposenc.reshape(N * N, E), W_e,
                     preferred_element_type=f32).reshape(N, N, T)
  edge_pre = jnp.pad(edge_pre, ((0, 0), (0, Jp - N), (0, 0)))

  used = 4 + 3 + 2 * N_TORSIONS + O
  OUT_W = ((used + 127) // 128) * 128

  kernel = functools.partial(egnn_kernel, N=N, J=J, O=O)
  const2 = lambda b: (0, 0)
  out = pl.pallas_call(
      kernel,
      grid=(B // Bb,),
      in_specs=[
          pl.BlockSpec((Bb, Jp, H), lambda b: (b, 0, 0)),
          pl.BlockSpec((Bb, Jp, 8), lambda b: (b, 0, 0)),
          pl.BlockSpec((Bb, N, 2 * N_TORSIONS), lambda b: (b, 0, 0)),
          pl.BlockSpec((Bb, N, Jp), lambda b: (b, 0, 0)),
          pl.BlockSpec((N, Jp, T), lambda b: (0, 0, 0)),
          pl.BlockSpec(w_h.shape, const2),
          pl.BlockSpec(mW2.shape, const2),
          pl.BlockSpec(mb.shape, const2),
          pl.BlockSpec(wbig1.shape, const2),
          pl.BlockSpec(wtor.shape, const2),
          pl.BlockSpec(georow.shape, const2),
          pl.BlockSpec(b1a.shape, const2),
          pl.BlockSpec(wbig2.shape, const2),
          pl.BlockSpec(b2s.shape, const2),
          pl.BlockSpec(wf1.shape, const2),
          pl.BlockSpec(fb1.shape, const2),
          pl.BlockSpec(fW2.shape, const2),
          pl.BlockSpec(fb2.shape, const2),
      ],
      out_specs=pl.BlockSpec((Bb, N, OUT_W), lambda b: (b, 0, 0)),
      out_shape=jax.ShapeDtypeStruct((B, N, OUT_W), f32),
      compiler_params=pltpu.CompilerParams(dimension_semantics=("parallel",)),
  )(all_h.astype(bf16), neigh, tor_pack, attn_bias, edge_pre,
    w_h, mW2, mb, wbig1, wtor, georow, b1a, wbig2, b2s, wf1, fb1, fW2, fb2)

  q = out[..., 0:4]
  t = out[..., 4:7]
  new_sin = out[..., 7:7 + N_TORSIONS]
  new_cos = out[..., 7 + N_TORSIONS:7 + 2 * N_TORSIONS]
  feat = out[..., 7 + 2 * N_TORSIONS:7 + 2 * N_TORSIONS + O]
  return q, t, new_sin, new_cos, feat


def init_egnn_params(key, H, E, O, M):
  """H: node input size, E: edge size, O: node output size, M: message size."""
  tor_flat = 2 * N_TORSIONS
  specs = {
      'f': (H + M, O),                  # feature_mlp
      'm': (2 * H + E, M),              # message_mlp
      'a': (M + 2, 1),                  # attention_mlp
      'g': (M, 1),                      # translation_mlp
      'r': (M + 4, 4),                  # rotation_mlp
      't': (M + tor_flat, N_TORSIONS),  # torsion_mlp
  }
  keys = jax.random.split(key, len(specs) * 4)
  p = {}
  ki = 0
  for name, (fin, fout) in specs.items():
    p[name + 'W1'] = (jax.random.normal(keys[ki], (fin, TRANSITION), jnp.float32)
                      / jnp.sqrt(float(fin)))
    ki += 1
    p[name + 'b1'] = jax.random.normal(keys[ki], (1, TRANSITION), jnp.float32) * 0.01
    ki += 1
    p[name + 'W2'] = (jax.random.normal(keys[ki], (TRANSITION, fout), jnp.float32)
                      / jnp.sqrt(float(TRANSITION)))
    ki += 1
    p[name + 'b2'] = jax.random.normal(keys[ki], (1, fout), jnp.float32) * 0.01
    ki += 1
  return p


class PallasModel:
  """JAX/Pallas port of the PyTorch `Model` (two EGNN layers)."""

  def __init__(self, max_len, node_input_size, T, key):
    self.max_len = max_len
    self.T = T
    E = 2 * max_len - 1
    H1 = node_input_size + 1
    I = 64
    M = 64
    self.I = I
    self.H1 = H1
    k1, k2 = jax.random.split(key)
    self.gnn1_params = init_egnn_params(k1, H1, E, I, M)
    self.gnn2_params = init_egnn_params(k2, I, E, 1, M)
    rng = jnp.arange(max_len)
    relpos = max_len - 1 + (rng[:, None] - rng[None, :])
    self.relposenc = jax.nn.one_hot(relpos, E, dtype=jnp.float32)     # [L, L, E]

  def __call__(self, batch, t):
    frames_q = batch['frames_q']
    frames_t = batch['frames_t']
    torsions = batch['torsions']
    features = batch['features']
    mask = batch['mask'].astype(jnp.float32)
    pocket_q = batch['pocket_frames_q']
    pocket_t = batch['pocket_frames_t']
    pocket_mask = batch['pocket_mask'].astype(jnp.float32)
    pocket_features = batch['pocket_features']

    B, N, _ = features.shape
    P = pocket_features.shape[1]
    J = N + P
    Jp = ((J + 7) // 8) * 8
    pad = Jp - J

    ft = jnp.full((B, N, 1), float(t) / float(self.T), dtype=jnp.float32)
    h = jnp.concatenate([features, ft], axis=-1)                          # [B, N, H1]
    pocket_h = jnp.concatenate(
        [pocket_features, jnp.zeros((B, P, 1), jnp.float32)], axis=-1)    # [B, P, H1]

    # additive attention bias [B, N, Jp]: 0 = valid edge, -INF = masked real edge,
    # -2*INF = padded dummy neighbour (never selected, even for fully-masked rows).
    eye = jnp.eye(N, dtype=jnp.float32)
    pep_mm = mask[:, :, None] * mask[:, None, :] * (1.0 - eye)[None]
    poc_mm = mask[:, :, None] * pocket_mask[:, None, :]
    mask_real = jnp.concatenate([pep_mm, poc_mm], axis=-1)                # [B, N, J]
    bias_parts = [-(1.0 - mask_real) * INFINITY]
    if pad:
      bias_parts.append(jnp.full((B, N, pad), -2.0 * INFINITY, jnp.float32))
    attn_bias = jnp.concatenate(bias_parts, axis=-1)                      # [B, N, Jp]

    def pack_neigh(pep_q_, pep_t_):
      nq_parts = [pep_q_, pocket_q]
      nt_parts = [pep_t_, pocket_t]
      if pad:
        nq_parts.append(jnp.broadcast_to(
            jnp.array([1.0, 0.0, 0.0, 0.0], jnp.float32), (B, pad, 4)))
        nt_parts.append(jnp.zeros((B, pad, 3), jnp.float32))
      nq = jnp.concatenate(nq_parts, axis=1)
      nt = jnp.concatenate(nt_parts, axis=1)
      padc = jnp.zeros((B, Jp, 1), jnp.float32)
      return jnp.concatenate([nq, nt, padc], axis=-1)                     # [B, Jp, 8]

    def pack_h(pep_feats, pocket_feats):
      F = pep_feats.shape[-1]
      parts = [pep_feats, pocket_feats]
      if pad:
        parts.append(jnp.zeros((B, pad, F), jnp.float32))
      return jnp.concatenate(parts, axis=1)                               # [B, Jp, F]

    tor_pack1 = jnp.concatenate([torsions[..., 0], torsions[..., 1]], axis=-1)

    neigh1 = pack_neigh(frames_q, frames_t)
    all_h1 = pack_h(h, pocket_h)

    q1, x1, sin1, cos1, i_feat = egnn_layer(
        self.gnn1_params, all_h1, neigh1, tor_pack1, attn_bias, self.relposenc, P)
    i_feat = jax.nn.relu(i_feat)
    pocket_i = jnp.zeros((B, P, self.I), jnp.float32)
    pocket_i = pocket_i.at[..., :self.H1].set(pocket_h)

    neigh2 = pack_neigh(q1, x1)
    all_h2 = pack_h(i_feat, pocket_i)
    tor_pack2 = jnp.concatenate([sin1, cos1], axis=-1)

    q2, x2, sin2, cos2, _ = egnn_layer(
        self.gnn2_params, all_h2, neigh2, tor_pack2, attn_bias, self.relposenc, P)

    new_torsions = jnp.stack([sin2, cos2], axis=-1)                       # [B, N, 7, 2]
    return {'frames_q': q2, 'frames_t': x2, 'torsions': new_torsions}


# ----------------------------------------------------------------------------- main
if __name__ == "__main__":
  key = jax.random.PRNGKey(0)

  max_len = 8          # N (peptide length == max_len, as required by relposenc)
  node_input_size = 4
  T_steps = 10
  B, P = 2, 4
  N = max_len

  model = PallasModel(max_len, node_input_size, T_steps, jax.random.fold_in(key, 1))

  ks = jax.random.split(key, 8)
  q = jax.random.normal(ks[0], (B, N, 4), jnp.float32)
  q = q / jnp.linalg.norm(q, axis=-1, keepdims=True)
  x = jax.random.normal(ks[1], (B, N, 3), jnp.float32)
  pq = jax.random.normal(ks[2], (B, P, 4), jnp.float32)
  pq = pq / jnp.linalg.norm(pq, axis=-1, keepdims=True)
  px = jax.random.normal(ks[3], (B, P, 3), jnp.float32)
  ang = jax.random.uniform(ks[4], (B, N, N_TORSIONS), minval=-3.0, maxval=3.0)
  torsions = jnp.stack([jnp.sin(ang), jnp.cos(ang)], axis=-1)           # [B, N, 7, 2]
  features = jax.random.normal(ks[5], (B, N, node_input_size), jnp.float32)
  pocket_features = jax.random.normal(ks[6], (B, P, node_input_size), jnp.float32)
  mask = jnp.ones((B, N), jnp.float32).at[1, 6:].set(0.0)
  pocket_mask = jnp.ones((B, P), jnp.float32)

  batch = {
      'frames_q': q, 'frames_t': x, 'torsions': torsions, 'features': features,
      'mask': mask, 'pocket_frames_q': pq, 'pocket_frames_t': px,
      'pocket_mask': pocket_mask, 'pocket_features': pocket_features,
  }

  out = model(batch, t=3)
  out = jax.block_until_ready(out)

  assert out['frames_q'].shape == (B, N, 4)
  assert out['frames_t'].shape == (B, N, 3)
  assert out['torsions'].shape == (B, N, N_TORSIONS, 2)
  assert bool(jnp.all(jnp.isfinite(out['frames_q'])))
  assert bool(jnp.all(jnp.isfinite(out['frames_t'])))
  assert bool(jnp.all(jnp.isfinite(out['torsions'])))
  # returned quats were built with normalize_quats=True -> unit norm
  assert bool(jnp.allclose(jnp.linalg.norm(out['frames_q'], axis=-1), 1.0, atol=1e-4))

  print("KERNEL_OK")
</pallas_src>

<mosaic_0001>
module attributes {stable_mosaic.version = 11 : i64} {
  func.func @egnn_kernel(%arg0: i32, %arg1: memref<1x16x5xbf16, #tpu.memory_space<vmem>>, %arg2: memref<1x16x8xf32, #tpu.memory_space<vmem>>, %arg3: memref<1x8x14xf32, #tpu.memory_space<vmem>>, %arg4: memref<1x8x16xf32, #tpu.memory_space<vmem>>, %arg5: memref<8x16x64xf32, #tpu.memory_space<vmem>>, %arg6: memref<5x128xbf16, #tpu.memory_space<vmem>>, %arg7: memref<64x64xbf16, #tpu.memory_space<vmem>>, %arg8: memref<2x64xf32, #tpu.memory_space<vmem>>, %arg9: memref<64x256xbf16, #tpu.memory_space<vmem>>, %arg10: memref<14x256xbf16, #tpu.memory_space<vmem>>, %arg11: memref<8x256xf32, #tpu.memory_space<vmem>>, %arg12: memref<1x256xf32, #tpu.memory_space<vmem>>, %arg13: memref<256x16xbf16, #tpu.memory_space<vmem>>, %arg14: memref<1x16xf32, #tpu.memory_space<vmem>>, %arg15: memref<69x64xbf16, #tpu.memory_space<vmem>>, %arg16: memref<1x64xf32, #tpu.memory_space<vmem>>, %arg17: memref<64x64xbf16, #tpu.memory_space<vmem>>, %arg18: memref<1x64xf32, #tpu.memory_space<vmem>>, %arg19: memref<1x8x128xf32, #tpu.memory_space<vmem>>) attributes {dimension_semantics = [#tpu.dimension_semantics<parallel>], iteration_bounds = array<i64: 2>, scalar_prefetch = 0 : i64, scratch_operands = 0 : i64, tpu.core_type = #tpu.core_type<tc>, window_params = [{transform_indices = @transform_0, window_bounds = array<i64: 1, 16, 5>}, {transform_indices = @transform_1, window_bounds = array<i64: 1, 16, 8>}, {transform_indices = @transform_2, window_bounds = array<i64: 1, 8, 14>}, {transform_indices = @transform_3, window_bounds = array<i64: 1, 8, 16>}, {pipeline_mode = #tpu.pipeline_mode<synchronous>, transform_indices = @transform_4, window_bounds = array<i64: 8, 16, 64>}, {pipeline_mode = #tpu.pipeline_mode<synchronous>, transform_indices = @transform_5, window_bounds = array<i64: 5, 128>}, {pipeline_mode = #tpu.pipeline_mode<synchronous>, transform_indices = @transform_6, window_bounds = array<i64: 64, 64>}, {pipeline_mode = #tpu.pipeline_mode<synchronous>, transform_indices = @transform_7, window_bounds = array<i64: 2, 64>}, {pipeline_mode = #tpu.pipeline_mode<synchronous>, transform_indices = @transform_8, window_bounds = array<i64: 64, 256>}, {pipeline_mode = #tpu.pipeline_mode<synchronous>, transform_indices = @transform_9, window_bounds = array<i64: 14, 256>}, {pipeline_mode = #tpu.pipeline_mode<synchronous>, transform_indices = @transform_10, window_bounds = array<i64: 8, 256>}, {pipeline_mode = #tpu.pipeline_mode<synchronous>, transform_indices = @transform_11, window_bounds = array<i64: 1, 256>}, {pipeline_mode = #tpu.pipeline_mode<synchronous>, transform_indices = @transform_12, window_bounds = array<i64: 256, 16>}, {pipeline_mode = #tpu.pipeline_mode<synchronous>, transform_indices = @transform_13, window_bounds = array<i64: 1, 16>}, {pipeline_mode = #tpu.pipeline_mode<synchronous>, transform_indices = @transform_14, window_bounds = array<i64: 69, 64>}, {pipeline_mode = #tpu.pipeline_mode<synchronous>, transform_indices = @transform_15, window_bounds = array<i64: 1, 64>}, {pipeline_mode = #tpu.pipeline_mode<synchronous>, transform_indices = @transform_16, window_bounds = array<i64: 64, 64>}, {pipeline_mode = #tpu.pipeline_mode<synchronous>, transform_indices = @transform_17, window_bounds = array<i64: 1, 64>}, {transform_indices = @transform_18, window_bounds = array<i64: 1, 8, 128>}]} {
    %c0 = arith.constant 0 : index
    %c0_0 = arith.constant 0 : index
    %c0_1 = arith.constant 0 : index
    %0 = vector.load %arg1[%c0, %c0_0, %c0_1] : memref<1x16x5xbf16, #tpu.memory_space<vmem>>, vector<1x16x5xbf16>
    %c0_2 = arith.constant 0 : index
    %c0_3 = arith.constant 0 : index
    %c0_4 = arith.constant 0 : index
    %1 = vector.load %arg2[%c0_2, %c0_3, %c0_4] : memref<1x16x8xf32, #tpu.memory_space<vmem>>, vector<1x16x8xf32>
    %c0_5 = arith.constant 0 : index
    %c0_6 = arith.constant 0 : index
    %c0_7 = arith.constant 0 : index
    %2 = vector.load %arg3[%c0_5, %c0_6, %c0_7] : memref<1x8x14xf32, #tpu.memory_space<vmem>>, vector<1x8x14xf32>
    %c0_8 = arith.constant 0 : index
    %c0_9 = arith.constant 0 : index
    %c0_10 = arith.constant 0 : index
    %3 = vector.load %arg4[%c0_8, %c0_9, %c0_10] : memref<1x8x16xf32, #tpu.memory_space<vmem>>, vector<1x8x16xf32>
    %c0_11 = arith.constant 0 : index
    %c0_12 = arith.constant 0 : index
    %c0_13 = arith.constant 0 : index
    %4 = vector.load %arg5[%c0_11, %c0_12, %c0_13] : memref<8x16x64xf32, #tpu.memory_space<vmem>>, vector<8x16x64xf32>
    %5 = vector.shape_cast %0 : vector<1x16x5xbf16> to vector<16x5xbf16>
    %c0_14 = arith.constant 0 : index
    %c0_15 = arith.constant 0 : index
    %6 = vector.load %arg6[%c0_14, %c0_15] : memref<5x128xbf16, #tpu.memory_space<vmem>>, vector<5x128xbf16>
    %cst = arith.constant dense<0.000000e+00> : vector<16x128xf32>
    %7 = tpu.matmul %5, %6, %cst {dimension_numbers = #tpu.dot_dimension_numbers<[1], [0], [0], [1], [0, 0, 1, 1], [], []>} : vector<16x5xbf16>, vector<5x128xbf16>, vector<16x128xf32> -> vector<16x128xf32>
    %8 = vector.shape_cast %7 : vector<16x128xf32> to vector<1x16x128xf32>
    %9 = vector.extract_strided_slice %8 {offsets = [0, 0, 0], sizes = [1, 8, 64], strides = [1, 1, 1]} : vector<1x16x128xf32> to vector<1x8x64xf32>
    %10 = vector.extract_strided_slice %8 {offsets = [0, 0, 64], sizes = [1, 16, 64], strides = [1, 1, 1]} : vector<1x16x128xf32> to vector<1x16x64xf32>
    %c0_16 = arith.constant 0 : index
    %c0_17 = arith.constant 0 : index
    %11 = vector.load %arg8[%c0_16, %c0_17] : memref<2x64xf32, #tpu.memory_space<vmem>>, vector<1x64xf32>
    %c1 = arith.constant 1 : index
    %c0_18 = arith.constant 0 : index
    %12 = vector.load %arg8[%c1, %c0_18] : memref<2x64xf32, #tpu.memory_space<vmem>>, vector<1x64xf32>
    %13 = vector.shape_cast %9 : vector<1x8x64xf32> to vector<1x8x1x64xf32>
    %14 = vector.shape_cast %10 : vector<1x16x64xf32> to vector<1x1x16x64xf32>
    %15 = vector.broadcast %13 : vector<1x8x1x64xf32> to vector<1x8x16x64xf32>
    %16 = vector.broadcast %14 : vector<1x1x16x64xf32> to vector<1x8x16x64xf32>
    %17 = arith.addf %15, %16 : vector<1x8x16x64xf32>
    %18 = vector.shape_cast %4 : vector<8x16x64xf32> to vector<1x8x16x64xf32>
    %19 = arith.addf %17, %18 : vector<1x8x16x64xf32>
    %20 = vector.shape_cast %11 : vector<1x64xf32> to vector<1x1x1x64xf32>
    %21 = vector.broadcast %20 : vector<1x1x1x64xf32> to vector<1x8x16x64xf32>
    %22 = arith.addf %19, %21 : vector<1x8x16x64xf32>
    %cst_19 = arith.constant 0.000000e+00 : f32
    %23 = vector.broadcast %cst_19 : f32 to vector<1x8x16x64xf32>
    %24 = arith.maximumf %22, %23 : vector<1x8x16x64xf32>
    %25 = arith.truncf %24 : vector<1x8x16x64xf32> to vector<1x8x16x64xbf16>
    %26 = vector.shape_cast %25 : vector<1x8x16x64xbf16> to vector<128x64xbf16>
    %c0_20 = arith.constant 0 : index
    %c0_21 = arith.constant 0 : index
    %27 = vector.load %arg7[%c0_20, %c0_21] : memref<64x64xbf16, #tpu.memory_space<vmem>>, vector<64x64xbf16>
    %cst_22 = arith.constant dense<0.000000e+00> : vector<128x64xf32>
    %28 = tpu.matmul %26, %27, %cst_22 {dimension_numbers = #tpu.dot_dimension_numbers<[1], [0], [0], [1], [0, 0, 1, 1], [], []>} : vector<128x64xbf16>, vector<64x64xbf16>, vector<128x64xf32> -> vector<128x64xf32>
    %29 = vector.broadcast %12 : vector<1x64xf32> to vector<128x64xf32>
    %30 = arith.addf %28, %29 : vector<128x64xf32>
    %31 = arith.truncf %30 : vector<128x64xf32> to vector<128x64xbf16>
    %32 = vector.shape_cast %30 : vector<128x64xf32> to vector<1x8x16x64xf32>
    %33 = tpu.transpose %1, [0, 2, 1] : vector<1x16x8xf32> -> vector<1x8x16xf32>
    %34 = vector.extract_strided_slice %33 {offsets = [0, 0, 0], sizes = [1, 1, 16], strides = [1, 1, 1]} : vector<1x8x16xf32> to vector<1x1x16xf32>
    %35 = vector.extract_strided_slice %33 {offsets = [0, 1, 0], sizes = [1, 1, 16], strides = [1, 1, 1]} : vector<1x8x16xf32> to vector<1x1x16xf32>
    %36 = vector.extract_strided_slice %33 {offsets = [0, 2, 0], sizes = [1, 1, 16], strides = [1, 1, 1]} : vector<1x8x16xf32> to vector<1x1x16xf32>
    %37 = vector.extract_strided_slice %33 {offsets = [0, 3, 0], sizes = [1, 1, 16], strides = [1, 1, 1]} : vector<1x8x16xf32> to vector<1x1x16xf32>
    %38 = vector.extract_strided_slice %33 {offsets = [0, 4, 0], sizes = [1, 1, 16], strides = [1, 1, 1]} : vector<1x8x16xf32> to vector<1x1x16xf32>
    %39 = vector.extract_strided_slice %33 {offsets = [0, 5, 0], sizes = [1, 1, 16], strides = [1, 1, 1]} : vector<1x8x16xf32> to vector<1x1x16xf32>
    %40 = vector.extract_strided_slice %33 {offsets = [0, 6, 0], sizes = [1, 1, 16], strides = [1, 1, 1]} : vector<1x8x16xf32> to vector<1x1x16xf32>
    %41 = vector.extract_strided_slice %1 {offsets = [0, 0, 0], sizes = [1, 8, 1], strides = [1, 1, 1]} : vector<1x16x8xf32> to vector<1x8x1xf32>
    %42 = vector.extract_strided_slice %1 {offsets = [0, 0, 1], sizes = [1, 8, 1], strides = [1, 1, 1]} : vector<1x16x8xf32> to vector<1x8x1xf32>
    %43 = vector.extract_strided_slice %1 {offsets = [0, 0, 2], sizes = [1, 8, 1], strides = [1, 1, 1]} : vector<1x16x8xf32> to vector<1x8x1xf32>
    %44 = vector.extract_strided_slice %1 {offsets = [0, 0, 3], sizes = [1, 8, 1], strides = [1, 1, 1]} : vector<1x16x8xf32> to vector<1x8x1xf32>
    %45 = vector.extract_strided_slice %1 {offsets = [0, 0, 4], sizes = [1, 8, 1], strides = [1, 1, 1]} : vector<1x16x8xf32> to vector<1x8x1xf32>
    %46 = vector.extract_strided_slice %1 {offsets = [0, 0, 5], sizes = [1, 8, 1], strides = [1, 1, 1]} : vector<1x16x8xf32> to vector<1x8x1xf32>
    %47 = vector.extract_strided_slice %1 {offsets = [0, 0, 6], sizes = [1, 8, 1], strides = [1, 1, 1]} : vector<1x16x8xf32> to vector<1x8x1xf32>
    %48 = vector.broadcast %45 : vector<1x8x1xf32> to vector<1x8x16xf32>
    %49 = vector.broadcast %38 : vector<1x1x16xf32> to vector<1x8x16xf32>
    %50 = arith.subf %48, %49 : vector<1x8x16xf32>
    %51 = vector.broadcast %46 : vector<1x8x1xf32> to vector<1x8x16xf32>
    %52 = vector.broadcast %39 : vector<1x1x16xf32> to vector<1x8x16xf32>
    %53 = arith.subf %51, %52 : vector<1x8x16xf32>
    %54 = vector.broadcast %47 : vector<1x8x1xf32> to vector<1x8x16xf32>
    %55 = vector.broadcast %40 : vector<1x1x16xf32> to vector<1x8x16xf32>
    %56 = arith.subf %54, %55 : vector<1x8x16xf32>
    %57 = arith.mulf %50, %50 : vector<1x8x16xf32>
    %58 = arith.mulf %53, %53 : vector<1x8x16xf32>
    %59 = arith.addf %57, %58 : vector<1x8x16xf32>
    %60 = arith.mulf %56, %56 : vector<1x8x16xf32>
    %61 = arith.addf %59, %60 : vector<1x8x16xf32>
    %62 = vector.broadcast %41 : vector<1x8x1xf32> to vector<1x8x16xf32>
    %63 = vector.broadcast %34 : vector<1x1x16xf32> to vector<1x8x16xf32>
    %64 = arith.mulf %62, %63 : vector<1x8x16xf32>
    %65 = vector.broadcast %42 : vector<1x8x1xf32> to vector<1x8x16xf32>
    %66 = vector.broadcast %35 : vector<1x1x16xf32> to vector<1x8x16xf32>
    %67 = arith.mulf %65, %66 : vector<1x8x16xf32>
    %68 = arith.addf %64, %67 : vector<1x8x16xf32>
    %69 = vector.broadcast %43 : vector<1x8x1xf32> to vector<1x8x16xf32>
    %70 = vector.broadcast %36 : vector<1x1x16xf32> to vector<1x8x16xf32>
    %71 = arith.mulf %69, %70 : vector<1x8x16xf32>
    %72 = arith.addf %68, %71 : vector<1x8x16xf32>
    %73 = vector.broadcast %44 : vector<1x8x1xf32> to vector<1x8x16xf32>
    %74 = vector.broadcast %37 : vector<1x1x16xf32> to vector<1x8x16xf32>
    %75 = arith.mulf %73, %74 : vector<1x8x16xf32>
    %76 = arith.addf %72, %75 : vector<1x8x16xf32>
    %77 = arith.mulf %76, %76 : vector<1x8x16xf32>
    %78 = arith.mulf %34, %34 : vector<1x1x16xf32>
    %79 = arith.mulf %35, %35 : vector<1x1x16xf32>
    %80 = arith.addf %78, %79 : vector<1x1x16xf32>
    %81 = arith.mulf %36, %36 : vector<1x1x16xf32>
    %82 = arith.addf %80, %81 : vector<1x1x16xf32>
    %83 = arith.mulf %37, %37 : vector<1x1x16xf32>
    %84 = arith.addf %82, %83 : vector<1x1x16xf32>
    %85 = arith.divf %34, %84 : vector<1x1x16xf32>
    %cst_23 = arith.constant 0.000000e+00 : f32
    %86 = vector.broadcast %cst_23 : f32 to vector<1x1x16xf32>
    %87 = arith.subf %86, %35 : vector<1x1x16xf32>
    %88 = arith.divf %87, %84 : vector<1x1x16xf32>
    %cst_24 = arith.constant 0.000000e+00 : f32
    %89 = vector.broadcast %cst_24 : f32 to vector<1x1x16xf32>
    %90 = arith.subf %89, %36 : vector<1x1x16xf32>
    %91 = arith.divf %90, %84 : vector<1x1x16xf32>
    %cst_25 = arith.constant 0.000000e+00 : f32
    %92 = vector.broadcast %cst_25 : f32 to vector<1x1x16xf32>
    %93 = arith.subf %92, %37 : vector<1x1x16xf32>
    %94 = arith.divf %93, %84 : vector<1x1x16xf32>
    %95 = vector.broadcast %41 : vector<1x8x1xf32> to vector<1x8x16xf32>
    %96 = vector.broadcast %34 : vector<1x1x16xf32> to vector<1x8x16xf32>
    %97 = arith.mulf %95, %96 : vector<1x8x16xf32>
    %98 = vector.broadcast %42 : vector<1x8x1xf32> to vector<1x8x16xf32>
    %99 = vector.broadcast %35 : vector<1x1x16xf32> to vector<1x8x16xf32>
    %100 = arith.mulf %98, %99 : vector<1x8x16xf32>
    %101 = arith.subf %97, %100 : vector<1x8x16xf32>
    %102 = vector.broadcast %43 : vector<1x8x1xf32> to vector<1x8x16xf32>
    %103 = vector.broadcast %36 : vector<1x1x16xf32> to vector<1x8x16xf32>
    %104 = arith.mulf %102, %103 : vector<1x8x16xf32>
    %105 = arith.subf %101, %104 : vector<1x8x16xf32>
    %106 = vector.broadcast %44 : vector<1x8x1xf32> to vector<1x8x16xf32>
    %107 = vector.broadcast %37 : vector<1x1x16xf32> to vector<1x8x16xf32>
    %108 = arith.mulf %106, %107 : vector<1x8x16xf32>
    %109 = arith.subf %105, %108 : vector<1x8x16xf32>
    %110 = vector.broadcast %41 : vector<1x8x1xf32> to vector<1x8x16xf32>
    %111 = vector.broadcast %35 : vector<1x1x16xf32> to vector<1x8x16xf32>
    %112 = arith.mulf %110, %111 : vector<1x8x16xf32>
    %113 = vector.broadcast %42 : vector<1x8x1xf32> to vector<1x8x16xf32>
    %114 = vector.broadcast %34 : vector<1x1x16xf32> to vector<1x8x16xf32>
    %115 = arith.mulf %113, %114 : vector<1x8x16xf32>
    %116 = arith.addf %112, %115 : vector<1x8x16xf32>
    %117 = vector.broadcast %43 : vector<1x8x1xf32> to vector<1x8x16xf32>
    %118 = vector.broadcast %37 : vector<1x1x16xf32> to vector<1x8x16xf32>
    %119 = arith.mulf %117, %118 : vector<1x8x16xf32>
    %120 = arith.addf %116, %119 : vector<1x8x16xf32>
    %121 = vector.broadcast %44 : vector<1x8x1xf32> to vector<1x8x16xf32>
    %122 = vector.broadcast %36 : vector<1x1x16xf32> to vector<1x8x16xf32>
    %123 = arith.mulf %121, %122 : vector<1x8x16xf32>
    %124 = arith.subf %120, %123 : vector<1x8x16xf32>
    %125 = vector.broadcast %41 : vector<1x8x1xf32> to vector<1x8x16xf32>
    %126 = vector.broadcast %36 : vector<1x1x16xf32> to vector<1x8x16xf32>
    %127 = arith.mulf %125, %126 : vector<1x8x16xf32>
    %128 = vector.broadcast %42 : vector<1x8x1xf32> to vector<1x8x16xf32>
    %129 = vector.broadcast %37 : vector<1x1x16xf32> to vector<1x8x16xf32>
    %130 = arith.mulf %128, %129 : vector<1x8x16xf32>
    %131 = arith.subf %127, %130 : vector<1x8x16xf32>
    %132 = vector.broadcast %43 : vector<1x8x1xf32> to vector<1x8x16xf32>
    %133 = vector.broadcast %34 : vector<1x1x16xf32> to vector<1x8x16xf32>
    %134 = arith.mulf %132, %133 : vector<1x8x16xf32>
    %135 = arith.addf %131, %134 : vector<1x8x16xf32>
    %136 = vector.broadcast %44 : vector<1x8x1xf32> to vector<1x8x16xf32>
    %137 = vector.broadcast %35 : vector<1x1x16xf32> to vector<1x8x16xf32>
    %138 = arith.mulf %136, %137 : vector<1x8x16xf32>
    %139 = arith.addf %135, %138 : vector<1x8x16xf32>
    %140 = vector.broadcast %41 : vector<1x8x1xf32> to vector<1x8x16xf32>
    %141 = vector.broadcast %37 : vector<1x1x16xf32> to vector<1x8x16xf32>
    %142 = arith.mulf %140, %141 : vector<1x8x16xf32>
    %143 = vector.broadcast %42 : vector<1x8x1xf32> to vector<1x8x16xf32>
    %144 = vector.broadcast %36 : vector<1x1x16xf32> to vector<1x8x16xf32>
    %145 = arith.mulf %143, %144 : vector<1x8x16xf32>
    %146 = arith.addf %142, %145 : vector<1x8x16xf32>
    %147 = vector.broadcast %43 : vector<1x8x1xf32> to vector<1x8x16xf32>
    %148 = vector.broadcast %35 : vector<1x1x16xf32> to vector<1x8x16xf32>
    %149 = arith.mulf %147, %148 : vector<1x8x16xf32>
    %150 = arith.subf %146, %149 : vector<1x8x16xf32>
    %151 = vector.broadcast %44 : vector<1x8x1xf32> to vector<1x8x16xf32>
    %152 = vector.broadcast %34 : vector<1x1x16xf32> to vector<1x8x16xf32>
    %153 = arith.mulf %151, %152 : vector<1x8x16xf32>
    %154 = arith.addf %150, %153 : vector<1x8x16xf32>
    %155 = vector.broadcast %85 : vector<1x1x16xf32> to vector<1x8x16xf32>
    %156 = arith.mulf %155, %109 : vector<1x8x16xf32>
    %157 = vector.broadcast %88 : vector<1x1x16xf32> to vector<1x8x16xf32>
    %158 = arith.mulf %157, %124 : vector<1x8x16xf32>
    %159 = arith.subf %156, %158 : vector<1x8x16xf32>
    %160 = vector.broadcast %91 : vector<1x1x16xf32> to vector<1x8x16xf32>
    %161 = arith.mulf %160, %139 : vector<1x8x16xf32>
    %162 = arith.subf %159, %161 : vector<1x8x16xf32>
    %163 = vector.broadcast %94 : vector<1x1x16xf32> to vector<1x8x16xf32>
    %164 = arith.mulf %163, %154 : vector<1x8x16xf32>
    %165 = arith.subf %162, %164 : vector<1x8x16xf32>
    %166 = vector.broadcast %85 : vector<1x1x16xf32> to vector<1x8x16xf32>
    %167 = arith.mulf %166, %124 : vector<1x8x16xf32>
    %168 = vector.broadcast %88 : vector<1x1x16xf32> to vector<1x8x16xf32>
    %169 = arith.mulf %168, %109 : vector<1x8x16xf32>
    %170 = arith.addf %167, %169 : vector<1x8x16xf32>
    %171 = vector.broadcast %91 : vector<1x1x16xf32> to vector<1x8x16xf32>
    %172 = arith.mulf %171, %154 : vector<1x8x16xf32>
    %173 = arith.addf %170, %172 : vector<1x8x16xf32>
    %174 = vector.broadcast %94 : vector<1x1x16xf32> to vector<1x8x16xf32>
    %175 = arith.mulf %174, %139 : vector<1x8x16xf32>
    %176 = arith.subf %173, %175 : vector<1x8x16xf32>
    %177 = vector.broadcast %85 : vector<1x1x16xf32> to vector<1x8x16xf32>
    %178 = arith.mulf %177, %139 : vector<1x8x16xf32>
    %179 = vector.broadcast %88 : vector<1x1x16xf32> to vector<1x8x16xf32>
    %180 = arith.mulf %179, %154 : vector<1x8x16xf32>
    %181 = arith.subf %178, %180 : vector<1x8x16xf32>
    %182 = vector.broadcast %91 : vector<1x1x16xf32> to vector<1x8x16xf32>
    %183 = arith.mulf %182, %109 : vector<1x8x16xf32>
    %184 = arith.addf %181, %183 : vector<1x8x16xf32>
    %185 = vector.broadcast %94 : vector<1x1x16xf32> to vector<1x8x16xf32>
    %186 = arith.mulf %185, %124 : vector<1x8x16xf32>
    %187 = arith.addf %184, %186 : vector<1x8x16xf32>
    %188 = vector.broadcast %85 : vector<1x1x16xf32> to vector<1x8x16xf32>
    %189 = arith.mulf %188, %154 : vector<1x8x16xf32>
    %190 = vector.broadcast %88 : vector<1x1x16xf32> to vector<1x8x16xf32>
    %191 = arith.mulf %190, %139 : vector<1x8x16xf32>
    %192 = arith.addf %189, %191 : vector<1x8x16xf32>
    %193 = vector.broadcast %91 : vector<1x1x16xf32> to vector<1x8x16xf32>
    %194 = arith.mulf %193, %124 : vector<1x8x16xf32>
    %195 = arith.subf %192, %194 : vector<1x8x16xf32>
    %196 = vector.broadcast %94 : vector<1x1x16xf32> to vector<1x8x16xf32>
    %197 = arith.mulf %196, %109 : vector<1x8x16xf32>
    %198 = arith.addf %195, %197 : vector<1x8x16xf32>
    %199 = arith.truncf %2 : vector<1x8x14xf32> to vector<1x8x14xbf16>
    %200 = vector.shape_cast %199 : vector<1x8x14xbf16> to vector<8x14xbf16>
    %c0_26 = arith.constant 0 : index
    %c0_27 = arith.constant 0 : index
    %201 = vector.load %arg10[%c0_26, %c0_27] : memref<14x256xbf16, #tpu.memory_space<vmem>>, vector<14x256xbf16>
    %cst_28 = arith.constant dense<0.000000e+00> : vector<8x256xf32>
    %202 = tpu.matmul %200, %201, %cst_28 {dimension_numbers = #tpu.dot_dimension_numbers<[1], [0], [0], [1], [0, 0, 1, 1], [], []>} : vector<8x14xbf16>, vector<14x256xbf16>, vector<8x256xf32> -> vector<8x256xf32>
    %203 = vector.shape_cast %202 : vector<8x256xf32> to vector<1x8x256xf32>
    %c0_29 = arith.constant 0 : index
    %c0_30 = arith.constant 0 : index
    %204 = vector.load %arg9[%c0_29, %c0_30] : memref<64x256xbf16, #tpu.memory_space<vmem>>, vector<64x256xbf16>
    %cst_31 = arith.constant dense<0.000000e+00> : vector<128x256xf32>
    %205 = tpu.matmul %31, %204, %cst_31 {dimension_numbers = #tpu.dot_dimension_numbers<[1], [0], [0], [1], [0, 0, 1, 1], [], []>} : vector<128x64xbf16>, vector<64x256xbf16>, vector<128x256xf32> -> vector<128x256xf32>
    %206 = vector.shape_cast %205 : vector<128x256xf32> to vector<1x8x16x256xf32>
    %207 = vector.shape_cast %203 : vector<1x8x256xf32> to vector<1x8x1x256xf32>
    %208 = vector.broadcast %207 : vector<1x8x1x256xf32> to vector<1x8x16x256xf32>
    %209 = arith.addf %206, %208 : vector<1x8x16x256xf32>
    %c0_32 = arith.constant 0 : index
    %c0_33 = arith.constant 0 : index
    %210 = vector.load %arg12[%c0_32, %c0_33] : memref<1x256xf32, #tpu.memory_space<vmem>>, vector<1x256xf32>
    %211 = vector.shape_cast %210 : vector<1x256xf32> to vector<1x1x1x256xf32>
    %212 = vector.broadcast %211 : vector<1x1x1x256xf32> to vector<1x8x16x256xf32>
    %213 = arith.addf %209, %212 : vector<1x8x16x256xf32>
    %c0_34 = arith.constant 0 : index
    %c0_35 = arith.constant 0 : index
    %214 = vector.load %arg11[%c0_34, %c0_35] : memref<8x256xf32, #tpu.memory_space<vmem>>, vector<8x256xf32>
    %215 = vector.shape_cast %61 : vector<1x8x16xf32> to vector<1x8x16x1xf32>
    %216 = vector.extract_strided_slice %214 {offsets = [0, 0], sizes = [1, 256], strides = [1, 1]} : vector<8x256xf32> to vector<1x256xf32>
    %217 = vector.shape_cast %216 : vector<1x256xf32> to vector<1x1x1x256xf32>
    %218 = vector.broadcast %215 : vector<1x8x16x1xf32> to vector<1x8x16x256xf32>
    %219 = vector.broadcast %217 : vector<1x1x1x256xf32> to vector<1x8x16x256xf32>
    %220 = arith.mulf %218, %219 : vector<1x8x16x256xf32>
    %221 = arith.addf %213, %220 : vector<1x8x16x256xf32>
    %222 = vector.shape_cast %77 : vector<1x8x16xf32> to vector<1x8x16x1xf32>
    %223 = vector.extract_strided_slice %214 {offsets = [1, 0], sizes = [1, 256], strides = [1, 1]} : vector<8x256xf32> to vector<1x256xf32>
    %224 = vector.shape_cast %223 : vector<1x256xf32> to vector<1x1x1x256xf32>
    %225 = vector.broadcast %222 : vector<1x8x16x1xf32> to vector<1x8x16x256xf32>
    %226 = vector.broadcast %224 : vector<1x1x1x256xf32> to vector<1x8x16x256xf32>
    %227 = arith.mulf %225, %226 : vector<1x8x16x256xf32>
    %228 = arith.addf %221, %227 : vector<1x8x16x256xf32>
    %229 = vector.shape_cast %165 : vector<1x8x16xf32> to vector<1x8x16x1xf32>
    %230 = vector.extract_strided_slice %214 {offsets = [2, 0], sizes = [1, 256], strides = [1, 1]} : vector<8x256xf32> to vector<1x256xf32>
    %231 = vector.shape_cast %230 : vector<1x256xf32> to vector<1x1x1x256xf32>
    %232 = vector.broadcast %229 : vector<1x8x16x1xf32> to vector<1x8x16x256xf32>
    %233 = vector.broadcast %231 : vector<1x1x1x256xf32> to vector<1x8x16x256xf32>
    %234 = arith.mulf %232, %233 : vector<1x8x16x256xf32>
    %235 = arith.addf %228, %234 : vector<1x8x16x256xf32>
    %236 = vector.shape_cast %176 : vector<1x8x16xf32> to vector<1x8x16x1xf32>
    %237 = vector.extract_strided_slice %214 {offsets = [3, 0], sizes = [1, 256], strides = [1, 1]} : vector<8x256xf32> to vector<1x256xf32>
    %238 = vector.shape_cast %237 : vector<1x256xf32> to vector<1x1x1x256xf32>
    %239 = vector.broadcast %236 : vector<1x8x16x1xf32> to vector<1x8x16x256xf32>
    %240 = vector.broadcast %238 : vector<1x1x1x256xf32> to vector<1x8x16x256xf32>
    %241 = arith.mulf %239, %240 : vector<1x8x16x256xf32>
    %242 = arith.addf %235, %241 : vector<1x8x16x256xf32>
    %243 = vector.shape_cast %187 : vector<1x8x16xf32> to vector<1x8x16x1xf32>
    %244 = vector.extract_strided_slice %214 {offsets = [4, 0], sizes = [1, 256], strides = [1, 1]} : vector<8x256xf32> to vector<1x256xf32>
    %245 = vector.shape_cast %244 : vector<1x256xf32> to vector<1x1x1x256xf32>
    %246 = vector.broadcast %243 : vector<1x8x16x1xf32> to vector<1x8x16x256xf32>
    %247 = vector.broadcast %245 : vector<1x1x1x256xf32> to vector<1x8x16x256xf32>
    %248 = arith.mulf %246, %247 : vector<1x8x16x256xf32>
    %249 = arith.addf %242, %248 : vector<1x8x16x256xf32>
    %250 = vector.shape_cast %198 : vector<1x8x16xf32> to vector<1x8x16x1xf32>
    %251 = vector.extract_strided_slice %214 {offsets = [5, 0], sizes = [1, 256], strides = [1, 1]} : vector<8x256xf32> to vector<1x256xf32>
    %252 = vector.shape_cast %251 : vector<1x256xf32> to vector<1x1x1x256xf32>
    %253 = vector.broadcast %250 : vector<1x8x16x1xf32> to vector<1x8x16x256xf32>
    %254 = vector.broadcast %252 : vector<1x1x1x256xf32> to vector<1x8x16x256xf32>
    %255 = arith.mulf %253, %254 : vector<1x8x16x256xf32>
    %256 = arith.addf %249, %255 : vector<1x8x16x256xf32>
    %cst_36 = arith.constant 0.000000e+00 : f32
    %257 = vector.broadcast %cst_36 : f32 to vector<1x8x16x256xf32>
    %258 = arith.maximumf %256, %257 : vector<1x8x16x256xf32>
    %259 = arith.truncf %258 : vector<1x8x16x256xf32> to vector<1x8x16x256xbf16>
    %260 = vector.shape_cast %259 : vector<1x8x16x256xbf16> to vector<128x256xbf16>
    %c0_37 = arith.constant 0 : index
    %c0_38 = arith.constant 0 : index
    %261 = vector.load %arg13[%c0_37, %c0_38] : memref<256x16xbf16, #tpu.memory_space<vmem>>, vector<256x16xbf16>
    %cst_39 = arith.constant dense<0.000000e+00> : vector<128x16xf32>
    %262 = tpu.matmul %260, %261, %cst_39 {dimension_numbers = #tpu.dot_dimension_numbers<[1], [0], [0], [1], [0, 0, 1, 1], [], []>} : vector<128x256xbf16>, vector<256x16xbf16>, vector<128x16xf32> -> vector<128x16xf32>
    %c0_40 = arith.constant 0 : index
    %c0_41 = arith.constant 0 : index
    %263 = vector.load %arg14[%c0_40, %c0_41] : memref<1x16xf32, #tpu.memory_space<vmem>>, vector<1x16xf32>
    %264 = vector.broadcast %263 : vector<1x16xf32> to vector<128x16xf32>
    %265 = arith.addf %262, %264 : vector<128x16xf32>
    %266 = vector.shape_cast %265 : vector<128x16xf32> to vector<1x8x16x16xf32>
    %267 = vector.extract_strided_slice %266 {offsets = [0, 0, 0, 0], sizes = [1, 8, 16, 1], strides = [1, 1, 1, 1]} : vector<1x8x16x16xf32> to vector<1x8x16x1xf32>
    %268 = vector.shape_cast %267 : vector<1x8x16x1xf32> to vector<1x8x16xf32>
    %269 = arith.addf %268, %3 : vector<1x8x16xf32>
    %cst_42 = arith.constant dense<0xFF800000> : vector<1x8xf32>
    %270 = vector.multi_reduction <maximumf>, %269, %cst_42 [2] : vector<1x8x16xf32> to vector<1x8xf32>
    %271 = vector.shape_cast %270 : vector<1x8xf32> to vector<1x8x1xf32>
    %272 = vector.broadcast %271 : vector<1x8x1xf32> to vector<1x8x16xf32>
    %273 = arith.subf %269, %272 : vector<1x8x16xf32>
    %274 = math.exp %273 : vector<1x8x16xf32>
    %cst_43 = arith.constant dense<0.000000e+00> : vector<1x8xf32>
    %275 = vector.multi_reduction <add>, %274, %cst_43 [2] : vector<1x8x16xf32> to vector<1x8xf32>
    %276 = vector.shape_cast %275 : vector<1x8xf32> to vector<1x8x1xf32>
    %277 = vector.broadcast %276 : vector<1x8x1xf32> to vector<1x8x16xf32>
    %278 = arith.divf %274, %277 : vector<1x8x16xf32>
    %279 = vector.shape_cast %278 : vector<1x8x16xf32> to vector<1x8x16x1xf32>
    %280 = tpu.iota {dimensions = array<i32: 0>} : vector<16x1xi32>
    %c12_i32 = arith.constant 12 : i32
    %281 = vector.broadcast %c12_i32 : i32 to vector<16x1xi32>
    %282 = arith.cmpi slt, %280, %281 : vector<16x1xi32>
    %283 = arith.extui %282 : vector<16x1xi1> to vector<16x1xi32>
    %284 = arith.sitofp %283 : vector<16x1xi32> to vector<16x1xf32>
    %285 = vector.shape_cast %284 : vector<16x1xf32> to vector<1x1x16x1xf32>
    %286 = vector.broadcast %285 : vector<1x1x16x1xf32> to vector<1x8x16x64xf32>
    %287 = arith.mulf %32, %286 : vector<1x8x16x64xf32>
    %cst_44 = arith.constant dense<0.000000e+00> : vector<1x8x64xf32>
    %288 = vector.multi_reduction <add>, %287, %cst_44 [2] : vector<1x8x16x64xf32> to vector<1x8x64xf32>
    %289 = vector.extract_strided_slice %0 {offsets = [0, 0, 0], sizes = [1, 8, 5], strides = [1, 1, 1]} : vector<1x16x5xbf16> to vector<1x8x5xbf16>
    %290 = arith.truncf %288 : vector<1x8x64xf32> to vector<1x8x64xbf16>
    %291 = tpu.concatenate %289, %290 in 2 : vector<1x8x5xbf16>, vector<1x8x64xbf16> -> vector<1x8x69xbf16>
    %292 = vector.shape_cast %291 : vector<1x8x69xbf16> to vector<8x69xbf16>
    %c0_45 = arith.constant 0 : index
    %c0_46 = arith.constant 0 : index
    %293 = vector.load %arg15[%c0_45, %c0_46] : memref<69x64xbf16, #tpu.memory_space<vmem>>, vector<69x64xbf16>
    %cst_47 = arith.constant dense<0.000000e+00> : vector<8x64xf32>
    %294 = tpu.matmul %292, %293, %cst_47 {dimension_numbers = #tpu.dot_dimension_numbers<[1], [0], [0], [1], [0, 0, 1, 1], [], []>} : vector<8x69xbf16>, vector<69x64xbf16>, vector<8x64xf32> -> vector<8x64xf32>
    %c0_48 = arith.constant 0 : index
    %c0_49 = arith.constant 0 : index
    %295 = vector.load %arg16[%c0_48, %c0_49] : memref<1x64xf32, #tpu.memory_space<vmem>>, vector<1x64xf32>
    %296 = vector.broadcast %295 : vector<1x64xf32> to vector<8x64xf32>
    %297 = arith.addf %294, %296 : vector<8x64xf32>
    %cst_50 = arith.constant 0.000000e+00 : f32
    %298 = vector.broadcast %cst_50 : f32 to vector<8x64xf32>
    %299 = arith.maximumf %297, %298 : vector<8x64xf32>
    %300 = arith.truncf %299 : vector<8x64xf32> to vector<8x64xbf16>
    %c0_51 = arith.constant 0 : index
    %c0_52 = arith.constant 0 : index
    %301 = vector.load %arg17[%c0_51, %c0_52] : memref<64x64xbf16, #tpu.memory_space<vmem>>, vector<64x64xbf16>
    %cst_53 = arith.constant dense<0.000000e+00> : vector<8x64xf32>
    %302 = tpu.matmul %300, %301, %cst_53 {dimension_numbers = #tpu.dot_dimension_numbers<[1], [0], [0], [1], [0, 0, 1, 1], [], []>} : vector<8x64xbf16>, vector<64x64xbf16>, vector<8x64xf32> -> vector<8x64xf32>
    %c0_54 = arith.constant 0 : index
    %c0_55 = arith.constant 0 : index
    %303 = vector.load %arg18[%c0_54, %c0_55] : memref<1x64xf32, #tpu.memory_space<vmem>>, vector<1x64xf32>
    %304 = vector.broadcast %303 : vector<1x64xf32> to vector<8x64xf32>
    %305 = arith.addf %302, %304 : vector<8x64xf32>
    %306 = vector.shape_cast %305 : vector<8x64xf32> to vector<1x8x64xf32>
    %307 = vector.extract_strided_slice %266 {offsets = [0, 0, 0, 2], sizes = [1, 8, 16, 1], strides = [1, 1, 1, 1]} : vector<1x8x16x16xf32> to vector<1x8x16x1xf32>
    %308 = vector.shape_cast %307 : vector<1x8x16x1xf32> to vector<1x8x16xf32>
    %309 = arith.negf %308 : vector<1x8x16xf32>
    %310 = math.exp %309 : vector<1x8x16xf32>
    %cst_56 = arith.constant 1.000000e+00 : f32
    %311 = vector.broadcast %cst_56 : f32 to vector<1x8x16xf32>
    %312 = arith.addf %311, %310 : vector<1x8x16xf32>
    %313 = arith.divf %311, %312 : vector<1x8x16xf32>
    %314 = vector.extract_strided_slice %266 {offsets = [0, 0, 0, 3], sizes = [1, 8, 16, 1], strides = [1, 1, 1, 1]} : vector<1x8x16x16xf32> to vector<1x8x16x1xf32>
    %315 = vector.shape_cast %314 : vector<1x8x16x1xf32> to vector<1x8x16xf32>
    %316 = arith.negf %315 : vector<1x8x16xf32>
    %317 = math.exp %316 : vector<1x8x16xf32>
    %cst_57 = arith.constant 1.000000e+00 : f32
    %318 = vector.broadcast %cst_57 : f32 to vector<1x8x16xf32>
    %319 = arith.addf %318, %317 : vector<1x8x16xf32>
    %320 = arith.divf %318, %319 : vector<1x8x16xf32>
    %321 = vector.extract_strided_slice %266 {offsets = [0, 0, 0, 4], sizes = [1, 8, 16, 1], strides = [1, 1, 1, 1]} : vector<1x8x16x16xf32> to vector<1x8x16x1xf32>
    %322 = vector.shape_cast %321 : vector<1x8x16x1xf32> to vector<1x8x16xf32>
    %323 = arith.negf %322 : vector<1x8x16xf32>
    %324 = math.exp %323 : vector<1x8x16xf32>
    %cst_58 = arith.constant 1.000000e+00 : f32
    %325 = vector.broadcast %cst_58 : f32 to vector<1x8x16xf32>
    %326 = arith.addf %325, %324 : vector<1x8x16xf32>
    %327 = arith.divf %325, %326 : vector<1x8x16xf32>
    %328 = vector.extract_strided_slice %266 {offsets = [0, 0, 0, 5], sizes = [1, 8, 16, 1], strides = [1, 1, 1, 1]} : vector<1x8x16x16xf32> to vector<1x8x16x1xf32>
    %329 = vector.shape_cast %328 : vector<1x8x16x1xf32> to vector<1x8x16xf32>
    %330 = arith.negf %329 : vector<1x8x16xf32>
    %331 = math.exp %330 : vector<1x8x16xf32>
    %cst_59 = arith.constant 1.000000e+00 : f32
    %332 = vector.broadcast %cst_59 : f32 to vector<1x8x16xf32>
    %333 = arith.addf %332, %331 : vector<1x8x16xf32>
    %334 = arith.divf %332, %333 : vector<1x8x16xf32>
    %335 = vector.broadcast %85 : vector<1x1x16xf32> to vector<1x8x16xf32>
    %336 = arith.mulf %313, %335 : vector<1x8x16xf32>
    %337 = vector.broadcast %88 : vector<1x1x16xf32> to vector<1x8x16xf32>
    %338 = arith.mulf %320, %337 : vector<1x8x16xf32>
    %339 = arith.subf %336, %338 : vector<1x8x16xf32>
    %340 = vector.broadcast %91 : vector<1x1x16xf32> to vector<1x8x16xf32>
    %341 = arith.mulf %327, %340 : vector<1x8x16xf32>
    %342 = arith.subf %339, %341 : vector<1x8x16xf32>
    %343 = vector.broadcast %94 : vector<1x1x16xf32> to vector<1x8x16xf32>
    %344 = arith.mulf %334, %343 : vector<1x8x16xf32>
    %345 = arith.subf %342, %344 : vector<1x8x16xf32>
    %346 = vector.broadcast %88 : vector<1x1x16xf32> to vector<1x8x16xf32>
    %347 = arith.mulf %313, %346 : vector<1x8x16xf32>
    %348 = vector.broadcast %85 : vector<1x1x16xf32> to vector<1x8x16xf32>
    %349 = arith.mulf %320, %348 : vector<1x8x16xf32>
    %350 = arith.addf %347, %349 : vector<1x8x16xf32>
    %351 = vector.broadcast %94 : vector<1x1x16xf32> to vector<1x8x16xf32>
    %352 = arith.mulf %327, %351 : vector<1x8x16xf32>
    %353 = arith.addf %350, %352 : vector<1x8x16xf32>
    %354 = vector.broadcast %91 : vector<1x1x16xf32> to vector<1x8x16xf32>
    %355 = arith.mulf %334, %354 : vector<1x8x16xf32>
    %356 = arith.subf %353, %355 : vector<1x8x16xf32>
    %357 = vector.broadcast %91 : vector<1x1x16xf32> to vector<1x8x16xf32>
    %358 = arith.mulf %313, %357 : vector<1x8x16xf32>
    %359 = vector.broadcast %94 : vector<1x1x16xf32> to vector<1x8x16xf32>
    %360 = arith.mulf %320, %359 : vector<1x8x16xf32>
    %361 = arith.subf %358, %360 : vector<1x8x16xf32>
    %362 = vector.broadcast %85 : vector<1x1x16xf32> to vector<1x8x16xf32>
    %363 = arith.mulf %327, %362 : vector<1x8x16xf32>
    %364 = arith.addf %361, %363 : vector<1x8x16xf32>
    %365 = vector.broadcast %88 : vector<1x1x16xf32> to vector<1x8x16xf32>
    %366 = arith.mulf %334, %365 : vector<1x8x16xf32>
    %367 = arith.addf %364, %366 : vector<1x8x16xf32>
    %368 = vector.broadcast %94 : vector<1x1x16xf32> to vector<1x8x16xf32>
    %369 = arith.mulf %313, %368 : vector<1x8x16xf32>
    %370 = vector.broadcast %91 : vector<1x1x16xf32> to vector<1x8x16xf32>
    %371 = arith.mulf %320, %370 : vector<1x8x16xf32>
    %372 = arith.addf %369, %371 : vector<1x8x16xf32>
    %373 = vector.broadcast %88 : vector<1x1x16xf32> to vector<1x8x16xf32>
    %374 = arith.mulf %327, %373 : vector<1x8x16xf32>
    %375 = arith.subf %372, %374 : vector<1x8x16xf32>
    %376 = vector.broadcast %85 : vector<1x1x16xf32> to vector<1x8x16xf32>
    %377 = arith.mulf %334, %376 : vector<1x8x16xf32>
    %378 = arith.addf %375, %377 : vector<1x8x16xf32>
    %379 = vector.broadcast %34 : vector<1x1x16xf32> to vector<1x8x16xf32>
    %380 = arith.mulf %379, %345 : vector<1x8x16xf32>
    %381 = vector.broadcast %35 : vector<1x1x16xf32> to vector<1x8x16xf32>
    %382 = arith.mulf %381, %356 : vector<1x8x16xf32>
    %383 = arith.subf %380, %382 : vector<1x8x16xf32>
    %384 = vector.broadcast %36 : vector<1x1x16xf32> to vector<1x8x16xf32>
    %385 = arith.mulf %384, %367 : vector<1x8x16xf32>
    %386 = arith.subf %383, %385 : vector<1x8x16xf32>
    %387 = vector.broadcast %37 : vector<1x1x16xf32> to vector<1x8x16xf32>
    %388 = arith.mulf %387, %378 : vector<1x8x16xf32>
    %389 = arith.subf %386, %388 : vector<1x8x16xf32>
    %390 = vector.broadcast %34 : vector<1x1x16xf32> to vector<1x8x16xf32>
    %391 = arith.mulf %390, %356 : vector<1x8x16xf32>
    %392 = vector.broadcast %35 : vector<1x1x16xf32> to vector<1x8x16xf32>
    %393 = arith.mulf %392, %345 : vector<1x8x16xf32>
    %394 = arith.addf %391, %393 : vector<1x8x16xf32>
    %395 = vector.broadcast %36 : vector<1x1x16xf32> to vector<1x8x16xf32>
    %396 = arith.mulf %395, %378 : vector<1x8x16xf32>
    %397 = arith.addf %394, %396 : vector<1x8x16xf32>
    %398 = vector.broadcast %37 : vector<1x1x16xf32> to vector<1x8x16xf32>
    %399 = arith.mulf %398, %367 : vector<1x8x16xf32>
    %400 = arith.subf %397, %399 : vector<1x8x16xf32>
    %401 = vector.broadcast %34 : vector<1x1x16xf32> to vector<1x8x16xf32>
    %402 = arith.mulf %401, %367 : vector<1x8x16xf32>
    %403 = vector.broadcast %35 : vector<1x1x16xf32> to vector<1x8x16xf32>
    %404 = arith.mulf %403, %378 : vector<1x8x16xf32>
    %405 = arith.subf %402, %404 : vector<1x8x16xf32>
    %406 = vector.broadcast %36 : vector<1x1x16xf32> to vector<1x8x16xf32>
    %407 = arith.mulf %406, %345 : vector<1x8x16xf32>
    %408 = arith.addf %405, %407 : vector<1x8x16xf32>
    %409 = vector.broadcast %37 : vector<1x1x16xf32> to vector<1x8x16xf32>
    %410 = arith.mulf %409, %356 : vector<1x8x16xf32>
    %411 = arith.addf %408, %410 : vector<1x8x16xf32>
    %412 = vector.broadcast %34 : vector<1x1x16xf32> to vector<1x8x16xf32>
    %413 = arith.mulf %412, %378 : vector<1x8x16xf32>
    %414 = vector.broadcast %35 : vector<1x1x16xf32> to vector<1x8x16xf32>
    %415 = arith.mulf %414, %367 : vector<1x8x16xf32>
    %416 = arith.addf %413, %415 : vector<1x8x16xf32>
    %417 = vector.broadcast %36 : vector<1x1x16xf32> to vector<1x8x16xf32>
    %418 = arith.mulf %417, %356 : vector<1x8x16xf32>
    %419 = arith.subf %416, %418 : vector<1x8x16xf32>
    %420 = vector.broadcast %37 : vector<1x1x16xf32> to vector<1x8x16xf32>
    %421 = arith.mulf %420, %345 : vector<1x8x16xf32>
    %422 = arith.addf %419, %421 : vector<1x8x16xf32>
    %423 = arith.mulf %389, %278 : vector<1x8x16xf32>
    %cst_60 = arith.constant dense<0.000000e+00> : vector<1x8xf32>
    %424 = vector.multi_reduction <add>, %423, %cst_60 [2] : vector<1x8x16xf32> to vector<1x8xf32>
    %425 = vector.shape_cast %424 : vector<1x8xf32> to vector<1x8x1xf32>
    %426 = arith.mulf %400, %278 : vector<1x8x16xf32>
    %cst_61 = arith.constant dense<0.000000e+00> : vector<1x8xf32>
    %427 = vector.multi_reduction <add>, %426, %cst_61 [2] : vector<1x8x16xf32> to vector<1x8xf32>
    %428 = vector.shape_cast %427 : vector<1x8xf32> to vector<1x8x1xf32>
    %429 = arith.mulf %411, %278 : vector<1x8x16xf32>
    %cst_62 = arith.constant dense<0.000000e+00> : vector<1x8xf32>
    %430 = vector.multi_reduction <add>, %429, %cst_62 [2] : vector<1x8x16xf32> to vector<1x8xf32>
    %431 = vector.shape_cast %430 : vector<1x8xf32> to vector<1x8x1xf32>
    %432 = arith.mulf %422, %278 : vector<1x8x16xf32>
    %cst_63 = arith.constant dense<0.000000e+00> : vector<1x8xf32>
    %433 = vector.multi_reduction <add>, %432, %cst_63 [2] : vector<1x8x16xf32> to vector<1x8xf32>
    %434 = vector.shape_cast %433 : vector<1x8xf32> to vector<1x8x1xf32>
    %cst_64 = arith.constant dense<0xFF800000> : vector<1x8xf32>
    %435 = vector.multi_reduction <maximumf>, %3, %cst_64 [2] : vector<1x8x16xf32> to vector<1x8xf32>
    %436 = vector.shape_cast %435 : vector<1x8xf32> to vector<1x8x1xf32>
    %cst_65 = arith.constant -5.000000e+08 : f32
    %437 = vector.broadcast %cst_65 : f32 to vector<1x8x1xf32>
    %438 = arith.cmpf ogt, %436, %437 : vector<1x8x1xf32>
    %cst_66 = arith.constant 1.000000e+00 : f32
    %439 = vector.broadcast %cst_66 : f32 to vector<1x8x1xf32>
    %440 = arith.select %438, %425, %439 : vector<1x8x1xi1>, vector<1x8x1xf32>
    %cst_67 = arith.constant 0.000000e+00 : f32
    %441 = vector.broadcast %cst_67 : f32 to vector<1x8x1xf32>
    %442 = arith.select %438, %428, %441 : vector<1x8x1xi1>, vector<1x8x1xf32>
    %cst_68 = arith.constant 0.000000e+00 : f32
    %443 = vector.broadcast %cst_68 : f32 to vector<1x8x1xf32>
    %444 = arith.select %438, %431, %443 : vector<1x8x1xi1>, vector<1x8x1xf32>
    %cst_69 = arith.constant 0.000000e+00 : f32
    %445 = vector.broadcast %cst_69 : f32 to vector<1x8x1xf32>
    %446 = arith.select %438, %434, %445 : vector<1x8x1xi1>, vector<1x8x1xf32>
    %447 = arith.mulf %440, %440 : vector<1x8x1xf32>
    %448 = arith.mulf %442, %442 : vector<1x8x1xf32>
    %449 = arith.addf %447, %448 : vector<1x8x1xf32>
    %450 = arith.mulf %444, %444 : vector<1x8x1xf32>
    %451 = arith.addf %449, %450 : vector<1x8x1xf32>
    %452 = arith.mulf %446, %446 : vector<1x8x1xf32>
    %453 = arith.addf %451, %452 : vector<1x8x1xf32>
    %454 = math.sqrt %453 : vector<1x8x1xf32>
    %cst_70 = arith.constant 9.99999996E-13 : f32
    %455 = vector.broadcast %cst_70 : f32 to vector<1x8x1xf32>
    %456 = arith.maximumf %454, %455 : vector<1x8x1xf32>
    %457 = arith.divf %440, %456 : vector<1x8x1xf32>
    %458 = arith.divf %442, %456 : vector<1x8x1xf32>
    %459 = arith.divf %444, %456 : vector<1x8x1xf32>
    %460 = arith.divf %446, %456 : vector<1x8x1xf32>
    %461 = arith.mulf %457, %41 : vector<1x8x1xf32>
    %462 = arith.mulf %458, %42 : vector<1x8x1xf32>
    %463 = arith.subf %461, %462 : vector<1x8x1xf32>
    %464 = arith.mulf %459, %43 : vector<1x8x1xf32>
    %465 = arith.subf %463, %464 : vector<1x8x1xf32>
    %466 = arith.mulf %460, %44 : vector<1x8x1xf32>
    %467 = arith.subf %465, %466 : vector<1x8x1xf32>
    %468 = arith.mulf %457, %42 : vector<1x8x1xf32>
    %469 = arith.mulf %458, %41 : vector<1x8x1xf32>
    %470 = arith.addf %468, %469 : vector<1x8x1xf32>
    %471 = arith.mulf %459, %44 : vector<1x8x1xf32>
    %472 = arith.addf %470, %471 : vector<1x8x1xf32>
    %473 = arith.mulf %460, %43 : vector<1x8x1xf32>
    %474 = arith.subf %472, %473 : vector<1x8x1xf32>
    %475 = arith.mulf %457, %43 : vector<1x8x1xf32>
    %476 = arith.mulf %458, %44 : vector<1x8x1xf32>
    %477 = arith.subf %475, %476 : vector<1x8x1xf32>
    %478 = arith.mulf %459, %41 : vector<1x8x1xf32>
    %479 = arith.addf %477, %478 : vector<1x8x1xf32>
    %480 = arith.mulf %460, %42 : vector<1x8x1xf32>
    %481 = arith.addf %479, %480 : vector<1x8x1xf32>
    %482 = arith.mulf %457, %44 : vector<1x8x1xf32>
    %483 = arith.mulf %458, %43 : vector<1x8x1xf32>
    %484 = arith.addf %482, %483 : vector<1x8x1xf32>
    %485 = arith.mulf %459, %42 : vector<1x8x1xf32>
    %486 = arith.subf %484, %485 : vector<1x8x1xf32>
    %487 = arith.mulf %460, %41 : vector<1x8x1xf32>
    %488 = arith.addf %486, %487 : vector<1x8x1xf32>
    %489 = arith.mulf %467, %467 : vector<1x8x1xf32>
    %490 = arith.mulf %474, %474 : vector<1x8x1xf32>
    %491 = arith.addf %489, %490 : vector<1x8x1xf32>
    %492 = arith.mulf %481, %481 : vector<1x8x1xf32>
    %493 = arith.addf %491, %492 : vector<1x8x1xf32>
    %494 = arith.mulf %488, %488 : vector<1x8x1xf32>
    %495 = arith.addf %493, %494 : vector<1x8x1xf32>
    %496 = math.sqrt %495 : vector<1x8x1xf32>
    %497 = arith.divf %467, %496 : vector<1x8x1xf32>
    %498 = arith.divf %474, %496 : vector<1x8x1xf32>
    %499 = arith.divf %481, %496 : vector<1x8x1xf32>
    %500 = arith.divf %488, %496 : vector<1x8x1xf32>
    %501 = tpu.concatenate %497, %498, %499, %500 in 2 : vector<1x8x1xf32>, vector<1x8x1xf32>, vector<1x8x1xf32>, vector<1x8x1xf32> -> vector<1x8x4xf32>
    %502 = vector.extract_strided_slice %266 {offsets = [0, 0, 0, 6], sizes = [1, 8, 16, 7], strides = [1, 1, 1, 1]} : vector<1x8x16x16xf32> to vector<1x8x16x7xf32>
    %503 = vector.broadcast %279 : vector<1x8x16x1xf32> to vector<1x8x16x7xf32>
    %504 = arith.mulf %502, %503 : vector<1x8x16x7xf32>
    %cst_71 = arith.constant dense<0.000000e+00> : vector<1x8x7xf32>
    %505 = vector.multi_reduction <add>, %504, %cst_71 [2] : vector<1x8x16x7xf32> to vector<1x8x7xf32>
    %506 = vector.extract_strided_slice %2 {offsets = [0, 0, 0], sizes = [1, 8, 7], strides = [1, 1, 1]} : vector<1x8x14xf32> to vector<1x8x7xf32>
    %507 = vector.extract_strided_slice %2 {offsets = [0, 0, 7], sizes = [1, 8, 7], strides = [1, 1, 1]} : vector<1x8x14xf32> to vector<1x8x7xf32>
    %508 = math.sin %505 : vector<1x8x7xf32>
    %509 = math.cos %505 : vector<1x8x7xf32>
    %510 = arith.mulf %508, %507 : vector<1x8x7xf32>
    %511 = arith.mulf %509, %506 : vector<1x8x7xf32>
    %512 = arith.addf %510, %511 : vector<1x8x7xf32>
    %513 = arith.mulf %509, %507 : vector<1x8x7xf32>
    %514 = arith.mulf %508, %506 : vector<1x8x7xf32>
    %515 = arith.subf %513, %514 : vector<1x8x7xf32>
    %516 = vector.extract_strided_slice %266 {offsets = [0, 0, 0, 1], sizes = [1, 8, 16, 1], strides = [1, 1, 1, 1]} : vector<1x8x16x16xf32> to vector<1x8x16x1xf32>
    %517 = vector.shape_cast %516 : vector<1x8x16x1xf32> to vector<1x8x16xf32>
    %518 = arith.mulf %517, %278 : vector<1x8x16xf32>
    %519 = arith.mulf %518, %50 : vector<1x8x16xf32>
    %cst_72 = arith.constant dense<0.000000e+00> : vector<1x8xf32>
    %520 = vector.multi_reduction <add>, %519, %cst_72 [2] : vector<1x8x16xf32> to vector<1x8xf32>
    %521 = vector.shape_cast %520 : vector<1x8xf32> to vector<1x8x1xf32>
    %522 = arith.addf %45, %521 : vector<1x8x1xf32>
    %523 = arith.mulf %518, %53 : vector<1x8x16xf32>
    %cst_73 = arith.constant dense<0.000000e+00> : vector<1x8xf32>
    %524 = vector.multi_reduction <add>, %523, %cst_73 [2] : vector<1x8x16xf32> to vector<1x8xf32>
    %525 = vector.shape_cast %524 : vector<1x8xf32> to vector<1x8x1xf32>
    %526 = arith.addf %46, %525 : vector<1x8x1xf32>
    %527 = arith.mulf %518, %56 : vector<1x8x16xf32>
    %cst_74 = arith.constant dense<0.000000e+00> : vector<1x8xf32>
    %528 = vector.multi_reduction <add>, %527, %cst_74 [2] : vector<1x8x16xf32> to vector<1x8xf32>
    %529 = vector.shape_cast %528 : vector<1x8xf32> to vector<1x8x1xf32>
    %530 = arith.addf %47, %529 : vector<1x8x1xf32>
    %531 = tpu.concatenate %522, %526, %530 in 2 : vector<1x8x1xf32>, vector<1x8x1xf32>, vector<1x8x1xf32> -> vector<1x8x3xf32>
    %cst_75 = arith.constant 0.000000e+00 : f32
    %532 = vector.broadcast %cst_75 : f32 to vector<1x8x43xf32>
    %533 = tpu.concatenate %501, %531, %512, %515, %306, %532 in 2 : vector<1x8x4xf32>, vector<1x8x3xf32>, vector<1x8x7xf32>, vector<1x8x7xf32>, vector<1x8x64xf32>, vector<1x8x43xf32> -> vector<1x8x128xf32>
    %c0_76 = arith.constant 0 : index
    %c0_77 = arith.constant 0 : index
    %c0_78 = arith.constant 0 : index
    %534 = vector.load %arg19[%c0_76, %c0_77, %c0_78] : memref<1x8x128xf32, #tpu.memory_space<vmem>>, vector<1x8x128xf32>
    tpu.vector_store %arg19[%c0_76, %c0_77, %c0_78], %533 {strides = array<i32>} : memref<1x8x128xf32, #tpu.memory_space<vmem>>, vector<1x8x128xf32>,
    return
  }
  func.func @transform_0(%arg0: i32) -> (i32, i32, i32) {
    %c0_i32 = arith.constant 0 : i32
    %c0_i32_0 = arith.constant 0 : i32
    %c0_i32_1 = arith.constant 0 : i32
    return %arg0, %c0_i32, %c0_i32_0 : i32, i32, i32
  }
  func.func @transform_1(%arg0: i32) -> (i32, i32, i32) {
    %c0_i32 = arith.constant 0 : i32
    %c0_i32_0 = arith.constant 0 : i32
    %c0_i32_1 = arith.constant 0 : i32
    return %arg0, %c0_i32, %c0_i32_0 : i32, i32, i32
  }
  func.func @transform_2(%arg0: i32) -> (i32, i32, i32) {
    %c0_i32 = arith.constant 0 : i32
    %c0_i32_0 = arith.constant 0 : i32
    %c0_i32_1 = arith.constant 0 : i32
    return %arg0, %c0_i32, %c0_i32_0 : i32, i32, i32
  }
  func.func @transform_3(%arg0: i32) -> (i32, i32, i32) {
    %c0_i32 = arith.constant 0 : i32
    %c0_i32_0 = arith.constant 0 : i32
    %c0_i32_1 = arith.constant 0 : i32
    return %arg0, %c0_i32, %c0_i32_0 : i32, i32, i32
  }
  func.func @transform_4(%arg0: i32) -> (i32, i32, i32) {
    %c0_i32 = arith.constant 0 : i32
    %c0_i32_0 = arith.constant 0 : i32
    %c0_i32_1 = arith.constant 0 : i32
    %c0_i32_2 = arith.constant 0 : i32
    return %c0_i32, %c0_i32_0, %c0_i32_1 : i32, i32, i32
  }
  func.func @transform_5(%arg0: i32) -> (i32, i32) {
    %c0_i32 = arith.constant 0 : i32
    %c0_i32_0 = arith.constant 0 : i32
    %c0_i32_1 = arith.constant 0 : i32
    return %c0_i32, %c0_i32_0 : i32, i32
  }
  func.func @transform_6(%arg0: i32) -> (i32, i32) {
    %c0_i32 = arith.constant 0 : i32
    %c0_i32_0 = arith.constant 0 : i32
    %c0_i32_1 = arith.constant 0 : i32
    return %c0_i32, %c0_i32_0 : i32, i32
  }
  func.func @transform_7(%arg0: i32) -> (i32, i32) {
    %c0_i32 = arith.constant 0 : i32
    %c0_i32_0 = arith.constant 0 : i32
    %c0_i32_1 = arith.constant 0 : i32
    return %c0_i32, %c0_i32_0 : i32, i32
  }
  func.func @transform_8(%arg0: i32) -> (i32, i32) {
    %c0_i32 = arith.constant 0 : i32
    %c0_i32_0 = arith.constant 0 : i32
    %c0_i32_1 = arith.constant 0 : i32
    return %c0_i32, %c0_i32_0 : i32, i32
  }
  func.func @transform_9(%arg0: i32) -> (i32, i32) {
    %c0_i32 = arith.constant 0 : i32
    %c0_i32_0 = arith.constant 0 : i32
    %c0_i32_1 = arith.constant 0 : i32
    return %c0_i32, %c0_i32_0 : i32, i32
  }
  func.func @transform_10(%arg0: i32) -> (i32, i32) {
    %c0_i32 = arith.constant 0 : i32
    %c0_i32_0 = arith.constant 0 : i32
    %c0_i32_1 = arith.constant 0 : i32
    return %c0_i32, %c0_i32_0 : i32, i32
  }
  func.func @transform_11(%arg0: i32) -> (i32, i32) {
    %c0_i32 = arith.constant 0 : i32
    %c0_i32_0 = arith.constant 0 : i32
    %c0_i32_1 = arith.constant 0 : i32
    return %c0_i32, %c0_i32_0 : i32, i32
  }
  func.func @transform_12(%arg0: i32) -> (i32, i32) {
    %c0_i32 = arith.constant 0 : i32
    %c0_i32_0 = arith.constant 0 : i32
    %c0_i32_1 = arith.constant 0 : i32
    return %c0_i32, %c0_i32_0 : i32, i32
  }
  func.func @transform_13(%arg0: i32) -> (i32, i32) {
    %c0_i32 = arith.constant 0 : i32
    %c0_i32_0 = arith.constant 0 : i32
    %c0_i32_1 = arith.constant 0 : i32
    return %c0_i32, %c0_i32_0 : i32, i32
  }
  func.func @transform_14(%arg0: i32) -> (i32, i32) {
    %c0_i32 = arith.constant 0 : i32
    %c0_i32_0 = arith.constant 0 : i32
    %c0_i32_1 = arith.constant 0 : i32
    return %c0_i32, %c0_i32_0 : i32, i32
  }
  func.func @transform_15(%arg0: i32) -> (i32, i32) {
    %c0_i32 = arith.constant 0 : i32
    %c0_i32_0 = arith.constant 0 : i32
    %c0_i32_1 = arith.constant 0 : i32
    return %c0_i32, %c0_i32_0 : i32, i32
  }
  func.func @transform_16(%arg0: i32) -> (i32, i32) {
    %c0_i32 = arith.constant 0 : i32
    %c0_i32_0 = arith.constant 0 : i32
    %c0_i32_1 = arith.constant 0 : i32
    return %c0_i32, %c0_i32_0 : i32, i32
  }
  func.func @transform_17(%arg0: i32) -> (i32, i32) {
    %c0_i32 = arith.constant 0 : i32
    %c0_i32_0 = arith.constant 0 : i32
    %c0_i32_1 = arith.constant 0 : i32
    return %c0_i32, %c0_i32_0 : i32, i32
  }
  func.func @transform_18(%arg0: i32) -> (i32, i32, i32) {
    %c0_i32 = arith.constant 0 : i32
    %c0_i32_0 = arith.constant 0 : i32
    %c0_i32_1 = arith.constant 0 : i32
    return %arg0, %c0_i32, %c0_i32_0 : i32, i32, i32
  }
}

</mosaic_0001>

<bundles_post_ra>
// kernel: tpu_custom_call.1
= control target key start
LH: loop header
LB: loop body
LE: loop exit
PB: predicated region body
PF: predicated region fallthrough
CT: control target
= control target key end

     0   :  { %s17343_s0 = inlined_call_operand.vmem [shape: bf16[2,16,5], index: 0, kind: input, shape index: {}]   ;;  %s17344_s1 = inlined_call_operand.vmem [shape: f32[2,16,8], index: 1, kind: input, shape index: {}]   ;;  %s17345_s2 = inlined_call_operand.vmem [shape: f32[2,8,14], index: 2, kind: input, shape index: {}]   ;;  %s17346_s3 = inlined_call_operand.hbm [shape: f32[2,8,16], index: 3, kind: input, shape index: {}]   ;;  %s17347_s4 = inlined_call_operand.vmem [shape: f32[8,16,64], index: 4, kind: input, shape index: {}]   ;;  %s17348_s5 = inlined_call_operand.vmem [shape: bf16[5,128], index: 5, kind: input, shape index: {}]   ;;  %s17349_s6 = inlined_call_operand.hbm [shape: bf16[64,64], index: 6, kind: input, shape index: {}]   ;;  %s17350_s7 = inlined_call_operand.vmem [shape: f32[2,64], index: 7, kind: input, shape index: {}]   ;;  %s17351_s8 = inlined_call_operand.vmem [shape: bf16[64,256], index: 8, kind: input, shape index: {}]   ;;  %s17352_s9 = inlined_call_operand.hbm [shape: bf16[14,256], index: 9, kind: input, shape index: {}]   ;;  %s17353_s10 = inlined_call_operand.hbm [shape: f32[8,256], index: 10, kind: input, shape index: {}]   ;;  %s17354_s11 = inlined_call_operand.vmem [shape: f32[1,256], index: 11, kind: input, shape index: {}]   ;;  %s17355_s12 = inlined_call_operand.vmem [shape: bf16[256,16], index: 12, kind: input, shape index: {}]   ;;  %s17356_s13 = inlined_call_operand.vmem [shape: f32[1,16], index: 13, kind: input, shape index: {}]   ;;  %s17357_s14 = inlined_call_operand.vmem [shape: bf16[69,64], index: 14, kind: input, shape index: {}]   ;;  %s17358_s15 = inlined_call_operand.vmem [shape: f32[1,64], index: 15, kind: input, shape index: {}]   ;;  %s17359_s16 = inlined_call_operand.hbm [shape: bf16[64,64], index: 16, kind: input, shape index: {}]   ;;  %s17360_s17 = inlined_call_operand.vmem [shape: f32[1,64], index: 17, kind: input, shape index: {}]   ;;  %s17361_s18 = inlined_call_operand.hbm [shape: f32[2,8,128], index: 18, kind: output, shape index: {}]  }
   0x1   :  { %17790 = sst [smem:[#allocation217_spill]] %s17343_s0 }
   0x2   :  { %17791 = sst [smem:[#allocation218_spill]] %s17344_s1 }
   0x3   :  { %17792 = sst [smem:[#allocation219_spill]] %s17345_s2 }
   0x4   :  { %17793 = sst [smem:[#allocation220_spill]] %s17349_s6 }
   0x5   :  { %17794 = sst [smem:[#allocation221_spill]] %s17352_s9 }
   0x6   :  { %17795 = sst [smem:[#allocation222_spill]] %s17353_s10 }
   0x7   :  { %17796 = sst [smem:[#allocation223_spill]] %s17358_s15 }
   0x8   :  { %17797 = sst [smem:[#allocation224_spill]] %s17359_s16 }
   0x9   :  { %17798 = sst [smem:[#allocation225_spill]] %s17360_s17 }
   0xa   :  { %17799 = sst [smem:[#allocation226_spill]] %s17361_s18 }
   0xb   :  { %23 = vsyncpa [#allocation3], 0 }
   0xc   :  { %25 = vsyncpa [#allocation3 + $0x1], 0 }
   0xd   :  { %26 = vsyncpa [#allocation6], 0 }
   0xe   :  { %27 = vsyncpa [#allocation9], 0 }
   0xf   :  { %28 = vsyncpa [#allocation4], 0 }
  0x10   :  { %30 = vsyncpa [#allocation4 + $0x1], 0  ;;  %s10515_s27 = smov 0   ;;  %s10517_s28 = smov 0  }
  0x11   :  { %s10519_s29 = smov 0   ;;  %s10521_s30 = smov 0  }
  0x12 LB: > { %17800 = sst [smem:[#allocation16_spill]] %s10378_s29  ;;  %s10539_s20 = sadd.s32 4294967295, %s10382_s30   ;;  %s10382_s30 = sphi %s10521_s30, %s18997_s30   ;;  %s10378_s29 = sphi %s10519_s29, %s18999_s29   ;;  %s10374_s28 = sphi %s10517_s28, %s19001_s28   ;;  %s10370_s27 = sphi %s10515_s27, %s19000_s27  }
  0x13   : > { %s17801_s6 = sld [smem:[#allocation220_spill]]  ;;  %p9464_p0 = scmp.ge.s32.totalorder %s10382_s30, 1 }
  0x14   : > { %p135_p1 = scmp.eq.s32.totalorder %s10539_s20, 0  ;;  %p465_p2 = scmp.lt.s32.totalorder %s10382_s30, 3 }
  0x15   : > { %s10384_s22 = smov [#allocation5]   ;;  %s17803_s10 = sld [smem:[#allocation222_spill]] }
  0x16   : > { %p10544_p3 = pnand %p9464_p0, %p465_p2  ;;  %s484_s2 = sshll.u32 %s10384_s22, 4  ;;  %s485_s2 = int_to_ptr.vmem [resolvable:$true] %s484_s2 }
  0x17   : > { %s17805_s9 = sld [smem:[#allocation221_spill]]  ;;  %s10386_s17 = smov 64  }
  0x18   : > { %p9811_p4 = pneg %p10544_p3  ;;  %s10387_s15 = smov 4  }
  0x19   : > { %s482_s1 = sshll.u32 %s17801_s6, 4  ;;  %s10385_s6 = smov [#allocation8]   ;;  %s483_s1 = int_to_ptr.hbm [resolvable:$true] %s482_s1 }
  0x1a   : > { %p10556_p6 = pnand %p9811_p4, %p135_p1  ;;  %s519_s18 = sshll.u32 %s10385_s6, 4  ;;  %s520_s18 = int_to_ptr.vmem [resolvable:$true] %s519_s18 }
  0x1b   : > { %s517_s25 = sshll.u32 %s17803_s10, 4  ;;  %s10388_s23 = smov [#allocation7]   ;;  %s518_s25 = int_to_ptr.hbm [resolvable:$true] %s517_s25 }
  0x1c   : > { %9814 = dma.hbm_to_vmem [thread:$0]  (!%p10556_p6), %s483_s1, 512, %s485_s2, [#allocation6], %s10386_s17, %s10386_s17, %s10387_s15  }
  0x1d   : > { %s502_s22 = sshll.u32 %s17805_s9, 4  ;;  %s504_s24 = sshll.u32 %s10388_s23, 4  ;;  %s503_s22 = int_to_ptr.hbm [resolvable:$true] %s502_s22  ;;  %s505_s24 = int_to_ptr.vmem [resolvable:$true] %s504_s24 }
  0x1e   : > { %9820 = dma.hbm_to_vmem [thread:$0]  (!%p10556_p6), %s518_s25, 256, %s520_s18, [#allocation9]  }
  0x1f   : > { %s17806_s16 = sld [smem:[#allocation224_spill]]  ;;  %s10389_s1 = smov 128  }
  0x20   : > { %s10390_s2 = smov 8   ;;  %s10391_s18 = smov [#allocation10]  }
  0x21   : > { %9817 = dma.hbm_to_vmem [thread:$0]  (!%p10556_p6), %s503_s22, 256, %s505_s24, [#allocation6], %s10389_s1, %s10389_s1, %s10390_s2  }
  0x22   : > { %s545_s25 = sshll.u32 %s10391_s18, 4  ;;  %s9463_s23 = sadd.s32 4294967294, %s10382_s30   ;;  %s546_s25 = int_to_ptr.vmem [resolvable:$true] %s545_s25 }
  0x23   : > { %s10576_s0 = sadd.s32 1, %s10382_s30   ;;  %s121_s9 = sadd.s32 1, %s10378_s29 }
  0x24   : > { %17807 = sst [smem:[#allocation17_spill]] %s10576_s0  ;;  %s118_s6 = ssub.s32 %s10382_s30, %s10576_s0 }
  0x25   : > { %s543_s19 = sshll.u32 %s17806_s16, 4  ;;  %p119_p7 = scmp.eq.s32.totalorder %s118_s6, 0  ;;  %s544_s19 = int_to_ptr.hbm [resolvable:$true] %s543_s19 }
  0x26   : > { %9823 = dma.hbm_to_vmem [thread:$0]  (!%p10556_p6), %s544_s19, 512, %s546_s25, [#allocation9], %s10386_s17, %s10386_s17, %s10387_s15  }
  0x27   : > { %p128_p8 = scmp.ne.s32.totalorder %s10378_s29, %s10374_s28  ;;  %p129_p9 = scmp.eq.s32.totalorder %s10382_s30, 0 }
  0x28   : > { %p134_p10 = scmp.ne.s32.totalorder %s10374_s28, %s10370_s27  ;;  %p452_p13 = scmp.eq.s32.totalorder %s10539_s20, 1 }
  0x29   : > { %s10587_s22 = scalar_select %p119_p7, %s10378_s29, %s121_s9  }
  0x2a   : > { %p10589_p11 = por %p129_p9, %p128_p8  ;;  %p10595_p12 = por %p135_p1, %p134_p10 }
  0x2b   : > { %17808 = sst [smem:[#allocation18_spill]] %s10587_s22  ;;  %p458_p0 = scmp.eq.s32.totalorder %s9463_s23, 1 }
  0x2c   : > { %p9836_p2 = scmp.lt.s32.totalorder %s10382_s30, 2  ;;  %s585_s17 = sand.u32 1, %s10378_s29  }
  0x2d   : > { %p10602_p4 = por %p452_p13, %p128_p8  ;;  %p10606_p6 = por %p458_p0, %p134_p10 }
  0x2e   : > { %s9470_s19 = sshll.u32 %s585_s17, 3  ;;  %s9471_s1 = sshll.u32 %s10382_s30, 3 }
  0x2f   : > { %s593_s25 = scalar_lea.hbm %s17346_s3, %s9471_s1  ;;  %s589_s6 = scalar_lea.vmem [#allocation2], %s9470_s19 }
  0x30   : > { %s597_s10 = sshll.u32 %s589_s6, 4  ;;  %s595_s16 = sshll.u32 %s593_s25, 4  ;;  %s598_s10 = int_to_ptr.vmem [resolvable:$true] %s597_s10  ;;  %s596_s16 = int_to_ptr.hbm [resolvable:$true] %s595_s16 }
  0x31   : > { %p10616_p7 = pnand %p9836_p2, %p10589_p11  ;;  %s586_s22 = scalar_lea.sflag [#allocation3], %s585_s17 }
  0x32   : > { %s10278_s29 = sshra.s32 %s596_s16, 4  ;;  %s10285_s2 = scalar_lea.hbm %s17346_s3, 16  ;;  %s10279_s29 = int_to_ptr.hbm [resolvable:$true] %s10278_s29 }
  0x33   : > { %s10280_s0 = scalar_lea.hbm %s10279_s29, 8  ;;  %p10282_p9 = pneg %p10616_p7 }
  0x34   : > { %p10281_p8 = scmp.ne.s32.totalorder %s10279_s29, %s10280_s0  ;;  %p10286_p11 = scmp.lt.s32.totalorder %s10279_s29, %s17346_s3 }
  0x35   : > { %p10287_p0 = scmp.lt.s32.totalorder %s10285_s2, %s10280_s0 }
  0x36   : > { %p10283_p10 = pnand %p10282_p9, %p10281_p8 }
  0x37   : > { %p10288_p2 = por %p10287_p0, %p10286_p11 }
  0x38   : > { %p10284_p13 = pneg %p10283_p10 }
  0x3a   : > { %p10289_p5 = pnand %p10288_p2, %p10284_p13 }
  0x3c   : > { %10292 = shalt.err (!%p10289_p5)
}
  0x3d   : > { %9827 = dma.hbm_to_vmem [thread:$0]  (!%p10616_p7), %s596_s16, 128, %s598_s10, %s586_s22  }
  0x3e   : > { %606 = sbr.rel (%p10544_p3) target bundleno = 3321 (0xcf9), region = 92 }
  0x43   : > { %s10633_s17 = sand.u32 1, %s10374_s28  }
  0x44   : > { %s9473_s25 = sshll.u32 %s10633_s17, 3  ;;  %s609_s6 = scalar_lea.sflag [#allocation3], %s10633_s17 }
  0x45   : > { %s10639_s29 = scalar_lea.vmem [#allocation2], %s9473_s25 }
  0x46   : > { %10353 = dma.done.wait (%p10595_p12), %s609_s6, 128  }
  0x47   : > { %10355 = vsyncadd (%p10595_p12), %s609_s6, 4294967168 }
  0x48   : > { %10357 = dma.done.wait (%p135_p1), [#allocation6], 768  }
  0x49   : > { %10359 = vsyncadd (%p135_p1), [#allocation6], 4294966528 }
  0x4a   : > { %10361 = dma.done.wait (%p135_p1), [#allocation9], 768  }
  0x4b   : > { %10363 = vsyncadd (%p135_p1), [#allocation9], 4294966528  ;;  %p700_p3 = scmp.lt.s32.totalorder %s10539_s20, 1  ;;  %v10392_v0 = vmov 6   ;;  %v10393_v1 = vmov 4   ;;  %s17814_s22 = sld [smem:[#allocation218_spill]]  ;;  %v17368_v15 = vlaneseq }
  0x4c   : > { %9912 = vset.pattern.permute.xlu0 %v10392_v0  ;;  %9910 = vset.pattern.permute.xlu2 %v10393_v1  ;;  %v10394_v4 = vmov 3   ;;  %v10395_v5 = vmov 5   ;;  %v17366_v6 = vmov 1   ;;  %v17369_v7 = vmov 2   ;;  %v737_v8 = vld [vmem:[%s17348_s5] sm:$0x7] }
  0x4d   : > { %s10655_s10 = scalar_select %p700_p3, %s10539_s20, 1  ;;  %vm747_vm0 = vcmask 1041408   ;;  %vm748_vm1 = vcmask 1042432   ;;  %v10398_v9 = vmov 65535   ;;  %vm743_vm2 = vcmask 39936  }
  0x4e   : > { %v749_v10 = vsel %vm747_vm0, 4294967295, %v10398_v9  ;;  %s17815_s24 = sld [smem:[#allocation217_spill]]  ;;  %v17375_v14 = vmov 0   ;;  %v10685_v16 = vshrl.u32 %v17368_v15, 7  ;;  %s10402_s0 = smov 5  }
  0x4f   : > { %s9739_s16 = sshll.u32 %s10655_s10, 4  ;;  %s9738_s23 = sshll.u32 %s10655_s10, 3  ;;  %v10678_v11 = vsel %vm748_vm1, %v749_v10, 0 }
  0x50   : > { %v752_v12 = vand.u32 %v10678_v11, %v737_v8  ;;  %17816 = vst [vmem:[#allocation19_spill] sm:$0xff] %v10685_v16  ;;  %v10689_v17 = vadd.s32 8, %v10685_v16  ;;  %s10404_s19 = smov 127   ;;  %s10405_s1 = smov 125  }
  0x51   : > { %s10661_s15 = scalar_lea.vmem %s17814_s22, %s9739_s16  ;;  %s10400_s16 = smov 64  }
  0x52   : > { %v717_v2 = vld [vmem:[%s10661_s15] sm:$0xff]  ;;  %v718_v3 = vld [vmem:[%s10661_s15 + $0x8] sm:$0xff]  ;;  %761 = vmatpush.bf16.msra.mxu0 %v752_v12  ;;  %17817 = vst [vmem:[#allocation20_spill] sm:$0xff] %v10689_v17  ;;  %s10403_s22 = smov 126   ;;  %s18106_s18 = sld [smem:[#allocation223_spill]] }
  0x53   : > { %1037 = vxpose.xlu1.b32.start [1/2] (short) (narrow) %v717_v2, 8  ;;  %1083 = vperm.xlu0 %9912, %v717_v2   ;;  %s10414_s10 = smov 3   ;;  %s10419_s2 = smov 8  }
  0x54   : > { %1071 = vperm.xlu2 %9910, %v717_v2   ;;  %s10676_s6 = scalar_lea.vmem %s17815_s24, %s9738_s23 }
  0x55   : > { %v9740_v13 = vld [vmem:[%s10676_s6] sm:$0xff] }
  0x56   : > { %9488 = vmatmul.msk.bf16.vlgmr.msra.gmra.mxu0 %vm743_vm2, %v9740_v13 }
  0x5b   : > { %1038 = vxpose.xlu1.b32.end [2/2] (short) (narrow) %v718_v3, 8  ;;  %9916 = vset.pattern.permute.xlu0 %v10394_v4 }
  0x5c   : > { %1114 = vperm.xlu0 %9916, %v717_v2   ;;  %9911 = vset.pattern.permute.xlu2 %v10395_v5 }
  0x5d   : > { %1077 = vperm.xlu2 %9911, %v717_v2  }
  0x64   : > { %9920 = vset.pattern.permute.xlu0 %v10689_v17 }
  0x65   : > { %9914 = vset.pattern.permute.xlu2 %v17366_v6 }
  0x66   : > { %1100 = vperm.xlu2 %9914, %v717_v2  }
  0x6e   : > { %9915 = vset.pattern.permute.xlu2 %v17369_v7 }
  0x6f   : > { %1107 = vperm.xlu2 %9915, %v717_v2  }
  0x77   : > { %9917 = vset.pattern.permute.xlu2 %v10685_v16 }
  0xae   : > { %9913 = vset.pattern.permute.xlu1 %v17375_v14  ;;  %v1072_v18 = vpop.permute.xlu2 %1071 }
  0xb5   : > { %1094 = vperm.xlu1 %9913, %v717_v2  }
  0xb7   : > { %v1078_v23 = vpop.permute.xlu2 %1077 }
  0xbd   : > { %9924 = vset.pattern.permute.xlu1 %v10685_v16 }
  0xc0   : > { %v10739_v48 = vpop.permute.xlu2 %1100 }
  0xc5   : > { %v1084_v27 = vpop.permute.xlu0 %1083 }
  0xc9   : > { %v10770_v63 = vpop.permute.xlu2 %1107 }
  0xce   : > { %v10760_v59 = vpop.permute.xlu0 %1114 }
  0xf7   : > { %v10693_v19 = vpop.trf.xlu1 }
  0xf8   : > { %v1074_v20 = vperm.slane %v10693_v19, 4  ;;  %v1080_v21 = vperm.slane %v10693_v19, 5  ;;  %v1086_v22 = vperm.slane %v10693_v19, 6  ;;  %v1121_v24 = vmul.f32 %v10693_v19, %v10693_v19 }
  0xf9   : > { %v10753_v56 = vperm.slane %v10693_v19, 2  ;;  %v10756_v57 = vperm.slane %v10693_v19, 3  ;;  %v10767_v61 = vperm.slane %v10693_v19, 0  ;;  %v10773_v0 = vperm.slane %v10693_v19, 1 }
  0xfa   : > { %v10700_v25 = vsub.f32 %v1072_v18, %v1074_v20  ;;  %v10702_v26 = vsub.f32 %v1078_v23, %v1080_v21  ;;  %v10704_v28 = vsub.f32 %v1084_v27, %v1086_v22  ;;  %v1123_v29 = vrot.slane %v1121_v24, 1 }
  0xfb   : > { %v1126_v35 = vrot.slane %v1121_v24, 2  ;;  %v1129_v41 = vrot.slane %v1121_v24, 3  ;;  %17821 = vst [vmem:[#allocation24_spill] sm:$0xff] %v10753_v56  ;;  %v10777_v2 = vsub.f32 0.0, %v10693_v19  ;;  %v10781_v4 = vmul.f32 %v10756_v57, %v10760_v59 }
  0xfc   : > { %17818 = vst [vmem:[#allocation21_spill] sm:$0xff] %v10700_v25  ;;  %v1088_v30 = vmul.f32 %v10700_v25, %v10700_v25  ;;  %v1089_v31 = vmul.f32 %v10702_v26, %v10702_v26  ;;  %v1125_v32 = vadd.f32 %v1123_v29, %v1121_v24  ;;  %v1091_v34 = vmul.f32 %v10704_v28, %v10704_v28 }
  0xfd   : > { %17819 = vst [vmem:[#allocation22_spill] sm:$0xff] %v10702_v26  ;;  %v10785_v5 = vmul.f32 %v10760_v59, %v10753_v56  ;;  %v1111_v10 = vmul.f32 %v10753_v56, %v10770_v63  ;;  %v1206_v12 = vmul.f32 %v10756_v57, %v10770_v63  ;;  %v10799_v20 = vmul.f32 %v10770_v63, %v10767_v61 }
  0xfe   : > { %17820 = vst [vmem:[#allocation23_spill] sm:$0xff] %v10704_v28  ;;  %v1090_v33 = vadd.f32 %v1089_v31, %v1088_v30  ;;  %v1128_v37 = vadd.f32 %v1126_v35, %v1125_v32  ;;  %v1104_v23 = vmul.f32 %v10773_v0, %v10739_v48  ;;  %v1204_v27 = vmul.f32 %v10739_v48, %v10767_v61 }
  0xff   : > { %17822 = vst [vmem:[#allocation25_spill] sm:$0xff] %v10756_v57  ;;  %v1211_v29 = vmul.f32 %v10756_v57, %v10739_v48 }
 0x100   : > { %v10712_v36 = vadd.f32 %v1091_v34, %v1090_v33  ;;  %v10719_v42 = vadd.f32 %v1129_v41, %v1128_v37  ;;  %17823 = vst [vmem:[#allocation26_spill] sm:$0xff] %v10767_v61 }
 0x101   : > { %17824 = vst [vmem:[#allocation27_spill] sm:$0xff] %v10773_v0 }
 0x102   : > { %v1694_v38 = vperm.slane %v10712_v36, 7  ;;  %v1629_v39 = vperm.slane %v10712_v36, 2  ;;  %v1603_v40 = vperm.slane %v10712_v36, 0  ;;  %v10722_v43 = vrot.slane %v10719_v42, 7 }
 0x103   : > { %v1668_v44 = vperm.slane %v10712_v36, 5  ;;  %10018 = vrcp.f32 %v10719_v42  ;;  %v10732_v45 = vrot.slane %v10719_v42, 6  ;;  %v10742_v49 = vrot.slane %v10719_v42, 5 }
 0x104   : > { %1699 = vperm.xlu1 %9924, %v1694_v38   ;;  %1640 = vperm.xlu0 %9920, %v1629_v39   ;;  %10020 = vrcp.f32 %v10722_v43  ;;  %v1616_v55 = vperm.slane %v10712_v36, 1  ;;  %v1141_v8 = vand.u32 2147483647, %v10719_v42  ;;  %v1143_v18 = vand.u32 2147483648, %v10719_v42 }
 0x105   : > { %1608 = vperm.xlu2 %9917, %v1603_v40   ;;  %10022 = vrcp.f32 %v10732_v45  ;;  %v1162_v22 = vand.u32 2147483648, %v10722_v43  ;;  %vm1137_vm5 = vweird.f32 %v10719_v42  ;;  %vm1156_vm8 = vweird.f32 %v10722_v43 }
 0x106   : > { %10024 = vrcp.f32 %v10742_v49  ;;  %vm10816_vm7 = vcmp.eq.f32.partialorder %v1141_v8, 8.507059e+37  ;;  %v1160_v32 = vand.u32 2147483647, %v10722_v43  ;;  %v1144_v37 = vor.u32 1.1754944e-38, %v1143_v18 }
 0x107   : > { %vm1173_vm12 = vweird.f32 %v10732_v45  ;;  %vm1190_vm0 = vweird.f32 %v10742_v49 }
 0x108   : > { %vm1161_vm11 = vcmp.eq.f32.partialorder %v1160_v32, 8.507059e+37 }
 0x109   : > { %v10734_v46 = vpop.eup %10018 }
 0x10a   : > { %v10737_v47 = vpop.eup %10020  ;;  %v1133_v50 = vmul.f32 %v10734_v46, %v10719_v42  ;;  %vm1138_vm3 = vweird.f32 %v10734_v46 }
 0x10b   : > { %v1152_v51 = vmul.f32 %v10737_v47, %v10722_v43  ;;  %v10749_v52 = vpop.eup %10022  ;;  %vm1157_vm4 = vweird.f32 %v10737_v47  ;;  %vm10812_vm6 = vmor %vm1137_vm5, %vm1138_vm3  ;;  %v1163_v43 = vor.u32 1.1754944e-38, %v1162_v22  ;;  %v1218_v22 = vmul.f32 %v10753_v56, %v10739_v48 }
 0x10c   : > { %9926 = vset.pattern.permute.xlu1 %v10689_v17  ;;  %1679 = vperm.xlu0 %9920, %v1668_v44   ;;  %v1134_v53 = vsub.f32 1.0, %v1133_v50  ;;  %v1169_v58 = vmul.f32 %v10749_v52, %v10732_v45  ;;  %v10764_v60 = vpop.eup %10024  ;;  %vm10828_vm9 = vmor %vm1156_vm8, %vm1157_vm4  ;;  %vm1174_vm10 = vweird.f32 %v10749_v52  ;;  %v1196_v48 = vand.u32 2147483648, %v10742_v49 }
 0x10d   : > { %9918 = vset.pattern.permute.xlu2 %v10689_v17  ;;  %v1153_v54 = vsub.f32 1.0, %v1152_v51  ;;  %v1186_v9 = vmul.f32 %v10764_v60, %v10742_v49  ;;  %vm10846_vm13 = vmor %vm1173_vm12, %vm1174_vm10  ;;  %vm1191_vm14 = vweird.f32 %v10764_v60  ;;  %vm955_vm4 = vcmask 523264  }
 0x10e   : > { %v1135_v62 = vmul.f32 %v10734_v46, %v1134_v53  ;;  %v1170_v3 = vsub.f32 1.0, %v1169_v58  ;;  %vm10876_vm1 = vmor %vm1190_vm0, %vm1191_vm14  ;;  %vm1271_vm5 = vcmask 1046528   ;;  %vm17785_vm8 = vcmask 1041409  }
 0x10f   : > { %v1154_v1 = vmul.f32 %v10737_v47, %v1153_v54  ;;  %v1187_v33 = vsub.f32 1.0, %v1186_v9  ;;  %vm17735_vm10 = vcmask 1043459   ;;  %vm17682_vm12 = vcmask 1045509  }
 0x110   : > { %v1136_v13 = vadd.f32 %v10734_v46, %v1135_v62  ;;  %v1171_v24 = vmul.f32 %v10749_v52, %v1170_v3  ;;  %vm17615_vm14 = vcmask 1047559  }
 0x111   : > { %v1155_v21 = vadd.f32 %v10737_v47, %v1154_v1  ;;  %v1188_v62 = vmul.f32 %v10764_v60, %v1187_v33 }
 0x112   : > { %v1140_v35 = vsel %vm10812_vm6, %v10734_v46, %v1136_v13  ;;  %v1179_v46 = vand.u32 2147483648, %v10732_v45  ;;  %v1172_v50 = vadd.f32 %v10749_v52, %v1171_v24  ;;  %vm17612_vm6 = vcmask 113664  }
 0x113   : > { %v1159_v42 = vsel %vm10828_vm9, %v10737_v47, %v1155_v21  ;;  %v1145_v58 = vsel %vm10816_vm7, %v1144_v37, %v1140_v35  ;;  %v1177_v47 = vand.u32 2147483647, %v10732_v45  ;;  %v1189_v30 = vadd.f32 %v10764_v60, %v1188_v62 }
 0x114   : > { %1705 = vperm.xlu0 %9920, %v1694_v38   ;;  %v1164_v3 = vsel %vm1161_vm11, %v1163_v43, %v1159_v42  ;;  %v1180_v13 = vor.u32 1.1754944e-38, %v1179_v46  ;;  %v1176_v24 = vsel %vm10846_vm13, %v10749_v52, %v1172_v50  ;;  %vm3536_vm7 = vcmp.lt.s32.totalorder %v10689_v17, 12 }
 0x115   : > { %1614 = vperm.xlu2 %9918, %v1603_v40   ;;  %vm1178_vm15 = vcmp.eq.f32.partialorder %v1177_v47, 8.507059e+37  ;;  %vm17782_vm9 = vcmask 1042434   ;;  %vm17683_vm11 = vcmask 1044484   ;;  %vm17681_vm13 = vcmask 1046534  }
 0x116   : > { %v1181_v52 = vsel %vm1178_vm15, %v1180_v13, %v1176_v24  ;;  %vm1477_vm15 = vcmask 1040384  }
 0x117   : > { %v1182_v38 = vmul.f32 %v1181_v52, %v10777_v2 }
 0x11d   : > { %1627 = vperm.xlu2 %9918, %v1616_v55  }
 0x125   : > { %9919 = vset.pattern.permute.xlu2 %v10685_v16 }
 0x127   : > { %v1095_v34 = vpop.permute.xlu1 %1094 }
 0x128   : > { %v1098_v40 = vmul.f32 %v10767_v61, %v1095_v34  ;;  %v1203_v41 = vmul.f32 %v10773_v0, %v1095_v34  ;;  %v1210_v1 = vmul.f32 %v10753_v56, %v1095_v34 }
 0x12a   : > { %v1105_v51 = vadd.f32 %v1104_v23, %v1098_v40  ;;  %v1200_v53 = vsub.f32 %v1098_v40, %v1104_v23  ;;  %v1205_v54 = vadd.f32 %v1204_v27, %v1203_v41  ;;  %v1146_v23 = vmul.f32 %v1145_v58, %v10693_v19 }
 0x12b   : > { %v1165_v27 = vmul.f32 %v1164_v3, %v10777_v2  ;;  %v1212_v31 = vsub.f32 %v1210_v1, %v1211_v29  ;;  %v1194_v19 = vand.u32 2147483647, %v10742_v49  ;;  %v1215_v49 = vmul.f32 %v10760_v59, %v10773_v0  ;;  %v10908_v3 = vpop.f32.mrf.mxu0 }
 0x12c   : > { %v1112_v8 = vadd.f32 %v1111_v10, %v1105_v51  ;;  %v1201_v18 = vsub.f32 %v1200_v53, %v1111_v10  ;;  %v1207_v21 = vadd.f32 %v1206_v12, %v1205_v54  ;;  %v1217_v10 = vmul.f32 %v10756_v57, %v1095_v34 }
 0x12d   : > { %1634 = vperm.xlu2 %9919, %v1629_v39   ;;  %v10880_v33 = vperm.slane %v1146_v23, 0  ;;  %v1220_v34 = vmul.f32 %v10770_v63, %v10773_v0  ;;  %v1214_v35 = vadd.f32 %v10799_v20, %v1212_v31  ;;  %vm1195_vm3 = vcmp.eq.f32.partialorder %v1194_v19, 8.507059e+37 }
 0x12e   : > { %v1119_v45 = vadd.f32 %v10781_v4, %v1112_v8  ;;  %v10869_v32 = vsub.f32 %v1201_v18, %v10781_v4  ;;  %v10872_v29 = vsub.f32 %v1207_v21, %v10785_v5  ;;  %v1193_v4 = vsel %vm10876_vm1, %v10764_v60, %v1189_v30 }
 0x12f   : > { %17835 = vst [vmem:[#allocation28_spill] sm:$0xff] %v10880_v33  ;;  %v10889_v5 = vperm.slane %v1165_v27, 1  ;;  %v1219_v37 = vadd.f32 %v1218_v22, %v1217_v10  ;;  %v1197_v40 = vor.u32 1.1754944e-38, %v1196_v48  ;;  %v1642_v41 = vperm.slane %v10712_v36, 3 }
 0x130   : > { %v10866_v12 = vmul.f32 %v1119_v45, %v1119_v45  ;;  %v1225_v42 = vmul.f32 %v10880_v33, %v10869_v32  ;;  %v1216_v50 = vadd.f32 %v1215_v49, %v1214_v35  ;;  %v1222_v53 = vmul.f32 %v10760_v59, %v10767_v61 }
 0x131   : > { %17836 = vst [vmem:[#allocation29_spill] sm:$0xff] %v10889_v5  ;;  %v1227_v63 = vmul.f32 %v10889_v5, %v10872_v29  ;;  %v1198_v46 = vsel %vm1195_vm3, %v1197_v40, %v1193_v4  ;;  %v1221_v20 = vsub.f32 %v1219_v37, %v1220_v34  ;;  %v10905_v54 = vperm.slane %v1182_v38, 2 }
 0x132   : > { %v1812_v43 = vperm.slane %v10866_v12, 3  ;;  %v1773_v60 = vperm.slane %v10866_v12, 0  ;;  %v1199_v51 = vmul.f32 %v1198_v46, %v10777_v2  ;;  %v1235_v2 = vmul.f32 %v10880_v33, %v10872_v29 }
 0x133   : > { %17837 = vst [vmem:[#allocation30_spill] sm:$0xff] %v10905_v54  ;;  %v1228_v58 = vsub.f32 %v1225_v42, %v1227_v63  ;;  %v1223_v62 = vadd.f32 %v1222_v53, %v1221_v20  ;;  %v1230_v1 = vmul.f32 %v10905_v54, %v1216_v50  ;;  %v1236_v13 = vmul.f32 %v10889_v5, %v10869_v32  ;;  %v765_v52 = vpop.f32.mrf.mxu0 }
 0x134   : > { %1823 = vperm.xlu0 %9920, %v1812_v43   ;;  %1784 = vperm.xlu1 %9926, %v1773_v60   ;;  %v10910_v47 = vperm.slane %v1199_v51, 3  ;;  %v1799_v21 = vperm.slane %v10866_v12, 2  ;;  %v1655_v45 = vperm.slane %v10712_v36, 4  ;;  %v1242_v19 = vmul.f32 %v10880_v33, %v1216_v50 }
 0x135   : > { %1647 = vperm.xlu2 %9919, %v1642_v41   ;;  %v1231_v8 = vsub.f32 %v1228_v58, %v1230_v1  ;;  %v1237_v22 = vadd.f32 %v1236_v13, %v1235_v2  ;;  %v1238_v23 = vmul.f32 %v10905_v54, %v1223_v62  ;;  %v1243_v48 = vmul.f32 %v10889_v5, %v1223_v62  ;;  %v10983_v58 = vld [vmem:[%s10639_s29] sm:$0xff] }
 0x136   : > { %17838 = vst [vmem:[#allocation31_spill] sm:$0xff] %v10910_v47  ;;  %v1233_v9 = vmul.f32 %v10910_v47, %v1223_v62  ;;  %v1240_v30 = vmul.f32 %v10910_v47, %v1216_v50  ;;  %v1825_v39 = vperm.slane %v10866_v12, 4  ;;  %v1245_v34 = vmul.f32 %v10905_v54, %v10869_v32 }
 0x137   : > { %v1239_v24 = vadd.f32 %v1238_v23, %v1237_v22  ;;  %v1244_v49 = vsub.f32 %v1242_v19, %v1243_v48  ;;  %v1681_v4 = vperm.slane %v10712_v36, 6  ;;  %v1249_v37 = vmul.f32 %v10880_v33, %v1223_v62  ;;  %17839 = vst [vmem:[#allocation32_spill] sm:$0xff] %v10983_v58  ;;  %v729_v48 = vld [vmem:[%s17347_s4 + $0x40] sm:$0xff] }
 0x138   : > { %v10916_v59 = vsub.f32 %v1231_v8, %v1233_v9  ;;  %v1250_v38 = vmul.f32 %v10889_v5, %v1216_v50  ;;  %v1254_v20 = vmul.f32 %v10910_v47, %v10869_v32  ;;  %v17371_v62 = vperm.slane %v10983_v58, 3 }
 0x139   : > { %v10934_v31 = vsub.f32 %v1239_v24, %v1240_v30  ;;  %v1246_v35 = vadd.f32 %v1245_v34, %v1244_v49  ;;  %v1786_v9 = vperm.slane %v10866_v12, 1  ;;  %v1851_v22 = vperm.slane %v10866_v12, 6  ;;  %v9743_v24 = vld [vmem:[#allocation5 + $0x10] sm:$0xff]  ;;  %v9741_v34 = vld [vmem:[#allocation5] sm:$0xff] }
 0x13a   : > { %v1943_v18 = vperm.slane %v10916_v59, 0  ;;  %v2008_v27 = vperm.slane %v10916_v59, 5  ;;  %v1251_v63 = vadd.f32 %v1250_v38, %v1249_v37  ;;  %v1956_v8 = vperm.slane %v10916_v59, 1 }
 0x13b   : > { %v2139_v10 = vperm.slane %v10934_v31, 2  ;;  %v17383_v40 = vperm.slane %v10934_v31, 7  ;;  %v774_v36 = vrot.slane %v10908_v3, 4  ;;  %v1982_v30 = vperm.slane %v10916_v59, 3 }
 0x13c   : > { %795 = vrot.lane.b32.xlu0 %v10908_v3, %s10400_s16  ;;  %9928 = vset.pattern.permute.xlu1 %v10685_v16  ;;  %v17384_v37 = vperm.slane %v10916_v59, 6 }
 0x13d   : > { %9921 = vset.pattern.permute.xlu2 %v10689_v17 }
 0x144   : > { %1954 = vperm.xlu0 %9920, %v1943_v18   ;;  %1804 = vperm.xlu1 %9928, %v1799_v21  }
 0x145   : > { %1653 = vperm.xlu2 %9921, %v1642_v41   ;;  %v1838_v41 = vperm.slane %v10866_v12, 5 }
 0x14c   : > { %2019 = vperm.xlu0 %9920, %v2008_v27   ;;  %1817 = vperm.xlu1 %9928, %v1812_v43   ;;  %v1252_v43 = vmul.f32 %v10905_v54, %v10872_v29 }
 0x14d   : > { %1666 = vperm.xlu2 %9921, %v1655_v45  }
 0x14e   : > { %v1253_v46 = vsub.f32 %v1251_v63, %v1252_v43  ;;  %v17382_v63 = vperm.slane %v10916_v59, 7  ;;  %v778_v43 = vperm.slane %v10908_v3, 0 }
 0x150   : > { %v10970_v51 = vadd.f32 %v1254_v20, %v1253_v46 }
 0x152   : > { %v17374_v53 = vperm.slane %v10970_v51, 1  ;;  %v17372_v32 = vperm.slane %v10970_v51, 6 }
 0x154   : > { %2150 = vperm.xlu0 %9920, %v2139_v10   ;;  %9930 = vset.pattern.permute.xlu1 %v10689_v17 }
 0x155   : > { %9922 = vset.pattern.permute.xlu2 %v10685_v16 }
 0x15c   : > { %797 = vrot.lane.b32.xlu0 %v765_v52, %s10400_s16  ;;  %1836 = vperm.xlu1 %9930, %v1825_v39   ;;  %s17849_s16 = sld [smem:[#allocation219_spill]] }
 0x15d   : > { %1673 = vperm.xlu2 %9922, %v1668_v44   ;;  %v1247_v44 = vmul.f32 %v10910_v47, %v10872_v29  ;;  %v1864_v29 = vperm.slane %v10866_v12, 7  ;;  %v732_v12 = vld [vmem:[%s17347_s4 + $0x58] sm:$0xff] }
 0x15f   : > { %v10959_v42 = vadd.f32 %v1247_v44, %v1246_v35  ;;  %v17378_v44 = vperm.slane %v10934_v31, 5 }
 0x161   : > { %v17379_v50 = vperm.slane %v10959_v42, 4  ;;  %v17377_v7 = vperm.slane %v10959_v42, 7  ;;  %v17860_v25 = vperm.slane %v10959_v42, 1 }
 0x162   : > { %s11259_s21 = scalar_lea.vmem %s17849_s16, %s9738_s23  ;;  %s10415_s23 = smov 2  }
 0x164   : > { %2215 = vperm.xlu0 %9920, %v17383_v40   ;;  %1849 = vperm.xlu1 %9930, %v1838_v41  }
 0x165   : > { %1686 = vperm.xlu2 %9922, %v1681_v4  }
 0x16c   : > { %2346 = vperm.xlu0 %9920, %v17379_v50   ;;  %9932 = vset.pattern.permute.xlu1 %v10685_v16 }
 0x16d   : > { %9923 = vset.pattern.permute.xlu2 %v10689_v17 }
 0x174   : > { %2477 = vperm.xlu0 %9920, %v17374_v53   ;;  %1869 = vperm.xlu1 %9932, %v1864_v29  }
 0x175   : > { %1692 = vperm.xlu2 %9923, %v1681_v4   ;;  %v17381_v4 = vperm.slane %v10934_v31, 0 }
 0x176   : > { %v10991_v1 = vpop.permute.xlu0 %1640 }
 0x17c   : > { %2542 = vperm.xlu0 %9920, %v17372_v32   ;;  %1948 = vperm.xlu1 %9932, %v1943_v18   ;;  %v1995_v18 = vperm.slane %v10916_v59, 4 }
 0x17d   : > { %9925 = vset.pattern.permute.xlu2 %v10685_v16 }
 0x17e   : > { %v11000_v2 = vpop.permute.xlu0 %1679 }
 0x184   : > { %3032 = vperm.xlu0 %9920, %v17371_v62   ;;  %9934 = vset.pattern.permute.xlu1 %v10689_v17 }
 0x185   : > { %1778 = vperm.xlu2 %9925, %v1773_v60   ;;  %v1969_v60 = vperm.slane %v10916_v59, 2 }
 0x186   : > { %v11011_v13 = vpop.permute.xlu0 %1705 }
 0x187   : > { %17840 = vst [vmem:[#allocation33_spill] sm:$0xff] %v11011_v13 }
 0x18c   : > { %9961 = vset.pattern.permute.xlu0 %v10685_v16  ;;  %1967 = vperm.xlu1 %9934, %v1956_v8  }
 0x18d   : > { %9927 = vset.pattern.permute.xlu2 %v10689_v17 }
 0x194   : > { %1621 = vperm.xlu0 %9961, %v1616_v55   ;;  %1980 = vperm.xlu1 %9934, %v1969_v60  }
 0x195   : > { %1797 = vperm.xlu2 %9927, %v1786_v9  }
 0x19c   : > { %1660 = vperm.xlu0 %9961, %v1655_v45   ;;  %9936 = vset.pattern.permute.xlu1 %v10685_v16  ;;  %v782_v45 = vperm.slane %v774_v36, 0 }
 0x19d   : > { %1810 = vperm.xlu2 %9927, %v1799_v21   ;;  %v9744_v21 = vld [vmem:[#allocation5 + $0x18] sm:$0xff] }
 0x19e   : > { %984 = vmatpush.bf16.msrb.mxu0 %v9744_v21  ;;  %9779 = vmatpush.bf16.msra.mxu1 %v9744_v21  ;;  %v721_v21 = vld [vmem:[%s17347_s4] sm:$0xff] }
 0x1a2   : > { %985 = vmatpush.bf16.msrb.mxu0 %v9743_v24  ;;  %9780 = vmatpush.bf16.msra.mxu1 %v9743_v24 }
 0x1a4   : > { %1791 = vperm.xlu0 %9961, %v1786_v9   ;;  %2000 = vperm.xlu1 %9936, %v1995_v18  }
 0x1a5   : > { %9929 = vset.pattern.permute.xlu2 %v10685_v16 }
 0x1a6   : > { %v11017_v55 = vpop.permute.xlu0 %1823 }
 0x1ac   : > { %1856 = vperm.xlu0 %9961, %v1851_v22   ;;  %2013 = vperm.xlu1 %9936, %v2008_v27   ;;  %v9742_v27 = vld [vmem:[#allocation5 + $0x8] sm:$0xff] }
 0x1ad   : > { %1830 = vperm.xlu2 %9929, %v1825_v39   ;;  %v11040_v39 = vld [vmem:[%s17350_s7] ss:$0 sm:$0xff]  ;;  %986 = vmatpush.bf16.msrb.mxu0 %v9742_v27 }
 0x1ae   : > { %v11023_v23 = vpop.permute.xlu0 %795  ;;  %9781 = vmatpush.bf16.msra.mxu1 %v9742_v27  ;;  %v771_v27 = vrot.slane %v10908_v3, 1 }
 0x1af   : > { %v809_v19 = vadd.f32 %v11023_v23, %v782_v45  ;;  %v801_v20 = vadd.f32 %v11023_v23, %v778_v43 }
 0x1b1   : > { %v825_v49 = vadd.f32 %v809_v19, %v729_v48  ;;  %987 = vmatpush.bf16.msrb.mxu0 %v9741_v34  ;;  %v817_v24 = vadd.f32 %v801_v20, %v721_v21  ;;  %v17373_v48 = vperm.slane %v10959_v42, 2  ;;  %v722_v20 = vld [vmem:[%s17347_s4 + $0x8] sm:$0xff] }
 0x1b2   : > { %9782 = vmatpush.bf16.msra.mxu1 %v9741_v34 }
 0x1b3   : > { %v11044_v35 = vadd.f32 %v11040_v39, %v825_v49  ;;  %v834_v49 = vadd.f32 %v11040_v39, %v817_v24 }
 0x1b4   : > { %1987 = vperm.xlu0 %9961, %v1982_v30   ;;  %9938 = vset.pattern.permute.xlu1 %v10689_v17 }
 0x1b5   : > { %1843 = vperm.xlu2 %9929, %v1838_v41   ;;  %v775_v41 = vrot.slane %v10908_v3, 5  ;;  %v850_v6 = vmax.f32 %v834_v49, 0.0 }
 0x1b6   : > { %v11035_v52 = vpop.permute.xlu0 %1954 }
 0x1b7   : > { %v783_v46 = vperm.slane %v775_v41, 0 }
 0x1b9   : > { %v811_v9 = vadd.f32 %v11023_v23, %v783_v46 }
 0x1bc   : > { %2118 = vperm.xlu0 %9961, %v17381_v4   ;;  %2032 = vperm.xlu1 %9938, %v17384_v37   ;;  %v17386_v37 = vperm.slane %v10970_v51, 4 }
 0x1bd   : > { %9931 = vset.pattern.permute.xlu2 %v10689_v17 }
 0x1be   : > { %v11052_v38 = vpop.permute.xlu0 %2019 }
 0x1c4   : > { %2183 = vperm.xlu0 %9961, %v17378_v44   ;;  %2045 = vperm.xlu1 %9938, %v17382_v63  }
 0x1c5   : > { %1862 = vperm.xlu2 %9931, %v1851_v22   ;;  %v731_v22 = vld [vmem:[%s17347_s4 + $0x50] sm:$0xff] }
 0x1c6   : > { %v11064_v36 = vpop.permute.xlu0 %2150  ;;  %v827_v19 = vadd.f32 %v811_v9, %v731_v22  ;;  %v779_v22 = vperm.slane %v771_v27, 0 }
 0x1c8   : > { %v844_v34 = vadd.f32 %v11040_v39, %v827_v19  ;;  %v803_v27 = vadd.f32 %v11023_v23, %v779_v22 }
 0x1ca   : > { %v860_v15 = vmax.f32 %v844_v34, 0.0 }
 0x1cc   : > { %2314 = vperm.xlu0 %9961, %v17373_v48   ;;  %9940 = vset.pattern.permute.xlu1 %v10685_v16  ;;  %v17380_v48 = vperm.slane %v10934_v31, 1 }
 0x1cd   : > { %1875 = vperm.xlu2 %9931, %v1864_v29   ;;  %v776_v29 = vrot.slane %v10908_v3, 6 }
 0x1ce   : > { %v11081_v41 = vpop.permute.xlu0 %797 }
 0x1cf   : > { %v802_v9 = vadd.f32 %v11081_v41, %v778_v43  ;;  %v812_v21 = vadd.f32 %v11081_v41, %v783_v46  ;;  %v784_v62 = vperm.slane %v776_v29, 0  ;;  %v810_v32 = vadd.f32 %v11081_v41, %v782_v45  ;;  %v730_v46 = vld [vmem:[%s17347_s4 + $0x48] sm:$0xff]  ;;  %v724_v45 = vld [vmem:[%s17347_s4 + $0x18] sm:$0xff] }
 0x1d0   : > { %v804_v43 = vadd.f32 %v11081_v41, %v779_v22  ;;  %v876_v29 = vpack.c.bf16 %v860_v15, %v860_v15 }
 0x1d1   : > { %v818_v24 = vadd.f32 %v802_v9, %v722_v20  ;;  %v828_v19 = vadd.f32 %v812_v21, %v732_v12  ;;  %v814_v49 = vadd.f32 %v11081_v41, %v784_v62  ;;  %v866_v20 = vpack.c.bf16 %v850_v6, %v850_v6  ;;  %v723_v9 = vld [vmem:[%s17347_s4 + $0x10] sm:$0xff]  ;;  %v734_v21 = vld [vmem:[%s17347_s4 + $0x68] sm:$0xff]  ;;  %v733_v6 = vld [vmem:[%s17347_s4 + $0x60] sm:$0xff] }
 0x1d2   : > { %v813_v22 = vadd.f32 %v11023_v23, %v784_v62  ;;  %v820_v50 = vadd.f32 %v804_v43, %v724_v45  ;;  %v917_v63 = vunpack.c.l.b16 %v876_v29 }
 0x1d3   : > { %v835_v53 = vadd.f32 %v11040_v39, %v818_v24  ;;  %v845_v14 = vadd.f32 %v11040_v39, %v828_v19  ;;  %v11117_v24 = vpop.permute.xlu2 %1608  ;;  %v826_v19 = vadd.f32 %v810_v32, %v730_v46  ;;  %v830_v15 = vadd.f32 %v814_v49, %v734_v21 }
 0x1d4   : > { %2379 = vperm.xlu0 %9961, %v17377_v7   ;;  %2131 = vperm.xlu1 %9940, %v17380_v48   ;;  %v907_v48 = vunpack.c.l.b16 %v866_v20  ;;  %v829_v62 = vadd.f32 %v813_v22, %v733_v6  ;;  %v837_v45 = vadd.f32 %v11040_v39, %v820_v50 }
 0x1d5   : > { %9933 = vset.pattern.permute.xlu2 %v10685_v16  ;;  %v851_v34 = vmax.f32 %v835_v53, 0.0  ;;  %v861_v12 = vmax.f32 %v845_v14, 0.0  ;;  %v819_v14 = vadd.f32 %v803_v27, %v723_v9  ;;  %v858_v53 = vmax.f32 %v11044_v35, 0.0 }
 0x1d6   : > { %v843_v32 = vadd.f32 %v11040_v39, %v826_v19  ;;  %v853_v27 = vmax.f32 %v837_v45, 0.0 }
 0x1d7   : > { %v867_v7 = vpack.c.bf16 %v851_v34, %v851_v34  ;;  %v877_v44 = vpack.c.bf16 %v861_v12, %v861_v12 }
 0x1d8   : > { %v859_v35 = vmax.f32 %v843_v32, 0.0  ;;  %v869_v22 = vpack.c.bf16 %v853_v27, %v853_v27  ;;  %v736_v32 = vld [vmem:[%s17347_s4 + $0x78] sm:$0xff] }
 0x1d9   : > { %v908_v4 = vunpack.c.l.b16 %v867_v7  ;;  %v918_v40 = vunpack.c.l.b16 %v877_v44  ;;  %v847_v7 = vadd.f32 %v11040_v39, %v830_v15  ;;  %v874_v44 = vpack.c.bf16 %v858_v53, %v858_v53 }
 0x1da   : > { %v910_v45 = vunpack.c.l.b16 %v869_v22 }
 0x1db   : > { %v923_v46 = vpack.c.b16 %v908_v4, %v907_v48  ;;  %v928_v43 = vpack.c.b16 %v918_v40, %v917_v63  ;;  %v836_v4 = vadd.f32 %v11040_v39, %v819_v14  ;;  %v772_v40 = vrot.slane %v10908_v3, 2  ;;  %v11137_v50 = vpop.permute.xlu2 %1614  ;;  %v726_v14 = vld [vmem:[%s17347_s4 + $0x28] sm:$0xff] }
 0x1dc   : > { %2510 = vperm.xlu0 %9961, %v17386_v37   ;;  %2144 = vperm.xlu1 %9940, %v2139_v10   ;;  %v777_v63 = vrot.slane %v10908_v3, 7  ;;  %v875_v48 = vpack.c.bf16 %v859_v35, %v859_v35  ;;  %v863_v49 = vmax.f32 %v847_v7, 0.0  ;;  %v915_v34 = vunpack.c.l.b16 %v874_v44  ;;  %v735_v35 = vld [vmem:[%s17347_s4 + $0x70] sm:$0xff] }
 0x1dd   : > { %1961 = vperm.xlu2 %9933, %v1956_v8   ;;  %9505 = vmatmul.msk.bf16.vlgmr.msrb.gmra.mxu0 %vm955_vm4, %v923_v46  ;;  %v846_v8 = vadd.f32 %v11040_v39, %v829_v62  ;;  %v852_v10 = vmax.f32 %v836_v4, 0.0  ;;  %v780_v12 = vperm.slane %v772_v40, 0 }
 0x1de   : > { %9510 = vmatmul.msk.bf16.vlgmr.msra.gmra.mxu1 %vm955_vm4, %v928_v43  ;;  %v916_v20 = vunpack.c.l.b16 %v875_v48  ;;  %v785_v9 = vperm.slane %v777_v63, 0  ;;  %v879_v6 = vpack.c.bf16 %v863_v49, %v863_v49  ;;  %v2152_v49 = vperm.slane %v10934_v31, 3 }
 0x1df   : > { %v862_v29 = vmax.f32 %v846_v8, 0.0  ;;  %v806_v19 = vadd.f32 %v11081_v41, %v780_v12  ;;  %v868_v53 = vpack.c.bf16 %v852_v10, %v852_v10  ;;  %v805_v62 = vadd.f32 %v11023_v23, %v780_v12 }
 0x1e0   : > { %v11142_v21 = vpack.c.b16 %v916_v20, %v915_v34  ;;  %v816_v15 = vadd.f32 %v11081_v41, %v785_v9  ;;  %v815_v43 = vadd.f32 %v11023_v23, %v785_v9  ;;  %v920_v4 = vunpack.c.l.b16 %v879_v6 }
 0x1e1   : > { %v878_v46 = vpack.c.bf16 %v862_v29, %v862_v29  ;;  %v822_v7 = vadd.f32 %v806_v19, %v726_v14  ;;  %v909_v8 = vunpack.c.l.b16 %v868_v53  ;;  %v773_v9 = vrot.slane %v10908_v3, 3 }
 0x1e2   : > { %v832_v40 = vadd.f32 %v816_v15, %v736_v32  ;;  %v831_v27 = vadd.f32 %v815_v43, %v735_v35  ;;  %v2165_v32 = vperm.slane %v10934_v31, 4  ;;  %v728_v43 = vld [vmem:[%s17347_s4 + $0x38] sm:$0xff] }
 0x1e3   : > { %v11163_v44 = vpop.permute.xlu2 %1627  ;;  %v919_v48 = vunpack.c.l.b16 %v878_v46  ;;  %v924_v34 = vpack.c.b16 %v910_v45, %v909_v8  ;;  %v839_v20 = vadd.f32 %v11040_v39, %v822_v7  ;;  %v781_v53 = vperm.slane %v773_v9, 0 }
 0x1e4   : > { %9942 = vset.pattern.permute.xlu1 %v10689_v17  ;;  %v849_v12 = vadd.f32 %v11040_v39, %v832_v40  ;;  %v848_v22 = vadd.f32 %v11040_v39, %v831_v27 }
 0x1e5   : > { %1974 = vperm.xlu2 %9933, %v1969_v60   ;;  %v725_v60 = vld [vmem:[%s17347_s4 + $0x20] sm:$0xff]  ;;  %v929_v10 = vpack.c.b16 %v920_v4, %v919_v48  ;;  %v855_v19 = vmax.f32 %v839_v20, 0.0  ;;  %v807_v7 = vadd.f32 %v11023_v23, %v781_v53  ;;  %v727_v4 = vld [vmem:[%s17347_s4 + $0x30] sm:$0xff] }
 0x1e6   : > { %v821_v63 = vadd.f32 %v805_v62, %v725_v60  ;;  %v865_v14 = vmax.f32 %v849_v12, 0.0  ;;  %v864_v62 = vmax.f32 %v848_v22, 0.0  ;;  %v808_v60 = vadd.f32 %v11081_v41, %v781_v53 }
 0x1e7   : > { %v871_v46 = vpack.c.bf16 %v855_v19, %v855_v19  ;;  %v2191_v22 = vperm.slane %v10934_v31, 6 }
 0x1e8   : > { %v838_v29 = vadd.f32 %v11040_v39, %v821_v63  ;;  %v881_v3 = vpack.c.bf16 %v865_v14, %v865_v14  ;;  %v880_v35 = vpack.c.bf16 %v864_v62, %v864_v62  ;;  %v824_v40 = vadd.f32 %v808_v60, %v728_v43  ;;  %v9549_v43 = vld [vmem:[%s17351_s8 + $0x30] sm:$0xf] }
 0x1e9   : > { %v912_v41 = vunpack.c.l.b16 %v871_v46  ;;  %v823_v63 = vadd.f32 %v807_v7, %v727_v4  ;;  %v17842_v46 = vperm.slane %v10934_v31, 7  ;;  %v17391_v4 = vperm.slane %v10959_v42, 1 }
 0x1ea   : > { %v854_v15 = vmax.f32 %v838_v29, 0.0  ;;  %v922_v8 = vunpack.c.l.b16 %v881_v3  ;;  %v921_v27 = vunpack.c.l.b16 %v880_v35  ;;  %v841_v20 = vadd.f32 %v11040_v39, %v824_v40 }
 0x1eb   : > { %v11176_v6 = vpop.permute.xlu2 %1634  ;;  %v17843_v3 = vperm.slane %v10916_v59, 7  ;;  %v17392_v35 = vperm.slane %v10959_v42, 0 }
 0x1ec   : > { %2163 = vperm.xlu1 %9942, %v2152_v49   ;;  %v870_v45 = vpack.c.bf16 %v854_v15, %v854_v15  ;;  %v930_v23 = vpack.c.b16 %v922_v8, %v921_v27  ;;  %v857_v12 = vmax.f32 %v841_v20, 0.0  ;;  %v11239_v8 = vpop.permute.xlu1 %1699  ;;  %v17848_v27 = vperm.slane %v10934_v31, 1 }
 0x1ed   : > { %9935 = vset.pattern.permute.xlu2 %v10689_v17  ;;  %9506 = vmatmul.msk.bf16.gmra.mxu0 %vm955_vm4, %v924_v34  ;;  %17847 = vst [vmem:[#allocation36_spill] sm:$0xff] %v11239_v8 }
 0x1ee   : > { %9511 = vmatmul.msk.bf16.gmra.mxu1 %vm955_vm4, %v929_v10  ;;  %v840_v10 = vadd.f32 %v11040_v39, %v823_v63  ;;  %v873_v19 = vpack.c.bf16 %v857_v12, %v857_v12  ;;  %v17841_v39 = vperm.slane %v10916_v59, 6 }
 0x1f0   : > { %v856_v29 = vmax.f32 %v840_v10, 0.0  ;;  %v914_v14 = vunpack.c.l.b16 %v873_v19  ;;  %v9746_v10 = vld [vmem:[#allocation7 + $0x4] sm:$0x70] }
 0x1f3   : > { %v11191_v48 = vpop.permute.xlu2 %1647 }
 0x1f4   : > { %2176 = vperm.xlu1 %9942, %v2165_v32   ;;  %v11252_v20 = vpop.permute.xlu1 %1784 }
 0x1f5   : > { %1993 = vperm.xlu2 %9935, %v1982_v30   ;;  %v911_v30 = vunpack.c.l.b16 %v870_v45  ;;  %v9754_v45 = vld [vmem:[%s17351_s8 + $0x34] sm:$0xf0] }
 0x1f6   : > { %v9550_v7 = vor.u32 %v9754_v45, %v9549_v43  ;;  %v17850_v45 = vperm.slane %v10959_v42, 4 }
 0x1f7   : > { %v925_v34 = vpack.c.b16 %v912_v41, %v911_v30  ;;  %v17845_v41 = vperm.slane %v10934_v31, 0  ;;  %v9541_v30 = vld [vmem:[%s17351_s8 + $0x20] sm:$0xf] }
 0x1f8   : > { %1380 = vmatpush.bf16.msra.mxu0 %v9550_v7 }
 0x1fb   : > { %v11200_v9 = vpop.permute.xlu2 %1653 }
 0x1fc   : > { %9944 = vset.pattern.permute.xlu1 %v10685_v16 }
 0x1fd   : > { %2006 = vperm.xlu2 %9935, %v1995_v18   ;;  %9507 = vmatmul.msk.bf16.gmra.mxu0 %vm955_vm4, %v925_v34  ;;  %v872_v18 = vpack.c.bf16 %v856_v29, %v856_v29  ;;  %v17390_v29 = vperm.slane %v10959_v42, 3 }
 0x1fe   : > { %9512 = vmatmul.msk.bf16.gmra.mxu1 %vm955_vm4, %v930_v23  ;;  %v9515_v23 = vld [vmem:[#allocation7] sm:$0xf] }
 0x1ff   : > { %v913_v15 = vunpack.c.l.b16 %v872_v18  ;;  %v9516_v12 = vor.u32 %v9746_v10, %v9515_v23  ;;  %v719_v18 = vld [vmem:[%s11259_s21] sm:$0xff] }
 0x201   : > { %v926_v53 = vpack.c.b16 %v914_v14, %v913_v15  ;;  %v1273_v19 = vsel %vm1271_vm5, %v9516_v12, 0  ;;  %v11269_v15 = vpop.permute.xlu1 %1804 }
 0x202   : > { %1285 = vmatpush.bf16.msra.mxu2 %v1273_v19 }
 0x203   : > { %v11206_v62 = vpop.permute.xlu2 %1666 }
 0x204   : > { %2196 = vperm.xlu1 %9944, %v2191_v22  }
 0x205   : > { %9937 = vset.pattern.permute.xlu2 %v10685_v16 }
 0x206   : > { %9783 = vmatpush.bf16.msrb.mxu2 %v9550_v7 }
 0x209   : > { %v11289_v23 = vpop.permute.xlu1 %1817 }
 0x20b   : > { %v11213_v60 = vpop.permute.xlu2 %1673 }
 0x20c   : > { %2209 = vperm.xlu1 %9944, %v17842_v46   ;;  %v1256_v46 = vpack.c.bf16 %v719_v18, %v719_v18  ;;  %v9525_v18 = vld [vmem:[%s17351_s8] sm:$0xf] }
 0x20d   : > { %2026 = vperm.xlu2 %9937, %v17841_v39   ;;  %9508 = vmatmul.msk.bf16.gmra.mxu0 %vm955_vm4, %v926_v53  ;;  %v9745_v53 = vld [vmem:[#allocation7 + $0x4] sm:$0xf]  ;;  %v9517_v39 = vld [vmem:[#allocation7 + $0x8] sm:$0x70] }
 0x20e   : > { %9521 = vmatmul.msk.bf16.vlgmr.msra.gmra.mxu2 %vm17612_vm6, %v1256_v46 }
 0x211   : > { %v11296_v19 = vpop.permute.xlu1 %1836 }
 0x213   : > { %v11230_v59 = vpop.permute.xlu2 %1686 }
 0x214   : > { %9946 = vset.pattern.permute.xlu1 %v10689_v17  ;;  %17844 = vst [vmem:[#allocation34_spill] sm:$0xff] %v11230_v59 }
 0x215   : > { %2039 = vperm.xlu2 %9937, %v17843_v3   ;;  %v9520_v3 = vor.u32 %v9745_v53, %v9517_v39 }
 0x217   : > { %v1276_v43 = vsel %vm1271_vm5, %v9520_v3, 0  ;;  %v9551_v3 = vld [vmem:[%s17351_s8 + $0x38] sm:$0xf0] }
 0x218   : > { %1298 = vmatpush.bf16.msra.mxu3 %v1276_v43 }
 0x21b   : > { %v11237_v40 = vpop.permute.xlu2 %1692  ;;  %9522 = vmatmul.msk.bf16.vlgmr.msra.gmra.mxu3 %vm17612_vm6, %v1256_v46  ;;  %v9753_v46 = vld [vmem:[%s17351_s8 + $0x34] sm:$0xf] }
 0x21c   : > { %2294 = vperm.xlu1 %9946, %v17392_v35   ;;  %17846 = vst [vmem:[#allocation35_spill] sm:$0xff] %v11237_v40  ;;  %9784 = vmatpush.bf16.msrb.mxu3 %v9550_v7  ;;  %v9554_v43 = vor.u32 %v9753_v46, %v9551_v3  ;;  %v9527_v46 = vld [vmem:[%s17351_s8 + $0x8] sm:$0xf0] }
 0x21d   : > { %9939 = vset.pattern.permute.xlu2 %v10689_v17  ;;  %9509 = vmatmul.msk.bf16.gmra.mxu0 %vm955_vm4, %v11142_v21  ;;  %v9752_v21 = vld [vmem:[%s17351_s8 + $0x24] sm:$0xf0] }
 0x21e   : > { %v9542_v63 = vor.u32 %v9752_v21, %v9541_v30  ;;  %v9750_v30 = vld [vmem:[%s17351_s8 + $0x14] sm:$0xf0]  ;;  %v3682_v21 = vld [vmem:[%s17357_s14 + $0x20] sm:$0x7] }
 0x21f   : > { %v3704_v7 = vunpack.c.l.b16 %v3682_v21  ;;  %v11323_v21 = vpop.permute.xlu1 %1849 }
 0x220   : > { %1381 = vmatpush.bf16.msra.mxu0 %v9542_v63  ;;  %9785 = vmatpush.bf16.msrb.mxu2 %v9542_v63 }
 0x221   : > { %9786 = vmatpush.bf16.msrb.mxu3 %v9542_v63  ;;  %v3709_v10 = vpack.c.b16 %v3704_v7, %v3704_v7  ;;  %v9748_v63 = vld [vmem:[%s17351_s8 + $0x4] sm:$0xf0]  ;;  %v17852_v7 = vperm.slane %v10934_v31, 5 }
 0x222   : > { %v9526_v39 = vor.u32 %v9748_v63, %v9525_v18  ;;  %v9535_v18 = vld [vmem:[%s17351_s8 + $0x18] sm:$0xf0] }
 0x223   : > { %v11250_v34 = vpop.permute.xlu2 %1778  ;;  %v3718_v53 = vand.u32 %v3709_v10, %v10678_v11  ;;  %v9751_v11 = vld [vmem:[%s17351_s8 + $0x24] sm:$0xf]  ;;  %v9749_v10 = vld [vmem:[%s17351_s8 + $0x14] sm:$0xf] }
 0x224   : > { %2307 = vperm.xlu1 %9946, %v17391_v4   ;;  %v9538_v63 = vor.u32 %v9749_v10, %v9535_v18  ;;  %v11356_v10 = vld [vmem:[%s17350_s7 + $0x1] ss:$0 sm:$0xff] }
 0x225   : > { %2124 = vperm.xlu2 %9939, %v17845_v41   ;;  %v9533_v41 = vld [vmem:[%s17351_s8 + $0x10] sm:$0xf] }
 0x22b   : > { %v11267_v14 = vpop.permute.xlu2 %1797 }
 0x22c   : > { %9948 = vset.pattern.permute.xlu1 %v10685_v16 }
 0x22d   : > { %2137 = vperm.xlu2 %9939, %v17848_v27   ;;  %v9534_v27 = vor.u32 %v9750_v30, %v9533_v41 }
 0x22f   : > { %1382 = vmatpush.bf16.msra.mxu0 %v9534_v27  ;;  %9787 = vmatpush.bf16.msrb.mxu2 %v9534_v27 }
 0x230   : > { %9788 = vmatpush.bf16.msrb.mxu3 %v9534_v27  ;;  %v17387_v27 = vperm.slane %v10959_v42, 6 }
 0x233   : > { %9789 = vmatpush.bf16.msrb.mxu2 %v9526_v39  ;;  %1383 = vmatpush.bf16.msra.mxu0 %v9526_v39 }
 0x234   : > { %2327 = vperm.xlu1 %9948, %v17390_v29   ;;  %9790 = vmatpush.bf16.msrb.mxu3 %v9526_v39  ;;  %v9747_v39 = vld [vmem:[%s17351_s8 + $0x4] sm:$0xf] }
 0x235   : > { %9941 = vset.pattern.permute.xlu2 %v10685_v16 }
 0x237   : > { %3723 = vmatpush.bf16.msrb.mxu0 %v3718_v53  ;;  %1429 = vmatpush.bf16.msra.mxu2 %v9554_v43  ;;  %v17385_v53 = vperm.slane %v10983_v58, 1 }
 0x239   : > { %3000 = vperm.xlu0 %9961, %v17385_v53  }
 0x23c   : > { %2340 = vperm.xlu1 %9948, %v17850_v45   ;;  %v9543_v45 = vld [vmem:[%s17351_s8 + $0x28] sm:$0xf0] }
 0x23d   : > { %2157 = vperm.xlu2 %9941, %v2152_v49   ;;  %v11287_v49 = vpop.permute.xlu2 %1810  ;;  %v9546_v30 = vor.u32 %v9751_v11, %v9543_v45  ;;  %v9530_v11 = vor.u32 %v9747_v39, %v9527_v46  ;;  %v11347_v45 = vpop.permute.xlu1 %1869 }
 0x23e   : > { %17854 = vst [vmem:[#allocation39_spill] sm:$0xff] %v11347_v45 }
 0x23f   : > { %1430 = vmatpush.bf16.msra.mxu2 %v9546_v30 }
 0x243   : > { %1431 = vmatpush.bf16.msra.mxu2 %v9538_v63  ;;  %v10401_v63 = vmov 0.0  }
 0x244   : > { %9950 = vset.pattern.permute.xlu1 %v10689_v17  ;;  %v11361_v39 = vsel %vm3536_vm7, 1.0, %v10401_v63  ;;  %vm3714_vm7 = vcmask 564224  }
 0x245   : > { %2170 = vperm.xlu2 %9941, %v2165_v32   ;;  %v11294_v12 = vpop.permute.xlu2 %1830  ;;  %v17389_v32 = vperm.slane %v10959_v42, 5 }
 0x247   : > { %1432 = vmatpush.bf16.msra.mxu2 %v9530_v11  ;;  %v17393_v11 = vperm.slane %v10970_v51, 0 }
 0x24c   : > { %2359 = vperm.xlu1 %9950, %v17389_v32  }
 0x24d   : > { %9943 = vset.pattern.permute.xlu2 %v10689_v17  ;;  %v11321_v41 = vpop.permute.xlu2 %1843 }
 0x24e   : > { %17851 = vst [vmem:[#allocation37_spill] sm:$0xff] %v11321_v41 }
 0x254   : > { %2372 = vperm.xlu1 %9950, %v17387_v27  }
 0x255   : > { %2189 = vperm.xlu2 %9943, %v17852_v7   ;;  %v11345_v3 = vpop.permute.xlu2 %1862  ;;  %v17388_v7 = vperm.slane %v10983_v58, 6 }
 0x256   : > { %17853 = vst [vmem:[#allocation38_spill] sm:$0xff] %v11345_v3 }
 0x257   : > { %3065 = vperm.xlu0 %9961, %v17388_v7   ;;  %v11371_v7 = vpop.permute.xlu1 %1948 }
 0x25a   : > { %v989_v43 = vpop.f32.mrf.mxu0 }
 0x25b   : > { %v1014_v30 = vpop.f32.mrf.mxu1  ;;  %v990_v31 = vadd.f32 %v11356_v10, %v989_v43 }
 0x25c   : > { %9952 = vset.pattern.permute.xlu1 %v10685_v16  ;;  %v1015_v37 = vadd.f32 %v11356_v10, %v1014_v30 }
 0x25d   : > { %2202 = vperm.xlu2 %9943, %v2191_v22   ;;  %v11366_v53 = vpop.permute.xlu2 %1875  ;;  %v3557_v29 = vsel %vm955_vm4, %v990_v31, 0.0 }
 0x25e   : > { %17855 = vst [vmem:[#allocation40_spill] sm:$0xff] %v11366_v53 }
 0x25f   : > { %v11393_v57 = vpop.permute.xlu1 %1967 }
 0x262   : > { %v991_v18 = vpop.f32.mrf.mxu0 }
 0x263   : > { %v992_v22 = vadd.f32 %v11356_v10, %v991_v18  ;;  %v1016_v46 = vpop.f32.mrf.mxu1 }
 0x264   : > { %v1017_v27 = vadd.f32 %v11356_v10, %v1016_v46  ;;  %2458 = vperm.xlu1 %9952, %v17393_v11   ;;  %v3602_v46 = vsel %vm955_vm4, %v1015_v37, 0.0 }
 0x265   : > { %9945 = vset.pattern.permute.xlu2 %v10685_v16  ;;  %v1029_v32 = vpack.c.bf16 %v992_v22, %v990_v31  ;;  %v3542_v63 = vmul.f32 %v11361_v39, %v992_v22  ;;  %v17856_v22 = vmov 0   ;;  %v11389_v31 = vpop.permute.xlu2 %1961 }
 0x266   : > { %v11376_v43 = vpack.c.bf16 %v1017_v27, %v1015_v37  ;;  %v3552_v18 = vmul.f32 %v11361_v39, %v1017_v27  ;;  %9969 = vset.pattern.permute.xlu0 %v17856_v22  ;;  %17857 = vst [vmem:[#allocation41_spill] sm:$0xff] %v11389_v31  ;;  %v17859_v37 = vperm.slane %v10970_v51, 1 }
 0x267   : > { %v3558_v30 = vsel %vm955_vm4, %v3542_v63, 0.0  ;;  %9555 = vmatmul.msk.bf16.vlgmr.msra.gmra.mxu0 %vm955_vm4, %v1029_v32  ;;  %v17858_v63 = vperm.slane %v10959_v42, 0 }
 0x268   : > { %v3559_v4 = vadd.f32 %v3558_v30, %v3557_v29  ;;  %v3603_v35 = vsel %vm955_vm4, %v3552_v18, 0.0  ;;  %9560 = vmatmul.msk.bf16.vlgmr.msrb.gmra.mxu2 %vm955_vm4, %v11376_v43 }
 0x269   : > { %v11387_v11 = vadd.f32 %v3603_v35, %v3602_v46 }
 0x26a   : > { %v3560_v28 = vrot.slane %v3559_v4, 4  ;;  %v994_v27 = vpop.f32.mrf.mxu0 }
 0x26b   : > { %v1019_v26 = vpop.f32.mrf.mxu1  ;;  %v995_v56 = vadd.f32 %v11356_v10, %v994_v27 }
 0x26c   : > { %2471 = vperm.xlu1 %9952, %v17859_v37   ;;  %v3561_v29 = vadd.f32 %v3560_v28, %v3559_v4  ;;  %v1020_v0 = vadd.f32 %v11356_v10, %v1019_v26 }
 0x26d   : > { %2288 = vperm.xlu2 %9945, %v17858_v63   ;;  %v11405_v28 = vpop.permute.xlu2 %1974  ;;  %v3566_v26 = vsel %vm955_vm4, %v995_v56, 0.0 }
 0x26e   : > { %v3562_v18 = vrot.slane %v3561_v29, 2  ;;  %17861 = vst [vmem:[#allocation42_spill] sm:$0xff] %v11405_v28 }
 0x270   : > { %v3563_v4 = vadd.f32 %v3562_v18, %v3561_v29 }
 0x272   : > { %v996_v30 = vpop.f32.mrf.mxu0 }
 0x273   : > { %v997_v35 = vadd.f32 %v11356_v10, %v996_v30  ;;  %v1021_v46 = vpop.f32.mrf.mxu1  ;;  %v11410_v30 = vpop.permute.xlu1 %1980 }
 0x274   : > { %v1022_v61 = vadd.f32 %v11356_v10, %v1021_v46  ;;  %9954 = vset.pattern.permute.xlu1 %v10689_v17 }
 0x275   : > { %2301 = vperm.xlu2 %9945, %v17860_v25   ;;  %v1030_v63 = vpack.c.bf16 %v997_v35, %v995_v56  ;;  %v3544_v53 = vmul.f32 %v11361_v39, %v997_v35  ;;  %v3611_v25 = vsel %vm955_vm4, %v1020_v0, 0.0 }
 0x276   : > { %v11407_v37 = vpack.c.bf16 %v1022_v61, %v1020_v0  ;;  %v3554_v27 = vmul.f32 %v11361_v39, %v1022_v61  ;;  %v3564_v61 = vrot.slane %v3563_v4, 1  ;;  %v11426_v0 = vpop.permute.xlu2 %1993 }
 0x277   : > { %v3567_v46 = vsel %vm955_vm4, %v3544_v53, 0.0  ;;  %9556 = vmatmul.msk.bf16.gmra.mxu0 %vm955_vm4, %v1030_v63  ;;  %v17415_v53 = vperm.slane %v10970_v51, 2  ;;  %17862 = vst [vmem:[#allocation43_spill] sm:$0xff] %v11426_v0 }
 0x278   : > { %v3568_v35 = vadd.f32 %v3567_v46, %v3566_v26  ;;  %v3612_v45 = vsel %vm955_vm4, %v3554_v27, 0.0  ;;  %9561 = vmatmul.msk.bf16.vlgmr.msrb.gmra.mxu3 %vm955_vm4, %v11407_v37  ;;  %9563 = vmatmul.msk.bf16.vlgmr.msra.gmra.mxu2 %vm955_vm4, %v1029_v32  ;;  %v3565_v27 = vadd.f32 %v3564_v61, %v3563_v4  ;;  %v17864_v4 = vperm.slane %v10959_v42, 2 }
 0x279   : > { %v11420_v29 = vadd.f32 %v3612_v45, %v3611_v25 }
 0x27a   : > { %v3569_v18 = vrot.slane %v3568_v35, 4  ;;  %v999_v8 = vpop.f32.mrf.mxu0  ;;  %v3629_v45 = vpack.c.bf16 %v3565_v27, %v3565_v27 }
 0x27b   : > { %v1024_v56 = vpop.f32.mrf.mxu1  ;;  %v11428_v46 = vpop.permute.xlu1 %2000  ;;  %v1000_v40 = vadd.f32 %v11356_v10, %v999_v8 }
 0x27c   : > { %v3570_v13 = vadd.f32 %v3569_v18, %v3568_v35  ;;  %2490 = vperm.xlu1 %9954, %v17415_v53   ;;  %17863 = vst [vmem:[#allocation44_spill] sm:$0xff] %v11428_v46  ;;  %v17417_v18 = vperm.slane %v10970_v51, 3  ;;  %v1025_v53 = vadd.f32 %v11356_v10, %v1024_v56  ;;  %v3645_v8 = vperm.slane %v3629_v45, 0 }
 0x27d   : > { %9947 = vset.pattern.permute.xlu2 %v10689_v17 }
 0x27e   : > { %v3571_v26 = vrot.slane %v3570_v13, 2 }
 0x280   : > { %v3572_v32 = vadd.f32 %v3571_v26, %v3570_v13 }
 0x282   : > { %v3573_v25 = vrot.slane %v3572_v32, 1  ;;  %v1001_v3 = vpop.f32.mrf.mxu0 }
 0x283   : > { %v1002_v28 = vadd.f32 %v11356_v10, %v1001_v3  ;;  %v1026_v35 = vpop.f32.mrf.mxu1 }
 0x284   : > { %v3574_v22 = vadd.f32 %v3573_v25, %v3572_v32  ;;  %v1027_v0 = vadd.f32 %v11356_v10, %v1026_v35  ;;  %2503 = vperm.xlu1 %9954, %v17417_v18   ;;  %v3575_v32 = vsel %vm955_vm4, %v1000_v40, 0.0  ;;  %v11446_v25 = vpop.permute.xlu2 %2006 }
 0x285   : > { %2320 = vperm.xlu2 %9947, %v17864_v4   ;;  %v1031_v61 = vpack.c.bf16 %v1002_v28, %v1000_v40  ;;  %v3546_v13 = vmul.f32 %v11361_v39, %v1002_v28  ;;  %17865 = vst [vmem:[#allocation45_spill] sm:$0xff] %v11446_v25  ;;  %v3620_v28 = vsel %vm955_vm4, %v1025_v53, 0.0 }
 0x286   : > { %v3630_v27 = vpack.c.bf16 %v3574_v22, %v3574_v22  ;;  %v11440_v3 = vpack.c.bf16 %v1027_v0, %v1025_v53  ;;  %v3556_v26 = vmul.f32 %v11361_v39, %v1027_v0  ;;  %v11453_v22 = vpop.permute.xlu1 %2013  ;;  %v3653_v0 = vunpack.c.l.b16 %v3645_v8 }
 0x287   : > { %v3576_v56 = vsel %vm955_vm4, %v3546_v13, 0.0  ;;  %9557 = vmatmul.msk.bf16.gmra.mxu0 %vm955_vm4, %v1031_v61  ;;  %17866 = vst [vmem:[#allocation46_spill] sm:$0xff] %v11453_v22  ;;  %v17867_v53 = vperm.slane %v10959_v42, 3 }
 0x288   : > { %v3646_v35 = vperm.slane %v3630_v27, 0  ;;  %v3577_v4 = vadd.f32 %v3576_v56, %v3575_v32  ;;  %v3621_v18 = vsel %vm955_vm4, %v3556_v26, 0.0  ;;  %9562 = vmatmul.msk.bf16.gmra.mxu3 %vm955_vm4, %v11440_v3  ;;  %9564 = vmatmul.msk.bf16.gmra.mxu2 %vm955_vm4, %v1030_v63 }
 0x289   : > { %v3622_v40 = vadd.f32 %v3621_v18, %v3620_v28  ;;  %v17422_v28 = vperm.slane %v10970_v51, 5 }
 0x28a   : > { %v3654_v45 = vunpack.c.l.b16 %v3646_v35  ;;  %v3578_v13 = vrot.slane %v3577_v4, 4  ;;  %v1004_v46 = vpop.f32.mrf.mxu0 }
 0x28b   : > { %v1005_v8 = vadd.f32 %v11356_v10, %v1004_v46 }
 0x28c   : > { %v3661_v27 = vsel %vm17785_vm8, %v3654_v45, %v3653_v0  ;;  %v3579_v25 = vadd.f32 %v3578_v13, %v3577_v4  ;;  %9956 = vset.pattern.permute.xlu1 %v10685_v16  ;;  %v11459_v32 = vpop.permute.xlu2 %2026 }
 0x28d   : > { %2333 = vperm.xlu2 %9947, %v17867_v53   ;;  %17868 = vst [vmem:[#allocation47_spill] sm:$0xff] %v11459_v32  ;;  %v3584_v13 = vsel %vm955_vm4, %v1005_v8, 0.0 }
 0x28e   : > { %v3580_v26 = vrot.slane %v3579_v25, 2  ;;  %v11461_v56 = vpop.permute.xlu1 %2032 }
 0x28f   : > { %17869 = vst [vmem:[#allocation48_spill] sm:$0xff] %v11461_v56 }
 0x290   : > { %v3581_v63 = vadd.f32 %v3580_v26, %v3579_v25 }
 0x292   : > { %v3582_v22 = vrot.slane %v3581_v63, 1  ;;  %v1006_v18 = vpop.f32.mrf.mxu0 }
 0x293   : > { %v1007_v35 = vadd.f32 %v11356_v10, %v1006_v18 }
 0x294   : > { %v3583_v4 = vadd.f32 %v3582_v22, %v3581_v63  ;;  %2523 = vperm.xlu1 %9956, %v17422_v28   ;;  %v11474_v22 = vpop.permute.xlu2 %2039 }
 0x295   : > { %9949 = vset.pattern.permute.xlu2 %v10685_v16  ;;  %v1032_v0 = vpack.c.bf16 %v1007_v35, %v1005_v8  ;;  %v3548_v45 = vmul.f32 %v11361_v39, %v1007_v35  ;;  %17870 = vst [vmem:[#allocation49_spill] sm:$0xff] %v11474_v22  ;;  %v3614_v8 = vrot.slane %v11420_v29, 4 }
 0x296   : > { %v3631_v25 = vpack.c.bf16 %v3583_v4, %v3583_v4  ;;  %v11476_v32 = vpop.permute.xlu1 %2045  ;;  %v3605_v4 = vrot.slane %v11387_v11, 4 }
 0x297   : > { %v3585_v53 = vsel %vm955_vm4, %v3548_v45, 0.0  ;;  %9558 = vmatmul.msk.bf16.gmra.mxu0 %vm955_vm4, %v1032_v0  ;;  %17871 = vst [vmem:[#allocation50_spill] sm:$0xff] %v11476_v32  ;;  %v3615_v22 = vadd.f32 %v3614_v8, %v11420_v29 }
 0x298   : > { %v3647_v46 = vperm.slane %v3631_v25, 0  ;;  %v3586_v26 = vadd.f32 %v3585_v53, %v3584_v13  ;;  %9565 = vmatmul.msk.bf16.gmra.mxu2 %vm955_vm4, %v1031_v61  ;;  %v17872_v25 = vperm.slane %v10959_v42, 5  ;;  %v3623_v13 = vrot.slane %v3622_v40, 4 }
 0x299   : > { %v17873_v61 = vperm.slane %v10970_v51, 6 }
 0x29a   : > { %v3655_v63 = vunpack.c.l.b16 %v3647_v46  ;;  %v3587_v18 = vrot.slane %v3586_v26, 4  ;;  %v1009_v35 = vpop.f32.mrf.mxu0  ;;  %v3606_v46 = vadd.f32 %v3605_v4, %v11387_v11  ;;  %v3624_v56 = vadd.f32 %v3623_v13, %v3622_v40 }
 0x29b   : > { %v17876_v11 = vperm.slane %v10959_v42, 6 }
 0x29c   : > { %v3662_v45 = vsel %vm17782_vm9, %v3655_v63, %v3661_v27  ;;  %v3588_v28 = vadd.f32 %v3587_v18, %v3586_v26  ;;  %2536 = vperm.xlu1 %9956, %v17873_v61   ;;  %v11487_v47 = vpop.permute.xlu2 %2124  ;;  %v11489_v27 = vpop.permute.xlu0 %2215  ;;  %v3607_v63 = vrot.slane %v3606_v46, 2  ;;  %v1010_v18 = vadd.f32 %v11356_v10, %v1009_v35 }
 0x29d   : > { %2353 = vperm.xlu2 %9949, %v17872_v25   ;;  %17874 = vst [vmem:[#allocation51_spill] sm:$0xff] %v11489_v27  ;;  %v3616_v61 = vrot.slane %v3615_v22, 2  ;;  %v3625_v29 = vrot.slane %v3624_v56, 2 }
 0x29e   : > { %v3589_v53 = vrot.slane %v3588_v28, 2  ;;  %v11491_v26 = vpop.permute.xlu1 %2131  ;;  %v3608_v8 = vadd.f32 %v3607_v63, %v3606_v46  ;;  %v3593_v13 = vsel %vm955_vm4, %v1010_v18, 0.0 }
 0x29f   : > { %17875 = vst [vmem:[#allocation52_spill] sm:$0xff] %v11491_v26  ;;  %v17936_v26 = vperm.slane %v10970_v51, 7 }
 0x2a0   : > { %v3590_v32 = vadd.f32 %v3589_v53, %v3588_v28 }
 0x2a2   : > { %v3591_v54 = vrot.slane %v3590_v32, 1  ;;  %v1011_v31 = vpop.f32.mrf.mxu0 }
 0x2a3   : > { %v1012_v25 = vadd.f32 %v11356_v10, %v1011_v31  ;;  %v3617_v10 = vadd.f32 %v3616_v61, %v3615_v22 }
 0x2a4   : > { %v3592_v41 = vadd.f32 %v3591_v54, %v3590_v32  ;;  %9958 = vset.pattern.permute.xlu1 %v10689_v17  ;;  %v3626_v32 = vadd.f32 %v3625_v29, %v3624_v56  ;;  %v11504_v63 = vpop.permute.xlu2 %2137 }
 0x2a5   : > { %2366 = vperm.xlu2 %9949, %v17876_v11   ;;  %v1033_v40 = vpack.c.bf16 %v1012_v25, %v1010_v18  ;;  %v3550_v28 = vmul.f32 %v11361_v39, %v1012_v25  ;;  %v3609_v39 = vrot.slane %v3608_v8, 1  ;;  %v3618_v46 = vrot.slane %v3617_v10, 1  ;;  %17877 = vst [vmem:[#allocation53_spill] sm:$0xff] %v11504_v63  ;;  %v11508_v25 = vpop.permute.xlu0 %2346 }
 0x2a6   : > { %v3632_v4 = vpack.c.bf16 %v3592_v41, %v3592_v41  ;;  %v17435_v41 = vperm.slane %v10970_v51, 7  ;;  %v11510_v61 = vpop.permute.xlu1 %2144  ;;  %v3627_v56 = vrot.slane %v3626_v32, 1 }
 0x2a7   : > { %v3594_v53 = vsel %vm955_vm4, %v3550_v28, 0.0  ;;  %9559 = vmatmul.msk.bf16.gmra.mxu0 %vm955_vm4, %v1033_v40  ;;  %17878 = vst [vmem:[#allocation54_spill] sm:$0xff] %v11510_v61  ;;  %v3610_v29 = vadd.f32 %v3609_v39, %v3608_v8  ;;  %v3619_v28 = vadd.f32 %v3618_v46, %v3617_v10  ;;  %v17880_v61 = vperm.slane %v10959_v42, 7 }
 0x2a8   : > { %v3648_v31 = vperm.slane %v3632_v4, 0  ;;  %v3595_v54 = vadd.f32 %v3594_v53, %v3593_v13  ;;  %9566 = vmatmul.msk.bf16.gmra.mxu2 %vm955_vm4, %v1032_v0  ;;  %v3628_v13 = vadd.f32 %v3627_v56, %v3626_v32  ;;  %v11515_v53 = vld [vmem:[%s10639_s29] sm:$0xff] }
 0x2aa   : > { %v3656_v35 = vunpack.c.l.b16 %v3648_v31  ;;  %v3596_v11 = vrot.slane %v3595_v54, 4  ;;  %v17437_v31 = vperm.slane %v11515_v53, 0 }
 0x2ac   : > { %v3597_v18 = vadd.f32 %v3596_v11, %v3595_v54  ;;  %v3663_v22 = vsel %vm17735_vm10, %v3656_v35, %v3662_v45  ;;  %2555 = vperm.xlu1 %9958, %v17435_v41   ;;  %v3634_v11 = vpack.c.bf16 %v3610_v29, %v3610_v29  ;;  %v3635_v45 = vpack.c.bf16 %v3619_v28, %v3619_v28  ;;  %v11518_v35 = vpop.permute.xlu2 %2157  ;;  %v1287_v29 = vpop.f32.mrf.mxu2 }
 0x2ad   : > { %9951 = vset.pattern.permute.xlu2 %v10689_v17  ;;  %17879 = vst [vmem:[#allocation55_spill] sm:$0xff] %v11518_v35  ;;  %v3636_v41 = vpack.c.bf16 %v3628_v13, %v3628_v13  ;;  %v11526_v10 = vpop.permute.xlu0 %2477  ;;  %v17907_v35 = vperm.slane %v10970_v51, 5 }
 0x2ae   : > { %v3598_v0 = vrot.slane %v3597_v18, 2  ;;  %v11522_v63 = vpop.permute.xlu1 %2163  ;;  %v3650_v32 = vperm.slane %v3634_v11, 0  ;;  %v3651_v39 = vperm.slane %v3635_v45, 0  ;;  %v17436_v45 = vperm.slane %v11515_v53, 2 }
 0x2af   : > { %17881 = vst [vmem:[#allocation56_spill] sm:$0xff] %v11522_v63 }
 0x2b0   : > { %v3599_v4 = vadd.f32 %v3598_v0, %v3597_v18  ;;  %v3652_v18 = vperm.slane %v3636_v41, 0  ;;  %v3658_v42 = vunpack.c.l.b16 %v3650_v32  ;;  %v17882_v0 = vperm.slane %v10970_v51, 0 }
 0x2b2   : > { %v3600_v54 = vrot.slane %v3599_v4, 1  ;;  %v3660_v28 = vunpack.c.l.b16 %v3652_v18 }
 0x2b4   : > { %v3601_v27 = vadd.f32 %v3600_v54, %v3599_v4  ;;  %2993 = vperm.xlu1 %9958, %v17437_v31   ;;  %v1289_v32 = vpop.f32.mrf.mxu2  ;;  %v17899_v31 = vperm.slane %v10970_v51, 3 }
 0x2b5   : > { %2385 = vperm.xlu2 %9951, %v17880_v61   ;;  %v3659_v61 = vunpack.c.l.b16 %v3651_v39  ;;  %v11542_v11 = vpop.permute.xlu0 %2542 }
 0x2b6   : > { %v3633_v8 = vpack.c.bf16 %v3601_v27, %v3601_v27  ;;  %v11537_v13 = vpop.permute.xlu1 %2176  ;;  %17886 = vst [vmem:[#allocation60_spill] sm:$0xff] %v11542_v11  ;;  %v17903_v11 = vperm.slane %v10970_v51, 4 }
 0x2b7   : > { %17884 = vst [vmem:[#allocation58_spill] sm:$0xff] %v11537_v13 }
 0x2b8   : > { %v3649_v46 = vperm.slane %v3633_v8, 0  ;;  %9567 = vmatmul.msk.bf16.gmra.mxu2 %vm955_vm4, %v1033_v40  ;;  %v11534_v40 = vpop.permute.xlu2 %2170 }
 0x2b9   : > { %17883 = vst [vmem:[#allocation57_spill] sm:$0xff] %v11534_v40  ;;  %v11635_v40 = vld [vmem:[#allocation8] sm:$0xff] }
 0x2ba   : > { %v3657_v56 = vunpack.c.l.b16 %v3649_v46 }
 0x2bc   : > { %v3664_v27 = vsel %vm17683_vm11, %v3657_v56, %v3663_v22  ;;  %9960 = vset.pattern.permute.xlu1 %v10685_v16  ;;  %v1300_v22 = vpop.f32.mrf.mxu3 }
 0x2bd   : > { %2464 = vperm.xlu2 %9951, %v17882_v0   ;;  %v3665_v4 = vsel %vm17682_vm12, %v3658_v42, %v3664_v27  ;;  %v1476_v8 = vrot.slane %v1300_v22, 7  ;;  %v11556_v42 = vpop.permute.xlu0 %3032 }
 0x2be   : > { %v3666_v41 = vsel %vm17681_vm13, %v3659_v61, %v3665_v4  ;;  %v11552_v18 = vpop.permute.xlu1 %2196  ;;  %17889 = vst [vmem:[#allocation63_spill] sm:$0xff] %v11556_v42  ;;  %v17890_v61 = vperm.slane %v10970_v51, 2 }
 0x2bf   : > { %v11540_v54 = vsel %vm17615_vm14, %v3660_v28, %v3666_v41  ;;  %v11550_v46 = vsel %vm1477_vm15, %v1287_v29, %v1476_v8  ;;  %17888 = vst [vmem:[#allocation62_spill] sm:$0xff] %v11552_v18  ;;  %v11561_v0 = vsel %vm17682_vm12, %v1287_v29, %v1476_v8  ;;  %v11564_v27 = vsel %vm17785_vm8, %v1287_v29, %v1476_v8 }
 0x2c0   : > { %17885 = vst [vmem:[#allocation59_spill] sm:$0xff] %v11540_v54  ;;  %v11548_v39 = vpop.permute.xlu2 %2189  ;;  %v11567_v28 = vsel %vm17681_vm13, %v1287_v29, %v1476_v8  ;;  %v11570_v4 = vsel %vm17782_vm9, %v1287_v29, %v1476_v8  ;;  %v11575_v41 = vsel %vm1271_vm5, %v1476_v8, %v1287_v29  ;;  %v11578_v22 = vsel %vm17735_vm10, %v1287_v29, %v1476_v8 }
 0x2c1   : > { %17887 = vst [vmem:[#allocation61_spill] sm:$0xff] %v11548_v39  ;;  %v11581_v32 = vsel %vm17683_vm11, %v1287_v29, %v1476_v8  ;;  %v17442_v29 = vperm.slane %v11515_v53, 4 }
 0x2c2   : > { %17891 = vst [vmem:[#allocation64_spill] sm:$0xff] %v11561_v0 }
 0x2c3   : > { %17892 = vst [vmem:[#allocation65_spill] sm:$0xff] %v11567_v28 }
 0x2c4   : > { %3013 = vperm.xlu1 %9960, %v17436_v45   ;;  %v1302_v56 = vpop.f32.mrf.mxu3  ;;  %17894 = vst [vmem:[#allocation66_spill] sm:$0xff] %v11575_v41 }
 0x2c5   : > { %9953 = vset.pattern.permute.xlu2 %v10685_v16  ;;  %17895 = vst [vmem:[#allocation67_spill] sm:$0xff] %v11578_v22  ;;  %v11587_v45 = vpop.permute.xlu0 %1621 }
 0x2c6   : > { %17896 = vst [vmem:[#allocation68_spill] sm:$0xff] %v11581_v32  ;;  %v9760_v32 = vld [vmem:[%s17355_s12 + $0x28] sm:$0xff] }
 0x2c8   : > { %9568 = vmatmul.msk.bf16.gmra.mxu2 %vm955_vm4, %v11376_v43  ;;  %v17893_v43 = vperm.slane %v10983_v58, 3  ;;  %v11583_v56 = vpop.permute.xlu2 %2202 }
 0x2c9   : > { %17897 = vst [vmem:[#allocation69_spill] sm:$0xff] %v11583_v56  ;;  %v17448_v56 = vrot.slane %v11561_v0, 5  ;;  %v9761_v0 = vld [vmem:[%s17355_s12 + $0x30] sm:$0xff] }
 0x2cc   : > { %3026 = vperm.xlu1 %9960, %v17893_v43  }
 0x2cd   : > { %2484 = vperm.xlu2 %9953, %v17890_v61   ;;  %v11585_v61 = vpop.permute.xlu1 %2209  ;;  %v11600_v8 = vpop.permute.xlu0 %1660 }
 0x2ce   : > { %17898 = vst [vmem:[#allocation70_spill] sm:$0xff] %v11585_v61 }
 0x2d0   : > { %v11592_v43 = vpop.permute.xlu2 %2288 }
 0x2d4   : > { %9963 = vset.pattern.permute.xlu1 %v10689_v17 }
 0x2d5   : > { %2497 = vperm.xlu2 %9953, %v17899_v31   ;;  %v11596_v42 = vpop.permute.xlu1 %2294  ;;  %v17443_v31 = vperm.slane %v11515_v53, 5  ;;  %v11616_v18 = vpop.permute.xlu0 %1791 }
 0x2d6   : > { %17900 = vst [vmem:[#allocation71_spill] sm:$0xff] %v11596_v42 }
 0x2d8   : > { %9569 = vmatmul.msk.bf16.gmra.mxu2 %vm955_vm4, %v11407_v37  ;;  %v11605_v61 = vpop.permute.xlu2 %2301 }
 0x2d9   : > { %17901 = vst [vmem:[#allocation72_spill] sm:$0xff] %v11605_v61 }
 0x2dc   : > { %3045 = vperm.xlu1 %9963, %v17442_v29   ;;  %v9770_v29 = vld [vmem:[%s17355_s12 + $0x78] sm:$0xff] }
 0x2dd   : > { %9955 = vset.pattern.permute.xlu2 %v10689_v17  ;;  %v11607_v54 = vpop.permute.xlu1 %2307  ;;  %2932 = vmatpush.bf16.msrb.mxu1 %v9770_v29  ;;  %v11643_v29 = vld [vmem:[#allocation8 + $0x8] sm:$0xff] }
 0x2de   : > { %17902 = vst [vmem:[#allocation73_spill] sm:$0xff] %v11607_v54  ;;  %v11696_v54 = vperm.slane %v11635_v40, 1 }
 0x2e0   : > { %v11623_v41 = vpop.permute.xlu2 %2320  ;;  %17915 = vst [vmem:[#allocation84_spill] sm:$0xff] %v11696_v54  ;;  %v11822_v42 = vmul.f32 %v11696_v54, %v11269_v15 }
 0x2e1   : > { %17904 = vst [vmem:[#allocation74_spill] sm:$0xff] %v11623_v41 }
 0x2e4   : > { %v11611_v37 = vpop.f32.mrf.mxu0  ;;  %3058 = vperm.xlu1 %9963, %v17443_v31   ;;  %v9769_v31 = vld [vmem:[%s17355_s12 + $0x70] sm:$0xff] }
 0x2e5   : > { %2516 = vperm.xlu2 %9955, %v17903_v11   ;;  %v1509_v11 = vperm.slane %v17448_v56, 0  ;;  %v11630_v39 = vpop.permute.xlu1 %2327  ;;  %2933 = vmatpush.bf16.msrb.mxu1 %v9769_v31 }
 0x2e6   : > { %17905 = vst [vmem:[#allocation75_spill] sm:$0xff] %v11630_v39  ;;  %v11658_v39 = vpop.permute.xlu0 %1856 }
 0x2e7   : > { %17910 = vst [vmem:[#allocation79_spill] sm:$0xff] %v11658_v39 }
 0x2e8   : > { %9570 = vmatmul.msk.bf16.gmra.mxu2 %vm955_vm4, %v11440_v3  ;;  %v9762_v3 = vld [vmem:[%s17355_s12 + $0x38] sm:$0xff] }
 0x2e9   : > { %2883 = vmatpush.bf16.msra.mxu3 %v9762_v3 }
 0x2eb   : > { %v1410_v28 = vpop.f32.mrf.mxu2 }
 0x2ec   : > { %v11637_v13 = vadd.f32 %v1509_v11, %v1410_v28  ;;  %v11641_v56 = vpop.f32.mrf.mxu0  ;;  %9965 = vset.pattern.permute.xlu1 %v10685_v16  ;;  %v9768_v28 = vld [vmem:[%s17355_s12 + $0x68] sm:$0xff] }
 0x2ed   : > { %2529 = vperm.xlu2 %9955, %v17907_v35   ;;  %v11656_v35 = vperm.slane %v11643_v29, 0  ;;  %2884 = vmatpush.bf16.msra.mxu3 %v9761_v0 }
 0x2ee   : > { %17906 = vst [vmem:[#allocation76_spill] sm:$0xff] %v11637_v13  ;;  %v11653_v13 = vperm.slane %v11635_v40, 0  ;;  %2934 = vmatpush.bf16.msrb.mxu1 %v9768_v28  ;;  %v11680_v28 = vpop.permute.xlu2 %2333 }
 0x2ef   : > { %17909 = vst [vmem:[#allocation78_spill] sm:$0xff] %v11656_v35  ;;  %v11670_v41 = vmul.f32 %v11656_v35, %v11117_v24  ;;  %v11678_v0 = vmul.f32 %v11656_v35, %v11137_v50  ;;  %v11693_v61 = vmul.f32 %v11656_v35, %v10991_v1 }
 0x2f0   : > { %17908 = vst [vmem:[#allocation77_spill] sm:$0xff] %v11653_v13  ;;  %v11663_v31 = vmul.f32 %v11653_v13, %v11117_v24  ;;  %v11674_v39 = vmul.f32 %v11653_v13, %v11137_v50  ;;  %v11689_v24 = vmul.f32 %v11653_v13, %v10991_v1  ;;  %v11699_v50 = vperm.slane %v11643_v29, 1 }
 0x2f1   : > { %17911 = vst [vmem:[#allocation80_spill] sm:$0xff] %v11680_v28  ;;  %2885 = vmatpush.bf16.msra.mxu3 %v9760_v32  ;;  %v11711_v1 = vmul.f32 %v11656_v35, %v11163_v44  ;;  %v11715_v28 = vmul.f32 %v11653_v13, %v11000_v2  ;;  %v11724_v32 = vmul.f32 %v11653_v13, %v11176_v6 }
 0x2f2   : > { %17913 = vst [vmem:[#allocation82_spill] sm:$0xff] %v11689_v24  ;;  %v11763_v24 = vmul.f32 %v11696_v54, %v11017_v55  ;;  %v11840_v51 = vmul.f32 %v11653_v13, %v11230_v59  ;;  %v11883_v59 = vperm.slane %v11635_v40, 5 }
 0x2f3   : > { %v1412_v3 = vpop.f32.mrf.mxu2  ;;  %17914 = vst [vmem:[#allocation83_spill] sm:$0xff] %v11693_v61  ;;  %v1499_v61 = vperm.slane %v11550_v46, 0 }
 0x2f4   : > { %v11682_v63 = vadd.f32 %v1509_v11, %v1412_v3  ;;  %v11685_v22 = vpop.f32.mrf.mxu0  ;;  %17916 = vst [vmem:[#allocation85_spill] sm:$0xff] %v11699_v50  ;;  %v11701_v11 = vpop.permute.xlu1 %2340  ;;  %v17918_v3 = vperm.slane %v11515_v53, 7 }
 0x2f5   : > { %9957 = vset.pattern.permute.xlu2 %v10685_v16  ;;  %17917 = vst [vmem:[#allocation86_spill] sm:$0xff] %v11701_v11  ;;  %v11720_v11 = vmul.f32 %v11656_v35, %v11000_v2  ;;  %v9767_v2 = vld [vmem:[%s17355_s12 + $0x60] sm:$0xff]  ;;  %v11749_v16 = vmul.f32 %v11653_v13, %v11200_v9 }
 0x2f6   : > { %17912 = vst [vmem:[#allocation81_spill] sm:$0xff] %v11682_v63  ;;  %3078 = vperm.xlu1 %9965, %v17918_v3   ;;  %v11707_v63 = vmul.f32 %v11653_v13, %v11163_v44  ;;  %v11728_v3 = vmul.f32 %v11656_v35, %v11176_v6  ;;  %v11732_v44 = vmul.f32 %v11653_v13, %v11191_v48 }
 0x2f7   : > { %17919 = vst [vmem:[#allocation87_spill] sm:$0xff] %v11711_v1  ;;  %v11745_v6 = vmul.f32 %v11656_v35, %v11191_v48  ;;  %v11767_v48 = vmul.f32 %v11699_v50, %v11017_v55  ;;  %2935 = vmatpush.bf16.msrb.mxu1 %v9767_v2  ;;  %v11784_v55 = vmul.f32 %v11699_v50, %v11252_v20 }
 0x2f8   : > { %17920 = vst [vmem:[#allocation88_spill] sm:$0xff] %v11715_v28  ;;  %v1563_v28 = vld [vmem:[%s17354_s11] sm:$0x3]  ;;  %v11788_v2 = vmul.f32 %v11653_v13, %v11206_v62 }
 0x2f9   : > { %17921 = vst [vmem:[#allocation89_spill] sm:$0xff] %v11720_v11  ;;  %v9759_v11 = vld [vmem:[%s17355_s12 + $0x20] sm:$0xff]  ;;  %v11773_v1 = vperm.slane %v1563_v28, 0 }
 0x2fa   : > { %17922 = vst [vmem:[#allocation90_spill] sm:$0xff] %v11724_v32  ;;  %v11755_v32 = vperm.slane %v11643_v29, 2  ;;  %2886 = vmatpush.bf16.msra.mxu3 %v9759_v11  ;;  %v11794_v11 = vpop.permute.xlu0 %1987 }
 0x2fb   : > { %17923 = vst [vmem:[#allocation91_spill] sm:$0xff] %v11728_v3  ;;  %v11759_v3 = vmul.f32 %v11656_v35, %v11200_v9  ;;  %v1500_v9 = vperm.slane %v11550_v46, 1  ;;  %v1434_v46 = vpop.f32.mrf.mxu2 }
 0x2fc   : > { %17924 = vst [vmem:[#allocation92_spill] sm:$0xff] %v11732_v44  ;;  %v11752_v44 = vperm.slane %v11635_v40, 2  ;;  %v11818_v58 = vpop.f32.mrf.mxu0 }
 0x2fd   : > { %17925 = vst [vmem:[#allocation93_spill] sm:$0xff] %v11745_v6  ;;  %v11770_v6 = vperm.slane %v11635_v40, 3  ;;  %2549 = vperm.xlu2 %9957, %v17936_v26  }
 0x2fe   : > { %17926 = vst [vmem:[#allocation94_spill] sm:$0xff] %v11749_v16  ;;  %v1531_v16 = vadd.f32 %v1499_v61, %v11611_v37  ;;  %v11792_v37 = vmul.f32 %v11656_v35, %v11206_v62  ;;  %v11812_v62 = vmul.f32 %v11752_v44, %v11035_v52  ;;  %4096 = vperm.xlu1 %9965, %v10880_v33  }
 0x2ff   : > { %17927 = vst [vmem:[#allocation95_spill] sm:$0xff] %v11759_v3  ;;  %v11776_v3 = vperm.slane %v1563_v28, 1  ;;  %v9758_v28 = vld [vmem:[%s17355_s12 + $0x18] sm:$0xff]  ;;  %v11891_v33 = vmul.f32 %v11696_v54, %v11296_v19 }
 0x300   : > { %17928 = vst [vmem:[#allocation96_spill] sm:$0xff] %v11763_v24  ;;  %v11780_v24 = vmul.f32 %v11696_v54, %v11252_v20  ;;  %v9766_v20 = vld [vmem:[%s17355_s12 + $0x58] sm:$0xff]  ;;  %2887 = vmatpush.bf16.msra.mxu3 %v9758_v28  ;;  %v1569_v26 = vadd.f32 %v11773_v1, %v1531_v16  ;;  %v11855_v28 = vmul.f32 %v11752_v44, %v11052_v38 }
 0x301   : > { %17929 = vst [vmem:[#allocation97_spill] sm:$0xff] %v11767_v48  ;;  %v11804_v48 = vmul.f32 %v11653_v13, %v11213_v60  ;;  %2936 = vmatpush.bf16.msrb.mxu1 %v9766_v20  ;;  %v11859_v16 = vmul.f32 %v11755_v32, %v11052_v38  ;;  %v11875_v20 = vperm.slane %v11643_v29, 4 }
 0x302   : > { %17930 = vst [vmem:[#allocation98_spill] sm:$0xff] %v11788_v2  ;;  %v11808_v2 = vmul.f32 %v11656_v35, %v11213_v60  ;;  %v11826_v60 = vmul.f32 %v11699_v50, %v11269_v15  ;;  %v1533_v15 = vadd.f32 %v1499_v61, %v11641_v56  ;;  %v9757_v56 = vld [vmem:[%s17355_s12 + $0x10] sm:$0xff] }
 0x303   : > { %17931 = vst [vmem:[#allocation99_spill] sm:$0xff] %v11792_v37  ;;  %v11814_v37 = vpop.permute.xlu2 %2353  ;;  %v9765_v61 = vld [vmem:[%s17355_s12 + $0x50] sm:$0xff] }
 0x304   : > { %17932 = vst [vmem:[#allocation100_spill] sm:$0xff] %v11794_v11  ;;  %v1532_v11 = vadd.f32 %v1500_v9, %v1434_v46  ;;  %v11835_v46 = vpop.permute.xlu1 %2359  ;;  %2888 = vmatpush.bf16.msra.mxu3 %v9757_v56  ;;  %v1879_v56 = vmul.f32 %v11696_v54, %v11250_v34 }
 0x305   : > { %17933 = vst [vmem:[#allocation101_spill] sm:$0xff] %v11804_v48  ;;  %2937 = vmatpush.bf16.msrb.mxu1 %v9765_v61 }
 0x306   : > { %17934 = vst [vmem:[#allocation102_spill] sm:$0xff] %v11808_v2  ;;  %v11830_v2 = vmul.f32 %v11755_v32, %v11035_v52  ;;  %v1570_v48 = vadd.f32 %v11776_v3, %v1532_v11  ;;  %v11847_v52 = vmul.f32 %v11696_v54, %v11289_v23  ;;  %v11872_v11 = vperm.slane %v11635_v40, 4  ;;  %4127 = vperm.xlu1 %9965, %v10889_v5  }
 0x307   : > { %17935 = vst [vmem:[#allocation103_spill] sm:$0xff] %v11814_v37  ;;  %v11833_v37 = vperm.slane %v11643_v29, 3  ;;  %v11899_v40 = vmul.f32 %v11699_v50, %v11296_v19  ;;  %v9764_v19 = vld [vmem:[%s17355_s12 + $0x48] sm:$0xff]  ;;  %v11952_v5 = vmul.f32 %v11699_v50, %v11267_v14 }
 0x308   : > { %17937 = vst [vmem:[#allocation104_spill] sm:$0xff] %v11835_v46  ;;  %v11851_v46 = vmul.f32 %v11699_v50, %v11289_v23  ;;  %v11869_v23 = vmul.f32 %v11770_v6, %v11064_v36  ;;  %v1742_v38 = vadd.f32 %v11670_v41, %v1570_v48  ;;  %v1880_v41 = vmul.f32 %v11699_v50, %v11250_v34 }
 0x309   : > { %17938 = vst [vmem:[#allocation105_spill] sm:$0xff] %v11840_v51  ;;  %v11880_v51 = vmul.f32 %v11833_v37, %v11064_v36  ;;  %v1741_v48 = vadd.f32 %v11663_v31, %v1569_v26  ;;  %v1571_v36 = vadd.f32 %v11773_v1, %v1533_v15  ;;  %v9756_v31 = vld [vmem:[%s17355_s12 + $0x8] sm:$0xff]  ;;  %v11919_v26 = vmul.f32 %v11872_v11, %v11508_v25 }
 0x30a   : > { %17939 = vst [vmem:[#allocation106_spill] sm:$0xff] %v11847_v52  ;;  %v1912_v15 = vadd.f32 %v1880_v41, %v1742_v38  ;;  %v17948_v34 = vperm.slane %v11515_v53, 0  ;;  %2889 = vmatpush.bf16.msra.mxu3 %v9756_v31  ;;  %2938 = vmatpush.bf16.msrb.mxu1 %v9764_v19  ;;  %v11956_v31 = vmul.f32 %v11696_v54, %v11287_v49 }
 0x30b   : > { %17940 = vst [vmem:[#allocation107_spill] sm:$0xff] %v11855_v28  ;;  %v1481_v28 = vrot.slane %v11564_v27, 1  ;;  %v11903_v27 = vmul.f32 %v11696_v54, %v11323_v21  ;;  %v1743_v38 = vadd.f32 %v11674_v39, %v1571_v36  ;;  %v11943_v41 = vpop.permute.xlu2 %2366  ;;  %v9755_v36 = vld [vmem:[%s17355_s12] sm:$0xff] }
 0x30c   : > { %17941 = vst [vmem:[#allocation108_spill] sm:$0xff] %v11859_v16  ;;  %v11886_v16 = vperm.slane %v11643_v29, 5  ;;  %v11907_v29 = vmul.f32 %v11699_v50, %v11323_v21  ;;  %v11923_v21 = vmul.f32 %v11875_v20, %v11508_v25  ;;  %2987 = vperm.xlu2 %9957, %v17948_v34   ;;  %v11946_v34 = vpop.f32.mrf.mxu0 }
 0x30d   : > { %17942 = vst [vmem:[#allocation109_spill] sm:$0xff] %v11891_v33  ;;  %v1436_v33 = vpop.f32.mrf.mxu2  ;;  %v1501_v25 = vperm.slane %v1481_v28, 0 }
 0x30e   : > { %17943 = vst [vmem:[#allocation110_spill] sm:$0xff] %v11899_v40  ;;  %v1534_v61 = vadd.f32 %v1500_v9, %v1436_v33  ;;  %v2119_v40 = vpop.permute.xlu0 %2118  ;;  %v2050_v33 = vmul.f32 %v11755_v32, %v11371_v7  ;;  %v1911_v9 = vadd.f32 %v1879_v56, %v1741_v48  ;;  %v11958_v48 = vpop.permute.xlu1 %2372  ;;  %v11973_v56 = vmul.f32 %v11752_v44, %v11393_v57 }
 0x30f   : > { %17944 = vst [vmem:[#allocation111_spill] sm:$0xff] %v11903_v27  ;;  %v11933_v27 = vmul.f32 %v11886_v16, %v11526_v10  ;;  %v1537_v39 = vadd.f32 %v1501_v25, %v11818_v58  ;;  %v11978_v58 = vmul.f32 %v11755_v32, %v11393_v57  ;;  %2890 = vmatpush.bf16.msra.mxu3 %v9755_v36 }
 0x310   : > { %17945 = vst [vmem:[#allocation112_spill] sm:$0xff] %v11907_v29  ;;  %v11929_v29 = vmul.f32 %v11883_v59, %v11526_v10  ;;  %v1572_v10 = vadd.f32 %v11776_v3, %v1534_v61  ;;  %v2082_v19 = vadd.f32 %v2050_v33, %v1912_v15  ;;  %v1913_v15 = vadd.f32 %v11780_v24, %v1743_v38 }
 0x311   : > { %17946 = vst [vmem:[#allocation113_spill] sm:$0xff] %v11919_v26  ;;  %v11937_v26 = vmul.f32 %v11696_v54, %v11267_v14  ;;  %v11969_v14 = vmul.f32 %v11699_v50, %v11287_v49  ;;  %v2220_v49 = vmul.f32 %v11833_v37, %v2119_v40  ;;  %v1502_v33 = vperm.slane %v1481_v28, 1  ;;  %9967 = vset.pattern.permute.xlu1 %v10689_v17 }
 0x312   : > { %17947 = vst [vmem:[#allocation114_spill] sm:$0xff] %v11923_v21  ;;  %v2049_v21 = vmul.f32 %v11752_v44, %v11371_v7  ;;  %v9763_v7 = vld [vmem:[%s17355_s12 + $0x40] sm:$0xff]  ;;  %v1744_v61 = vadd.f32 %v11678_v0, %v1572_v10  ;;  %v1535_v0 = vadd.f32 %v1501_v25, %v11685_v22  ;;  %v11993_v57 = vmul.f32 %v11752_v44, %v11410_v30 }
 0x313   : > { %17949 = vst [vmem:[#allocation115_spill] sm:$0xff] %v11943_v41  ;;  %v11982_v41 = vmul.f32 %v11696_v54, %v11294_v12  ;;  %2939 = vmatpush.bf16.msrb.mxu1 %v9763_v7  ;;  %v1713_v10 = vmul.f32 %v11653_v13, %v11587_v45  ;;  %v2252_v24 = vadd.f32 %v2220_v49, %v2082_v19  ;;  %v12021_v19 = vpop.permute.xlu2 %2385 }
 0x314   : > { %17950 = vst [vmem:[#allocation116_spill] sm:$0xff] %v11958_v48  ;;  %v11986_v48 = vmul.f32 %v11699_v50, %v11294_v12  ;;  %v2081_v52 = vadd.f32 %v2049_v21, %v1911_v9  ;;  %v1714_v12 = vmul.f32 %v11656_v35, %v11587_v45  ;;  %v2219_v21 = vmul.f32 %v11770_v6, %v2119_v40  ;;  %v17953_v9 = vld [vmem:[#allocation37_spill] sm:$0xff] }
 0x315   : > { %17951 = vst [vmem:[#allocation117_spill] sm:$0xff] %v11982_v41  ;;  %v1575_v41 = vadd.f32 %v11773_v1, %v1537_v39  ;;  %v1439_v36 = vpop.f32.mrf.mxu2  ;;  %v1914_v22 = vadd.f32 %v11784_v55, %v1744_v61  ;;  %9959 = vset.pattern.permute.xlu2 %v10689_v17  ;;  %v12005_v25 = vmul.f32 %v11755_v32, %v11410_v30 }
 0x316   : > { %17952 = vst [vmem:[#allocation118_spill] sm:$0xff] %v11986_v48  ;;  %v1536_v28 = vadd.f32 %v1502_v33, %v1439_v36  ;;  %v12009_v38 = vmul.f32 %v11696_v54, %v17953_v9  ;;  %v12013_v45 = vmul.f32 %v11699_v50, %v17953_v9  ;;  %v2390_v40 = vmul.f32 %v11875_v20, %v11592_v43  ;;  %v1397_v9 = vpop.f32.mrf.mxu0 }
 0x317   : > { %v2251_v55 = vadd.f32 %v2219_v21, %v2081_v52  ;;  %v2083_v39 = vadd.f32 %v11812_v62, %v1913_v15  ;;  %v1573_v7 = vadd.f32 %v11773_v1, %v1535_v0  ;;  %17956 = vst [vmem:[#allocation120_spill] sm:$0xff] %v12021_v19  ;;  %v12025_v61 = vmul.f32 %v11653_v13, %v11600_v8  ;;  %v2459_v52 = vpop.permute.xlu1 %2458 }
 0x318   : > { %17954 = vst [vmem:[#allocation37_spill] sm:$0xff] %v12009_v38  ;;  %v1574_v30 = vadd.f32 %v11776_v3, %v1536_v28  ;;  %v12029_v49 = vmul.f32 %v11656_v35, %v11600_v8  ;;  %v2221_v36 = vmul.f32 %v11770_v6, %v11487_v47  ;;  %v1747_v62 = vadd.f32 %v11707_v63, %v1575_v41  ;;  %v17962_v38 = vld [vmem:[#allocation30_spill] sm:$0xff] }
 0x319   : > { %17955 = vst [vmem:[#allocation119_spill] sm:$0xff] %v12013_v45  ;;  %v2389_v15 = vmul.f32 %v11872_v11, %v11592_v43  ;;  %v2422_v0 = vadd.f32 %v2390_v40, %v2252_v24  ;;  %v2084_v21 = vadd.f32 %v11830_v2, %v1914_v22  ;;  %v1883_v19 = vmul.f32 %v11696_v54, %v11616_v18  ;;  %v17957_v40 = vld [vmem:[#allocation41_spill] sm:$0xff]  ;;  %v17958_v22 = vld [vmem:[#allocation71_spill] sm:$0xff]  ;;  %v17959_v54 = vld [vmem:[#allocation32_spill] sm:$0xff] }
 0x31a   : > { %v1746_v28 = vadd.f32 %v1714_v12, %v1574_v30  ;;  %v1884_v8 = vmul.f32 %v11699_v50, %v11616_v18  ;;  %v2222_v13 = vmul.f32 %v11833_v37, %v11487_v47  ;;  %v1484_v35 = vrot.slane %v11570_v4, 2  ;;  %4244 = vperm.xlu1 %9967, %v17962_v38   ;;  %v17963_v38 = vld [vmem:[#allocation53_spill] sm:$0xff] }
 0x31b   : > { %v2560_v63 = vmul.f32 %v11886_v16, %v2459_v52  ;;  %v2421_v41 = vadd.f32 %v2389_v15, %v2251_v55  ;;  %v1745_v43 = vadd.f32 %v1713_v10, %v1573_v7  ;;  %v2253_v24 = vadd.f32 %v2221_v36, %v2083_v39  ;;  %v17961_v39 = vld [vmem:[#allocation52_spill] sm:$0xff] }
 0x31c   : > { %v2053_v2 = vmul.f32 %v11752_v44, %v17957_v40  ;;  %v2054_v12 = vmul.f32 %v11755_v32, %v17957_v40  ;;  %v2391_v30 = vmul.f32 %v11872_v11, %v17958_v22  ;;  %v1917_v18 = vadd.f32 %v11937_v26, %v1747_v62  ;;  %v2465_v62 = vpop.permute.xlu2 %2464 }
 0x31d   : > { %v1441_v50 = vpop.f32.mrf.mxu2  ;;  %v2559_v47 = vmul.f32 %v11883_v59, %v2459_v52  ;;  %v1916_v4 = vadd.f32 %v1884_v8, %v1746_v28  ;;  %v17960_v45 = vperm.slane %v17959_v54, 1  ;;  %v2254_v10 = vadd.f32 %v2222_v13, %v2084_v21 }
 0x31e   : > { %v2592_v55 = vadd.f32 %v2560_v63, %v2422_v0  ;;  %v2223_v7 = vmul.f32 %v11770_v6, %v17961_v39  ;;  %v2224_v36 = vmul.f32 %v11833_v37, %v17961_v39  ;;  %v1503_v15 = vperm.slane %v1484_v35, 0 }
 0x31f   : > { %3006 = vperm.xlu2 %9959, %v17960_v45   ;;  %v1538_v40 = vadd.f32 %v1502_v33, %v1441_v50  ;;  %v2392_v26 = vmul.f32 %v11875_v20, %v17958_v22  ;;  %v1915_v52 = vadd.f32 %v1883_v19, %v1745_v43  ;;  %v2423_v28 = vadd.f32 %v2391_v30, %v2253_v24  ;;  %v17964_v22 = vld [vmem:[#allocation87_spill] sm:$0xff] }
 0x320   : > { %v2591_v8 = vadd.f32 %v2559_v47, %v2421_v41  ;;  %v2087_v13 = vadd.f32 %v11973_v56, %v1917_v18  ;;  %v1541_v45 = vadd.f32 %v1503_v15, %v1397_v9  ;;  %v2561_v21 = vmul.f32 %v11883_v59, %v2465_v62  ;;  %v12070_v9 = vpop.f32.mrf.mxu0 }
 0x321   : > { %v1576_v0 = vadd.f32 %v11776_v3, %v1538_v40  ;;  %v2086_v63 = vadd.f32 %v2054_v12, %v1916_v4  ;;  %v2424_v39 = vadd.f32 %v2392_v26, %v2254_v10  ;;  %v2562_v50 = vmul.f32 %v11886_v16, %v2465_v62  ;;  %v12074_v40 = vpop.permute.xlu0 %2183 }
 0x322   : > { %v2624_v33 = vmax.f32 %v2592_v55, 0.0  ;;  %v2225_v48 = vmul.f32 %v11770_v6, %v17963_v38  ;;  %v2593_v43 = vadd.f32 %v2561_v21, %v2423_v28  ;;  %v1504_v24 = vperm.slane %v1484_v35, 1 }
 0x323   : > { %v1748_v19 = vadd.f32 %v17964_v22, %v1576_v0  ;;  %v2085_v41 = vadd.f32 %v2053_v2, %v1915_v52  ;;  %v1539_v56 = vadd.f32 %v1503_v15, %v11946_v34  ;;  %v2594_v30 = vadd.f32 %v2562_v50, %v2424_v39  ;;  %v17966_v15 = vld [vmem:[#allocation73_spill] sm:$0xff]  ;;  %v17967_v52 = vld [vmem:[#allocation72_spill] sm:$0xff]  ;;  %v2472_v39 = vpop.permute.xlu1 %2471  ;;  %v17969_v50 = vld [vmem:[#allocation82_spill] sm:$0xff] }
 0x324   : > { %v2623_v18 = vmax.f32 %v2591_v8, 0.0  ;;  %v2257_v47 = vadd.f32 %v2225_v48, %v2087_v13  ;;  %v1579_v12 = vadd.f32 %v11773_v1, %v1541_v45  ;;  %v2625_v10 = vmax.f32 %v2593_v43, 0.0  ;;  %v17968_v13 = vld [vmem:[#allocation31_spill] sm:$0xff] }
 0x325   : > { %v1918_v4 = vadd.f32 %v11952_v5, %v1748_v19  ;;  %v1444_v55 = vpop.f32.mrf.mxu2  ;;  %v2256_v26 = vadd.f32 %v2224_v36, %v2086_v63  ;;  %v2626_v62 = vmax.f32 %v2594_v30, 0.0  ;;  %v17965_v35 = vperm.slane %v11515_v53, 2  ;;  %4355 = vperm.xlu1 %9967, %v17968_v13   ;;  %v17970_v19 = vld [vmem:[#allocation67_spill] sm:$0xff] }
 0x326   : > { %v1540_v28 = vadd.f32 %v1504_v24, %v1444_v55  ;;  %v2655_v34 = vpack.c.bf16 %v2624_v33, %v2623_v18  ;;  %v2226_v2 = vmul.f32 %v11833_v37, %v17963_v38  ;;  %v2395_v48 = vmul.f32 %v11872_v11, %v17966_v15 }
 0x327   : > { %3019 = vperm.xlu2 %9959, %v17965_v35   ;;  %v2394_v5 = vmul.f32 %v11875_v20, %v17967_v52  ;;  %v2088_v8 = vadd.f32 %v11978_v58, %v1918_v4  ;;  %v2255_v36 = vadd.f32 %v2223_v7, %v2085_v41  ;;  %v1577_v45 = vadd.f32 %v11773_v1, %v1539_v56  ;;  %v17971_v41 = vld [vmem:[#allocation91_spill] sm:$0xff] }
 0x328   : > { %v2656_v0 = vpack.c.bf16 %v2626_v62, %v2625_v10  ;;  %v1578_v21 = vadd.f32 %v11776_v3, %v1540_v28  ;;  %v2396_v63 = vmul.f32 %v11875_v20, %v17966_v15  ;;  %v2393_v38 = vmul.f32 %v11872_v11, %v17967_v52  ;;  %v17972_v62 = vld [vmem:[#allocation90_spill] sm:$0xff]  ;;  %v17973_v52 = vld [vmem:[#allocation44_spill] sm:$0xff] }
 0x329   : > { %v1751_v33 = vadd.f32 %v17969_v50, %v1579_v12  ;;  %v2258_v22 = vadd.f32 %v2226_v2, %v2088_v8  ;;  %v1487_v58 = vrot.slane %v17970_v19, 3  ;;  %v2723_v43 = vunpack.c.l.b16 %v2655_v34 }
 0x32a   : > { %v2426_v30 = vadd.f32 %v2394_v5, %v2256_v26  ;;  %v2427_v7 = vadd.f32 %v2395_v48, %v2257_v47  ;;  %v1750_v56 = vadd.f32 %v17971_v41, %v1578_v21  ;;  %v2725_v18 = vunpack.c.l.b16 %v2656_v0  ;;  %v1402_v5 = vpop.f32.mrf.mxu0 }
 0x32b   : > { %v2724_v4 = vunpack.c.h.b16 %v2655_v34  ;;  %v2726_v10 = vunpack.c.h.b16 %v2656_v0  ;;  %v2564_v55 = vmul.f32 %v11886_v16, %v2472_v39  ;;  %v1749_v28 = vadd.f32 %v17972_v62, %v1577_v45  ;;  %v17974_v0 = vld [vmem:[#allocation19_spill] sm:$0xff] }
 0x32c   : > { %v2425_v35 = vadd.f32 %v2393_v38, %v2255_v36  ;;  %v2428_v15 = vadd.f32 %v2396_v63, %v2258_v22  ;;  %v12099_v12 = vmul.f32 %v11752_v44, %v17973_v52  ;;  %v1921_v2 = vadd.f32 %v11956_v31, %v1751_v33  ;;  %v2315_v38 = vpop.permute.xlu0 %2314 }
 0x32d   : > { %v1446_v8 = vpop.f32.mrf.mxu2  ;;  %v2755_v26 = vpack.c.b16 %v2725_v18, %v2723_v43  ;;  %v2756_v47 = vpack.c.b16 %v2726_v10, %v2724_v4  ;;  %v2563_v48 = vmul.f32 %v11883_v59, %v2472_v39  ;;  %v2596_v21 = vadd.f32 %v2564_v55, %v2426_v30  ;;  %v17977_v43 = vld [vmem:[#allocation42_spill] sm:$0xff] }
 0x32e   : > { %v1542_v34 = vadd.f32 %v1504_v24, %v1446_v8  ;;  %v2598_v45 = vadd.f32 %v11933_v27, %v2428_v15  ;;  %v12107_v36 = vmul.f32 %v11755_v32, %v17973_v52  ;;  %v1920_v63 = vadd.f32 %v11826_v60, %v1750_v56  ;;  %v17976_v27 = vld [vmem:[#allocation46_spill] sm:$0xff]  ;;  %v2491_v8 = vpop.permute.xlu1 %2490 }
 0x32f   : > { %9962 = vset.pattern.permute.xlu2 %v17974_v0  ;;  %2891 = vmatmul.bf16.vlgmr.msra.gmra.mxu3 %v2755_v26  ;;  %v2597_v31 = vadd.f32 %v11929_v29, %v2427_v7  ;;  %v1919_v39 = vadd.f32 %v11822_v42, %v1749_v28  ;;  %v1505_v50 = vperm.slane %v1487_v58, 0  ;;  %v2595_v33 = vadd.f32 %v2563_v48, %v2425_v35  ;;  %v17978_v7 = vld [vmem:[#allocation83_spill] sm:$0xff]  ;;  %v17979_v10 = vld [vmem:[#allocation54_spill] sm:$0xff] }
 0x330   : > { %2940 = vmatmul.bf16.vlgmr.msrb.gmra.mxu1 %v2756_v47  ;;  %v1580_v24 = vadd.f32 %v11776_v3, %v1542_v34  ;;  %v17975_v22 = vmov 0   ;;  %v12116_v19 = vmul.f32 %v11752_v44, %v17976_v27  ;;  %v2058_v60 = vmul.f32 %v11755_v32, %v17977_v43 }
 0x331   : > { %9968 = vset.pattern.permute.xlu1 %v17975_v22  ;;  %v2091_v30 = vadd.f32 %v11993_v57, %v1921_v2  ;;  %v2630_v41 = vmax.f32 %v2598_v45, 0.0  ;;  %v2057_v29 = vmul.f32 %v11752_v44, %v17977_v43  ;;  %v1545_v42 = vadd.f32 %v1505_v50, %v1402_v5 }
 0x332   : > { %v1752_v56 = vadd.f32 %v17978_v7, %v1580_v24  ;;  %v2628_v18 = vmax.f32 %v2596_v21, 0.0  ;;  %v2397_v4 = vmul.f32 %v11872_v11, %v2315_v38  ;;  %v2227_v55 = vmul.f32 %v11770_v6, %v17979_v10 }
 0x333   : > { %v2090_v62 = vadd.f32 %v2058_v60, %v1920_v63  ;;  %v2629_v28 = vmax.f32 %v2597_v31, 0.0  ;;  %v2089_v35 = vadd.f32 %v2057_v29, %v1919_v39  ;;  %v1506_v52 = vperm.slane %v1487_v58, 1  ;;  %v17981_v31 = vld [vmem:[#allocation74_spill] sm:$0xff] }
 0x334   : > { %v1922_v15 = vadd.f32 %v11969_v14, %v1752_v56  ;;  %v2627_v57 = vmax.f32 %v2595_v33, 0.0  ;;  %v2228_v2 = vmul.f32 %v11833_v37, %v17979_v10  ;;  %v2261_v26 = vadd.f32 %v11869_v23, %v2091_v30  ;;  %v1405_v33 = vpop.f32.mrf.mxu0 }
 0x335   : > { %v1543_v47 = vadd.f32 %v1505_v50, %v12070_v9  ;;  %v1449_v48 = vpop.f32.mrf.mxu2  ;;  %v2658_v5 = vpack.c.bf16 %v2630_v41, %v2629_v28  ;;  %v1583_v34 = vadd.f32 %v11773_v1, %v1545_v42  ;;  %v17980_v63 = vperm.slane %v11515_v53, 4  ;;  %v17982_v42 = vld [vmem:[#allocation94_spill] sm:$0xff] }
 0x336   : > { %v2092_v21 = vadd.f32 %v12005_v25, %v1922_v15  ;;  %v1544_v45 = vadd.f32 %v1506_v52, %v1449_v48  ;;  %v2657_v14 = vpack.c.bf16 %v2628_v18, %v2627_v57  ;;  %v2398_v58 = vmul.f32 %v11875_v20, %v2315_v38  ;;  %v2485_v25 = vpop.permute.xlu2 %2484  ;;  %v17983_v15 = vld [vmem:[#allocation93_spill] sm:$0xff] }
 0x337   : > { %3039 = vperm.xlu2 %9962, %v17980_v63   ;;  %v2399_v39 = vmul.f32 %v11872_v11, %v17981_v31  ;;  %v2400_v23 = vmul.f32 %v11875_v20, %v17981_v31  ;;  %v2260_v9 = vadd.f32 %v2228_v2, %v2090_v62  ;;  %v2570_v50 = vmul.f32 %v11886_v16, %v2491_v8  ;;  %v17987_v31 = vld [vmem:[#allocation96_spill] sm:$0xff] }
 0x338   : > { %v2262_v24 = vadd.f32 %v11880_v51, %v2092_v21  ;;  %v2259_v43 = vadd.f32 %v2227_v55, %v2089_v35  ;;  %v1582_v60 = vadd.f32 %v11776_v3, %v1544_v45  ;;  %v1581_v30 = vadd.f32 %v11773_v1, %v1543_v47  ;;  %v17984_v35 = vld [vmem:[#allocation100_spill] sm:$0xff] }
 0x339   : > { %v2729_v41 = vunpack.c.l.b16 %v2658_v5  ;;  %v2730_v38 = vunpack.c.h.b16 %v2658_v5  ;;  %v2431_v29 = vadd.f32 %v2399_v39, %v2261_v26  ;;  %v1755_v7 = vadd.f32 %v17982_v42, %v1583_v34  ;;  %v17985_v47 = vld [vmem:[#allocation68_spill] sm:$0xff] }
 0x33a   : > { %v2727_v56 = vunpack.c.l.b16 %v2657_v14  ;;  %v2728_v18 = vunpack.c.h.b16 %v2657_v14  ;;  %v2432_v10 = vadd.f32 %v2400_v23, %v2262_v24  ;;  %v2430_v62 = vadd.f32 %v2398_v58, %v2260_v9  ;;  %v17986_v14 = vld [vmem:[#allocation92_spill] sm:$0xff] }
 0x33b   : > { %v2567_v28 = vmul.f32 %v11883_v59, %v2485_v25  ;;  %v2568_v51 = vmul.f32 %v11886_v16, %v2485_v25  ;;  %v1754_v57 = vadd.f32 %v17983_v15, %v1582_v60  ;;  %v12151_v55 = vmul.f32 %v11755_v32, %v17976_v27  ;;  %v12177_v15 = vpop.permute.xlu0 %2379 }
 0x33c   : > { %v2061_v2 = vmul.f32 %v11752_v44, %v17984_v35  ;;  %v2569_v26 = vmul.f32 %v11883_v59, %v2491_v8  ;;  %v1490_v48 = vrot.slane %v17985_v47, 4  ;;  %v2429_v5 = vadd.f32 %v2397_v4, %v2259_v43  ;;  %v17989_v43 = vld [vmem:[#allocation43_spill] sm:$0xff] }
 0x33d   : > { %v1451_v34 = vpop.f32.mrf.mxu2  ;;  %v2757_v21 = vpack.c.b16 %v2729_v41, %v2727_v56  ;;  %v2758_v45 = vpack.c.b16 %v2730_v38, %v2728_v18  ;;  %v2602_v63 = vadd.f32 %v2570_v50, %v2432_v10  ;;  %v1753_v58 = vadd.f32 %v17986_v14, %v1581_v30  ;;  %v17990_v30 = vld [vmem:[#allocation56_spill] sm:$0xff]  ;;  %v17995_v14 = vld [vmem:[#allocation75_spill] sm:$0xff] }
 0x33e   : > { %v1925_v39 = vadd.f32 %v17987_v31, %v1755_v7  ;;  %v1546_v23 = vadd.f32 %v1506_v52, %v1451_v34  ;;  %v17988_v27 = vperm.slane %v11515_v53, 5  ;;  %v2601_v9 = vadd.f32 %v2569_v26, %v2431_v29  ;;  %v17992_v7 = vld [vmem:[#allocation106_spill] sm:$0xff]  ;;  %v17996_v31 = vld [vmem:[#allocation76_spill] sm:$0xff] }
 0x33f   : > { %v2599_v24 = vadd.f32 %v2567_v28, %v2429_v5  ;;  %v2600_v25 = vadd.f32 %v2568_v51, %v2430_v62  ;;  %v1924_v8 = vadd.f32 %v11851_v46, %v1754_v57  ;;  %2896 = vmatmul.bf16.gmra.mxu3 %v2757_v21  ;;  %v2062_v4 = vmul.f32 %v11755_v32, %v17984_v35  ;;  %v17991_v46 = vld [vmem:[#allocation55_spill] sm:$0xff]  ;;  %v1407_v62 = vpop.f32.mrf.mxu0  ;;  %v17994_v21 = vld [vmem:[#allocation97_spill] sm:$0xff] }
 0x340   : > { %3052 = vperm.xlu2 %9962, %v17988_v27   ;;  %2945 = vmatmul.bf16.gmra.mxu1 %v2758_v45  ;;  %v2063_v50 = vmul.f32 %v11752_v44, %v17989_v43  ;;  %v2064_v60 = vmul.f32 %v11755_v32, %v17989_v43  ;;  %v1584_v52 = vadd.f32 %v11776_v3, %v1546_v23  ;;  %v2634_v42 = vmax.f32 %v2602_v63, 0.0  ;;  %v17993_v28 = vld [vmem:[#allocation95_spill] sm:$0xff] }
 0x341   : > { %v2233_v41 = vmul.f32 %v11770_v6, %v17990_v30  ;;  %v2234_v38 = vmul.f32 %v11833_v37, %v17990_v30  ;;  %v2231_v29 = vmul.f32 %v11770_v6, %v17991_v46  ;;  %v1923_v56 = vadd.f32 %v17992_v7, %v1753_v58 }
 0x342   : > { %v2095_v18 = vadd.f32 %v2063_v50, %v1925_v39  ;;  %v1507_v10 = vperm.slane %v1490_v48, 0  ;;  %v1756_v51 = vadd.f32 %v17993_v28, %v1584_v52  ;;  %v2631_v57 = vmax.f32 %v2599_v24, 0.0  ;;  %v2504_v50 = vpop.permute.xlu1 %2503 }
 0x343   : > { %v2632_v35 = vmax.f32 %v2600_v25, 0.0  ;;  %v2094_v26 = vadd.f32 %v2062_v4, %v1924_v8  ;;  %v2633_v47 = vmax.f32 %v2601_v9, 0.0  ;;  %v2232_v5 = vmul.f32 %v11833_v37, %v17991_v46  ;;  %v17997_v4 = vld [vmem:[#allocation80_spill] sm:$0xff] }
 0x344   : > { %v1547_v34 = vadd.f32 %v1507_v10, %v1405_v33  ;;  %v1926_v45 = vadd.f32 %v17994_v21, %v1756_v51  ;;  %v1508_v63 = vperm.slane %v1490_v48, 1  ;;  %v2401_v58 = vmul.f32 %v11872_v11, %v17995_v14 }
 0x345   : > { %v1589_v39 = vadd.f32 %v11773_v1, %v17996_v31  ;;  %v1549_v23 = vadd.f32 %v1507_v10, %v1407_v62  ;;  %v1454_v27 = vpop.f32.mrf.mxu2  ;;  %v2660_v43 = vpack.c.bf16 %v2634_v42, %v2633_v47  ;;  %v2093_v24 = vadd.f32 %v2061_v2, %v1923_v56  ;;  %v12203_v31 = vpop.permute.xlu0 %2510 }
 0x346   : > { %v2265_v25 = vadd.f32 %v2233_v41, %v2095_v18  ;;  %v2096_v8 = vadd.f32 %v2064_v60, %v1926_v45  ;;  %v1548_v9 = vadd.f32 %v1508_v63, %v1454_v27  ;;  %v2402_v33 = vmul.f32 %v11875_v20, %v17995_v14  ;;  %v17998_v41 = vld [vmem:[#allocation101_spill] sm:$0xff]  ;;  %v2498_v18 = vpop.permute.xlu2 %2497 }
 0x347   : > { %v2403_v48 = vmul.f32 %v11872_v11, %v17997_v4  ;;  %v2264_v52 = vadd.f32 %v2232_v5, %v2094_v26  ;;  %v2659_v30 = vpack.c.bf16 %v2632_v35, %v2631_v57  ;;  %v2404_v46 = vmul.f32 %v11875_v20, %v17997_v4  ;;  %v18001_v4 = vld [vmem:[#allocation118_spill] sm:$0xff] }
 0x348   : > { %9964 = vset.pattern.permute.xlu2 %v10689_v17  ;;  %v1585_v42 = vadd.f32 %v11773_v1, %v1547_v34  ;;  %v2266_v2 = vadd.f32 %v2234_v38, %v2096_v8  ;;  %v1586_v60 = vadd.f32 %v11776_v3, %v1548_v9  ;;  %v1761_v7 = vadd.f32 %v17998_v41, %v1589_v39  ;;  %v17999_v39 = vld [vmem:[#allocation98_spill] sm:$0xff] }
 0x349   : > { %v1587_v56 = vadd.f32 %v11773_v1, %v1549_v23  ;;  %v2733_v10 = vunpack.c.l.b16 %v2660_v43  ;;  %v2734_v62 = vunpack.c.h.b16 %v2660_v43  ;;  %v2574_v28 = vmul.f32 %v11886_v16, %v2504_v50 }
 0x34a   : > { %v2263_v51 = vadd.f32 %v2231_v29, %v2093_v24  ;;  %v2435_v26 = vadd.f32 %v2403_v48, %v2265_v25  ;;  %v2436_v57 = vadd.f32 %v2404_v46, %v2266_v2  ;;  %v2434_v35 = vadd.f32 %v2402_v33, %v2264_v52 }
 0x34b   : > { %v1758_v47 = vadd.f32 %v12029_v49, %v1586_v60  ;;  %v2731_v5 = vunpack.c.l.b16 %v2659_v30  ;;  %v2732_v34 = vunpack.c.h.b16 %v2659_v30  ;;  %v2573_v38 = vmul.f32 %v11883_v59, %v2504_v50  ;;  %v18002_v30 = vld [vmem:[#allocation45_spill] sm:$0xff] }
 0x34c   : > { %v1757_v21 = vadd.f32 %v12025_v61, %v1585_v42  ;;  %v2571_v45 = vmul.f32 %v11883_v59, %v2498_v18  ;;  %v2572_v14 = vmul.f32 %v11886_v16, %v2498_v18  ;;  %v1759_v23 = vadd.f32 %v17999_v39, %v1587_v56  ;;  %v18004_v42 = vld [vmem:[#allocation37_spill] sm:$0xff] }
 0x34d   : > { %v1456_v29 = vpop.f32.mrf.mxu2  ;;  %v2759_v27 = vpack.c.b16 %v2733_v10, %v2731_v5  ;;  %v2760_v43 = vpack.c.b16 %v2734_v62, %v2732_v34  ;;  %v2606_v24 = vadd.f32 %v2574_v28, %v2436_v57  ;;  %v2239_v49 = vmul.f32 %v11770_v6, %v12074_v40  ;;  %v18005_v60 = vld [vmem:[#allocation109_spill] sm:$0xff]  ;;  %v18006_v62 = vld [vmem:[#allocation58_spill] sm:$0xff] }
 0x34e   : > { %v12210_v25 = vmul.f32 %v11833_v37, %v12074_v40  ;;  %v2433_v61 = vadd.f32 %v2401_v58, %v2263_v51  ;;  %v1550_v8 = vadd.f32 %v1508_v63, %v1456_v29  ;;  %v18000_v9 = vperm.slane %v17959_v54, 6  ;;  %v12221_v40 = vpop.f32.mrf.mxu3  ;;  %v18003_v58 = vld [vmem:[#allocation117_spill] sm:$0xff] }
 0x34f   : > { %v2604_v33 = vadd.f32 %v2572_v14, %v2434_v35  ;;  %v1928_v48 = vadd.f32 %v18001_v4, %v1758_v47  ;;  %2901 = vmatmul.bf16.gmra.mxu3 %v2759_v27  ;;  %v2605_v50 = vadd.f32 %v2573_v38, %v2435_v26  ;;  %v12217_v52 = vmul.f32 %v11886_v16, %v12203_v31  ;;  %v18007_v26 = vld [vmem:[#allocation99_spill] sm:$0xff]  ;;  %v18008_v35 = vld [vmem:[#allocation57_spill] sm:$0xff]  ;;  %v18010_v14 = vld [vmem:[#allocation110_spill] sm:$0xff] }
 0x350   : > { %3071 = vperm.xlu2 %9964, %v18000_v9   ;;  %2950 = vmatmul.bf16.gmra.mxu1 %v2760_v43  ;;  %v2067_v46 = vmul.f32 %v11752_v44, %v18002_v30  ;;  %v1927_v63 = vadd.f32 %v18003_v58, %v1757_v21  ;;  %v1588_v54 = vadd.f32 %v11776_v3, %v1550_v8  ;;  %v2638_v18 = vmax.f32 %v2606_v24, 0.0  ;;  %v18009_v38 = vld [vmem:[#allocation81_spill] sm:$0xff] }
 0x351   : > { %v1931_v2 = vadd.f32 %v18004_v42, %v1761_v7  ;;  %v1929_v41 = vadd.f32 %v18005_v60, %v1759_v23  ;;  %v2603_v56 = vadd.f32 %v2571_v45, %v2433_v61  ;;  %v2068_v10 = vmul.f32 %v11755_v32, %v18002_v30  ;;  %v18011_v23 = vld [vmem:[#allocation64_spill] sm:$0xff]  ;;  %v18015_v58 = vld [vmem:[#allocation65_spill] sm:$0xff] }
 0x352   : > { %v2237_v28 = vmul.f32 %v11770_v6, %v18006_v62  ;;  %v2238_v51 = vmul.f32 %v11833_v37, %v18006_v62  ;;  %v1760_v57 = vadd.f32 %v18007_v26, %v1588_v54  ;;  %v2236_v47 = vmul.f32 %v11833_v37, %v18008_v35  ;;  %v18016_v42 = vld [vmem:[#allocation88_spill] sm:$0xff] }
 0x353   : > { %v2636_v5 = vmax.f32 %v2604_v33, 0.0  ;;  %v2098_v7 = vadd.f32 %v12107_v36, %v1928_v48  ;;  %v2637_v34 = vmax.f32 %v2605_v50, 0.0  ;;  %v1591_v21 = vadd.f32 %v11773_v1, %v18009_v38  ;;  %v18013_v33 = vld [vmem:[#allocation86_spill] sm:$0xff] }
 0x354   : > { %v2097_v45 = vadd.f32 %v12099_v12, %v1927_v63  ;;  %v1930_v39 = vadd.f32 %v18010_v14, %v1760_v57  ;;  %v18012_v29 = vrot.slane %v18011_v23, 5  ;;  %v2101_v43 = vadd.f32 %v12116_v19, %v1931_v2  ;;  %v2517_v63 = vpop.permute.xlu2 %2516  ;;  %v18017_v57 = vld [vmem:[#allocation103_spill] sm:$0xff] }
 0x355   : > { %v2099_v24 = vadd.f32 %v2067_v46, %v1929_v41  ;;  %v2635_v61 = vmax.f32 %v2603_v56, 0.0  ;;  %v1459_v8 = vpop.f32.mrf.mxu2  ;;  %v2662_v9 = vpack.c.bf16 %v2638_v18, %v2637_v34  ;;  %v2235_v36 = vmul.f32 %v11770_v6, %v18008_v35 }
 0x356   : > { %v1510_v27 = vperm.slane %v18012_v29, 1  ;;  %v2405_v4 = vmul.f32 %v11872_v11, %v18013_v33  ;;  %v2100_v48 = vadd.f32 %v2068_v10, %v1930_v39  ;;  %v18014_v12 = vperm.slane %v11515_v53, 7  ;;  %v2524_v10 = vpop.permute.xlu1 %2523  ;;  %v1417_v34 = vpop.f32.mrf.mxu3  ;;  %v18021_v29 = vld [vmem:[#allocation119_spill] sm:$0xff] }
 0x357   : > { %v2406_v30 = vmul.f32 %v11875_v20, %v18013_v33  ;;  %v1496_v19 = vrot.slane %v18015_v58, 6  ;;  %v2268_v46 = vadd.f32 %v2236_v47, %v2098_v7  ;;  %v2661_v54 = vpack.c.bf16 %v2636_v5, %v2635_v61  ;;  %v18018_v47 = vld [vmem:[#allocation102_spill] sm:$0xff]  ;;  %v18022_v61 = vld [vmem:[#allocation113_spill] sm:$0xff] }
 0x358   : > { %v1552_v50 = vadd.f32 %v1510_v27, %v1459_v8  ;;  %3084 = vperm.xlu2 %9964, %v18014_v12   ;;  %v1763_v2 = vadd.f32 %v18016_v42, %v1591_v21  ;;  %v2267_v60 = vadd.f32 %v2235_v36, %v2097_v45  ;;  %v2270_v41 = vadd.f32 %v2238_v51, %v2100_v48  ;;  %v18019_v5 = vld [vmem:[#allocation114_spill] sm:$0xff]  ;;  %v18023_v12 = vld [vmem:[#allocation61_spill] sm:$0xff] }
 0x359   : > { %v2271_v18 = vadd.f32 %v2239_v49, %v2101_v43  ;;  %v2269_v62 = vadd.f32 %v2237_v28, %v2099_v24  ;;  %v2737_v26 = vunpack.c.l.b16 %v2662_v9  ;;  %v2738_v53 = vunpack.c.h.b16 %v2662_v9  ;;  %v18020_v49 = vld [vmem:[#allocation111_spill] sm:$0xff] }
 0x35a   : > { %v1590_v56 = vadd.f32 %v11776_v3, %v1552_v50  ;;  %v2409_v35 = vmul.f32 %v11872_v11, %v18017_v57  ;;  %v2577_v38 = vmul.f32 %v11883_v59, %v2517_v63  ;;  %v2440_v14 = vadd.f32 %v18019_v5, %v2270_v41 }
 0x35b   : > { %v2578_v21 = vmul.f32 %v11886_v16, %v2517_v63  ;;  %v2735_v51 = vunpack.c.l.b16 %v2661_v54  ;;  %v2736_v45 = vunpack.c.h.b16 %v2661_v54  ;;  %v2438_v39 = vadd.f32 %v2406_v30, %v2268_v46  ;;  %v18024_v63 = vld [vmem:[#allocation28_spill] sm:$0xff] }
 0x35c   : > { %v1762_v7 = vadd.f32 %v18018_v47, %v1590_v56  ;;  %v1933_v23 = vadd.f32 %v18020_v49, %v1763_v2  ;;  %v2579_v28 = vmul.f32 %v11883_v59, %v2524_v10  ;;  %v2437_v24 = vadd.f32 %v2405_v4, %v2267_v60  ;;  %v18025_v2 = vld [vmem:[#allocation107_spill] sm:$0xff]  ;;  %v18027_v47 = vld [vmem:[#allocation104_spill] sm:$0xff] }
 0x35d   : > { %v2439_v8 = vadd.f32 %v18022_v61, %v2269_v62  ;;  %v1461_v9 = vpop.f32.mrf.mxu2  ;;  %v2761_v36 = vpack.c.b16 %v2737_v26, %v2735_v51  ;;  %v2762_v33 = vpack.c.b16 %v2738_v53, %v2736_v45  ;;  %v2610_v48 = vadd.f32 %v2578_v21, %v2440_v14  ;;  %v18028_v45 = vld [vmem:[#allocation112_spill] sm:$0xff] }
 0x35e   : > { %v1932_v43 = vadd.f32 %v18021_v29, %v1762_v7  ;;  %v2575_v50 = vmul.f32 %v11883_v59, %v12203_v31  ;;  %v2241_v58 = vmul.f32 %v11770_v6, %v18023_v12  ;;  %v1554_v46 = vadd.f32 %v1510_v27, %v1461_v9  ;;  %v12283_v21 = vpop.f32.mrf.mxu3 }
 0x35f   : > { %v2441_v54 = vadd.f32 %v2409_v35, %v2271_v18  ;;  %v2609_v42 = vadd.f32 %v2577_v38, %v2439_v8  ;;  %2906 = vmatmul.bf16.gmra.mxu3 %v2761_v36  ;;  %v2608_v4 = vadd.f32 %v12217_v52, %v2438_v39  ;;  %v2103_v60 = vadd.f32 %v18025_v2, %v1933_v23  ;;  %v18026_v35 = vld [vmem:[#allocation89_spill] sm:$0xff]  ;;  %v18029_v8 = vld [vmem:[#allocation108_spill] sm:$0xff] }
 0x360   : > { %v2102_v30 = vadd.f32 %v12151_v55, %v1932_v43  ;;  %4102 = vperm.xlu2 %9964, %v18024_v63   ;;  %2955 = vmatmul.bf16.gmra.mxu1 %v2762_v33  ;;  %v2410_v41 = vmul.f32 %v11875_v20, %v18017_v57  ;;  %v1592_v56 = vadd.f32 %v11776_v3, %v1554_v46  ;;  %v1511_v62 = vperm.slane %v1496_v19, 0  ;;  %v18030_v36 = vld [vmem:[#allocation29_spill] sm:$0xff] }
 0x361   : > { %v2611_v55 = vadd.f32 %v2579_v28, %v2441_v54  ;;  %v2607_v27 = vadd.f32 %v2575_v50, %v2437_v24  ;;  %v2642_v26 = vmax.f32 %v2610_v48, 0.0  ;;  %v2242_v18 = vmul.f32 %v11833_v37, %v18023_v12  ;;  %v18031_v48 = vld [vmem:[#allocation34_spill] sm:$0xff] }
 0x362   : > { %v2272_v31 = vadd.f32 %v12210_v25, %v2102_v30  ;;  %v2580_v53 = vmul.f32 %v11886_v16, %v2524_v10  ;;  %v1764_v52 = vadd.f32 %v18026_v35, %v1592_v56  ;;  %v2411_v7 = vmul.f32 %v11872_v11, %v18027_v47  ;;  %v2530_v25 = vpop.permute.xlu2 %2529  ;;  %v18032_v50 = vld [vmem:[#allocation78_spill] sm:$0xff] }
 0x363   : > { %v1557_v57 = vadd.f32 %v1511_v62, %v1417_v34  ;;  %v2641_v5 = vmax.f32 %v2609_v42, 0.0  ;;  %v2640_v14 = vmax.f32 %v2608_v4, 0.0  ;;  %v2273_v51 = vadd.f32 %v2241_v58, %v2103_v60  ;;  %v18033_v42 = vld [vmem:[#allocation35_spill] sm:$0xff]  ;;  %v18034_v4 = vld [vmem:[#allocation77_spill] sm:$0xff]  ;;  %v18035_v56 = vld [vmem:[#allocation66_spill] sm:$0xff] }
 0x364   : > { %v2442_v38 = vadd.f32 %v2410_v41, %v2272_v31  ;;  %v1934_v39 = vadd.f32 %v18028_v45, %v1764_v52  ;;  %v1512_v49 = vperm.slane %v1496_v19, 1  ;;  %v1555_v28 = vadd.f32 %v1511_v62, %v12221_v40  ;;  %v18040_v45 = vld [vmem:[#allocation105_spill] sm:$0xff] }
 0x365   : > { %v2643_v10 = vmax.f32 %v2611_v55, 0.0  ;;  %v1464_v29 = vpop.f32.mrf.mxu2  ;;  %v2639_v43 = vmax.f32 %v2607_v27, 0.0  ;;  %v2664_v24 = vpack.c.bf16 %v2642_v26, %v2641_v5  ;;  %v2581_v61 = vmul.f32 %v11883_v59, %v2530_v25  ;;  %v18038_v5 = vld [vmem:[#allocation79_spill] sm:$0xff] }
 0x366   : > { %v2612_v23 = vadd.f32 %v2580_v53, %v2442_v38  ;;  %v2104_v34 = vadd.f32 %v18029_v8, %v1934_v39  ;;  %v1556_v9 = vadd.f32 %v1512_v49, %v1464_v29  ;;  %v1734_v12 = vmul.f32 %v18032_v50, %v18031_v48  ;;  %v18036_v38 = vld [vmem:[#allocation38_spill] sm:$0xff]  ;;  %v1422_v29 = vpop.f32.mrf.mxu3  ;;  %v18041_v48 = vld [vmem:[#allocation48_spill] sm:$0xff] }
 0x367   : > { %v2412_v19 = vmul.f32 %v11875_v20, %v18027_v47  ;;  %v1595_v40 = vadd.f32 %v11773_v1, %v1557_v57  ;;  %v2663_v58 = vpack.c.bf16 %v2640_v14, %v2639_v43  ;;  %v2443_v30 = vadd.f32 %v2411_v7, %v2273_v51  ;;  %v18037_v47 = vld [vmem:[#allocation84_spill] sm:$0xff]  ;;  %v18039_v14 = vld [vmem:[#allocation85_spill] sm:$0xff] }
 0x368   : > { %4133 = vperm.xlu2 %9964, %v18030_v36   ;;  %v2644_v33 = vmax.f32 %v2612_v23, 0.0  ;;  %v2274_v46 = vadd.f32 %v2242_v18, %v2104_v34  ;;  %v1594_v63 = vadd.f32 %v11776_v3, %v1556_v9  ;;  %v1735_v2 = vmul.f32 %v18034_v4, %v18033_v42 }
 0x369   : > { %v1593_v60 = vadd.f32 %v11773_v1, %v1555_v28  ;;  %v2741_v41 = vunpack.c.l.b16 %v2664_v24  ;;  %v2742_v31 = vunpack.c.h.b16 %v2664_v24  ;;  %v1498_v62 = vrot.slane %v18035_v56, 7 }
 0x36a   : > { %v2665_v54 = vpack.c.bf16 %v2644_v33, %v2643_v10  ;;  %v2582_v55 = vmul.f32 %v11886_v16, %v2530_v25  ;;  %v2613_v27 = vadd.f32 %v2581_v61, %v2443_v30  ;;  %v2444_v26 = vadd.f32 %v2412_v19, %v2274_v46 }
 0x36b   : > { %v1767_v53 = vadd.f32 %v1735_v2, %v1595_v40  ;;  %v1766_v35 = vadd.f32 %v1734_v12, %v1594_v63  ;;  %v2739_v52 = vunpack.c.l.b16 %v2663_v58  ;;  %v2740_v18 = vunpack.c.h.b16 %v2663_v58  ;;  %v18042_v40 = vld [vmem:[#allocation47_spill] sm:$0xff] }
 0x36c   : > { %v1905_v7 = vmul.f32 %v18037_v47, %v18036_v38  ;;  %v2614_v57 = vadd.f32 %v2582_v55, %v2444_v26  ;;  %v1904_v51 = vmul.f32 %v18039_v14, %v18038_v5  ;;  %v1765_v39 = vadd.f32 %v18040_v45, %v1593_v60  ;;  %v12322_v26 = vpop.permute.xlu2 %2549 }
 0x36d   : > { %v1466_v23 = vpop.f32.mrf.mxu2  ;;  %v2763_v28 = vpack.c.b16 %v2741_v41, %v2739_v52  ;;  %v2764_v10 = vpack.c.b16 %v2742_v31, %v2740_v18  ;;  %v1736_v25 = vmul.f32 %v18032_v50, %v18033_v42  ;;  %v2645_v43 = vmax.f32 %v2613_v27, 0.0 }
 0x36e   : > { %v1558_v24 = vadd.f32 %v1512_v49, %v1466_v23  ;;  %v2646_v61 = vmax.f32 %v2614_v57, 0.0  ;;  %v1903_v8 = vmul.f32 %v18037_v47, %v18038_v5  ;;  %v1937_v34 = vadd.f32 %v1905_v7, %v1767_v53  ;;  %v18044_v57 = vld [vmem:[#allocation69_spill] sm:$0xff] }
 0x36f   : > { %v1513_v9 = vperm.slane %v1498_v62, 0  ;;  %v1936_v36 = vadd.f32 %v1904_v51, %v1766_v35  ;;  %2911 = vmatmul.bf16.gmra.mxu3 %v2763_v28  ;;  %v1906_v33 = vmul.f32 %v18039_v14, %v18036_v38  ;;  %v2075_v12 = vmul.f32 %v11752_v44, %v18041_v48  ;;  %v18043_v38 = vld [vmem:[#allocation62_spill] sm:$0xff] }
 0x370   : > { %9966 = vset.pattern.permute.xlu2 %v17974_v0  ;;  %2960 = vmatmul.bf16.gmra.mxu1 %v2764_v10  ;;  %v1596_v19 = vadd.f32 %v11776_v3, %v1558_v24  ;;  %v2666_v49 = vpack.c.bf16 %v2646_v61, %v2645_v43  ;;  %v2074_v58 = vmul.f32 %v11755_v32, %v18042_v40  ;;  %v2743_v63 = vunpack.c.l.b16 %v2665_v54 }
 0x371   : > { %v1935_v30 = vadd.f32 %v1903_v8, %v1765_v39  ;;  %v1561_v46 = vadd.f32 %v1513_v9, %v1422_v29  ;;  %v2744_v60 = vunpack.c.h.b16 %v2665_v54  ;;  %v2076_v31 = vmul.f32 %v11755_v32, %v18041_v48  ;;  %v18047_v8 = vld [vmem:[#allocation116_spill] sm:$0xff] }
 0x372   : > { %v1768_v42 = vadd.f32 %v1736_v25, %v1596_v19  ;;  %v2745_v2 = vunpack.c.l.b16 %v2666_v49  ;;  %v2746_v41 = vunpack.c.h.b16 %v2666_v49  ;;  %v2073_v56 = vmul.f32 %v11752_v44, %v18042_v40  ;;  %v18046_v25 = vld [vmem:[#allocation33_spill] sm:$0xff] }
 0x373   : > { %v2107_v55 = vadd.f32 %v2075_v12, %v1937_v34  ;;  %v2106_v27 = vadd.f32 %v2074_v58, %v1936_v36  ;;  %v1514_v35 = vperm.slane %v1498_v62, 1  ;;  %v2244_v7 = vmul.f32 %v11833_v37, %v18043_v38  ;;  %v18045_v62 = vld [vmem:[#allocation30_spill] sm:$0xff]  ;;  %v18049_v12 = vld [vmem:[#allocation115_spill] sm:$0xff]  ;;  %v2537_v58 = vpop.permute.xlu1 %2536 }
 0x374   : > { %v1938_v53 = vadd.f32 %v1906_v33, %v1768_v42  ;;  %v2765_v52 = vpack.c.b16 %v2745_v2, %v2743_v63  ;;  %v2766_v18 = vpack.c.b16 %v2746_v41, %v2744_v60  ;;  %v2245_v54 = vmul.f32 %v11770_v6, %v18044_v57  ;;  %v18050_v63 = vld [vmem:[#allocation60_spill] sm:$0xff] }
 0x375   : > { %v2246_v5 = vmul.f32 %v11833_v37, %v18044_v57  ;;  %v2105_v51 = vadd.f32 %v2073_v56, %v1935_v30  ;;  %v1469_v45 = vpop.f32.mrf.mxu2  ;;  %v1559_v39 = vadd.f32 %v1513_v9, %v12283_v21  ;;  %v1599_v23 = vadd.f32 %v11773_v1, %v1561_v46  ;;  %v18048_v9 = vld [vmem:[#allocation36_spill] sm:$0xff]  ;;  %v18051_v56 = vld [vmem:[#allocation39_spill] sm:$0xff] }
 0x376   : > { %v2108_v28 = vadd.f32 %v2076_v31, %v1938_v53  ;;  %v1560_v10 = vadd.f32 %v1514_v35, %v1469_v45  ;;  %v1739_v29 = vmul.f32 %v18034_v4, %v18046_v25  ;;  %v2277_v43 = vadd.f32 %v2245_v54, %v2107_v55 }
 0x377   : > { %v2276_v24 = vadd.f32 %v2244_v7, %v2106_v27  ;;  %v2243_v61 = vmul.f32 %v11770_v6, %v18043_v38  ;;  %v2416_v34 = vmul.f32 %v11875_v20, %v18047_v8  ;;  %v1738_v33 = vmul.f32 %v18032_v50, %v18048_v9  ;;  %v18052_v27 = vld [vmem:[#allocation40_spill] sm:$0xff] }
 0x378   : > { %4238 = vperm.xlu2 %9966, %v18045_v62   ;;  %v2278_v36 = vadd.f32 %v2246_v5, %v2108_v28  ;;  %v1598_v21 = vadd.f32 %v11776_v3, %v1560_v10  ;;  %v2415_v48 = vmul.f32 %v11872_v11, %v18047_v8  ;;  %v2414_v19 = vmul.f32 %v11875_v20, %v18049_v12 }
 0x379   : > { %v2275_v49 = vadd.f32 %v2243_v61, %v2105_v51  ;;  %v1597_v40 = vadd.f32 %v11773_v1, %v1559_v39  ;;  %v1771_v30 = vadd.f32 %v1739_v29, %v1599_v23  ;;  %v2586_v42 = vmul.f32 %v11886_v16, %v18050_v63  ;;  %v12361_v39 = vpop.permute.xlu2 %2987 }
 0x37a   : > { %v2448_v46 = vadd.f32 %v2416_v34, %v2278_v36  ;;  %v1770_v2 = vadd.f32 %v1738_v33, %v1598_v21  ;;  %v2446_v60 = vadd.f32 %v2414_v19, %v2276_v24  ;;  %v2447_v41 = vadd.f32 %v2415_v48, %v2277_v43  ;;  %v18053_v24 = vld [vmem:[#allocation50_spill] sm:$0xff]  ;;  %v18054_v34 = vld [vmem:[#allocation49_spill] sm:$0xff] }
 0x37b   : > { %v1737_v31 = vmul.f32 %v18034_v4, %v18048_v9  ;;  %v1908_v55 = vmul.f32 %v18039_v14, %v18051_v56  ;;  %v1909_v53 = vmul.f32 %v18037_v47, %v18052_v27  ;;  %v2413_v1 = vmul.f32 %v11872_v11, %v18049_v12 }
 0x37c   : > { %v2585_v38 = vmul.f32 %v11883_v59, %v18050_v63  ;;  %v2583_v7 = vmul.f32 %v11883_v59, %v2537_v58  ;;  %v2584_v57 = vmul.f32 %v11886_v16, %v2537_v58  ;;  %v2618_v5 = vadd.f32 %v2586_v42, %v2448_v46 }
 0x37d   : > { %v1471_v54 = vpop.f32.mrf.mxu2  ;;  %v2445_v51 = vadd.f32 %v2413_v1, %v2275_v49  ;;  %v1769_v4 = vadd.f32 %v1737_v31, %v1597_v40  ;;  %v1941_v45 = vadd.f32 %v1909_v53, %v1771_v30  ;;  %v1940_v28 = vadd.f32 %v1908_v55, %v1770_v2  ;;  %v18056_v49 = vld [vmem:[#allocation59_spill] sm:$0xff]  ;;  %v18058_v55 = vld [vmem:[#allocation120_spill] sm:$0xff] }
 0x37e   : > { %v1562_v23 = vadd.f32 %v1514_v35, %v1471_v54  ;;  %v2616_v10 = vadd.f32 %v2584_v57, %v2446_v60  ;;  %v2617_v62 = vadd.f32 %v2585_v38, %v2447_v41  ;;  %v1740_v29 = vmul.f32 %v18032_v50, %v18046_v25  ;;  %v18055_v50 = vld [vmem:[#allocation51_spill] sm:$0xff] }
 0x37f   : > { %2916 = vmatmul.bf16.gmra.mxu3 %v2765_v52  ;;  %v1907_v43 = vmul.f32 %v18037_v47, %v18051_v56  ;;  %v2079_v61 = vmul.f32 %v11752_v44, %v18053_v24  ;;  %v2078_v35 = vmul.f32 %v11755_v32, %v18054_v34  ;;  %v2650_v36 = vmax.f32 %v2618_v5, 0.0 }
 0x380   : > { %4349 = vperm.xlu2 %9966, %v17968_v13   ;;  %2965 = vmatmul.bf16.gmra.mxu1 %v2766_v18  ;;  %v1600_v8 = vadd.f32 %v11776_v3, %v1562_v23  ;;  %v2615_v13 = vadd.f32 %v2583_v7, %v2445_v51  ;;  %v1910_v52 = vmul.f32 %v18039_v14, %v18052_v27  ;;  %v2648_v33 = vmax.f32 %v2616_v10, 0.0  ;;  %v18057_v14 = vld [vmem:[#allocation70_spill] sm:$0xff] }
 0x381   : > { %v1939_v18 = vadd.f32 %v1907_v43, %v1769_v4  ;;  %v2111_v21 = vadd.f32 %v2079_v61, %v1941_v45  ;;  %v2249_v25 = vmul.f32 %v11770_v6, %v18055_v50  ;;  %v2110_v47 = vadd.f32 %v2078_v35, %v1940_v28  ;;  %v12387_v60 = vpop.permute.xlu2 %3006 }
 0x382   : > { %v1772_v9 = vadd.f32 %v1740_v29, %v1600_v8  ;;  %v2649_v48 = vmax.f32 %v2617_v62, 0.0  ;;  %v2080_v3 = vmul.f32 %v11755_v32, %v18053_v24  ;;  %v2077_v12 = vmul.f32 %v11752_v44, %v18054_v34  ;;  %v2556_v44 = vpop.permute.xlu1 %2555 }
 0x383   : > { %v3668_v40 = vpack.c.b16 %v18056_v49, %v18056_v49  ;;  %v2248_v58 = vmul.f32 %v11833_v37, %v18057_v14  ;;  %v2647_v30 = vmax.f32 %v2615_v13, 0.0  ;;  %v2250_v63 = vmul.f32 %v11833_v37, %v18055_v50 }
 0x384   : > { %v1942_v19 = vadd.f32 %v1910_v52, %v1772_v9  ;;  %v2668_v46 = vpack.c.bf16 %v2650_v36, %v2649_v48  ;;  %v2109_v42 = vadd.f32 %v2077_v12, %v1939_v18  ;;  %v2281_v2 = vadd.f32 %v2249_v25, %v2111_v21 }
 0x385   : > { %v2280_v41 = vadd.f32 %v2248_v58, %v2110_v47  ;;  %v2667_v31 = vpack.c.bf16 %v2648_v33, %v2647_v30  ;;  %v2247_v56 = vmul.f32 %v11770_v6, %v18057_v14  ;;  %v2419_v27 = vmul.f32 %v11872_v11, %v18058_v55 }
 0x386   : > { %v2112_v32 = vadd.f32 %v2080_v3, %v1942_v19  ;;  %v2420_v37 = vmul.f32 %v11875_v20, %v18058_v55  ;;  %v2418_v1 = vmul.f32 %v11875_v20, %v12177_v15  ;;  %v2749_v38 = vunpack.c.l.b16 %v2668_v46 }
 0x387   : > { %v2750_v7 = vunpack.c.h.b16 %v2668_v46  ;;  %v2451_v57 = vadd.f32 %v2419_v27, %v2281_v2  ;;  %v2589_v54 = vmul.f32 %v11883_v59, %v2556_v44  ;;  %v2279_v5 = vadd.f32 %v2247_v56, %v2109_v42 }
 0x388   : > { %3669 = vrot.lane.b32.xlu2 %v3668_v40, %s10402_s0  ;;  %v2282_v53 = vadd.f32 %v2250_v63, %v2112_v32  ;;  %v2590_v4 = vmul.f32 %v11886_v16, %v2556_v44  ;;  %v2747_v6 = vunpack.c.l.b16 %v2667_v31  ;;  %v2748_v45 = vunpack.c.h.b16 %v2667_v31  ;;  %v12423_v40 = vld [vmem:[%s17356_s13] ss:$0 sm:$0xff] }
 0x389   : > { %9970 = vset.pattern.permute.xlu2 %v17975_v22  ;;  %v2450_v23 = vadd.f32 %v2418_v1, %v2280_v41  ;;  %v2417_v28 = vmul.f32 %v11872_v11, %v12177_v15  ;;  %v2587_v10 = vmul.f32 %v11883_v59, %v12322_v26  ;;  %v2588_v20 = vmul.f32 %v11886_v16, %v12322_v26  ;;  %v12406_v35 = vpop.permute.xlu2 %3019  ;;  %v9774_v41 = vld [vmem:[%s17357_s14 + $0x18] sm:$0xff] }
 0x38a   : > { %v2452_v51 = vadd.f32 %v2420_v37, %v2282_v53  ;;  %v2767_v62 = vpack.c.b16 %v2749_v38, %v2747_v6  ;;  %v2768_v29 = vpack.c.b16 %v2750_v7, %v2748_v45  ;;  %v2621_v24 = vadd.f32 %v2589_v54, %v2451_v57  ;;  %v2994_v61 = vpop.permute.xlu1 %2993  ;;  %3724 = vmatpush.bf16.msrb.mxu0 %v9774_v41  ;;  %v9772_v54 = vld [vmem:[%s17357_s14 + $0x8] sm:$0xff]  ;;  %v9771_v6 = vld [vmem:[%s17357_s14] sm:$0xff] }
 0x38b   : > { %v2449_v8 = vadd.f32 %v2417_v28, %v2279_v5  ;;  %v2620_v34 = vadd.f32 %v2588_v20, %v2450_v23 }
 0x38c   : > { %v2622_v43 = vadd.f32 %v2590_v4, %v2452_v51  ;;  %v2653_v11 = vmax.f32 %v2621_v24, 0.0  ;;  %v3001_v4 = vpop.permute.xlu0 %3000 }
 0x38d   : > { %v2619_v13 = vadd.f32 %v2587_v10, %v2449_v8  ;;  %v2652_v15 = vmax.f32 %v2620_v34, 0.0 }
 0x38e   : > { %v2654_v36 = vmax.f32 %v2622_v43, 0.0 }
 0x38f   : > { %2921 = vmatmul.bf16.gmra.mxu3 %v2767_v62  ;;  %v2651_v52 = vmax.f32 %v2619_v13, 0.0 }
 0x390   : > { %2970 = vmatmul.bf16.gmra.mxu1 %v2768_v29  ;;  %v2670_v59 = vpack.c.bf16 %v2654_v36, %v2653_v11 }
 0x391   : > { %v2669_v18 = vpack.c.bf16 %v2652_v15, %v2651_v52  ;;  %v12408_v21 = vpop.permute.xlu2 %3039 }
 0x392   : > { %v12410_v16 = vpop.permute.xlu1 %3013  ;;  %v2753_v26 = vunpack.c.l.b16 %v2670_v59  ;;  %v2754_v9 = vunpack.c.h.b16 %v2670_v59 }
 0x393   : > { %v2751_v50 = vunpack.c.l.b16 %v2669_v18  ;;  %v2752_v25 = vunpack.c.h.b16 %v2669_v18 }
 0x395   : > { %v2769_v47 = vpack.c.b16 %v2753_v26, %v2751_v50  ;;  %v2770_v33 = vpack.c.b16 %v2754_v9, %v2752_v25 }
 0x39a   : > { %v12412_v48 = vpop.permute.xlu2 %3052  ;;  %v12414_v3 = vpop.permute.xlu1 %3026 }
 0x39f   : > { %2926 = vmatmul.bf16.gmra.mxu3 %v2769_v47 }
 0x3a0   : > { %2975 = vmatmul.bf16.gmra.mxu1 %v2770_v33 }
 0x3a2   : > { %v12418_v19 = vpop.permute.xlu1 %3045 }
 0x3aa   : > { %v12416_v12 = vpop.permute.xlu2 %3071  ;;  %v12430_v63 = vpop.permute.xlu1 %3058 }
 0x3ad   : > { %v2941_v49 = vpop.f32.mrf.mxu1 }
 0x3b2   : > { %v2892_v14 = vpop.f32.mrf.mxu3  ;;  %v12426_v30 = vpop.permute.xlu2 %3084 }
 0x3b3   : > { %v2893_v58 = vadd.f32 %v12423_v40, %v2892_v14  ;;  %v12453_v38 = vpop.permute.xlu1 %3078 }
 0x3b5   : > { %v12428_v46 = vadd.f32 %v2941_v49, %v2893_v58  ;;  %v2943_v32 = vpop.f32.mrf.mxu1 }
 0x3b7   : > { %18059 = vst [vmem:[#allocation41_spill] sm:$0xff] %v12428_v46  ;;  %v9670_v42 = vmul.f32 -1.442695, %v12428_v46  ;;  %v12435_v2 = vadd.f32 %v12361_v39, %v12428_v46  ;;  %v9773_v39 = vld [vmem:[%s17357_s14 + $0x10] sm:$0xff] }
 0x3b8   : > { %3725 = vmatpush.bf16.msrb.mxu0 %v9773_v39 }
 0x3b9   : > { %18060 = vst [vmem:[#allocation71_spill] sm:$0xff] %v12435_v2  ;;  %10026 = vpow2.f32 %v9670_v42  ;;  %3135 = vperm.xlu1 %9968, %v12435_v2  }
 0x3ba   : > { %v2894_v44 = vpop.f32.mrf.mxu3  ;;  %v12444_v55 = vpop.permute.xlu2 %4102 }
 0x3bb   : > { %v2895_v31 = vadd.f32 %v12423_v40, %v2894_v44 }
 0x3bc   : > { %3726 = vmatpush.bf16.msrb.mxu0 %v9772_v54 }
 0x3bd   : > { %v12442_v56 = vadd.f32 %v2943_v32, %v2895_v31  ;;  %v2946_v7 = vpop.f32.mrf.mxu1 }
 0x3bf   : > { %18061 = vst [vmem:[#allocation32_spill] sm:$0xff] %v12442_v56  ;;  %v10027_v27 = vpop.eup %10026  ;;  %v9671_v37 = vmul.f32 -1.442695, %v12442_v56  ;;  %v12451_v53 = vadd.f32 %v2994_v61, %v12442_v56  ;;  %v12474_v61 = vpop.permute.xlu1 %4096  ;;  %v9778_v56 = vld [vmem:[#allocation10 + $0x18] sm:$0xff] }
 0x3c0   : > { %v3835_v1 = vadd.f32 1.0, %v10027_v27  ;;  %3727 = vmatpush.bf16.msrb.mxu0 %v9771_v6  ;;  %3778 = vmatpush.bf16.msrb.mxu2 %v9778_v56 }
 0x3c1   : > { %18062 = vst [vmem:[#allocation52_spill] sm:$0xff] %v12451_v53  ;;  %10028 = vpow2.f32 %v9671_v37  ;;  %3138 = vperm.xlu0 %9969, %v12451_v53   ;;  %v715_v37 = vld [vmem:[%s10676_s6] sm:$0xf]  ;;  %s10418_s6 = smov 4  }
 0x3c2   : > { %10030 = vrcp.f32 %v3835_v1  ;;  %v2897_v57 = vpop.f32.mrf.mxu3  ;;  %v12470_v20 = vpop.permute.xlu2 %4133  ;;  %v3862_v34 = vand.u32 2147483648, %v3835_v1  ;;  %v3860_v11 = vand.u32 2147483647, %v3835_v1  ;;  %vm3856_vm1 = vweird.f32 %v3835_v1 }
 0x3c3   : > { %v2898_v5 = vadd.f32 %v12423_v40, %v2897_v57 }
 0x3c4   : > { %v3863_v18 = vor.u32 1.1754944e-38, %v3862_v34  ;;  %vm3861_vm5 = vcmp.eq.f32.partialorder %v3860_v11, 8.507059e+37 }
 0x3c5   : > { %v12460_v51 = vadd.f32 %v2946_v7, %v2898_v5  ;;  %v2948_v8 = vpop.f32.mrf.mxu1 }
 0x3c7   : > { %18063 = vst [vmem:[#allocation53_spill] sm:$0xff] %v12460_v51  ;;  %v10029_v45 = vpop.eup %10028  ;;  %v12466_v23 = vadd.f32 %v3001_v4, %v12460_v51  ;;  %v9672_v25 = vmul.f32 -1.442695, %v12460_v51  ;;  %v12498_v49 = vpop.permute.xlu1 %4127 }
 0x3c8   : > { %v10031_v28 = vpop.eup %10030  ;;  %v12468_v10 = vadd.f32 1.0, %v10029_v45 }
 0x3c9   : > { %18064 = vst [vmem:[#allocation87_spill] sm:$0xff] %v12466_v23  ;;  %3141 = vperm.xlu2 %9970, %v12466_v23   ;;  %v3852_v62 = vmul.f32 %v10031_v28, %v3835_v1  ;;  %vm3857_vm0 = vweird.f32 %v10031_v28 }
 0x3ca   : > { %v2899_v29 = vpop.f32.mrf.mxu3  ;;  %10032 = vrcp.f32 %v12468_v10  ;;  %vm3858_vm3 = vmor %vm3856_vm1, %vm3857_vm0  ;;  %v3877_v4 = vand.u32 2147483648, %v12468_v10  ;;  %vm3871_vm0 = vweird.f32 %v12468_v10  ;;  %v3875_v45 = vand.u32 2147483647, %v12468_v10 }
 0x3cb   : > { %v2900_v43 = vadd.f32 %v12423_v40, %v2899_v29  ;;  %v3853_v24 = vsub.f32 1.0, %v3852_v62  ;;  %10034 = vpow2.f32 %v9672_v25 }
 0x3cc   : > { %v3878_v62 = vor.u32 1.1754944e-38, %v3877_v4 }
 0x3cd   : > { %v12477_v13 = vadd.f32 %v2948_v8, %v2900_v43  ;;  %v3854_v36 = vmul.f32 %v10031_v28, %v3853_v24  ;;  %v2951_v27 = vpop.f32.mrf.mxu1 }
 0x3cf   : > { %18065 = vst [vmem:[#allocation73_spill] sm:$0xff] %v12477_v13  ;;  %v12481_v15 = vadd.f32 %v12387_v60, %v12477_v13  ;;  %v3855_v52 = vadd.f32 %v10031_v28, %v3854_v36  ;;  %v12531_v29 = vpop.permute.xlu1 %4244  ;;  %v9673_v24 = vmul.f32 -1.442695, %v12477_v13 }
 0x3d0   : > { %v10033_v9 = vpop.eup %10032 }
 0x3d1   : > { %18066 = vst [vmem:[#allocation72_spill] sm:$0xff] %v12481_v15  ;;  %3144 = vperm.xlu1 %9968, %v12481_v15   ;;  %v3859_v26 = vsel %vm3858_vm3, %v10031_v28, %v3855_v52  ;;  %v3867_v33 = vmul.f32 %v10033_v9, %v12468_v10  ;;  %v10035_v31 = vpop.eup %10034  ;;  %vm3872_vm15 = vweird.f32 %v10033_v9 }
 0x3d2   : > { %v12483_v59 = vpop.permute.xlu2 %4238  ;;  %v3864_v50 = vsel %vm3861_vm5, %v3863_v18, %v3859_v26  ;;  %v2902_v58 = vpop.f32.mrf.mxu3  ;;  %v3837_v7 = vadd.f32 1.0, %v10035_v31  ;;  %vm3873_vm1 = vmor %vm3871_vm0, %vm3872_vm15 }
 0x3d3   : > { %v12488_v47 = vmul.f32 %v12483_v59, %v3864_v50  ;;  %v12491_v60 = vmul.f32 %v12474_v61, %v3864_v50  ;;  %v12501_v14 = vmul.f32 %v12498_v49, %v3864_v50  ;;  %v3868_v44 = vsub.f32 1.0, %v3867_v33 }
 0x3d4   : > { %v2903_v41 = vadd.f32 %v12423_v40, %v2902_v58  ;;  %10036 = vrcp.f32 %v3837_v7  ;;  %vm3886_vm5 = vweird.f32 %v3837_v7 }
 0x3d5   : > { %4280 = vrot.lane.b32.xlu0 %v12488_v47, %s10403_s22  ;;  %4471 = vrot.lane.b32.xlu2 %v12491_v60, %s10404_s19  ;;  %v3869_v39 = vmul.f32 %v10033_v9, %v3868_v44  ;;  %10038 = vpow2.f32 %v9673_v24  ;;  %v2953_v44 = vpop.f32.mrf.mxu1 }
 0x3d6   : > { %v12516_v1 = vadd.f32 %v2951_v27, %v2903_v41  ;;  %v3892_v41 = vand.u32 2147483648, %v3837_v7 }
 0x3d7   : > { %v3870_v5 = vadd.f32 %v10033_v9, %v3869_v39  ;;  %v12548_v11 = vpop.permute.xlu1 %4355  ;;  %v3890_v39 = vand.u32 2147483647, %v3837_v7 }
 0x3d8   : > { %18068 = vst [vmem:[#allocation82_spill] sm:$0xff] %v12516_v1  ;;  %v12524_v6 = vadd.f32 %v12410_v16, %v12516_v1 }
 0x3d9   : > { %4169 = vrot.lane.b32.xlu1 %v12501_v14, %s10404_s19  ;;  %v3874_v28 = vsel %vm3873_vm1, %v10033_v9, %v3870_v5  ;;  %vm3891_vm15 = vcmp.eq.f32.partialorder %v3890_v39, 8.507059e+37 }
 0x3da   : > { %v12503_v42 = vpop.permute.xlu2 %4349  ;;  %18069 = vst [vmem:[#allocation67_spill] sm:$0xff] %v12524_v6  ;;  %v10037_v16 = vpop.eup %10036 }
 0x3db   : > { %v12508_v32 = vmul.f32 %v12503_v42, %v3864_v50  ;;  %v3882_v8 = vmul.f32 %v10037_v16, %v3837_v7  ;;  %v2904_v26 = vpop.f32.mrf.mxu3  ;;  %v10039_v9 = vpop.eup %10038  ;;  %vm3887_vm3 = vweird.f32 %v10037_v16 }
 0x3dc   : > { %v2905_v25 = vadd.f32 %v12423_v40, %v2904_v26  ;;  %v3838_v33 = vadd.f32 1.0, %v10039_v9 }
 0x3dd   : > { %18067 = vst [vmem:[#allocation31_spill] sm:$0xff] %v12508_v32  ;;  %4391 = vrot.lane.b32.xlu0 %v12508_v32, %s10405_s1  ;;  %4663 = vrot.lane.b32.xlu2 %v12508_v32, %s10404_s19  ;;  %v3883_v36 = vsub.f32 1.0, %v3882_v8  ;;  %v2956_v8 = vpop.f32.mrf.mxu1 }
 0x3de   : > { %v12563_v31 = vadd.f32 %v2953_v44, %v2905_v25  ;;  %10040 = vrcp.f32 %v3838_v33  ;;  %vm3901_vm1 = vweird.f32 %v3838_v33 }
 0x3df   : > { %v3884_v50 = vmul.f32 %v10037_v16, %v3883_v36 }
 0x3e0   : > { %18073 = vst [vmem:[#allocation46_spill] sm:$0xff] %v12563_v31 }
 0x3e1   : > { %4535 = vrot.lane.b32.xlu1 %v12508_v32, %s10403_s22  ;;  %v3885_v58 = vadd.f32 %v10037_v16, %v3884_v50  ;;  %v3907_v50 = vand.u32 2147483648, %v3838_v33 }
 0x3e2   : > { %v3670_v57 = vpop.permute.xlu2 %3669 }
 0x3e3   : > { %v3673_v54 = vsel %vm743_vm2, %v715_v37, %v3670_v57  ;;  %vm3876_vm2 = vcmp.eq.f32.partialorder %v3875_v45, 8.507059e+37  ;;  %v3893_v37 = vor.u32 1.1754944e-38, %v3892_v41  ;;  %v12571_v57 = vadd.f32 %v12406_v35, %v12563_v31  ;;  %v2907_v35 = vpop.f32.mrf.mxu3 }
 0x3e4   : > { %9652 = vmatmul.msk.bf16.vlgmr.msrb.gmra.mxu0 %vm3714_vm7, %v3673_v54  ;;  %v3879_v43 = vsel %vm3876_vm2, %v3878_v62, %v3874_v28  ;;  %vm3888_vm7 = vmor %vm3886_vm5, %vm3887_vm3  ;;  %v10041_v5 = vpop.eup %10040  ;;  %v9674_v62 = vmul.f32 -1.442695, %v12516_v1  ;;  %v3908_v39 = vor.u32 1.1754944e-38, %v3907_v50  ;;  %v12656_v1 = vpop.permute.xlu0 %3065 }
 0x3e5   : > { %4599 = vrot.lane.b32.xlu0 %v12488_v47, %s10405_s1  ;;  %3147 = vperm.xlu2 %9970, %v12524_v6   ;;  %v12537_v10 = vmul.f32 %v12470_v20, %v3879_v43  ;;  %v12544_v34 = vmul.f32 %v12444_v55, %v3879_v43  ;;  %v12551_v52 = vmul.f32 %v12548_v11, %v3879_v43  ;;  %vm3902_vm0 = vweird.f32 %v10041_v5 }
 0x3e6   : > { %v12554_v18 = vmul.f32 %v12531_v29, %v3879_v43  ;;  %v3889_v27 = vsel %vm3888_vm7, %v10037_v16, %v3885_v58  ;;  %18074 = vst [vmem:[#allocation42_spill] sm:$0xff] %v12571_v57  ;;  %v3897_v4 = vmul.f32 %v10041_v5, %v3838_v33  ;;  %v2908_v43 = vadd.f32 %v12423_v40, %v2907_v35  ;;  %vm3903_vm2 = vmor %vm3901_vm1, %vm3902_vm0 }
 0x3e7   : > { %18070 = vst [vmem:[#allocation91_spill] sm:$0xff] %v12544_v34  ;;  %v3894_v54 = vsel %vm3891_vm15, %v3893_v37, %v3889_v27  ;;  %10042 = vpow2.f32 %v9674_v62  ;;  %v3905_v58 = vand.u32 2147483647, %v3838_v33 }
 0x3e8   : > { %18071 = vst [vmem:[#allocation90_spill] sm:$0xff] %v12551_v52  ;;  %v12575_v7 = vmul.f32 %v12474_v61, %v3894_v54  ;;  %v12582_v45 = vmul.f32 %v12498_v49, %v3894_v54  ;;  %v3898_v28 = vsub.f32 1.0, %v3897_v4  ;;  %v12589_v16 = vmul.f32 %v12503_v42, %v3894_v54 }
 0x3e9   : > { %4727 = vrot.lane.b32.xlu1 %v12491_v60, %s10403_s22  ;;  %18072 = vst [vmem:[#allocation44_spill] sm:$0xff] %v12554_v18  ;;  %v12595_v36 = vadd.f32 %v2956_v8, %v2908_v43  ;;  %v12598_v26 = vmul.f32 %v12483_v59, %v3894_v54  ;;  %vm3906_vm3 = vcmp.eq.f32.partialorder %v3905_v58, 8.507059e+37 }
 0x3ea   : > { %18075 = vst [vmem:[#allocation83_spill] sm:$0xff] %v12575_v7  ;;  %v3899_v24 = vmul.f32 %v10041_v5, %v3898_v28 }
 0x3eb   : > { %18076 = vst [vmem:[#allocation54_spill] sm:$0xff] %v12582_v45  ;;  %v12604_v25 = vadd.f32 %v12414_v3, %v12595_v36  ;;  %v9675_v3 = vmul.f32 -1.442695, %v12563_v31  ;;  %v2909_v58 = vpop.f32.mrf.mxu3 }
 0x3ec   : > { %18077 = vst [vmem:[#allocation74_spill] sm:$0xff] %v12589_v16  ;;  %v3900_v9 = vadd.f32 %v10041_v5, %v3899_v24 }
 0x3ed   : > { %4791 = vrot.lane.b32.xlu0 %v12501_v14, %s10405_s1  ;;  %4171 = vrot.lane.b32.xlu2 %v12537_v10, %s10404_s19  ;;  %18078 = vst [vmem:[#allocation94_spill] sm:$0xff] %v12595_v36  ;;  %v10043_v44 = vpop.eup %10042 }
 0x3ee   : > { %18079 = vst [vmem:[#allocation93_spill] sm:$0xff] %v12598_v26  ;;  %v3904_v41 = vsel %vm3903_vm2, %v10041_v5, %v3900_v9  ;;  %v3839_v27 = vadd.f32 1.0, %v10043_v44 }
 0x3ef   : > { %18080 = vst [vmem:[#allocation100_spill] sm:$0xff] %v12604_v25  ;;  %v3909_v37 = vsel %vm3906_vm3, %v3908_v39, %v3904_v41 }
 0x3f0   : > { %v12613_v54 = vmul.f32 %v12531_v29, %v3909_v37  ;;  %10044 = vrcp.f32 %v3839_v27  ;;  %v12622_v5 = vmul.f32 %v12548_v11, %v3909_v37  ;;  %v12625_v4 = vmul.f32 %v12470_v20, %v3909_v37 }
 0x3f1   : > { %4473 = vrot.lane.b32.xlu1 %v12544_v34, %s10404_s19  ;;  %10046 = vpow2.f32 %v9675_v3  ;;  %v12638_v8 = vmul.f32 %v12444_v55, %v3909_v37  ;;  %v3922_v39 = vand.u32 2147483648, %v3839_v27  ;;  %v9676_v37 = vmul.f32 -1.442695, %v12595_v36 }
 0x3f2   : > { %18081 = vst [vmem:[#allocation68_spill] sm:$0xff] %v12622_v5  ;;  %v2910_v3 = vadd.f32 %v12423_v40, %v2909_v58  ;;  %vm3916_vm7 = vweird.f32 %v3839_v27 }
 0x3f3   : > { %18082 = vst [vmem:[#allocation92_spill] sm:$0xff] %v12638_v8  ;;  %v3923_v31 = vor.u32 1.1754944e-38, %v3922_v39  ;;  %v18087_v39 = vld [vmem:[#allocation63_spill] sm:$0xff]  ;;  %v2912_v17 = vpop.f32.mrf.mxu3 }
 0x3f5   : > { %4537 = vrot.lane.b32.xlu0 %v12551_v52, %s10403_s22  ;;  %4282 = vrot.lane.b32.xlu2 %v12554_v18, %s10403_s22 }
 0x3f6   : > { %v10045_v33 = vpop.eup %10044 }
 0x3f7   : > { %v10047_v35 = vpop.eup %10046  ;;  %v3912_v28 = vmul.f32 %v10045_v33, %v3839_v27  ;;  %vm3917_vm5 = vweird.f32 %v10045_v33 }
 0x3f8   : > { %v12633_v43 = vadd.f32 1.0, %v10047_v35  ;;  %v3920_v35 = vand.u32 2147483647, %v3839_v27  ;;  %vm3918_vm15 = vmor %vm3916_vm7, %vm3917_vm5 }
 0x3f9   : > { %4665 = vrot.lane.b32.xlu1 %v12551_v52, %s10404_s19  ;;  %v3913_v24 = vsub.f32 1.0, %v3912_v28 }
 0x3fa   : > { %10048 = vrcp.f32 %v12633_v43  ;;  %vm3921_vm0 = vcmp.eq.f32.partialorder %v3920_v35, 8.507059e+37  ;;  %v3937_v51 = vand.u32 2147483648, %v12633_v43  ;;  %vm3931_vm2 = vweird.f32 %v12633_v43 }
 0x3fb   : > { %v3914_v9 = vmul.f32 %v10045_v33, %v3913_v24  ;;  %10050 = vpow2.f32 %v9676_v37 }
 0x3fd   : > { %4729 = vrot.lane.b32.xlu0 %v12544_v34, %s10403_s22  ;;  %4393 = vrot.lane.b32.xlu2 %v12551_v52, %s10405_s1  ;;  %v3915_v44 = vadd.f32 %v10045_v33, %v3914_v9  ;;  %v2958_v9 = vpop.f32.mrf.mxu1 }
 0x3fe   : > { %v12658_v36 = vadd.f32 %v2958_v9, %v2910_v3  ;;  %v9777_v3 = vld [vmem:[#allocation10 + $0x10] sm:$0xff] }
 0x3ff   : > { %v3919_v28 = vsel %vm3918_vm15, %v10045_v33, %v3915_v44  ;;  %3779 = vmatpush.bf16.msrb.mxu2 %v9777_v3 }
 0x400   : > { %v10049_v41 = vpop.eup %10048  ;;  %18084 = vst [vmem:[#allocation43_spill] sm:$0xff] %v12658_v36  ;;  %v3924_v27 = vsel %vm3921_vm0, %v3923_v31, %v3919_v28  ;;  %v12671_v37 = vadd.f32 %v18087_v39, %v12658_v36  ;;  %v9776_v39 = vld [vmem:[#allocation10 + $0x8] sm:$0xff] }
 0x401   : > { %3150 = vperm.xlu1 %9968, %v12571_v57   ;;  %v3927_v24 = vmul.f32 %v10049_v41, %v12633_v43  ;;  %v12667_v44 = vmul.f32 %v12503_v42, %v3924_v27  ;;  %v10051_v9 = vpop.eup %10050  ;;  %v12681_v28 = vmul.f32 %v12498_v49, %v3924_v27  ;;  %vm3932_vm1 = vweird.f32 %v10049_v41 }
 0x402   : > { %18088 = vst [vmem:[#allocation106_spill] sm:$0xff] %v12671_v37  ;;  %v12691_v3 = vmul.f32 %v12474_v61, %v3924_v27  ;;  %v12694_v0 = vmul.f32 %v12483_v59, %v3924_v27  ;;  %vm3933_vm3 = vmor %vm3931_vm2, %vm3932_vm1 }
 0x403   : > { %v3928_v46 = vsub.f32 1.0, %v3927_v24  ;;  %18086 = vst [vmem:[#allocation55_spill] sm:$0xff] %v12667_v44  ;;  %v12683_v24 = vadd.f32 1.0, %v10051_v9  ;;  %3780 = vmatpush.bf16.msrb.mxu2 %v9776_v39  ;;  %v3935_v9 = vand.u32 2147483647, %v12633_v43  ;;  %v9775_v39 = vld [vmem:[#allocation10] sm:$0xff] }
 0x404   : > { %18089 = vst [vmem:[#allocation95_spill] sm:$0xff] %v12691_v3 }
 0x405   : > { %4475 = vrot.lane.b32.xlu0 %v12575_v7, %s10404_s19  ;;  %4601 = vrot.lane.b32.xlu2 %v12554_v18, %s10405_s1  ;;  %v3929_v31 = vmul.f32 %v10049_v41, %v3928_v46  ;;  %18090 = vst [vmem:[#allocation97_spill] sm:$0xff] %v12694_v0  ;;  %10052 = vrcp.f32 %v12683_v24  ;;  %vm3936_vm5 = vcmp.eq.f32.partialorder %v3935_v9, 8.507059e+37  ;;  %vm3946_vm15 = vweird.f32 %v12683_v24 }
 0x407   : > { %v3930_v13 = vadd.f32 %v10049_v41, %v3929_v31  ;;  %3781 = vmatpush.bf16.msrb.mxu2 %v9775_v39 }
 0x409   : > { %4173 = vrot.lane.b32.xlu1 %v12582_v45, %s10404_s19  ;;  %v3934_v31 = vsel %vm3933_vm3, %v10049_v41, %v3930_v13  ;;  %v2961_v13 = vpop.f32.mrf.mxu1 }
 0x40b   : > { %v10053_v52 = vpop.eup %10052 }
 0x40c   : > { %vm3947_vm7 = vweird.f32 %v10053_v52 }
 0x40d   : > { %4667 = vrot.lane.b32.xlu0 %v12589_v16, %s10404_s19  ;;  %4793 = vrot.lane.b32.xlu2 %v12537_v10, %s10405_s1  ;;  %vm3948_vm0 = vmor %vm3946_vm15, %vm3947_vm7 }
 0x411   : > { %4284 = vrot.lane.b32.xlu1 %v12598_v26, %s10403_s22  ;;  %v2963_v57 = vpop.f32.mrf.mxu1 }
 0x415   : > { %3153 = vperm.xlu0 %9969, %v12604_v25   ;;  %4539 = vrot.lane.b32.xlu2 %v12589_v16, %s10403_s22 }
 0x419   : > { %4395 = vrot.lane.b32.xlu1 %v12589_v16, %s10405_s1 }
 0x41d   : > { %4286 = vrot.lane.b32.xlu0 %v12613_v54, %s10403_s22  ;;  %4731 = vrot.lane.b32.xlu2 %v12575_v7, %s10403_s22 }
 0x421   : > { %4603 = vrot.lane.b32.xlu1 %v12598_v26, %s10405_s1 }
 0x423   : > { %v12631_v62 = vpop.permute.xlu2 %3141 }
 0x425   : > { %4397 = vrot.lane.b32.xlu0 %v12622_v5, %s10405_s1  ;;  %4175 = vrot.lane.b32.xlu2 %v12625_v4, %s10404_s19 }
 0x429   : > { %4795 = vrot.lane.b32.xlu1 %v12582_v45, %s10405_s1 }
 0x42b   : > { %v12664_v33 = vpop.permute.xlu1 %3135 }
 0x42d   : > { %4605 = vrot.lane.b32.xlu0 %v12613_v54, %s10405_s1  ;;  %4477 = vrot.lane.b32.xlu2 %v12638_v8, %s10404_s19 }
 0x42f   : > { %v12645_v50 = vpop.permute.xlu2 %4471 }
 0x430   : > { %18083 = vst [vmem:[#allocation96_spill] sm:$0xff] %v12645_v50 }
 0x431   : > { %4541 = vrot.lane.b32.xlu1 %v12622_v5, %s10403_s22 }
 0x433   : > { %v12676_v35 = vpop.permute.xlu0 %3138 }
 0x435   : > { %4797 = vrot.lane.b32.xlu0 %v12625_v4, %s10405_s1  ;;  %4669 = vrot.lane.b32.xlu2 %v12622_v5, %s10404_s19  ;;  %v3938_v5 = vor.u32 1.1754944e-38, %v3937_v51  ;;  %v3942_v51 = vmul.f32 %v10053_v52, %v12683_v24 }
 0x437   : > { %v12660_v58 = vpop.permute.xlu2 %4663  ;;  %v3939_v43 = vsel %vm3936_vm5, %v3938_v5, %v3934_v31  ;;  %v2913_v5 = vadd.f32 %v12423_v40, %v2912_v17  ;;  %v2914_v31 = vpop.f32.mrf.mxu3  ;;  %v3943_v39 = vsub.f32 1.0, %v3942_v51 }
 0x438   : > { %18085 = vst [vmem:[#allocation56_spill] sm:$0xff] %v12660_v58  ;;  %v12712_v58 = vmul.f32 %v12444_v55, %v3939_v43  ;;  %v2915_v25 = vadd.f32 %v12423_v40, %v2914_v31  ;;  %v12732_v6 = vmul.f32 %v12548_v11, %v3939_v43 }
 0x439   : > { %4733 = vrot.lane.b32.xlu1 %v12638_v8, %s10403_s22  ;;  %v12726_v50 = vadd.f32 %v2961_v13, %v2913_v5  ;;  %v3944_v17 = vmul.f32 %v10053_v52, %v3943_v39 }
 0x43a   : > { %18094 = vst [vmem:[#allocation101_spill] sm:$0xff] %v12712_v58  ;;  %v12738_v23 = vadd.f32 %v2963_v57, %v2915_v25  ;;  %v3950_v25 = vand.u32 2147483647, %v12683_v24 }
 0x43b   : > { %18097 = vst [vmem:[#allocation45_spill] sm:$0xff] %v12726_v50  ;;  %v12746_v5 = vadd.f32 %v12408_v21, %v12726_v50  ;;  %v3945_v31 = vadd.f32 %v10053_v52, %v3944_v17  ;;  %v10016_v21 = vld [vmem:[%s18106_s18] ss:$0 sm:$0xff]  ;;  %s9735_s18 = sshll.u32 %s10539_s20, 3  ;;  %s9304_s20 = scalar_lea.sflag [#allocation4], %s10633_s17 }
 0x43c   : > { %18099 = vst [vmem:[#allocation37_spill] sm:$0xff] %v12732_v6  ;;  %v12755_v57 = vadd.f32 %v12418_v19, %v12738_v23  ;;  %vm3951_vm1 = vcmp.eq.f32.partialorder %v3950_v25, 8.507059e+37  ;;  %v9679_v53 = vmul.f32 -1.442695, %v12738_v23 }
 0x43d   : > { %4543 = vrot.lane.b32.xlu0 %v12667_v44, %s10403_s22  ;;  %3156 = vperm.xlu2 %9970, %v12671_v37   ;;  %18100 = vst [vmem:[#allocation109_spill] sm:$0xff] %v12738_v23  ;;  %v3949_v17 = vsel %vm3948_vm0, %v10053_v52, %v3945_v31 }
 0x43e   : > { %18103 = vst [vmem:[#allocation57_spill] sm:$0xff] %v12746_v5 }
 0x43f   : > { %v12678_v56 = vpop.permute.xlu2 %3147  ;;  %18105 = vst [vmem:[#allocation110_spill] sm:$0xff] %v12755_v57 }
 0x441   : > { %4177 = vrot.lane.b32.xlu1 %v12681_v28, %s10404_s19 }
 0x443   : > { %v12688_v46 = vpop.permute.xlu1 %3144 }
 0x445   : > { %4735 = vrot.lane.b32.xlu0 %v12691_v3, %s10403_s22  ;;  %4288 = vrot.lane.b32.xlu2 %v12694_v0, %s10403_s22 }
 0x447   : > { %v12703_v32 = vpop.permute.xlu2 %4171  ;;  %v12705_v27 = vpop.permute.xlu0 %4280 }
 0x448   : > { %18091 = vst [vmem:[#allocation75_spill] sm:$0xff] %v12703_v32 }
 0x449   : > { %18092 = vst [vmem:[#allocation76_spill] sm:$0xff] %v12705_v27  ;;  %4479 = vrot.lane.b32.xlu1 %v12691_v3, %s10404_s19 }
 0x44b   : > { %v12709_v16 = vpop.permute.xlu1 %4169 }
 0x44c   : > { %18093 = vst [vmem:[#allocation80_spill] sm:$0xff] %v12709_v16 }
 0x44d   : > { %4481 = vrot.lane.b32.xlu0 %v12712_v58, %s10404_s19  ;;  %4399 = vrot.lane.b32.xlu2 %v12667_v44, %s10405_s1 }
 0x44f   : > { %v12720_v41 = vpop.permute.xlu2 %4282  ;;  %v12722_v9 = vpop.permute.xlu0 %4391 }
 0x450   : > { %18095 = vst [vmem:[#allocation98_spill] sm:$0xff] %v12720_v41 }
 0x451   : > { %18096 = vst [vmem:[#allocation118_spill] sm:$0xff] %v12722_v9  ;;  %4671 = vrot.lane.b32.xlu1 %v12667_v44, %s10404_s19  ;;  %v3952_v44 = vand.u32 2147483648, %v12683_v24 }
 0x453   : > { %v12729_v37 = vpop.permute.xlu1 %4535 }
 0x454   : > { %18098 = vst [vmem:[#allocation117_spill] sm:$0xff] %v12729_v37  ;;  %v9677_v37 = vmul.f32 -1.442695, %v12658_v36  ;;  %v3953_v36 = vor.u32 1.1754944e-38, %v3952_v44  ;;  %v12780_v44 = vmul.f32 %v12470_v20, %v3939_v43 }
 0x455   : > { %4673 = vrot.lane.b32.xlu0 %v12732_v6, %s10404_s19  ;;  %4607 = vrot.lane.b32.xlu2 %v12694_v0, %s10405_s1 }
 0x456   : > { %10054 = vpow2.f32 %v9677_v37  ;;  %18111 = vst [vmem:[#allocation103_spill] sm:$0xff] %v12780_v44 }
 0x457   : > { %v12740_v51 = vpop.permute.xlu2 %4393  ;;  %v12742_v13 = vpop.permute.xlu0 %4599 }
 0x458   : > { %18101 = vst [vmem:[#allocation58_spill] sm:$0xff] %v12740_v51 }
 0x459   : > { %18102 = vst [vmem:[#allocation99_spill] sm:$0xff] %v12742_v13  ;;  %3159 = vperm.xlu1 %9968, %v12746_v5   ;;  %v12770_v13 = vmul.f32 %v12531_v29, %v3939_v43  ;;  %v3954_v5 = vsel %vm3951_vm1, %v3953_v36, %v3949_v17  ;;  %v9678_v43 = vmul.f32 -1.442695, %v12726_v50 }
 0x45a   : > { %v12777_v52 = vmul.f32 %v12498_v49, %v3954_v5  ;;  %v12797_v17 = vmul.f32 %v12483_v59, %v3954_v5  ;;  %v12812_v50 = vmul.f32 %v12503_v42, %v3954_v5 }
 0x45b   : > { %v12751_v39 = vpop.permute.xlu1 %4727  ;;  %18109 = vst [vmem:[#allocation65_spill] sm:$0xff] %v12770_v13 }
 0x45c   : > { %18104 = vst [vmem:[#allocation81_spill] sm:$0xff] %v12751_v39  ;;  %v10055_v37 = vpop.eup %10054 }
 0x45d   : > { %3162 = vperm.xlu0 %9969, %v12755_v57   ;;  %4799 = vrot.lane.b32.xlu2 %v12681_v28, %s10405_s1  ;;  %18115 = vst [vmem:[#allocation119_spill] sm:$0xff] %v12797_v17 }
 0x45e   : > { %18118 = vst [vmem:[#allocation28_spill] sm:$0xff] %v12812_v50 }
 0x45f   : > { %v12765_v39 = vpop.permute.xlu2 %4601  ;;  %v12767_v19 = vpop.permute.xlu0 %4791 }
 0x460   : > { %18107 = vst [vmem:[#allocation64_spill] sm:$0xff] %v12765_v39  ;;  %v12829_v39 = vmul.f32 %v12474_v61, %v3954_v5 }
 0x461   : > { %18108 = vst [vmem:[#allocation86_spill] sm:$0xff] %v12767_v19  ;;  %v3729_v24 = vpop.f32.mrf.mxu0  ;;  %4290 = vrot.lane.b32.xlu1 %v12770_v13, %s10403_s22 }
 0x462   : > { %v3730_v57 = vadd.f32 %v10016_v21, %v3729_v24  ;;  %18122 = vst [vmem:[#allocation112_spill] sm:$0xff] %v12829_v39 }
 0x463   : > { %v12774_v2 = vpop.permute.xlu1 %4473 }
 0x464   : > { %v3733_v15 = vmax.f32 %v3730_v57, 0.0  ;;  %18110 = vst [vmem:[#allocation88_spill] sm:$0xff] %v12774_v2  ;;  %v3842_v57 = vadd.f32 1.0, %v10055_v37 }
 0x465   : > { %4181 = vrot.lane.b32.xlu0 %v12777_v52, %s10404_s19  ;;  %4179 = vrot.lane.b32.xlu2 %v12780_v44, %s10404_s19 }
 0x466   : > { %v3734_v31 = vpack.c.bf16 %v3733_v15, %v3733_v15  ;;  %10056 = vrcp.f32 %v3842_v57  ;;  %v3967_v2 = vand.u32 2147483648, %v3842_v57  ;;  %vm3961_vm2 = vweird.f32 %v3842_v57 }
 0x467   : > { %v12786_v36 = vpop.permute.xlu2 %4793  ;;  %v12788_v25 = vpop.permute.xlu0 %4537  ;;  %10058 = vpow2.f32 %v9678_v43 }
 0x468   : > { %18112 = vst [vmem:[#allocation102_spill] sm:$0xff] %v12786_v36  ;;  %9669 = vmatmul.msk.bf16.vlgmr.msrb.gmra.mxu2 %vm955_vm4, %v3734_v31  ;;  %v3968_v16 = vor.u32 1.1754944e-38, %v3967_v2 }
 0x469   : > { %18113 = vst [vmem:[#allocation114_spill] sm:$0xff] %v12788_v25  ;;  %v3731_v21 = vpop.f32.mrf.mxu0  ;;  %4401 = vrot.lane.b32.xlu1 %v12732_v6, %s10405_s1  ;;  %v2917_v25 = vpop.f32.mrf.mxu3 }
 0x46a   : > { %v2918_v9 = vadd.f32 %v12423_v40, %v2917_v25 }
 0x46b   : > { %v12794_v15 = vpop.permute.xlu1 %4665 }
 0x46c   : > { %18114 = vst [vmem:[#allocation111_spill] sm:$0xff] %v12794_v15  ;;  %v10057_v31 = vpop.eup %10056 }
 0x46d   : > { %4292 = vrot.lane.b32.xlu0 %v12797_v17, %s10403_s22  ;;  %4545 = vrot.lane.b32.xlu2 %v12732_v6, %s10403_s22  ;;  %v10059_v36 = vpop.eup %10058  ;;  %v3957_v43 = vmul.f32 %v10057_v31, %v3842_v57  ;;  %vm3962_vm4 = vweird.f32 %v10057_v31 }
 0x46e   : > { %v12822_v15 = vadd.f32 1.0, %v10059_v36  ;;  %vm3963_vm3 = vmor %vm3961_vm2, %vm3962_vm4 }
 0x46f   : > { %v12803_v24 = vpop.permute.xlu2 %4539  ;;  %v12805_v37 = vpop.permute.xlu0 %4729 }
 0x470   : > { %18116 = vst [vmem:[#allocation113_spill] sm:$0xff] %v12803_v24  ;;  %v3958_v24 = vsub.f32 1.0, %v3957_v43  ;;  %10060 = vrcp.f32 %v12822_v15  ;;  %vm3976_vm15 = vweird.f32 %v12822_v15 }
 0x471   : > { %18117 = vst [vmem:[#allocation61_spill] sm:$0xff] %v12805_v37  ;;  %4609 = vrot.lane.b32.xlu1 %v12770_v13, %s10405_s1  ;;  %10062 = vpow2.f32 %v9679_v53 }
 0x473   : > { %v12809_v21 = vpop.permute.xlu1 %3150 }
 0x475   : > { %4403 = vrot.lane.b32.xlu0 %v12812_v50, %s10405_s1  ;;  %4737 = vrot.lane.b32.xlu2 %v12712_v58, %s10403_s22 }
 0x476   : > { %v10061_v5 = vpop.eup %10060 }
 0x477   : > { %v12818_v6 = vpop.permute.xlu2 %4731  ;;  %v12820_v37 = vpop.permute.xlu0 %4475  ;;  %vm3977_vm7 = vweird.f32 %v10061_v5 }
 0x478   : > { %18119 = vst [vmem:[#allocation107_spill] sm:$0xff] %v12818_v6  ;;  %v3959_v6 = vmul.f32 %v10057_v31, %v3958_v24  ;;  %v3965_v24 = vand.u32 2147483647, %v3842_v57  ;;  %v10063_v53 = vpop.eup %10062  ;;  %vm3978_vm0 = vmor %vm3976_vm15, %vm3977_vm7 }
 0x479   : > { %18120 = vst [vmem:[#allocation89_spill] sm:$0xff] %v12820_v37  ;;  %4801 = vrot.lane.b32.xlu1 %v12780_v44, %s10405_s1 }
 0x47a   : > { %v3960_v43 = vadd.f32 %v10057_v31, %v3959_v6  ;;  %v3972_v6 = vmul.f32 %v10061_v5, %v12822_v15  ;;  %vm3966_vm5 = vcmp.eq.f32.partialorder %v3965_v24, 8.507059e+37  ;;  %v3982_v24 = vand.u32 2147483648, %v12822_v15 }
 0x47b   : > { %v12826_v19 = vpop.permute.xlu1 %4173 }
 0x47c   : > { %18121 = vst [vmem:[#allocation104_spill] sm:$0xff] %v12826_v19  ;;  %v3973_v51 = vsub.f32 1.0, %v3972_v6 }
 0x47d   : > { %4611 = vrot.lane.b32.xlu0 %v12797_v17, %s10405_s1  ;;  %4483 = vrot.lane.b32.xlu2 %v12829_v39, %s10404_s19 }
 0x47f   : > { %v12836_v36 = vpop.permute.xlu2 %4175  ;;  %v12838_v37 = vpop.permute.xlu0 %4667 }
 0x480   : > { %18123 = vst [vmem:[#allocation108_spill] sm:$0xff] %v12836_v36  ;;  %v2966_v36 = vpop.f32.mrf.mxu1 }
 0x481   : > { %18124 = vst [vmem:[#allocation29_spill] sm:$0xff] %v12838_v37  ;;  %4547 = vrot.lane.b32.xlu1 %v12812_v50, %s10403_s22  ;;  %v3964_v37 = vsel %vm3963_vm3, %v10057_v31, %v3960_v43  ;;  %v12851_v23 = vadd.f32 %v2966_v36, %v2918_v9  ;;  %v12878_v43 = vadd.f32 1.0, %v10063_v53  ;;  %v3980_v53 = vand.u32 2147483647, %v12822_v15 }
 0x482   : > { %v3969_v57 = vsel %vm3966_vm5, %v3968_v16, %v3964_v37  ;;  %v3974_v16 = vmul.f32 %v10061_v5, %v3973_v51 }
 0x483   : > { %v12844_v27 = vpop.permute.xlu1 %4284  ;;  %18126 = vst [vmem:[#allocation78_spill] sm:$0xff] %v12851_v23  ;;  %v12862_v31 = vmul.f32 %v12548_v11, %v3969_v57  ;;  %v12866_v2 = vadd.f32 %v12412_v48, %v12851_v23  ;;  %v12876_v36 = vmul.f32 %v12470_v20, %v3969_v57  ;;  %v12886_v51 = vmul.f32 %v12444_v55, %v3969_v57 }
 0x484   : > { %18125 = vst [vmem:[#allocation34_spill] sm:$0xff] %v12844_v27  ;;  %v3975_v48 = vadd.f32 %v10061_v5, %v3974_v16  ;;  %10064 = vrcp.f32 %v12878_v43  ;;  %vm3981_vm1 = vcmp.eq.f32.partialorder %v3980_v53, 8.507059e+37  ;;  %vm3991_vm2 = vweird.f32 %v12878_v43 }
 0x485   : > { %4803 = vrot.lane.b32.xlu0 %v12777_v52, %s10405_s1  ;;  %4675 = vrot.lane.b32.xlu2 %v12812_v50, %s10404_s19  ;;  %18129 = vst [vmem:[#allocation66_spill] sm:$0xff] %v12862_v31  ;;  %v12889_v50 = vmul.f32 %v12531_v29, %v3969_v57 }
 0x486   : > { %18130 = vst [vmem:[#allocation38_spill] sm:$0xff] %v12866_v2  ;;  %v3979_v16 = vsel %vm3978_vm0, %v10061_v5, %v3975_v48 }
 0x487   : > { %v12853_v25 = vpop.permute.xlu2 %4477  ;;  %v12855_v3 = vpop.permute.xlu0 %3153  ;;  %18134 = vst [vmem:[#allocation105_spill] sm:$0xff] %v12886_v51 }
 0x488   : > { %18127 = vst [vmem:[#allocation35_spill] sm:$0xff] %v12853_v25  ;;  %v2968_v34 = vpop.f32.mrf.mxu1 }
 0x489   : > { %4739 = vrot.lane.b32.xlu1 %v12829_v39, %s10403_s22  ;;  %18135 = vst [vmem:[#allocation48_spill] sm:$0xff] %v12889_v50 }
 0x48a   : > { %v10065_v15 = vpop.eup %10064 }
 0x48b   : > { %v12859_v22 = vpop.permute.xlu1 %4395  ;;  %v3987_v5 = vmul.f32 %v10065_v15, %v12878_v43  ;;  %vm3992_vm4 = vweird.f32 %v10065_v15 }
 0x48c   : > { %18128 = vst [vmem:[#allocation77_spill] sm:$0xff] %v12859_v22  ;;  %vm3993_vm3 = vmor %vm3991_vm2, %vm3992_vm4 }
 0x48d   : > { %4549 = vrot.lane.b32.xlu0 %v12862_v31, %s10403_s22  ;;  %3165 = vperm.xlu2 %9970, %v12866_v2  }
 0x48f   : > { %v12871_v9 = vpop.permute.xlu2 %4669  ;;  %v12873_v37 = vpop.permute.xlu0 %4286 }
 0x490   : > { %18131 = vst [vmem:[#allocation84_spill] sm:$0xff] %v12871_v9  ;;  %v3983_v9 = vor.u32 1.1754944e-38, %v3982_v24 }
 0x491   : > { %18132 = vst [vmem:[#allocation79_spill] sm:$0xff] %v12873_v37  ;;  %4183 = vrot.lane.b32.xlu1 %v12876_v36, %s10404_s19 }
 0x492   : > { %v3984_v2 = vsel %vm3981_vm1, %v3983_v9, %v3979_v16  ;;  %v3988_v16 = vsub.f32 1.0, %v3987_v5 }
 0x493   : > { %v12883_v6 = vpop.permute.xlu1 %4603  ;;  %v12907_v41 = vmul.f32 %v12474_v61, %v3984_v2  ;;  %v12928_v22 = vmul.f32 %v12503_v42, %v3984_v2 }
 0x494   : > { %18133 = vst [vmem:[#allocation85_spill] sm:$0xff] %v12883_v6  ;;  %v2919_v6 = vpop.f32.mrf.mxu3 }
 0x495   : > { %4741 = vrot.lane.b32.xlu0 %v12886_v51, %s10403_s22  ;;  %4294 = vrot.lane.b32.xlu2 %v12889_v50, %s10403_s22  ;;  %18138 = vst [vmem:[#allocation69_spill] sm:$0xff] %v12907_v41  ;;  %v2920_v9 = vadd.f32 %v12423_v40, %v2919_v6  ;;  %v3989_v6 = vmul.f32 %v10065_v15, %v3988_v16 }
 0x496   : > { %18143 = vst [vmem:[#allocation115_spill] sm:$0xff] %v12928_v22 }
 0x497   : > { %v12898_v25 = vpop.permute.xlu2 %3156  ;;  %v12900_v57 = vpop.permute.xlu0 %4397 }
 0x498   : > { %18136 = vst [vmem:[#allocation47_spill] sm:$0xff] %v12900_v57  ;;  %v12922_v57 = vadd.f32 %v2968_v34, %v2920_v9 }
 0x499   : > { %4485 = vrot.lane.b32.xlu1 %v12886_v51, %s10404_s19 }
 0x49a   : > { %18141 = vst [vmem:[#allocation116_spill] sm:$0xff] %v12922_v57 }
 0x49b   : > { %v12904_v37 = vpop.permute.xlu1 %4795 }
 0x49c   : > { %18137 = vst [vmem:[#allocation62_spill] sm:$0xff] %v12904_v37  ;;  %v2922_v53 = vpop.f32.mrf.mxu3  ;;  %v9680_v37 = vmul.f32 -1.442695, %v12851_v23  ;;  %v3997_v23 = vand.u32 2147483648, %v12878_v43 }
 0x49d   : > { %4487 = vrot.lane.b32.xlu0 %v12907_v41, %s10404_s19  ;;  %4405 = vrot.lane.b32.xlu2 %v12862_v31, %s10405_s1  ;;  %v2923_v32 = vadd.f32 %v12423_v40, %v2922_v53  ;;  %v12942_v40 = vadd.f32 %v12430_v63, %v12922_v57  ;;  %v3990_v53 = vadd.f32 %v10065_v15, %v3989_v6 }
 0x49e   : > { %10066 = vpow2.f32 %v9680_v37  ;;  %v3998_v16 = vor.u32 1.1754944e-38, %v3997_v23 }
 0x49f   : > { %v12915_v48 = vpop.permute.xlu2 %4288  ;;  %v12917_v24 = vpop.permute.xlu0 %4605  ;;  %18147 = vst [vmem:[#allocation50_spill] sm:$0xff] %v12942_v40  ;;  %v3994_v63 = vsel %vm3993_vm3, %v10065_v15, %v3990_v53  ;;  %v12970_v15 = vmul.f32 %v12498_v49, %v3984_v2 }
 0x4a0   : > { %18139 = vst [vmem:[#allocation30_spill] sm:$0xff] %v12915_v48 }
 0x4a1   : > { %18140 = vst [vmem:[#allocation33_spill] sm:$0xff] %v12917_v24  ;;  %4677 = vrot.lane.b32.xlu1 %v12862_v31, %s10404_s19  ;;  %v2971_v31 = vpop.f32.mrf.mxu1 }
 0x4a2   : > { %v12934_v5 = vadd.f32 %v2971_v31, %v2923_v32  ;;  %v3995_v31 = vand.u32 2147483647, %v12878_v43  ;;  %v9681_v43 = vmul.f32 -1.442695, %v12922_v57  ;;  %18154 = vst [vmem:[#allocation121_spill] sm:$0xff] %v12970_v15 }
 0x4a3   : > { %v12925_v51 = vpop.permute.xlu1 %4541 }
 0x4a4   : > { %18142 = vst [vmem:[#allocation36_spill] sm:$0xff] %v12925_v51  ;;  %v12950_v32 = vadd.f32 %v12656_v1, %v12934_v5  ;;  %v10067_v37 = vpop.eup %10066  ;;  %v12962_v1 = vmul.f32 %v12483_v59, %v3984_v2  ;;  %vm3996_vm5 = vcmp.eq.f32.partialorder %v3995_v31, 8.507059e+37 }
 0x4a5   : > { %4679 = vrot.lane.b32.xlu0 %v12928_v22, %s10404_s19  ;;  %4613 = vrot.lane.b32.xlu2 %v12889_v50, %s10405_s1  ;;  %18144 = vst [vmem:[#allocation60_spill] sm:$0xff] %v12934_v5  ;;  %v3999_v51 = vsel %vm3996_vm5, %v3998_v16, %v3994_v63 }
 0x4a6   : > { %18149 = vst [vmem:[#allocation51_spill] sm:$0xff] %v12950_v32  ;;  %v12973_v23 = vmul.f32 %v12531_v29, %v3999_v51  ;;  %v12988_v63 = vmul.f32 %v12548_v11, %v3999_v51 }
 0x4a7   : > { %v12936_v34 = vpop.permute.xlu2 %4399  ;;  %v12938_v9 = vpop.permute.xlu0 %4797  ;;  %18152 = vst [vmem:[#allocation120_spill] sm:$0xff] %v12962_v1 }
 0x4a8   : > { %18145 = vst [vmem:[#allocation39_spill] sm:$0xff] %v12936_v34  ;;  %v13019_v34 = vmul.f32 %v12444_v55, %v3999_v51 }
 0x4a9   : > { %18146 = vst [vmem:[#allocation40_spill] sm:$0xff] %v12938_v9  ;;  %3168 = vperm.xlu1 %9968, %v12942_v40  }
 0x4aa   : > { %18155 = vst [vmem:[#allocation122_spill] sm:$0xff] %v12973_v23 }
 0x4ab   : > { %v12946_v24 = vpop.permute.xlu1 %4733  ;;  %18159 = vst [vmem:[#allocation126_spill] sm:$0xff] %v12988_v63 }
 0x4ac   : > { %18148 = vst [vmem:[#allocation49_spill] sm:$0xff] %v12946_v24  ;;  %v3845_v24 = vadd.f32 1.0, %v10067_v37 }
 0x4ad   : > { %4805 = vrot.lane.b32.xlu2 %v12876_v36, %s10405_s1  ;;  %3171 = vperm.xlu0 %9969, %v12950_v32   ;;  %v9682_v32 = vmul.f32 -1.442695, %v12934_v5  ;;  %18165 = vst [vmem:[#allocation132_spill] sm:$0xff] %v13019_v34 }
 0x4ae   : > { %10068 = vrcp.f32 %v3845_v24  ;;  %vm4006_vm15 = vweird.f32 %v3845_v24 }
 0x4af   : > { %v12957_v6 = vpop.permute.xlu2 %4607  ;;  %v12959_v9 = vpop.permute.xlu0 %4543  ;;  %10070 = vpow2.f32 %v9681_v43 }
 0x4b0   : > { %18150 = vst [vmem:[#allocation59_spill] sm:$0xff] %v12957_v6 }
 0x4b1   : > { %18151 = vst [vmem:[#allocation70_spill] sm:$0xff] %v12959_v9  ;;  %4296 = vrot.lane.b32.xlu1 %v12962_v1, %s10403_s22 }
 0x4b3   : > { %v12967_v40 = vpop.permute.xlu1 %4177 }
 0x4b4   : > { %18153 = vst [vmem:[#allocation63_spill] sm:$0xff] %v12967_v40  ;;  %v10069_v2 = vpop.eup %10068 }
 0x4b5   : > { %4185 = vrot.lane.b32.xlu2 %v12970_v15, %s10404_s19  ;;  %4298 = vrot.lane.b32.xlu0 %v12973_v23, %s10403_s22  ;;  %v10071_v16 = vpop.eup %10070  ;;  %v4002_v43 = vmul.f32 %v10069_v2, %v3845_v24  ;;  %vm4007_vm7 = vweird.f32 %v10069_v2 }
 0x4b6   : > { %vm4008_vm0 = vmor %vm4006_vm15, %vm4007_vm7 }
 0x4b7   : > { %v12979_v53 = vpop.permute.xlu2 %4799  ;;  %v12981_v31 = vpop.permute.xlu0 %4735  ;;  %v4003_v6 = vsub.f32 1.0, %v4002_v43 }
 0x4b8   : > { %18156 = vst [vmem:[#allocation123_spill] sm:$0xff] %v12979_v53 }
 0x4b9   : > { %18157 = vst [vmem:[#allocation124_spill] sm:$0xff] %v12981_v31  ;;  %4407 = vrot.lane.b32.xlu1 %v12928_v22, %s10405_s1  ;;  %v12998_v31 = vadd.f32 1.0, %v10071_v16 }
 0x4bb   : > { %v12985_v37 = vpop.permute.xlu1 %4479  ;;  %10072 = vrcp.f32 %v12998_v31  ;;  %v4027_v27 = vand.u32 2147483648, %v12998_v31  ;;  %vm4021_vm2 = vweird.f32 %v12998_v31 }
 0x4bc   : > { %18158 = vst [vmem:[#allocation125_spill] sm:$0xff] %v12985_v37  ;;  %10074 = vpow2.f32 %v9682_v32 }
 0x4bd   : > { %4551 = vrot.lane.b32.xlu2 %v12928_v22, %s10403_s22  ;;  %4409 = vrot.lane.b32.xlu0 %v12988_v63, %s10405_s1  ;;  %v4004_v22 = vmul.f32 %v10069_v2, %v4003_v6  ;;  %v13022_v6 = vmul.f32 %v12470_v20, %v3999_v51  ;;  %v2924_v51 = vpop.f32.mrf.mxu3 }
 0x4bf   : > { %v12994_v57 = vpop.permute.xlu2 %4179  ;;  %v12996_v53 = vpop.permute.xlu0 %4481  ;;  %v4005_v16 = vadd.f32 %v10069_v2, %v4004_v22  ;;  %18166 = vst [vmem:[#allocation133_spill] sm:$0xff] %v13022_v6 }
 0x4c0   : > { %18160 = vst [vmem:[#allocation127_spill] sm:$0xff] %v12994_v57 }
 0x4c1   : > { %18161 = vst [vmem:[#allocation128_spill] sm:$0xff] %v12996_v53  ;;  %4615 = vrot.lane.b32.xlu1 %v12962_v1, %s10405_s1  ;;  %v10073_v43 = vpop.eup %10072  ;;  %v4009_v22 = vsel %vm4008_vm0, %v10069_v2, %v4005_v16 }
 0x4c2   : > { %v10075_v32 = vpop.eup %10074  ;;  %vm4022_vm4 = vweird.f32 %v10073_v43 }
 0x4c3   : > { %v13002_v9 = vpop.permute.xlu1 %4671  ;;  %vm4023_vm3 = vmor %vm4021_vm2, %vm4022_vm4 }
 0x4c4   : > { %18162 = vst [vmem:[#allocation129_spill] sm:$0xff] %v13002_v9  ;;  %v4012_v9 = vand.u32 2147483648, %v3845_v24 }
 0x4c5   : > { %4743 = vrot.lane.b32.xlu2 %v12907_v41, %s10403_s22  ;;  %4617 = vrot.lane.b32.xlu0 %v12973_v23, %s10405_s1  ;;  %v10153_v41 = vld [vmem:[%s17356_s13] ss:$0 sm:$0xff] }
 0x4c6   : > { %v4013_v5 = vor.u32 1.1754944e-38, %v4012_v9  ;;  %v2925_v2 = vadd.f32 %v10153_v41, %v2924_v51  ;;  %v13053_v51 = vadd.f32 1.0, %v10075_v32  ;;  %v4025_v32 = vand.u32 2147483647, %v12998_v31 }
 0x4c7   : > { %v13009_v37 = vpop.permute.xlu2 %4545  ;;  %v13011_v53 = vpop.permute.xlu0 %4673 }
 0x4c8   : > { %18163 = vst [vmem:[#allocation130_spill] sm:$0xff] %v13009_v37  ;;  %v4010_v37 = vand.u32 2147483647, %v3845_v24  ;;  %10076 = vrcp.f32 %v13053_v51  ;;  %vm4026_vm5 = vcmp.eq.f32.partialorder %v4025_v32, 8.507059e+37  ;;  %v4042_v8 = vand.u32 2147483648, %v13053_v51 }
 0x4c9   : > { %18164 = vst [vmem:[#allocation131_spill] sm:$0xff] %v13011_v53  ;;  %4807 = vrot.lane.b32.xlu1 %v12970_v15, %s10405_s1  ;;  %v4017_v53 = vmul.f32 %v10073_v43, %v12998_v31  ;;  %vm4036_vm15 = vweird.f32 %v13053_v51 }
 0x4ca   : > { %vm4011_vm1 = vcmp.eq.f32.partialorder %v4010_v37, 8.507059e+37  ;;  %v2973_v37 = vpop.f32.mrf.mxu1 }
 0x4cb   : > { %v13016_v57 = vpop.permute.xlu1 %3159  ;;  %v4014_v15 = vsel %vm4011_vm1, %v4013_v5, %v4009_v22  ;;  %v4018_v24 = vsub.f32 1.0, %v4017_v53  ;;  %v13047_v53 = vadd.f32 %v2973_v37, %v2925_v2  ;;  %v2927_v37 = vpop.f32.mrf.mxu3 }
 0x4cc   : > { %v13041_v9 = vmul.f32 %v12503_v42, %v4014_v15  ;;  %v13065_v2 = vmul.f32 %v12474_v61, %v4014_v15  ;;  %v13107_v45 = vmul.f32 %v12483_v59, %v4014_v15 }
 0x4cd   : > { %4489 = vrot.lane.b32.xlu2 %v13019_v34, %s10404_s19  ;;  %4809 = vrot.lane.b32.xlu0 %v13022_v6, %s10405_s1  ;;  %v4019_v5 = vmul.f32 %v10073_v43, %v4018_v24  ;;  %18170 = vst [vmem:[#allocation137_spill] sm:$0xff] %v13047_v53  ;;  %v13062_v24 = vadd.f32 %v12416_v12, %v13047_v53 }
 0x4ce   : > { %18169 = vst [vmem:[#allocation136_spill] sm:$0xff] %v13041_v9  ;;  %v10077_v31 = vpop.eup %10076 }
 0x4cf   : > { %v13029_v48 = vpop.permute.xlu2 %4737  ;;  %v13031_v40 = vpop.permute.xlu0 %3162  ;;  %18174 = vst [vmem:[#allocation141_spill] sm:$0xff] %v13062_v24  ;;  %vm4037_vm7 = vweird.f32 %v10077_v31 }
 0x4d0   : > { %18167 = vst [vmem:[#allocation134_spill] sm:$0xff] %v13029_v48  ;;  %vm4038_vm0 = vmor %vm4036_vm15, %vm4037_vm7 }
 0x4d1   : > { %4187 = vrot.lane.b32.xlu1 %v13022_v6, %s10404_s19  ;;  %18175 = vst [vmem:[#allocation142_spill] sm:$0xff] %v13065_v2 }
 0x4d2   : > { %18184 = vst [vmem:[#allocation150_spill] sm:$0xff] %v13107_v45 }
 0x4d3   : > { %v13038_v16 = vpop.permute.xlu1 %4290 }
 0x4d4   : > { %18168 = vst [vmem:[#allocation135_spill] sm:$0xff] %v13038_v16  ;;  %v4020_v16 = vadd.f32 %v10073_v43, %v4019_v5 }
 0x4d5   : > { %4681 = vrot.lane.b32.xlu2 %v12988_v63, %s10404_s19  ;;  %4555 = vrot.lane.b32.xlu0 %v13041_v9, %s10403_s22 }
 0x4d6   : > { %v4024_v5 = vsel %vm4023_vm3, %v10073_v43, %v4020_v16  ;;  %v18180_v16 = vmov 2  }
 0x4d7   : > { %v13049_v22 = vpop.permute.xlu2 %4483  ;;  %v13051_v48 = vpop.permute.xlu0 %4181 }
 0x4d8   : > { %18171 = vst [vmem:[#allocation138_spill] sm:$0xff] %v13049_v22 }
 0x4d9   : > { %18172 = vst [vmem:[#allocation139_spill] sm:$0xff] %v13051_v48  ;;  %4553 = vrot.lane.b32.xlu1 %v12988_v63, %s10403_s22  ;;  %v4028_v63 = vor.u32 1.1754944e-38, %v4027_v27  ;;  %v2976_v27 = vpop.f32.mrf.mxu1 }
 0x4db   : > { %v13058_v19 = vpop.permute.xlu1 %4401 }
 0x4dc   : > { %18173 = vst [vmem:[#allocation140_spill] sm:$0xff] %v13058_v19  ;;  %v13077_v19 = vsel %vm4026_vm5, %v4028_v63, %v4024_v5  ;;  %v4032_v63 = vmul.f32 %v10077_v31, %v13053_v51 }
 0x4dd   : > { %3174 = vperm.xlu2 %9970, %v13062_v24   ;;  %4747 = vrot.lane.b32.xlu0 %v13065_v2, %s10403_s22  ;;  %v13084_v24 = vmul.f32 %v12498_v49, %v4014_v15  ;;  %v13088_v43 = vmul.f32 %v12444_v55, %v13077_v19  ;;  %v13111_v7 = vmul.f32 %v12548_v11, %v13077_v19 }
 0x4df   : > { %v13073_v12 = vpop.permute.xlu2 %4675  ;;  %v13075_v22 = vpop.permute.xlu0 %4292  ;;  %18179 = vst [vmem:[#allocation146_spill] sm:$0xff] %v13088_v43 }
 0x4e0   : > { %18176 = vst [vmem:[#allocation143_spill] sm:$0xff] %v13073_v12  ;;  %v4033_v12 = vsub.f32 1.0, %v4032_v63 }
 0x4e1   : > { %18177 = vst [vmem:[#allocation144_spill] sm:$0xff] %v13075_v22  ;;  %4745 = vrot.lane.b32.xlu1 %v13019_v34, %s10403_s22  ;;  %v2978_v63 = vpop.f32.mrf.mxu1  ;;  %v9683_v34 = vmul.f32 -1.442695, %v13047_v53 }
 0x4e2   : > { %18185 = vst [vmem:[#allocation151_spill] sm:$0xff] %v13111_v7 }
 0x4e3   : > { %v13081_v48 = vpop.permute.xlu1 %4609  ;;  %10078 = vpow2.f32 %v9683_v34  ;;  %v13165_v34 = vmul.f32 %v12470_v20, %v13077_v19 }
 0x4e4   : > { %18178 = vst [vmem:[#allocation145_spill] sm:$0xff] %v13081_v48  ;;  %v2929_v48 = vpop.f32.mrf.mxu3 }
 0x4e5   : > { %4189 = vrot.lane.b32.xlu2 %v13084_v24, %s10404_s19  ;;  %4493 = vrot.lane.b32.xlu0 %v13088_v43, %s10404_s19  ;;  %v2930_v44 = vadd.f32 %v10153_v41, %v2929_v48  ;;  %18199 = vst [vmem:[#allocation165_spill] sm:$0xff] %v13165_v34 }
 0x4e6   : > { %9971 = vset.pattern.permute.xlu2 %v18180_v16 }
 0x4e7   : > { %v13096_v32 = vpop.permute.xlu2 %3165  ;;  %v13098_v5 = vpop.permute.xlu0 %4403 }
 0x4e8   : > { %18181 = vst [vmem:[#allocation147_spill] sm:$0xff] %v13098_v5  ;;  %v2928_v5 = vadd.f32 %v10153_v41, %v2927_v37 }
 0x4e9   : > { %4491 = vrot.lane.b32.xlu1 %v13065_v2, %s10404_s19  ;;  %v4034_v2 = vmul.f32 %v10077_v31, %v4033_v12 }
 0x4ea   : > { %v13127_v6 = vadd.f32 %v2976_v27, %v2928_v5 }
 0x4eb   : > { %v13102_v22 = vpop.f32.mrf.mxu2  ;;  %v13104_v58 = vpop.permute.xlu1 %4801  ;;  %v4035_v15 = vadd.f32 %v10077_v31, %v4034_v2  ;;  %v4043_v2 = vor.u32 1.1754944e-38, %v4042_v8 }
 0x4ec   : > { %18182 = vst [vmem:[#allocation148_spill] sm:$0xff] %v13102_v22  ;;  %v13117_v22 = vadd.f32 %v2978_v63, %v2930_v44  ;;  %v4040_v44 = vand.u32 2147483647, %v13053_v51 }
 0x4ed   : > { %18183 = vst [vmem:[#allocation149_spill] sm:$0xff] %v13104_v58  ;;  %4300 = vrot.lane.b32.xlu2 %v13107_v45, %s10403_s22  ;;  %4685 = vrot.lane.b32.xlu0 %v13111_v7, %s10404_s19 }
 0x4ee   : > { %18186 = vst [vmem:[#allocation152_spill] sm:$0xff] %v13117_v22  ;;  %v13133_v41 = vadd.f32 %v12426_v30, %v13117_v22  ;;  %v13146_v30 = vadd.f32 %v12453_v38, %v13127_v6  ;;  %vm4041_vm1 = vcmp.eq.f32.partialorder %v4040_v44, 8.507059e+37  ;;  %v9684_v44 = vmul.f32 -1.442695, %v13127_v6 }
 0x4ef   : > { %v13119_v48 = vpop.permute.xlu2 %4294  ;;  %v13121_v58 = vpop.permute.xlu0 %4611  ;;  %18189 = vst [vmem:[#allocation155_spill] sm:$0xff] %v13127_v6  ;;  %v13186_v6 = vmul.f32 %v12531_v29, %v13077_v19 }
 0x4f0   : > { %18187 = vst [vmem:[#allocation153_spill] sm:$0xff] %v13119_v48 }
 0x4f1   : > { %18188 = vst [vmem:[#allocation154_spill] sm:$0xff] %v13121_v58  ;;  %4683 = vrot.lane.b32.xlu1 %v13041_v9, %s10404_s19 }
 0x4f2   : > { %18191 = vst [vmem:[#allocation157_spill] sm:$0xff] %v13133_v41 }
 0x4f3   : > { %v3785_v39 = vpop.f32.mrf.mxu2  ;;  %v13129_v12 = vpop.permute.xlu1 %4547  ;;  %18194 = vst [vmem:[#allocation160_spill] sm:$0xff] %v13146_v30 }
 0x4f4   : > { %18190 = vst [vmem:[#allocation156_spill] sm:$0xff] %v13129_v12  ;;  %v4039_v39 = vsel %vm4038_vm0, %v10077_v31, %v4035_v15  ;;  %v10079_v31 = vpop.eup %10078 }
 0x4f5   : > { %4411 = vrot.lane.b32.xlu2 %v13041_v9, %s10405_s1  ;;  %3180 = vperm.xlu0 %9969, %v13133_v41   ;;  %v4044_v5 = vsel %vm4041_vm1, %v4043_v2, %v4039_v39  ;;  %v3848_v15 = vadd.f32 1.0, %v10079_v31  ;;  %18203 = vst [vmem:[#allocation169_spill] sm:$0xff] %v13186_v6 }
 0x4f6   : > { %v13152_v63 = vmul.f32 %v12498_v49, %v4044_v5  ;;  %v13174_v2 = vmul.f32 %v12483_v59, %v4044_v5  ;;  %v13193_v58 = vmul.f32 %v12503_v42, %v4044_v5 }
 0x4f7   : > { %v13140_v37 = vpop.permute.xlu2 %4405  ;;  %v13142_v27 = vpop.permute.xlu0 %4803  ;;  %10080 = vrcp.f32 %v3848_v15  ;;  %vm4051_vm2 = vweird.f32 %v3848_v15 }
 0x4f8   : > { %18192 = vst [vmem:[#allocation158_spill] sm:$0xff] %v13140_v37  ;;  %10082 = vpow2.f32 %v9684_v44 }
 0x4f9   : > { %18193 = vst [vmem:[#allocation159_spill] sm:$0xff] %v13142_v27  ;;  %3177 = vperm.xlu1 %9968, %v13146_v30   ;;  %v4055_v30 = vand.u32 2147483647, %v3848_v15 }
 0x4fa   : > { %18196 = vst [vmem:[#allocation162_spill] sm:$0xff] %v13152_v63 }
 0x4fb   : > { %v13149_v51 = vpop.permute.xlu1 %4739  ;;  %18200 = vst [vmem:[#allocation166_spill] sm:$0xff] %v13174_v2  ;;  %vm4056_vm5 = vcmp.eq.f32.partialorder %v4055_v30, 8.507059e+37 }
 0x4fc   : > { %18195 = vst [vmem:[#allocation161_spill] sm:$0xff] %v13149_v51 }
 0x4fd   : > { %4619 = vrot.lane.b32.xlu2 %v13107_v45, %s10405_s1  ;;  %4193 = vrot.lane.b32.xlu0 %v13152_v63, %s10404_s19  ;;  %v10081_v9 = vpop.eup %10080  ;;  %18205 = vst [vmem:[#allocation171_spill] sm:$0xff] %v13193_v58 }
 0x4fe   : > { %9973 = vset.pattern.permute.xlu0 %v18180_v16  ;;  %v10083_v51 = vpop.eup %10082  ;;  %v4047_v44 = vmul.f32 %v10081_v9, %v3848_v15  ;;  %vm4052_vm4 = vweird.f32 %v10081_v9 }
 0x4ff   : > { %v13159_v38 = vpop.permute.xlu2 %4613  ;;  %v13161_v8 = vpop.permute.xlu0 %4549  ;;  %vm4053_vm3 = vmor %vm4051_vm2, %vm4052_vm4 }
 0x500   : > { %18197 = vst [vmem:[#allocation163_spill] sm:$0xff] %v13159_v38  ;;  %v4048_v12 = vsub.f32 1.0, %v4047_v44  ;;  %v9685_v38 = vmul.f32 -1.442695, %v13117_v22 }
 0x501   : > { %18198 = vst [vmem:[#allocation164_spill] sm:$0xff] %v13161_v8  ;;  %4191 = vrot.lane.b32.xlu1 %v13165_v34, %s10404_s19 }
 0x502   : > { %9972 = vset.pattern.permute.xlu1 %v18180_v16  ;;  %v4049_v41 = vmul.f32 %v10081_v9, %v4048_v12 }
 0x503   : > { %v13171_v39 = vpop.permute.xlu1 %4183 }
 0x504   : > { %v4050_v44 = vadd.f32 %v10081_v9, %v4049_v41 }
 0x505   : > { %4811 = vrot.lane.b32.xlu2 %v13084_v24, %s10405_s1  ;;  %4304 = vrot.lane.b32.xlu0 %v13174_v2, %s10403_s22 }
 0x507   : > { %v13180_v31 = vpop.permute.xlu2 %4805  ;;  %v13182_v53 = vpop.permute.xlu0 %4741 }
 0x508   : > { %18201 = vst [vmem:[#allocation167_spill] sm:$0xff] %v13180_v31 }
 0x509   : > { %18202 = vst [vmem:[#allocation168_spill] sm:$0xff] %v13182_v53  ;;  %4302 = vrot.lane.b32.xlu1 %v13186_v6, %s10403_s22  ;;  %v3849_v53 = vadd.f32 1.0, %v10083_v51 }
 0x50b   : > { %v13190_v27 = vpop.permute.xlu1 %4485  ;;  %10084 = vrcp.f32 %v3849_v53  ;;  %vm4066_vm15 = vweird.f32 %v3849_v53 }
 0x50c   : > { %18204 = vst [vmem:[#allocation170_spill] sm:$0xff] %v13190_v27  ;;  %10086 = vpow2.f32 %v9685_v38  ;;  %v4054_v38 = vsel %vm4053_vm3, %v10081_v9, %v4050_v44  ;;  %v4072_v44 = vand.u32 2147483648, %v3849_v53 }
 0x50d   : > { %4557 = vrot.lane.b32.xlu2 %v13111_v7, %s10403_s22  ;;  %4415 = vrot.lane.b32.xlu0 %v13193_v58, %s10405_s1 }
 0x50f   : > { %v13199_v31 = vpop.permute.xlu2 %4185  ;;  %v13201_v19 = vpop.permute.xlu0 %4487 }
 0x510   : > { %18206 = vst [vmem:[#allocation172_spill] sm:$0xff] %v13199_v31 }
 0x511   : > { %18207 = vst [vmem:[#allocation173_spill] sm:$0xff] %v13201_v19  ;;  %4413 = vrot.lane.b32.xlu1 %v13111_v7, %s10405_s1  ;;  %v10085_v22 = vpop.eup %10084  ;;  %v4057_v7 = vand.u32 2147483648, %v3848_v15  ;;  %v13221_v19 = vmul.f32 %v12474_v61, %v4044_v5 }
 0x512   : > { %v10087_v12 = vpop.eup %10086  ;;  %v4062_v41 = vmul.f32 %v10085_v22, %v3849_v53  ;;  %vm4067_vm7 = vweird.f32 %v10085_v22 }
 0x513   : > { %v13206_v8 = vpop.permute.xlu1 %4677  ;;  %v3850_v16 = vadd.f32 1.0, %v10087_v12  ;;  %vm4068_vm0 = vmor %vm4066_vm15, %vm4067_vm7  ;;  %vm17773_vm7 = vcmask 130112   ;;  %vm17614_vm15 = vcmask 130048  }
 0x514   : > { %18208 = vst [vmem:[#allocation174_spill] sm:$0xff] %v13206_v8  ;;  %v4063_v5 = vsub.f32 1.0, %v4062_v41 }
 0x515   : > { %4749 = vrot.lane.b32.xlu2 %v13088_v43, %s10403_s22  ;;  %4623 = vrot.lane.b32.xlu0 %v13174_v2, %s10405_s1  ;;  %10088 = vrcp.f32 %v3850_v16  ;;  %vm4081_vm2 = vweird.f32 %v3850_v16 }
 0x517   : > { %v13212_v27 = vpop.permute.xlu0 %4679  ;;  %v13214_v51 = vpop.permute.xlu2 %4551 }
 0x518   : > { %18209 = vst [vmem:[#allocation175_spill] sm:$0xff] %v13212_v27  ;;  %v4058_v27 = vor.u32 1.1754944e-38, %v4057_v7  ;;  %v4064_v7 = vmul.f32 %v10085_v22, %v4063_v5 }
 0x519   : > { %18210 = vst [vmem:[#allocation176_spill] sm:$0xff] %v13214_v51  ;;  %4621 = vrot.lane.b32.xlu1 %v13186_v6, %s10405_s1 }
 0x51a   : > { %v4059_v31 = vsel %vm4056_vm5, %v4058_v27, %v4054_v38  ;;  %v4065_v27 = vadd.f32 %v10085_v22, %v4064_v7 }
 0x51b   : > { %v13218_v8 = vpop.permute.xlu1 %3168  ;;  %v13236_v43 = vmul.f32 %v12548_v11, %v4059_v31  ;;  %v10089_v30 = vpop.eup %10088  ;;  %v13249_v38 = vmul.f32 %v12470_v20, %v4059_v31  ;;  %v13252_v41 = vmul.f32 %v12444_v55, %v4059_v31 }
 0x51c   : > { %v4069_v7 = vsel %vm4068_vm0, %v10085_v22, %v4065_v27  ;;  %vm4082_vm4 = vweird.f32 %v10089_v30 }
 0x51d   : > { %4495 = vrot.lane.b32.xlu2 %v13221_v19, %s10404_s19  ;;  %4815 = vrot.lane.b32.xlu0 %v13152_v63, %s10405_s1  ;;  %18213 = vst [vmem:[#allocation179_spill] sm:$0xff] %v13236_v43  ;;  %vm4083_vm3 = vmor %vm4081_vm2, %vm4082_vm4 }
 0x51f   : > { %v13227_v51 = vpop.permute.xlu0 %3171  ;;  %v13231_v15 = vpop.permute.xlu2 %4743 }
 0x520   : > { %18211 = vst [vmem:[#allocation177_spill] sm:$0xff] %v13231_v15  ;;  %v4070_v15 = vand.u32 2147483647, %v3849_v53 }
 0x521   : > { %4813 = vrot.lane.b32.xlu1 %v13165_v34, %s10405_s1 }
 0x522   : > { %vm4071_vm1 = vcmp.eq.f32.partialorder %v4070_v15, 8.507059e+37 }
 0x523   : > { %v13233_v37 = vpop.permute.xlu1 %4296 }
 0x524   : > { %18212 = vst [vmem:[#allocation178_spill] sm:$0xff] %v13233_v37 }
 0x525   : > { %4687 = vrot.lane.b32.xlu2 %v13193_v58, %s10404_s19  ;;  %4561 = vrot.lane.b32.xlu0 %v13236_v43, %s10403_s22 }
 0x527   : > { %v13242_v9 = vpop.permute.xlu0 %4298  ;;  %v13254_v5 = vpop.permute.xlu2 %4489 }
 0x528   : > { %18214 = vst [vmem:[#allocation180_spill] sm:$0xff] %v13242_v9  ;;  %v4073_v9 = vor.u32 1.1754944e-38, %v4072_v44  ;;  %v4085_v44 = vand.u32 2147483647, %v3850_v16 }
 0x529   : > { %4559 = vrot.lane.b32.xlu1 %v13193_v58, %s10403_s22  ;;  %18216 = vst [vmem:[#allocation182_spill] sm:$0xff] %v13254_v5  ;;  %v4077_v58 = vmul.f32 %v10089_v30, %v3850_v16  ;;  %v13267_v5 = vmul.f32 %v12531_v29, %v4059_v31  ;;  %v4087_v31 = vand.u32 2147483648, %v3850_v16 }
 0x52a   : > { %v4074_v37 = vsel %vm4071_vm1, %v4073_v9, %v4069_v7  ;;  %vm4086_vm5 = vcmp.eq.f32.partialorder %v4085_v44, 8.507059e+37 }
 0x52b   : > { %v13246_v12 = vpop.permute.xlu1 %4407  ;;  %v4078_v53 = vsub.f32 1.0, %v4077_v58  ;;  %18218 = vst [vmem:[#allocation184_spill] sm:$0xff] %v13267_v5  ;;  %v13270_v48 = vmul.f32 %v12474_v61, %v4074_v37  ;;  %v13285_v61 = vmul.f32 %v12503_v42, %v4074_v37 }
 0x52c   : > { %18215 = vst [vmem:[#allocation181_spill] sm:$0xff] %v13246_v12 }
 0x52d   : > { %4195 = vrot.lane.b32.xlu2 %v13249_v38, %s10404_s19  ;;  %4753 = vrot.lane.b32.xlu0 %v13252_v41, %s10403_s22  ;;  %v4079_v22 = vmul.f32 %v10089_v30, %v4078_v53  ;;  %18222 = vst [vmem:[#allocation188_spill] sm:$0xff] %v13285_v61  ;;  %v4088_v53 = vor.u32 1.1754944e-38, %v4087_v31 }
 0x52f   : > { %v13260_v12 = vpop.permute.xlu0 %4409  ;;  %v13276_v15 = vpop.permute.xlu2 %4681  ;;  %v4080_v58 = vadd.f32 %v10089_v30, %v4079_v22 }
 0x530   : > { %18219 = vst [vmem:[#allocation185_spill] sm:$0xff] %v13276_v15 }
 0x531   : > { %4751 = vrot.lane.b32.xlu1 %v13221_v19, %s10403_s22  ;;  %v4084_v7 = vsel %vm4083_vm3, %v10089_v30, %v4080_v58  ;;  %v13307_v30 = vmul.f32 %v12498_v49, %v4074_v37  ;;  %v13325_v49 = vmul.f32 %v12483_v59, %v4074_v37 }
 0x532   : > { %v4089_v22 = vsel %vm4086_vm5, %v4088_v53, %v4084_v7 }
 0x533   : > { %v13264_v34 = vpop.permute.xlu1 %4615  ;;  %v13300_v16 = vmul.f32 %v12470_v20, %v4089_v22  ;;  %18225 = vst [vmem:[#allocation191_spill] sm:$0xff] %v13307_v30  ;;  %v13316_v44 = vmul.f32 %v12531_v29, %v4089_v22  ;;  %v13332_v53 = vmul.f32 %v12548_v11, %v4089_v22 }
 0x534   : > { %18217 = vst [vmem:[#allocation183_spill] sm:$0xff] %v13264_v34 }
 0x535   : > { %4306 = vrot.lane.b32.xlu2 %v13267_v5, %s10403_s22  ;;  %4499 = vrot.lane.b32.xlu0 %v13270_v48, %s10404_s19  ;;  %18224 = vst [vmem:[#allocation190_spill] sm:$0xff] %v13300_v16 }
 0x536   : > { %18227 = vst [vmem:[#allocation193_spill] sm:$0xff] %v13316_v44 }
 0x537   : > { %v13278_v9 = vpop.permute.xlu0 %4617  ;;  %v13291_v34 = vpop.permute.xlu2 %3174  ;;  %18228 = vst [vmem:[#allocation194_spill] sm:$0xff] %v13325_v49 }
 0x538   : > { %18220 = vst [vmem:[#allocation186_spill] sm:$0xff] %v13278_v9 }
 0x539   : > { %4497 = vrot.lane.b32.xlu1 %v13252_v41, %s10404_s19  ;;  %18230 = vst [vmem:[#allocation196_spill] sm:$0xff] %v13332_v53 }
 0x53b   : > { %v13282_v27 = vpop.permute.xlu1 %4807 }
 0x53c   : > { %18221 = vst [vmem:[#allocation187_spill] sm:$0xff] %v13282_v27 }
 0x53d   : > { %4417 = vrot.lane.b32.xlu2 %v13236_v43, %s10405_s1  ;;  %4691 = vrot.lane.b32.xlu0 %v13285_v61, %s10404_s19 }
 0x53f   : > { %v13295_v42 = vpop.permute.xlu0 %4809  ;;  %v13311_v58 = vpop.permute.xlu2 %4189 }
 0x540   : > { %18223 = vst [vmem:[#allocation189_spill] sm:$0xff] %v13295_v42 }
 0x541   : > { %4689 = vrot.lane.b32.xlu1 %v13236_v43, %s10404_s19 }
 0x543   : > { %v13297_v27 = vpop.permute.xlu1 %4187 }
 0x545   : > { %4625 = vrot.lane.b32.xlu2 %v13267_v5, %s10405_s1  ;;  %4199 = vrot.lane.b32.xlu0 %v13300_v16, %s10404_s19 }
 0x547   : > { %v13318_v20 = vpop.permute.xlu0 %4555  ;;  %v13334_v29 = vpop.permute.xlu2 %4300 }
 0x549   : > { %4197 = vrot.lane.b32.xlu1 %v13307_v30, %s10404_s19 }
 0x54b   : > { %v13313_v31 = vpop.permute.xlu1 %4553 }
 0x54c   : > { %18226 = vst [vmem:[#allocation192_spill] sm:$0xff] %v13313_v31 }
 0x54d   : > { %4817 = vrot.lane.b32.xlu2 %v13249_v38, %s10405_s1  ;;  %4310 = vrot.lane.b32.xlu0 %v13316_v44, %s10403_s22 }
 0x54f   : > { %v13340_v43 = vpop.permute.xlu0 %4747  ;;  %v13350_v11 = vpop.permute.xlu2 %4411 }
 0x550   : > { %18231 = vst [vmem:[#allocation197_spill] sm:$0xff] %v13340_v43  ;;  %v13359_v43 = vmul.f32 %v12444_v55, %v4089_v22 }
 0x551   : > { %4308 = vrot.lane.b32.xlu1 %v13325_v49, %s10403_s22 }
 0x553   : > { %v13329_v7 = vpop.permute.xlu1 %4745 }
 0x554   : > { %18229 = vst [vmem:[#allocation195_spill] sm:$0xff] %v13329_v7 }
 0x555   : > { %4563 = vrot.lane.b32.xlu2 %v13285_v61, %s10403_s22  ;;  %4421 = vrot.lane.b32.xlu0 %v13332_v53, %s10405_s1 }
 0x557   : > { %v13352_v37 = vpop.permute.xlu0 %4493 }
 0x558   : > { %18232 = vst [vmem:[#allocation198_spill] sm:$0xff] %v13352_v37 }
 0x559   : > { %4419 = vrot.lane.b32.xlu1 %v13285_v61, %s10405_s1  ;;  %v13365_v61 = vpop.permute.xlu2 %4619 }
 0x55b   : > { %v13344_v59 = vpop.permute.xlu1 %4491 }
 0x55d   : > { %4755 = vrot.lane.b32.xlu2 %v13270_v48, %s10403_s22  ;;  %4629 = vrot.lane.b32.xlu0 %v13316_v44, %s10405_s1 }
 0x55f   : > { %v13369_v37 = vpop.permute.xlu0 %4685 }
 0x560   : > { %18234 = vst [vmem:[#allocation200_spill] sm:$0xff] %v13369_v37 }
 0x561   : > { %4627 = vrot.lane.b32.xlu1 %v13325_v49, %s10405_s1  ;;  %v13379_v55 = vpop.permute.xlu2 %4811 }
 0x562   : > { %18235 = vst [vmem:[#allocation201_spill] sm:$0xff] %v13379_v55 }
 0x563   : > { %v13356_v42 = vpop.permute.xlu1 %4683 }
 0x564   : > { %18233 = vst [vmem:[#allocation199_spill] sm:$0xff] %v13356_v42 }
 0x565   : > { %4501 = vrot.lane.b32.xlu2 %v13359_v43, %s10404_s19  ;;  %4859 = vrot.lane.b32.xlu0 %v12598_v26, %s10404_s19 }
 0x567   : > { %v13383_v42 = vpop.permute.xlu0 %3180 }
 0x569   : > { %4565 = vrot.lane.b32.xlu1 %v13332_v53, %s10403_s22  ;;  %v13393_v37 = vpop.permute.xlu2 %4557 }
 0x56a   : > { %18236 = vst [vmem:[#allocation202_spill] sm:$0xff] %v13393_v37 }
 0x56b   : > { %v13371_v9 = vpop.permute.xlu1 %3177 }
 0x56d   : > { %4693 = vrot.lane.b32.xlu2 %v13332_v53, %s10404_s19  ;;  %4865 = vrot.lane.b32.xlu0 %v12770_v13, %s10404_s19 }
 0x56f   : > { %v13399_v55 = vpop.permute.xlu0 %4193 }
 0x571   : > { %4757 = vrot.lane.b32.xlu1 %v13359_v43, %s10403_s22 }
 0x573   : > { %v13381_v22 = vpop.permute.xlu1 %4191 }
 0x575   : > { %4855 = vrot.lane.b32.xlu2 %v12488_v47, %s10404_s19  ;;  %4871 = vrot.lane.b32.xlu0 %v12962_v1, %s10404_s19  ;;  %v13409_v1 = vpop.permute.xlu2 %4749 }
 0x576   : > { %18237 = vst [vmem:[#allocation203_spill] sm:$0xff] %v13409_v1 }
 0x577   : > { %v13411_v26 = vpop.permute.xlu0 %4304 }
 0x579   : > { %4819 = vrot.lane.b32.xlu1 %v13307_v30, %s10405_s1 }
 0x57b   : > { %v13391_v53 = vpop.permute.xlu1 %4302 }
 0x57d   : > { %4861 = vrot.lane.b32.xlu2 %v12613_v54, %s10404_s19  ;;  %4821 = vrot.lane.b32.xlu0 %v13300_v16, %s10405_s1 }
 0x581   : > { %4857 = vrot.lane.b32.xlu1 %v12554_v18, %s10404_s19  ;;  %v13421_v18 = vpop.permute.xlu2 %4495 }
 0x582   : > { %18239 = vst [vmem:[#allocation205_spill] sm:$0xff] %v13421_v18 }
 0x583   : > { %v13403_v13 = vpop.permute.xlu1 %4413 }
 0x585   : > { %4867 = vrot.lane.b32.xlu2 %v12797_v17, %s10404_s19  ;;  %4877 = vrot.lane.b32.xlu0 %v13186_v6, %s10404_s19  ;;  %v13425_v6 = vpop.permute.xlu0 %4415 }
 0x589   : > { %4863 = vrot.lane.b32.xlu1 %v12694_v0, %s10404_s19  ;;  %v13435_v0 = vpop.permute.xlu2 %4687 }
 0x58a   : > { %18241 = vst [vmem:[#allocation207_spill] sm:$0xff] %v13435_v0 }
 0x58b   : > { %v13415_v37 = vpop.permute.xlu1 %4621 }
 0x58c   : > { %18238 = vst [vmem:[#allocation204_spill] sm:$0xff] %v13415_v37 }
 0x58d   : > { %4873 = vrot.lane.b32.xlu2 %v12973_v23, %s10404_s19  ;;  %4883 = vrot.lane.b32.xlu0 %v13325_v49, %s10404_s19  ;;  %v13437_v49 = vpop.permute.xlu0 %4623 }
 0x58e   : > { %18242 = vst [vmem:[#allocation208_spill] sm:$0xff] %v13437_v49 }
 0x591   : > { %4869 = vrot.lane.b32.xlu1 %v12889_v50, %s10404_s19  ;;  %v13447_v50 = vpop.permute.xlu2 %4195 }
 0x593   : > { %v13427_v1 = vpop.permute.xlu1 %4813 }
 0x594   : > { %18240 = vst [vmem:[#allocation206_spill] sm:$0xff] %v13427_v1 }
 0x595   : > { %4879 = vrot.lane.b32.xlu2 %v13174_v2, %s10404_s19  ;;  %4921 = vrot.lane.b32.xlu0 %v12537_v10, %s10403_s22 }
 0x599   : > { %4875 = vrot.lane.b32.xlu1 %v13107_v45, %s10404_s19  ;;  %v13451_v45 = vpop.permute.xlu0 %4815 }
 0x59a   : > { %18244 = vst [vmem:[#allocation210_spill] sm:$0xff] %v13451_v45 }
 0x59b   : > { %v13443_v1 = vpop.permute.xlu1 %4559 }
 0x59c   : > { %18243 = vst [vmem:[#allocation209_spill] sm:$0xff] %v13443_v1 }
 0x59d   : > { %4885 = vrot.lane.b32.xlu2 %v13316_v44, %s10404_s19  ;;  %4927 = vrot.lane.b32.xlu0 %v12681_v28, %s10403_s22  ;;  %v13459_v44 = vpop.permute.xlu2 %4306 }
 0x5a1   : > { %4881 = vrot.lane.b32.xlu1 %v13267_v5, %s10404_s19  ;;  %v13461_v49 = vpop.permute.xlu0 %4561  ;;  %v18246_v5 = vlaneseq }
 0x5a3   : > { %v13453_v37 = vpop.permute.xlu1 %4751  ;;  %v13464_v1 = vand.u32 127, %v18246_v5 }
 0x5a4   : > { %18245 = vst [vmem:[#allocation211_spill] sm:$0xff] %v13453_v37 }
 0x5a5   : > { %4933 = vrot.lane.b32.xlu0 %v12876_v36, %s10403_s22  ;;  %18247 = vst [vmem:[#allocation212_spill] sm:$0xff] %v13464_v1  ;;  %v13469_v45 = vadd.s32 4294967288, %v13464_v1  ;;  %v3189_v5 = vperm.slane %v12631_v62, %v13464_v1  ;;  %v3192_v31 = vperm.slane %v12678_v56, %v13464_v1  ;;  %v3184_v23 = vperm.slane %v12664_v33, %v13464_v1  ;;  %v13496_v15 = vpop.permute.xlu2 %4417 }
 0x5a6   : > { %v3195_v62 = vperm.slane %v12855_v3, %v13464_v1 }
 0x5a7   : > { %18248 = vst [vmem:[#allocation213_spill] sm:$0xff] %v13469_v45  ;;  %v3190_v2 = vperm.slane %v12688_v46, %v13469_v45  ;;  %v3193_v0 = vperm.slane %v12809_v21, %v13469_v45  ;;  %v3186_v18 = vperm.slane %v12676_v35, %v13469_v45  ;;  %v3196_v7 = vperm.slane %v12898_v25, %v13469_v45 }
 0x5a8   : > { %v3199_v46 = vperm.slane %v13031_v40, %v13469_v45  ;;  %v3202_v35 = vperm.slane %v13218_v8, %v13469_v45  ;;  %v3198_v25 = vperm.slane %v13016_v57, %v13464_v1  ;;  %v3205_v33 = vperm.slane %v13291_v34, %v13469_v45 }
 0x5a9   : > { %4919 = vrot.lane.b32.xlu1 %v12501_v14, %s10403_s22  ;;  %v3191_v21 = vsel %vm17773_vm7, %v3190_v2, %v3189_v5  ;;  %v3194_v56 = vsel %vm17773_vm7, %v3193_v0, %v3192_v31  ;;  %v13505_v40 = vpop.permute.xlu0 %4753  ;;  %v3188_v3 = vsel %vm17773_vm7, %v3186_v18, %v3184_v23  ;;  %v3197_v2 = vsel %vm17773_vm7, %v3196_v7, %v3195_v62 }
 0x5aa   : > { %18249 = vst [vmem:[#allocation214_spill] sm:$0xff] %v13505_v40  ;;  %v3201_v8 = vperm.slane %v13096_v32, %v13464_v1  ;;  %v3207_v5 = vperm.slane %v13371_v9, %v13464_v1  ;;  %v3210_v0 = vsel %vm17785_vm8, %v3191_v21, %v3188_v3  ;;  %v3200_v31 = vsel %vm17773_vm7, %v3199_v46, %v3198_v25  ;;  %v18251_v21 = vld [vmem:[#allocation133_spill] sm:$0xff]  ;;  %v18253_v25 = vld [vmem:[#allocation92_spill] sm:$0xff] }
 0x5ab   : > { %v13471_v37 = vpop.permute.xlu1 %4497  ;;  %v3204_v57 = vperm.slane %v13227_v51, %v13464_v1  ;;  %v3211_v34 = vsel %vm17782_vm9, %v3194_v56, %v3210_v0  ;;  %v3208_v18 = vperm.slane %v13383_v42, %v13469_v45  ;;  %v18257_v0 = vld [vmem:[#allocation132_spill] sm:$0xff]  ;;  %v18266_v45 = vld [vmem:[#allocation34_spill] sm:$0xff] }
 0x5ac   : > { %v3203_v40 = vsel %vm17773_vm7, %v3202_v35, %v3201_v8  ;;  %v3212_v32 = vsel %vm17735_vm10, %v3197_v2, %v3211_v34  ;;  %v18255_v2 = vld [vmem:[#allocation112_spill] sm:$0xff]  ;;  %v18259_v34 = vld [vmem:[#allocation83_spill] sm:$0xff] }
 0x5ad   : > { %4939 = vrot.lane.b32.xlu0 %v13084_v24, %s10403_s22  ;;  %v3206_v9 = vsel %vm17773_vm7, %v3205_v33, %v3204_v57  ;;  %v3213_v7 = vsel %vm17683_vm11, %v3200_v31, %v3212_v32  ;;  %v3209_v51 = vsel %vm17773_vm7, %v3208_v18, %v3207_v5  ;;  %v13534_v35 = vpop.permute.xlu2 %4625  ;;  %v18260_v32 = vld [vmem:[#allocation54_spill] sm:$0xff] }
 0x5ae   : > { %v3214_v46 = vsel %vm17682_vm12, %v3203_v40, %v3213_v7  ;;  %v18262_v7 = vld [vmem:[#allocation101_spill] sm:$0xff] }
 0x5af   : > { %v3215_v42 = vsel %vm17681_vm13, %v3206_v9, %v3214_v46 }
 0x5b0   : > { %v3217_v62 = vsel %vm17615_vm14, %v3209_v51, %v3215_v42  ;;  %v18264_v42 = vld [vmem:[#allocation103_spill] sm:$0xff] }
 0x5b1   : > { %4925 = vrot.lane.b32.xlu1 %v12625_v4, %s10403_s22  ;;  %v13536_v56 = vpop.permute.xlu0 %4499  ;;  %v3220_v33 = vsel %vm17614_vm15, %v3217_v62, -inf  ;;  %v18265_v62 = vld [vmem:[#allocation104_spill] sm:$0xff] }
 0x5b2   : > { %18252 = vst [vmem:[#allocation216_spill] sm:$0xff] %v13536_v56 }
 0x5b3   : > { %v13521_v23 = vpop.permute.xlu1 %4689 }
 0x5b4   : > { %18250 = vst [vmem:[#allocation215_spill] sm:$0xff] %v13521_v23  ;;  %v18268_v23 = vld [vmem:[#allocation77_spill] sm:$0xff] }
 0x5b5   : > { %4945 = vrot.lane.b32.xlu0 %v13249_v38, %s10403_s22  ;;  %v13545_v40 = vpop.permute.xlu2 %4817 }
 0x5b6   : > { %18254 = vst [vmem:[#allocation92_spill] sm:$0xff] %v13545_v40  ;;  %v18267_v40 = vld [vmem:[#allocation69_spill] sm:$0xff] }
 0x5b9   : > { %4931 = vrot.lane.b32.xlu1 %v12777_v52, %s10403_s22  ;;  %v13549_v8 = vpop.permute.xlu0 %4691 }
 0x5ba   : > { %18256 = vst [vmem:[#allocation112_spill] sm:$0xff] %v13549_v8  ;;  %v18269_v8 = vld [vmem:[#allocation105_spill] sm:$0xff] }
 0x5bb   : > { %v13541_v3 = vpop.permute.xlu1 %4197 }
 0x5bd   : > { %4983 = vrot.lane.b32.xlu0 %v12491_v60, %s10405_s1  ;;  %v13557_v31 = vpop.permute.xlu2 %4563 }
 0x5be   : > { %18258 = vst [vmem:[#allocation132_spill] sm:$0xff] %v13557_v31  ;;  %v4224_v31 = vsub.f32 %v18269_v8, %v13171_v39 }
 0x5c1   : > { %4937 = vrot.lane.b32.xlu1 %v18251_v21, %s10403_s22  ;;  %v13559_v57 = vpop.permute.xlu0 %4199  ;;  %v18283_v21 = vmov 0  }
 0x5c3   : > { %v13551_v5 = vpop.permute.xlu1 %4308 }
 0x5c5   : > { %4989 = vrot.lane.b32.xlu0 %v18253_v25, %s10405_s1  ;;  %v13569_v9 = vpop.permute.xlu2 %4755 }
 0x5c6   : > { %3221 = vmax.xlane.f32.xlu2 %v3220_v33  ;;  %18261 = vst [vmem:[#allocation83_spill] sm:$0xff] %v13569_v9  ;;  %v4219_v33 = vsub.f32 %v18259_v34, %v18265_v62 }
 0x5c8   : > { %v4330_v1 = vsub.f32 %v4219_v33, %v18266_v45  ;;  %v18274_v45 = vld [vmem:[#allocation146_spill] sm:$0xff] }
 0x5c9   : > { %4943 = vrot.lane.b32.xlu1 %v13152_v63, %s10403_s22  ;;  %v13573_v51 = vpop.permute.xlu0 %4310  ;;  %v18272_v63 = vld [vmem:[#allocation153_spill] sm:$0xff]  ;;  %v18275_v33 = vld [vmem:[#allocation158_spill] sm:$0xff] }
 0x5ca   : > { %v4441_v9 = vsub.f32 %v4330_v1, %v18268_v23 }
 0x5cb   : > { %v13563_v18 = vpop.permute.xlu1 %4419 }
 0x5cd   : > { %4995 = vrot.lane.b32.xlu0 %v18255_v2, %s10405_s1 }
 0x5d1   : > { %4949 = vrot.lane.b32.xlu1 %v13300_v16, %s10403_s22  ;;  %v13591_v56 = vpop.permute.xlu0 %4421  ;;  %v18271_v16 = vld [vmem:[#allocation121_spill] sm:$0xff] }
 0x5d3   : > { %v13575_v46 = vpop.permute.xlu1 %4627 }
 0x5d4   : > { %18263 = vst [vmem:[#allocation101_spill] sm:$0xff] %v13575_v46  ;;  %v13589_v46 = vpop.permute.xlu2 %4501 }
 0x5d5   : > { %5001 = vrot.lane.b32.xlu0 %v18257_v0, %s10405_s1  ;;  %18270 = vst [vmem:[#allocation104_spill] sm:$0xff] %v13589_v46  ;;  %v18278_v46 = vld [vmem:[#allocation165_spill] sm:$0xff] }
 0x5d9   : > { %4987 = vrot.lane.b32.xlu1 %v18259_v34, %s10405_s1  ;;  %v4335_v34 = vsub.f32 %v4224_v31, %v18272_v63  ;;  %v13603_v39 = vpop.permute.xlu0 %4629  ;;  %v18280_v63 = vld [vmem:[#allocation75_spill] sm:$0xff] }
 0x5da   : > { %18277 = vst [vmem:[#allocation77_spill] sm:$0xff] %v13603_v39  ;;  %v18281_v31 = vld [vmem:[#allocation91_spill] sm:$0xff] }
 0x5db   : > { %v13596_v62 = vpop.permute.xlu1 %4565  ;;  %v4446_v1 = vsub.f32 %v4335_v34, %v18275_v33  ;;  %v18284_v34 = vld [vmem:[#allocation58_spill] sm:$0xff]  ;;  %v18286_v39 = vld [vmem:[#allocation95_spill] sm:$0xff] }
 0x5dc   : > { %18273 = vst [vmem:[#allocation34_spill] sm:$0xff] %v13596_v62  ;;  %v13601_v23 = vpop.permute.xlu2 %4693  ;;  %v4218_v62 = vsub.f32 %v18281_v31, %v18280_v63 }
 0x5dd   : > { %5007 = vrot.lane.b32.xlu0 %v13221_v19, %s10405_s1  ;;  %18276 = vst [vmem:[#allocation69_spill] sm:$0xff] %v13601_v23 }
 0x5de   : > { %4923 = vrot.lane.b32.xlu2 %v18260_v32, %s10403_s22  ;;  %v18289_v32 = vld [vmem:[#allocation30_spill] sm:$0xff] }
 0x5e1   : > { %4993 = vrot.lane.b32.xlu1 %v18262_v7, %s10405_s1 }
 0x5e4   : > { %v13620_v23 = vpop.permute.xlu2 %4855 }
 0x5e5   : > { %5013 = vrot.lane.b32.xlu0 %v13359_v43, %s10405_s1  ;;  %18287 = vst [vmem:[#allocation153_spill] sm:$0xff] %v13620_v23  ;;  %v18295_v23 = vld [vmem:[#allocation144_spill] sm:$0xff] }
 0x5e6   : > { %4929 = vrot.lane.b32.xlu2 %v18264_v42, %s10403_s22 }
 0x5e9   : > { %4999 = vrot.lane.b32.xlu1 %v18267_v40, %s10405_s1 }
 0x5ed   : > { %5070 = vperm.xlu0 %9973, %v4441_v9   ;;  %v13607_v9 = vpop.permute.xlu1 %4757 }
 0x5ee   : > { %4935 = vrot.lane.b32.xlu2 %v18271_v16, %s10403_s22  ;;  %18279 = vst [vmem:[#allocation105_spill] sm:$0xff] %v13607_v9  ;;  %v18282_v16 = vld [vmem:[#allocation98_spill] sm:$0xff]  ;;  %v13622_v9 = vpop.permute.xlu0 %4859 }
 0x5ef   : > { %v4329_v42 = vsub.f32 %v4218_v62, %v18282_v16  ;;  %18288 = vst [vmem:[#allocation146_spill] sm:$0xff] %v13622_v9  ;;  %v18291_v16 = vld [vmem:[#allocation39_spill] sm:$0xff] }
 0x5f1   : > { %5005 = vrot.lane.b32.xlu1 %v18274_v45, %s10405_s1  ;;  %v4440_v33 = vsub.f32 %v4329_v42, %v18284_v34  ;;  %v18294_v34 = vld [vmem:[#allocation139_spill] sm:$0xff] }
 0x5f5   : > { %5085 = vperm.xlu0 %9973, %v4446_v1   ;;  %v18285_v1 = vld [vmem:[#allocation63_spill] sm:$0xff]  ;;  %v13625_v63 = vpop.permute.xlu1 %4819 }
 0x5f6   : > { %4941 = vrot.lane.b32.xlu2 %v18278_v46, %s10403_s22  ;;  %v4221_v46 = vsub.f32 %v18286_v39, %v18285_v1  ;;  %18290 = vst [vmem:[#allocation158_spill] sm:$0xff] %v13625_v63  ;;  %v13632_v42 = vpop.permute.xlu0 %4865  ;;  %v4223_v1 = vsub.f32 %v18255_v2, %v18294_v34 }
 0x5f7   : > { %18293 = vst [vmem:[#allocation91_spill] sm:$0xff] %v13632_v42 }
 0x5f8   : > { %v4332_v17 = vsub.f32 %v4221_v46, %v18289_v32  ;;  %v4334_v9 = vsub.f32 %v4223_v1, %v18295_v23  ;;  %v18297_v32 = vld [vmem:[#allocation147_spill] sm:$0xff]  ;;  %v18307_v1 = vld [vmem:[#allocation76_spill] sm:$0xff] }
 0x5f9   : > { %5011 = vrot.lane.b32.xlu1 %v13270_v48, %s10405_s1 }
 0x5fa   : > { %v4443_v62 = vsub.f32 %v4332_v17, %v18291_v16  ;;  %v4445_v46 = vsub.f32 %v4334_v9, %v18297_v32 }
 0x5fd   : > { %9975 = vset.pattern.permute.xlu0 %v18283_v21 }
 0x5fe   : > { %4947 = vrot.lane.b32.xlu2 %v13307_v30, %s10403_s22  ;;  %v13630_v30 = vpop.permute.xlu2 %4861  ;;  %v13644_v17 = vpop.permute.xlu0 %4871 }
 0x5ff   : > { %18292 = vst [vmem:[#allocation75_spill] sm:$0xff] %v13630_v30 }
 0x600   : > { %18299 = vst [vmem:[#allocation63_spill] sm:$0xff] %v13644_v17  ;;  %v18315_v17 = vld [vmem:[#allocation47_spill] sm:$0xff] }
 0x601   : > { %5067 = vperm.xlu1 %9972, %v4440_v33   ;;  %v13637_v33 = vpop.permute.xlu1 %4857 }
 0x602   : > { %18296 = vst [vmem:[#allocation98_spill] sm:$0xff] %v13637_v33 }
 0x606   : > { %4985 = vrot.lane.b32.xlu2 %v18281_v31, %s10405_s1  ;;  %v13642_v31 = vpop.permute.xlu2 %4867  ;;  %v13653_v23 = vpop.permute.xlu0 %4821 }
 0x607   : > { %18298 = vst [vmem:[#allocation58_spill] sm:$0xff] %v13642_v31  ;;  %v18310_v31 = vld [vmem:[#allocation118_spill] sm:$0xff] }
 0x608   : > { %18302 = vst [vmem:[#allocation39_spill] sm:$0xff] %v13653_v23 }
 0x609   : > { %5076 = vperm.xlu1 %9972, %v4443_v62   ;;  %v13648_v16 = vpop.permute.xlu1 %4863  ;;  %v18305_v62 = vld [vmem:[#allocation80_spill] sm:$0xff] }
 0x60a   : > { %18300 = vst [vmem:[#allocation95_spill] sm:$0xff] %v13648_v16  ;;  %v4217_v34 = vsub.f32 %v12491_v60, %v18305_v62  ;;  %v18311_v16 = vld [vmem:[#allocation108_spill] sm:$0xff]  ;;  %v18313_v60 = vld [vmem:[#allocation79_spill] sm:$0xff] }
 0x60c   : > { %v4328_v32 = vsub.f32 %v4217_v34, %v18307_v1  ;;  %v18317_v34 = vld [vmem:[#allocation127_spill] sm:$0xff] }
 0x60d   : > { %v4222_v1 = vsub.f32 %v18262_v7, %v18317_v34  ;;  %v18323_v34 = vld [vmem:[#allocation38_spill] sm:$0xff] }
 0x60e   : > { %4991 = vrot.lane.b32.xlu2 %v18286_v39, %s10405_s1  ;;  %v13651_v2 = vpop.permute.xlu2 %4873  ;;  %v18303_v39 = vld [vmem:[#allocation142_spill] sm:$0xff]  ;;  %v4439_v30 = vsub.f32 %v4328_v32, %v18310_v31  ;;  %v18319_v32 = vld [vmem:[#allocation140_spill] sm:$0xff] }
 0x60f   : > { %18301 = vst [vmem:[#allocation30_spill] sm:$0xff] %v13651_v2 }
 0x611   : > { %5082 = vperm.xlu1 %9972, %v4445_v46   ;;  %v13657_v9 = vpop.permute.xlu1 %4869  ;;  %v13666_v46 = vpop.permute.xlu0 %4877 }
 0x612   : > { %18304 = vst [vmem:[#allocation139_spill] sm:$0xff] %v13657_v9  ;;  %v4220_v9 = vsub.f32 %v18253_v25, %v18311_v16 }
 0x613   : > { %18308 = vst [vmem:[#allocation147_spill] sm:$0xff] %v13666_v46  ;;  %v18324_v46 = vld [vmem:[#allocation72_spill] sm:$0xff] }
 0x614   : > { %v4331_v62 = vsub.f32 %v4220_v9, %v18313_v60 }
 0x616   : > { %4997 = vrot.lane.b32.xlu2 %v18269_v8, %s10405_s1  ;;  %v13663_v8 = vpop.permute.xlu2 %4879 }
 0x617   : > { %18306 = vst [vmem:[#allocation144_spill] sm:$0xff] %v13663_v8  ;;  %v4442_v8 = vsub.f32 %v4331_v62, %v18315_v17  ;;  %v18321_v62 = vld [vmem:[#allocation71_spill] sm:$0xff] }
 0x619   : > { %9974 = vset.pattern.permute.xlu1 %v18283_v21  ;;  %v13668_v2 = vpop.permute.xlu1 %4875  ;;  %v13676_v63 = vpop.permute.xlu0 %4883 }
 0x61a   : > { %18309 = vst [vmem:[#allocation142_spill] sm:$0xff] %v13668_v2 }
 0x61b   : > { %18314 = vst [vmem:[#allocation76_spill] sm:$0xff] %v13676_v63 }
 0x61e   : > { %5003 = vrot.lane.b32.xlu2 %v18303_v39, %s10405_s1  ;;  %v13673_v33 = vpop.permute.xlu2 %4885 }
 0x61f   : > { %18312 = vst [vmem:[#allocation80_spill] sm:$0xff] %v13673_v33  ;;  %v18320_v33 = vld [vmem:[#allocation52_spill] sm:$0xff] }
 0x621   : > { %v13679_v42 = vpop.permute.xlu1 %4881  ;;  %v13689_v60 = vpop.permute.xlu0 %4921 }
 0x622   : > { %18316 = vst [vmem:[#allocation118_spill] sm:$0xff] %v13679_v42 }
 0x626   : > { %5009 = vrot.lane.b32.xlu2 %v13252_v41, %s10405_s1 }
 0x62e   : > { %5064 = vperm.xlu2 %9971, %v4439_v30   ;;  %v18318_v30 = vld [vmem:[#allocation135_spill] sm:$0xff] }
 0x62f   : > { %v4333_v31 = vsub.f32 %v4222_v1, %v18318_v30 }
 0x631   : > { %v4444_v9 = vsub.f32 %v4333_v31, %v18319_v32  ;;  %v13700_v32 = vpop.permute.xlu0 %4927 }
 0x632   : > { %18325 = vst [vmem:[#allocation79_spill] sm:$0xff] %v13700_v32 }
 0x636   : > { %5073 = vperm.xlu2 %9971, %v4442_v8   ;;  %v13693_v8 = vpop.permute.xlu1 %4919 }
 0x637   : > { %18322 = vst [vmem:[#allocation108_spill] sm:$0xff] %v13693_v8 }
 0x639   : > { %v13683_v2 = vpop.xlane.xlu2 %3221 }
 0x63a   : > { %v3224_v25 = vperm.slane %v13683_v2, 0  ;;  %v17603_v16 = vperm.slane %v13683_v2, 5  ;;  %v3225_v7 = vperm.slane %v13683_v2, 1 }
 0x63c   : > { %v3241_v17 = vsub.f32 %v18320_v33, %v3224_v25  ;;  %v3240_v42 = vsub.f32 %v18321_v62, %v3224_v25  ;;  %v3250_v1 = vsub.f32 %v18323_v34, %v17603_v16  ;;  %v3243_v23 = vsub.f32 %v18324_v46, %v3225_v7  ;;  %v18326_v33 = vld [vmem:[#allocation87_spill] sm:$0xff]  ;;  %v13721_v16 = vpop.permute.xlu0 %4933 }
 0x63d   : > { %v3242_v25 = vsub.f32 %v18326_v33, %v3225_v7  ;;  %v18333_v7 = vld [vmem:[#allocation172_spill] sm:$0xff]  ;;  %v3227_v33 = vperm.slane %v13683_v2, 3 }
 0x63e   : > { %5079 = vperm.xlu2 %9971, %v4444_v9   ;;  %v3258_v30 = vmul.f32 1.442695, %v3241_v17  ;;  %v3256_v63 = vmul.f32 1.442695, %v3240_v42  ;;  %v3276_v31 = vmul.f32 1.442695, %v3250_v1  ;;  %v13707_v34 = vpop.permute.xlu1 %4925 }
 0x63f   : > { %v3226_v9 = vperm.slane %v13683_v2, 2  ;;  %v3262_v62 = vmul.f32 1.442695, %v3243_v23  ;;  %18328 = vst [vmem:[#allocation127_spill] sm:$0xff] %v13707_v34  ;;  %v3260_v42 = vmul.f32 1.442695, %v3242_v25 }
 0x640   : > { %10090 = vpow2.f32 %v3258_v30  ;;  %v18330_v17 = vld [vmem:[#allocation42_spill] sm:$0xff] }
 0x641   : > { %10092 = vpow2.f32 %v3276_v31  ;;  %v3245_v1 = vsub.f32 %v18330_v17, %v3226_v9  ;;  %v4225_v31 = vsub.f32 %v18267_v40, %v18333_v7 }
 0x642   : > { %10094 = vpow2.f32 %v3256_v63  ;;  %v18332_v63 = vld [vmem:[#allocation67_spill] sm:$0xff] }
 0x643   : > { %10096 = vpow2.f32 %v3262_v62  ;;  %v3244_v23 = vsub.f32 %v18332_v63, %v3226_v9  ;;  %v3266_v25 = vmul.f32 1.442695, %v3245_v1  ;;  %v18335_v62 = vld [vmem:[#allocation178_spill] sm:$0xff]  ;;  %v18338_v63 = vmov 2   ;;  %v18339_v1 = vld [vmem:[#allocation100_spill] sm:$0xff] }
 0x644   : > { %10098 = vpow2.f32 %v3260_v42  ;;  %v4336_v17 = vsub.f32 %v4225_v31, %v18335_v62  ;;  %v18337_v9 = vld [vmem:[#allocation106_spill] sm:$0xff]  ;;  %v3246_v7 = vsub.f32 %v18339_v1, %v3227_v33  ;;  %v3230_v1 = vperm.slane %v13683_v2, 6 }
 0x645   : > { %v3264_v34 = vmul.f32 1.442695, %v3244_v23  ;;  %v3247_v42 = vsub.f32 %v18337_v9, %v3227_v33  ;;  %10100 = vpow2.f32 %v3266_v25  ;;  %v4228_v23 = vsub.f32 %v18274_v45, %v13381_v22  ;;  %v18342_v45 = vld [vmem:[#allocation57_spill] sm:$0xff] }
 0x646   : > { %9976 = vset.pattern.permute.xlu2 %v18283_v21  ;;  %v13705_v8 = vpop.eup %10090  ;;  %v13728_v32 = vpop.permute.xlu1 %4931  ;;  %v3268_v9 = vmul.f32 1.442695, %v3246_v7 }
 0x647   : > { %18327 = vst [vmem:[#allocation47_spill] sm:$0xff] %v13705_v8  ;;  %3308 = vperm.xlu0 %9975, %v13705_v8   ;;  %v13710_v46 = vpop.eup %10092  ;;  %10102 = vpow2.f32 %v3264_v34  ;;  %v3270_v31 = vmul.f32 1.442695, %v3247_v42  ;;  %v4339_v25 = vsub.f32 %v4228_v23, %v13391_v53  ;;  %v4231_v53 = vsub.f32 %v13270_v48, %v13541_v3  ;;  %v18346_v48 = vld [vmem:[#allocation88_spill] sm:$0xff] }
 0x648   : > { %18329 = vst [vmem:[#allocation135_spill] sm:$0xff] %v13710_v46  ;;  %v13713_v30 = vpop.eup %10094  ;;  %3335 = vperm.xlu2 %9976, %v13710_v46   ;;  %v18336_v46 = vld [vmem:[#allocation181_spill] sm:$0xff]  ;;  %v4520_v3 = vadd.f32 %v18346_v48, %v12537_v10  ;;  %v18351_v10 = vld [vmem:[#allocation64_spill] sm:$0xff] }
 0x649   : > { %18331 = vst [vmem:[#allocation140_spill] sm:$0xff] %v13713_v30  ;;  %3305 = vperm.xlu1 %9974, %v13713_v30   ;;  %v13723_v8 = vpop.eup %10096  ;;  %v4447_v30 = vsub.f32 %v4336_v17, %v18336_v46  ;;  %v3228_v46 = vperm.slane %v13683_v2, 4  ;;  %v13742_v17 = vpop.permute.xlu0 %4939  ;;  %10104 = vpow2.f32 %v3270_v31 }
 0x64a   : > { %18334 = vst [vmem:[#allocation52_spill] sm:$0xff] %v13723_v8  ;;  %v13731_v40 = vpop.eup %10098  ;;  %10106 = vpow2.f32 %v3268_v9 }
 0x64b   : > { %v13739_v62 = vpop.eup %10100  ;;  %v3248_v42 = vsub.f32 %v18342_v45, %v3228_v46 }
 0x64c   : > { %18340 = vst [vmem:[#allocation71_spill] sm:$0xff] %v13739_v62 }
 0x64d   : > { %v13747_v34 = vpop.eup %10102  ;;  %v3272_v23 = vmul.f32 1.442695, %v3248_v42  ;;  %v18349_v42 = vld [vmem:[#allocation114_spill] sm:$0xff] }
 0x64e   : > { %v13749_v22 = vpop.permute.xlu1 %4937 }
 0x64f   : > { %3314 = vperm.xlu0 %9975, %v13723_v8   ;;  %v18341_v8 = vld [vmem:[#allocation110_spill] sm:$0xff] }
 0x650   : > { %9977 = vset.pattern.permute.xlu2 %v18338_v63  ;;  %v3249_v33 = vsub.f32 %v18341_v8, %v3228_v46  ;;  %v4342_v8 = vsub.f32 %v4231_v53, %v13551_v5  ;;  %v18347_v5 = vperm.slane %v13683_v2, 5  ;;  %v3231_v53 = vperm.slane %v13683_v2, 7 }
 0x651   : > { %3311 = vperm.xlu1 %9974, %v13731_v40   ;;  %5088 = vperm.xlu2 %9977, %v4447_v30   ;;  %v4450_v30 = vsub.f32 %v4339_v25, %v13403_v13  ;;  %v13756_v13 = vpop.eup %10104  ;;  %v18344_v25 = vld [vmem:[#allocation51_spill] sm:$0xff]  ;;  %v13764_v9 = vpop.permute.xlu0 %4945 }
 0x652   : > { %v3274_v7 = vmul.f32 1.442695, %v3249_v33  ;;  %18343 = vst [vmem:[#allocation38_spill] sm:$0xff] %v13756_v13  ;;  %v4453_v31 = vsub.f32 %v4342_v8, %v13563_v18  ;;  %v13762_v46 = vpop.eup %10106  ;;  %v18348_v33 = vld [vmem:[#allocation50_spill] sm:$0xff]  ;;  %v4584_v18 = vadd.f32 %v18349_v42, %v4520_v3 }
 0x653   : > { %18345 = vst [vmem:[#allocation72_spill] sm:$0xff] %v13762_v46  ;;  %v3251_v45 = vsub.f32 %v18348_v33, %v18347_v5  ;;  %v18355_v33 = vld [vmem:[#allocation70_spill] sm:$0xff] }
 0x654   : > { %10108 = vpow2.f32 %v3274_v7  ;;  %v4648_v48 = vsub.f32 %v4584_v18, %v18351_v10 }
 0x655   : > { %10110 = vpow2.f32 %v3272_v23 }
 0x656   : > { %v13774_v8 = vpop.permute.xlu1 %4943 }
 0x657   : > { %3320 = vperm.xlu0 %9975, %v13739_v62   ;;  %v18353_v62 = vld [vmem:[#allocation160_spill] sm:$0xff] }
 0x658   : > { %v3254_v5 = vsub.f32 %v18353_v62, %v3231_v53  ;;  %v18356_v62 = vld [vmem:[#allocation59_spill] sm:$0xff] }
 0x659   : > { %3317 = vperm.xlu1 %9974, %v13747_v34   ;;  %5097 = vperm.xlu2 %9977, %v4450_v30   ;;  %v3252_v30 = vsub.f32 %v18344_v25, %v3230_v1  ;;  %v13786_v2 = vpop.permute.xlu0 %4983 }
 0x65a   : > { %v13776_v25 = vpop.eup %10108  ;;  %v3284_v42 = vmul.f32 1.442695, %v3254_v5 }
 0x65b   : > { %v3280_v7 = vmul.f32 1.442695, %v3252_v30  ;;  %18350 = vst [vmem:[#allocation87_spill] sm:$0xff] %v13776_v25  ;;  %v13783_v23 = vpop.eup %10110  ;;  %v18354_v30 = vld [vmem:[#allocation141_spill] sm:$0xff] }
 0x65c   : > { %v3253_v3 = vsub.f32 %v18354_v30, %v3230_v1  ;;  %v18358_v1 = vld [vmem:[#allocation157_spill] sm:$0xff] }
 0x65d   : > { %10112 = vpow2.f32 %v3280_v7 }
 0x65e   : > { %v13792_v10 = vpop.permute.xlu1 %4949 }
 0x65f   : > { %3326 = vperm.xlu0 %9975, %v13756_v13   ;;  %v3278_v13 = vmul.f32 1.442695, %v3251_v45 }
 0x661   : > { %3323 = vperm.xlu1 %9974, %v13762_v46   ;;  %5106 = vperm.xlu2 %9977, %v4453_v31   ;;  %v18352_v31 = vld [vmem:[#allocation125_spill] sm:$0xff]  ;;  %10114 = vpow2.f32 %v3278_v13  ;;  %v3255_v13 = vsub.f32 %v18358_v1, %v3231_v53  ;;  %v13803_v30 = vpop.permute.xlu0 %4989  ;;  %v4227_v53 = vsub.f32 %v18303_v39, %v13311_v58  ;;  %v4226_v39 = vsub.f32 %v18257_v0, %v13297_v27 }
 0x662   : > { %v4523_v46 = vadd.f32 %v18352_v31, %v12681_v28  ;;  %v3282_v28 = vmul.f32 1.442695, %v3253_v3  ;;  %v18357_v31 = vld [vmem:[#allocation170_spill] sm:$0xff]  ;;  %10116 = vpow2.f32 %v3284_v42  ;;  %v4529_v42 = vadd.f32 %v13344_v59, %v13084_v24 }
 0x663   : > { %v13790_v18 = vpop.eup %10112  ;;  %v4532_v59 = vadd.f32 %v13471_v37, %v13249_v38 }
 0x664   : > { %v4587_v45 = vadd.f32 %v18355_v33, %v4523_v46  ;;  %10118 = vpow2.f32 %v3282_v28  ;;  %v18359_v46 = vld [vmem:[#allocation164_spill] sm:$0xff]  ;;  %v3286_v33 = vmul.f32 1.442695, %v3255_v13  ;;  %v4338_v28 = vsub.f32 %v4227_v53, %v13334_v29 }
 0x665   : > { %v18361_v13 = vld [vmem:[#allocation180_spill] sm:$0xff] }
 0x666   : > { %v4651_v7 = vsub.f32 %v4587_v45, %v18356_v62  ;;  %v18360_v45 = vld [vmem:[#allocation163_spill] sm:$0xff]  ;;  %v13811_v62 = vpop.permute.xlu1 %4987  ;;  %10120 = vpow2.f32 %v3286_v33  ;;  %v4337_v38 = vsub.f32 %v4226_v39, %v18361_v13  ;;  %v18370_v39 = vld [vmem:[#allocation36_spill] sm:$0xff] }
 0x667   : > { %3332 = vperm.xlu0 %9975, %v13776_v25   ;;  %v13798_v25 = vpop.eup %10114 }
 0x668   : > { %v13805_v3 = vpop.eup %10116  ;;  %v4448_v27 = vsub.f32 %v4337_v38, %v13260_v12  ;;  %v4229_v12 = vsub.f32 %v13221_v19, %v13399_v55  ;;  %v18371_v55 = vld [vmem:[#allocation49_spill] sm:$0xff] }
 0x669   : > { %3329 = vperm.xlu1 %9974, %v13783_v23   ;;  %5164 = vperm.xlu2 %9977, %v4648_v48   ;;  %v4526_v48 = vadd.f32 %v18357_v31, %v12876_v36  ;;  %v4593_v31 = vadd.f32 %v13318_v20, %v4529_v42  ;;  %v13821_v1 = vpop.permute.xlu0 %4995  ;;  %v4230_v20 = vsub.f32 %v13252_v41, %v13447_v50  ;;  %v18362_v50 = vld [vmem:[#allocation96_spill] sm:$0xff]  ;;  %v18366_v42 = vld [vmem:[#allocation81_spill] sm:$0xff] }
 0x66a   : > { %v4519_v41 = vadd.f32 %v18362_v50, %v12501_v14  ;;  %v4340_v53 = vsub.f32 %v4229_v12, %v13411_v26 }
 0x66b   : > { %v4590_v5 = vadd.f32 %v18359_v46, %v4526_v48  ;;  %v4449_v48 = vsub.f32 %v4338_v28, %v13350_v11  ;;  %v4657_v24 = vsub.f32 %v4593_v31, %v13365_v61  ;;  %v4341_v11 = vsub.f32 %v4230_v20, %v13459_v44  ;;  %v18363_v44 = vld [vmem:[#allocation56_spill] sm:$0xff]  ;;  %v18367_v28 = vld [vmem:[#allocation86_spill] sm:$0xff]  ;;  %v18368_v31 = vld [vmem:[#allocation35_spill] sm:$0xff] }
 0x66c   : > { %v4596_v61 = vadd.f32 %v13461_v49, %v4532_v59  ;;  %v4711_v49 = vsub.f32 %v12488_v47, %v18363_v44  ;;  %v4451_v47 = vsub.f32 %v4340_v53, %v13425_v6  ;;  %v18376_v44 = vld [vmem:[#allocation119_spill] sm:$0xff]  ;;  %v18382_v53 = vld [vmem:[#allocation113_spill] sm:$0xff] }
 0x66d   : > { %v4654_v36 = vsub.f32 %v4590_v5, %v18360_v45  ;;  %v4452_v37 = vsub.f32 %v4341_v11, %v13496_v15  ;;  %v13846_v5 = vpop.permute.xlu2 %4923  ;;  %v18364_v15 = vld [vmem:[#allocation117_spill] sm:$0xff]  ;;  %v18365_v45 = vld [vmem:[#allocation99_spill] sm:$0xff] }
 0x66e   : > { %v13833_v29 = vpop.permute.xlu1 %4993  ;;  %v4660_v46 = vsub.f32 %v4596_v61, %v13534_v35  ;;  %v4583_v33 = vadd.f32 %v18364_v15, %v4519_v41  ;;  %v4775_v14 = vadd.f32 %v18366_v42, %v4711_v49  ;;  %v4232_v61 = vsub.f32 %v13359_v43, %v13559_v57  ;;  %v18375_v41 = vld [vmem:[#allocation143_spill] sm:$0xff]  ;;  %v18377_v15 = vld [vmem:[#allocation156_spill] sm:$0xff]  ;;  %v18378_v43 = vld [vmem:[#allocation54_spill] sm:$0xff] }
 0x66f   : > { %3341 = vperm.xlu0 %9975, %v13790_v18   ;;  %v4717_v49 = vsub.f32 %v18376_v44, %v18375_v41  ;;  %v18379_v57 = vld [vmem:[#allocation89_spill] sm:$0xff]  ;;  %v18381_v42 = vld [vmem:[#allocation154_spill] sm:$0xff] }
 0x670   : > { %v4343_v6 = vsub.f32 %v4232_v61, %v13573_v51  ;;  %v4521_v12 = vadd.f32 %v18379_v57, %v18378_v43  ;;  %v18389_v61 = vld [vmem:[#allocation192_spill] sm:$0xff]  ;;  %v18394_v41 = vld [vmem:[#allocation130_spill] sm:$0xff]  ;;  %v18397_v57 = vld [vmem:[#allocation205_spill] sm:$0xff] }
 0x671   : > { %3338 = vperm.xlu1 %9974, %v13798_v25   ;;  %5173 = vperm.xlu2 %9977, %v4651_v7   ;;  %v13813_v7 = vpop.eup %10118  ;;  %v13842_v0 = vpop.permute.xlu0 %5001  ;;  %v18396_v43 = vld [vmem:[#allocation162_spill] sm:$0xff] }
 0x672   : > { %v13827_v58 = vpop.eup %10120  ;;  %v4454_v50 = vsub.f32 %v4343_v6, %v13591_v56  ;;  %v4585_v56 = vadd.f32 %v18382_v53, %v4521_v12  ;;  %v4531_v12 = vadd.f32 %v18397_v57, %v18396_v43  ;;  %v18400_v53 = vld [vmem:[#allocation166_spill] sm:$0xff]  ;;  %v18412_v43 = vld [vmem:[#allocation69_spill] sm:$0xff] }
 0x673   : > { %v18413_v57 = vld [vmem:[#allocation193_spill] sm:$0xff] }
 0x675   : > { %v13869_v26 = vpop.permute.xlu2 %4929 }
 0x676   : > { %v13852_v35 = vpop.permute.xlu1 %4999 }
 0x677   : > { %3347 = vperm.xlu0 %9975, %v13805_v3  }
 0x679   : > { %3344 = vperm.xlu1 %9974, %v13813_v7   ;;  %5182 = vperm.xlu2 %9977, %v4654_v36   ;;  %v4647_v36 = vsub.f32 %v4583_v33, %v18365_v45  ;;  %v13866_v19 = vpop.permute.xlu0 %5007  ;;  %v18380_v45 = vld [vmem:[#allocation161_spill] sm:$0xff] }
 0x67a   : > { %v4781_v51 = vadd.f32 %v18380_v45, %v4717_v49 }
 0x67e   : > { %v13874_v38 = vpop.permute.xlu1 %5005 }
 0x67f   : > { %9979 = vset.pattern.permute.xlu0 %v18338_v63 }
 0x680   : > { %5094 = vperm.xlu0 %9979, %v4449_v48   ;;  %v4522_v48 = vadd.f32 %v18368_v31, %v12625_v4  ;;  %v18372_v4 = vld [vmem:[#allocation33_spill] sm:$0xff] }
 0x681   : > { %3350 = vperm.xlu1 %9974, %v13827_v58   ;;  %5191 = vperm.xlu2 %9977, %v4657_v24   ;;  %v18369_v24 = vld [vmem:[#allocation84_spill] sm:$0xff]  ;;  %v18384_v31 = vld [vmem:[#allocation133_spill] sm:$0xff] }
 0x682   : > { %v4714_v59 = vsub.f32 %v12613_v54, %v18369_v24  ;;  %v4586_v20 = vadd.f32 %v18370_v39, %v4522_v48  ;;  %v18373_v54 = vld [vmem:[#allocation40_spill] sm:$0xff]  ;;  %v18385_v48 = vld [vmem:[#allocation182_spill] sm:$0xff] }
 0x684   : > { %v4778_v11 = vadd.f32 %v18371_v55, %v4714_v59  ;;  %v4650_v13 = vsub.f32 %v4586_v20, %v18372_v4  ;;  %v18386_v59 = vld [vmem:[#allocation85_spill] sm:$0xff]  ;;  %v18388_v55 = vld [vmem:[#allocation122_spill] sm:$0xff] }
 0x685   : > { %v4649_v39 = vsub.f32 %v4585_v56, %v18386_v59  ;;  %v18387_v20 = vld [vmem:[#allocation185_spill] sm:$0xff] }
 0x686   : > { %v13896_v24 = vpop.permute.xlu1 %5011  ;;  %v18403_v59 = vld [vmem:[#allocation121_spill] sm:$0xff] }
 0x688   : > { %5103 = vperm.xlu0 %9979, %v4452_v37   ;;  %v4842_v37 = vadd.f32 %v18373_v54, %v4778_v11  ;;  %v4720_v11 = vsub.f32 %v18388_v55, %v18387_v20  ;;  %v18391_v54 = vld [vmem:[#allocation103_spill] sm:$0xff]  ;;  %v18405_v55 = vld [vmem:[#allocation208_spill] sm:$0xff] }
 0x689   : > { %9978 = vset.pattern.permute.xlu1 %v18338_v63  ;;  %5200 = vperm.xlu2 %9977, %v4660_v46   ;;  %v4839_v63 = vadd.f32 %v18367_v28, %v4775_v14  ;;  %v18374_v46 = vld [vmem:[#allocation138_spill] sm:$0xff]  ;;  %v18383_v28 = vld [vmem:[#allocation159_spill] sm:$0xff] }
 0x68a   : > { %5091 = vperm.xlu1 %9978, %v4448_v27   ;;  %v4525_v27 = vadd.f32 %v18374_v46, %v12777_v52  ;;  %v13890_v52 = vpop.permute.xlu2 %4935 }
 0x68c   : > { %v4589_v33 = vadd.f32 %v18377_v15, %v4525_v27  ;;  %v18393_v27 = vld [vmem:[#allocation186_spill] sm:$0xff]  ;;  %v18395_v15 = vld [vmem:[#allocation189_spill] sm:$0xff] }
 0x68e   : > { %v4653_v14 = vsub.f32 %v4589_v33, %v18381_v42 }
 0x690   : > { %5161 = vperm.xlu0 %9979, %v4647_v36   ;;  %v13887_v36 = vpop.permute.xlu0 %5013 }
 0x691   : > { %5259 = vperm.xlu2 %9977, %v4839_v63   ;;  %v4845_v63 = vadd.f32 %v18383_v28, %v4781_v51  ;;  %v18398_v51 = vld [vmem:[#allocation145_spill] sm:$0xff] }
 0x692   : > { %5100 = vperm.xlu1 %9978, %v4451_v47   ;;  %v4528_v47 = vadd.f32 %v18385_v48, %v18384_v31  ;;  %v13912_v45 = vpop.permute.xlu2 %4941  ;;  %v18401_v28 = vld [vmem:[#allocation209_spill] sm:$0xff]  ;;  %v13918_v31 = vpop.permute.xlu1 %5067  ;;  %v18402_v48 = vld [vmem:[#allocation211_spill] sm:$0xff] }
 0x694   : > { %v4592_v4 = vadd.f32 %v18389_v61, %v4528_v47  ;;  %v18406_v61 = vld [vmem:[#allocation176_spill] sm:$0xff] }
 0x698   : > { %5170 = vperm.xlu0 %9979, %v4650_v13   ;;  %v18390_v13 = vld [vmem:[#allocation195_spill] sm:$0xff]  ;;  %v13907_v49 = vpop.permute.xlu0 %5070 }
 0x699   : > { %5268 = vperm.xlu2 %9977, %v4842_v37   ;;  %v4784_v6 = vadd.f32 %v18390_v13, %v4720_v11  ;;  %v18392_v37 = vld [vmem:[#allocation128_spill] sm:$0xff]  ;;  %v18407_v13 = vld [vmem:[#allocation210_spill] sm:$0xff] }
 0x69a   : > { %5109 = vperm.xlu1 %9978, %v4454_v50   ;;  %v4524_v46 = vadd.f32 %v18392_v37, %v18391_v54  ;;  %v4656_v50 = vsub.f32 %v4592_v4, %v18393_v27  ;;  %v18408_v54 = vld [vmem:[#allocation190_spill] sm:$0xff]  ;;  %v18409_v37 = vld [vmem:[#allocation104_spill] sm:$0xff]  ;;  %v18410_v27 = vld [vmem:[#allocation183_spill] sm:$0xff] }
 0x69b   : > { %v4848_v33 = vadd.f32 %v18395_v15, %v4784_v6 }
 0x69c   : > { %v4588_v44 = vadd.f32 %v18394_v41, %v4524_v46  ;;  %v4534_v46 = vadd.f32 %v18409_v37, %v18408_v54  ;;  %v18423_v54 = vld [vmem:[#allocation107_spill] sm:$0xff] }
 0x69e   : > { %v4652_v42 = vsub.f32 %v4588_v44, %v18398_v51  ;;  %v18411_v44 = vld [vmem:[#allocation34_spill] sm:$0xff]  ;;  %v13936_v51 = vpop.permute.xlu1 %5076 }
 0x69f   : > { %v4598_v15 = vadd.f32 %v18411_v44, %v4534_v46  ;;  %v18424_v46 = vld [vmem:[#allocation74_spill] sm:$0xff] }
 0x6a0   : > { %5179 = vperm.xlu0 %9979, %v4653_v14   ;;  %v18399_v14 = vld [vmem:[#allocation207_spill] sm:$0xff]  ;;  %v13929_v41 = vpop.permute.xlu0 %5085 }
 0x6a1   : > { %5277 = vperm.xlu2 %9977, %v4845_v63   ;;  %v4723_v56 = vsub.f32 %v18400_v53, %v18399_v14  ;;  %v4595_v63 = vadd.f32 %v18401_v28, %v4531_v12  ;;  %v4726_v12 = vsub.f32 %v18413_v57, %v18412_v43  ;;  %v18415_v14 = vld [vmem:[#allocation198_spill] sm:$0xff]  ;;  %v18427_v43 = vld [vmem:[#allocation216_spill] sm:$0xff] }
 0x6a2   : > { %5167 = vperm.xlu1 %9978, %v4649_v39   ;;  %v18404_v39 = vld [vmem:[#allocation173_spill] sm:$0xff] }
 0x6a3   : > { %v4787_v47 = vadd.f32 %v18402_v48, %v4723_v56  ;;  %v4527_v20 = vadd.f32 %v18404_v39, %v18403_v59  ;;  %v4659_v11 = vsub.f32 %v4595_v63, %v18405_v55  ;;  %v18416_v56 = vld [vmem:[#allocation77_spill] sm:$0xff] }
 0x6a4   : > { %v4662_v28 = vsub.f32 %v4598_v15, %v18416_v56  ;;  %v18417_v63 = vld [vmem:[#allocation105_spill] sm:$0xff]  ;;  %v18426_v15 = vld [vmem:[#allocation191_spill] sm:$0xff]  ;;  %v18429_v56 = vld [vmem:[#allocation132_spill] sm:$0xff] }
 0x6a5   : > { %v4591_v4 = vadd.f32 %v18406_v61, %v4527_v20  ;;  %v4851_v6 = vadd.f32 %v18407_v13, %v4787_v47  ;;  %v4790_v48 = vadd.f32 %v18417_v63, %v4726_v12  ;;  %v18418_v47 = vld [vmem:[#allocation202_spill] sm:$0xff]  ;;  %v18419_v39 = vld [vmem:[#allocation29_spill] sm:$0xff]  ;;  %v4533_v57 = vadd.f32 %v18427_v43, %v18426_v15 }
 0x6a6   : > { %v18420_v20 = vld [vmem:[#allocation93_spill] sm:$0xff]  ;;  %v18428_v12 = vld [vmem:[#allocation62_spill] sm:$0xff] }
 0x6a7   : > { %v4713_v55 = vsub.f32 %v18420_v20, %v18419_v39  ;;  %v18431_v39 = vld [vmem:[#allocation131_spill] sm:$0xff]  ;;  %v18432_v20 = vld [vmem:[#allocation65_spill] sm:$0xff] }
 0x6a8   : > { %5188 = vperm.xlu0 %9979, %v4656_v50   ;;  %v4655_v50 = vsub.f32 %v4591_v4, %v18410_v27  ;;  %v18422_v4 = vld [vmem:[#allocation204_spill] sm:$0xff]  ;;  %v18425_v27 = vld [vmem:[#allocation146_spill] sm:$0xff] }
 0x6a9   : > { %5286 = vperm.xlu2 %9977, %v4848_v33   ;;  %v13932_v33 = vpop.permute.xlu2 %4947  ;;  %v4777_v37 = vadd.f32 %v18423_v54, %v4713_v55  ;;  %v4716_v55 = vsub.f32 %v18432_v20, %v18431_v39  ;;  %v18436_v54 = vld [vmem:[#allocation37_spill] sm:$0xff]  ;;  %v18443_v39 = vld [vmem:[#allocation175_spill] sm:$0xff]  ;;  %v18444_v20 = vld [vmem:[#allocation120_spill] sm:$0xff] }
 0x6aa   : > { %5176 = vperm.xlu1 %9978, %v4652_v42   ;;  %v18414_v42 = vld [vmem:[#allocation165_spill] sm:$0xff] }
 0x6ab   : > { %v4530_v53 = vadd.f32 %v18415_v14, %v18414_v42  ;;  %v4841_v42 = vadd.f32 %v18428_v12, %v4777_v37  ;;  %v18437_v37 = vld [vmem:[#allocation91_spill] sm:$0xff] }
 0x6ad   : > { %v4594_v59 = vadd.f32 %v18418_v47, %v4530_v53  ;;  %v13958_v53 = vpop.permute.xlu1 %5082 }
 0x6af   : > { %v4658_v13 = vsub.f32 %v4594_v59, %v18422_v4 }
 0x6b0   : > { %5197 = vperm.xlu0 %9979, %v4659_v11   ;;  %v18421_v11 = vld [vmem:[#allocation39_spill] sm:$0xff] }
 0x6b1   : > { %5295 = vperm.xlu2 %9977, %v4851_v6   ;;  %v4854_v61 = vadd.f32 %v18421_v11, %v4790_v48  ;;  %v13952_v44 = vpop.permute.xlu2 %4985  ;;  %v18430_v48 = vld [vmem:[#allocation101_spill] sm:$0xff]  ;;  %v18433_v11 = vld [vmem:[#allocation111_spill] sm:$0xff] }
 0x6b2   : > { %5185 = vperm.xlu1 %9978, %v4655_v50   ;;  %v4905_v50 = vadd.f32 %v18425_v27, %v18424_v46  ;;  %v4908_v46 = vadd.f32 %v18437_v37, %v18436_v54  ;;  %v18438_v27 = vld [vmem:[#allocation61_spill] sm:$0xff]  ;;  %v18449_v54 = vld [vmem:[#allocation187_spill] sm:$0xff] }
 0x6b4   : > { %v4969_v14 = vsub.f32 %v4905_v50, %v13846_v5  ;;  %v18435_v5 = vld [vmem:[#allocation134_spill] sm:$0xff]  ;;  %v18439_v50 = vld [vmem:[#allocation149_spill] sm:$0xff]  ;;  %v4972_v43 = vsub.f32 %v4908_v46, %v13869_v26 }
 0x6b5   : > { %v18445_v26 = vld [vmem:[#allocation177_spill] sm:$0xff] }
 0x6b6   : > { %v5033_v63 = vadd.f32 %v13811_v62, %v4969_v14  ;;  %v18440_v14 = vld [vmem:[#allocation102_spill] sm:$0xff] }
 0x6b8   : > { %5206 = vperm.xlu0 %9979, %v4662_v28   ;;  %v4597_v28 = vadd.f32 %v18429_v56, %v4533_v57 }
 0x6b9   : > { %v13947_v6 = vpop.permute.xlu0 %3308  ;;  %5304 = vperm.xlu2 %9977, %v4854_v61   ;;  %v18434_v61 = vld [vmem:[#allocation44_spill] sm:$0xff]  ;;  %v13975_v57 = vpop.permute.xlu2 %4991 }
 0x6ba   : > { %5194 = vperm.xlu1 %9978, %v4658_v13   ;;  %v4661_v47 = vsub.f32 %v4597_v28, %v18430_v48  ;;  %v4712_v4 = vsub.f32 %v18434_v61, %v18433_v11  ;;  %v4780_v13 = vadd.f32 %v18435_v5, %v4716_v55  ;;  %v18441_v28 = vld [vmem:[#allocation129_spill] sm:$0xff]  ;;  %v4719_v55 = vsub.f32 %v18444_v20, %v18443_v39  ;;  %v18446_v61 = vld [vmem:[#allocation115_spill] sm:$0xff] }
 0x6bb   : > { %v13977_v12 = vpop.permute.xlu1 %3305 }
 0x6bc   : > { %v4776_v62 = vadd.f32 %v18438_v27, %v4712_v4  ;;  %v4844_v15 = vadd.f32 %v18439_v50, %v4780_v13  ;;  %v4783_v11 = vadd.f32 %v18445_v26, %v4719_v55  ;;  %v18447_v4 = vld [vmem:[#allocation63_spill] sm:$0xff]  ;;  %v18448_v13 = vld [vmem:[#allocation124_spill] sm:$0xff] }
 0x6bd   : > { %v4911_v5 = vadd.f32 %v18447_v4, %v18446_v61  ;;  %v18457_v55 = vld [vmem:[#allocation147_spill] sm:$0xff]  ;;  %v18459_v4 = vld [vmem:[#allocation206_spill] sm:$0xff] }
 0x6be   : > { %v4840_v56 = vadd.f32 %v18440_v14, %v4776_v62  ;;  %v4847_v37 = vadd.f32 %v18449_v54, %v4783_v11  ;;  %v18452_v14 = vld [vmem:[#allocation48_spill] sm:$0xff]  ;;  %v18460_v54 = vld [vmem:[#allocation167_spill] sm:$0xff] }
 0x6bf   : > { %v4975_v46 = vsub.f32 %v4911_v5, %v13890_v52  ;;  %v18455_v52 = vld [vmem:[#allocation203_spill] sm:$0xff]  ;;  %v18458_v11 = vld [vmem:[#allocation168_spill] sm:$0xff] }
 0x6c0   : > { %5265 = vperm.xlu0 %9979, %v4841_v42   ;;  %v5036_v42 = vadd.f32 %v13833_v29, %v4972_v43 }
 0x6c1   : > { %v13963_v59 = vpop.permute.xlu0 %3314  ;;  %5363 = vperm.xlu2 %9977, %v5033_v63   ;;  %v18442_v63 = vld [vmem:[#allocation97_spill] sm:$0xff]  ;;  %v5039_v27 = vadd.f32 %v13852_v35, %v4975_v46  ;;  %v13994_v62 = vpop.permute.xlu2 %4997  ;;  %v18456_v35 = vld [vmem:[#allocation151_spill] sm:$0xff] }
 0x6c2   : > { %5203 = vperm.xlu1 %9978, %v4661_v47   ;;  %v4715_v48 = vsub.f32 %v18442_v63, %v18441_v28  ;;  %v18453_v63 = vld [vmem:[#allocation200_spill] sm:$0xff]  ;;  %v4914_v26 = vadd.f32 %v18457_v55, %v18456_v35  ;;  %v18461_v46 = vld [vmem:[#allocation199_spill] sm:$0xff]  ;;  %v18468_v35 = vld [vmem:[#allocation197_spill] sm:$0xff] }
 0x6c3   : > { %v13996_v50 = vpop.permute.xlu1 %3311 }
 0x6c4   : > { %v4779_v29 = vadd.f32 %v18448_v13, %v4715_v48  ;;  %v18454_v48 = vld [vmem:[#allocation169_spill] sm:$0xff]  ;;  %v4978_v13 = vsub.f32 %v4914_v26, %v13912_v45  ;;  %v18465_v45 = vld [vmem:[#allocation83_spill] sm:$0xff]  ;;  %v18469_v26 = vld [vmem:[#allocation158_spill] sm:$0xff] }
 0x6c5   : > { %v4722_v39 = vsub.f32 %v18454_v48, %v18453_v63 }
 0x6c7   : > { %v4786_v20 = vadd.f32 %v18455_v52, %v4722_v39  ;;  %v18467_v52 = vld [vmem:[#allocation76_spill] sm:$0xff] }
 0x6c8   : > { %5274 = vperm.xlu0 %9979, %v4844_v15   ;;  %v18450_v15 = vld [vmem:[#allocation123_spill] sm:$0xff] }
 0x6c9   : > { %v13983_v47 = vpop.permute.xlu0 %3320  ;;  %5372 = vperm.xlu2 %9977, %v5036_v42   ;;  %v4843_v43 = vadd.f32 %v18450_v15, %v4779_v29  ;;  %v18451_v42 = vld [vmem:[#allocation174_spill] sm:$0xff]  ;;  %v4850_v5 = vadd.f32 %v18459_v4, %v4786_v20  ;;  %v5042_v29 = vadd.f32 %v13874_v38, %v4978_v13  ;;  %v14017_v63 = vpop.permute.xlu2 %5003  ;;  %v18466_v38 = vld [vmem:[#allocation188_spill] sm:$0xff] }
 0x6ca   : > { %5262 = vperm.xlu1 %9978, %v4840_v56   ;;  %v4718_v56 = vsub.f32 %v18452_v14, %v18451_v42  ;;  %v18462_v15 = vld [vmem:[#allocation150_spill] sm:$0xff]  ;;  %v4917_v20 = vadd.f32 %v18467_v52, %v18466_v38  ;;  %v18476_v38 = vld [vmem:[#allocation92_spill] sm:$0xff] }
 0x6cb   : > { %v18464_v42 = vld [vmem:[#allocation194_spill] sm:$0xff]  ;;  %v14019_v48 = vpop.permute.xlu1 %3317 }
 0x6cc   : > { %v4782_v61 = vadd.f32 %v18458_v11, %v4718_v56 }
 0x6d0   : > { %5283 = vperm.xlu0 %9979, %v4847_v37   ;;  %v4846_v37 = vadd.f32 %v18460_v54, %v4782_v61  ;;  %v4981_v61 = vsub.f32 %v4917_v20, %v13932_v33  ;;  %v18472_v54 = vld [vmem:[#allocation184_spill] sm:$0xff]  ;;  %v18477_v20 = vld [vmem:[#allocation55_spill] sm:$0xff] }
 0x6d1   : > { %v14001_v28 = vpop.permute.xlu0 %3326  ;;  %5381 = vperm.xlu2 %9977, %v5039_v27   ;;  %v4721_v27 = vsub.f32 %v18462_v15, %v18461_v46  ;;  %v18473_v46 = vld [vmem:[#allocation90_spill] sm:$0xff] }
 0x6d2   : > { %5271 = vperm.xlu1 %9978, %v4843_v43   ;;  %v18463_v43 = vld [vmem:[#allocation112_spill] sm:$0xff]  ;;  %v5045_v4 = vadd.f32 %v13896_v24, %v4981_v61  ;;  %v18474_v15 = vld [vmem:[#allocation98_spill] sm:$0xff]  ;;  %v18481_v61 = vld [vmem:[#allocation153_spill] sm:$0xff] }
 0x6d3   : > { %v4725_v14 = vsub.f32 %v18464_v42, %v18463_v43  ;;  %v4785_v55 = vadd.f32 %v18468_v35, %v4721_v27  ;;  %v4904_v43 = vadd.f32 %v18474_v15, %v18473_v46  ;;  %v14036_v27 = vpop.permute.xlu2 %5009  ;;  %v18478_v35 = vld [vmem:[#allocation95_spill] sm:$0xff]  ;;  %v18483_v15 = vld [vmem:[#allocation68_spill] sm:$0xff] }
 0x6d5   : > { %v4789_v39 = vadd.f32 %v18465_v45, %v4725_v14  ;;  %v4968_v42 = vsub.f32 %v4904_v43, %v13689_v60  ;;  %v3324_v14 = vpop.permute.xlu1 %3323  ;;  %v18475_v45 = vld [vmem:[#allocation214_spill] sm:$0xff]  ;;  %v18484_v43 = vld [vmem:[#allocation75_spill] sm:$0xff] }
 0x6d7   : > { %v4853_v11 = vadd.f32 %v18469_v26, %v4789_v39  ;;  %v5032_v24 = vadd.f32 %v13952_v44, %v4968_v42  ;;  %v18479_v26 = vld [vmem:[#allocation79_spill] sm:$0xff]  ;;  %v18482_v44 = vld [vmem:[#allocation108_spill] sm:$0xff]  ;;  %v4906_v42 = vadd.f32 %v18484_v43, %v18483_v15  ;;  %v18491_v43 = vld [vmem:[#allocation213_spill] sm:$0xff] }
 0x6d8   : > { %5292 = vperm.xlu0 %9979, %v4850_v5   ;;  %v18470_v5 = vld [vmem:[#allocation201_spill] sm:$0xff] }
 0x6d9   : > { %5390 = vperm.xlu2 %9977, %v5042_v29   ;;  %v14021_v56 = vpop.permute.xlu0 %3332  ;;  %v4849_v13 = vadd.f32 %v18470_v5, %v4785_v55  ;;  %v18471_v29 = vld [vmem:[#allocation215_spill] sm:$0xff]  ;;  %v4907_v55 = vadd.f32 %v18478_v35, %v18477_v20  ;;  %v18486_v20 = vld [vmem:[#allocation28_spill] sm:$0xff]  ;;  %v18487_v35 = vld [vmem:[#allocation58_spill] sm:$0xff] }
 0x6da   : > { %5280 = vperm.xlu1 %9978, %v4846_v37   ;;  %v4724_v37 = vsub.f32 %v18472_v54, %v18471_v29 }
 0x6db   : > { %v4971_v60 = vsub.f32 %v4907_v55, %v18479_v26  ;;  %v4909_v55 = vadd.f32 %v18487_v35, %v18486_v20 }
 0x6dc   : > { %v4788_v33 = vadd.f32 %v18475_v45, %v4724_v37  ;;  %v18485_v45 = vld [vmem:[#allocation127_spill] sm:$0xff] }
 0x6dd   : > { %v5035_v5 = vadd.f32 %v13975_v57, %v4971_v60  ;;  %v3330_v29 = vpop.permute.xlu1 %3329  ;;  %v4973_v26 = vsub.f32 %v4909_v55, %v13728_v32  ;;  %v3356_v32 = vperm.slane %v13963_v59, %v18491_v43  ;;  %v18493_v59 = vld [vmem:[#allocation144_spill] sm:$0xff] }
 0x6de   : > { %v4852_v52 = vadd.f32 %v18476_v38, %v4788_v33  ;;  %v4970_v33 = vsub.f32 %v4906_v42, %v18485_v45  ;;  %v3359_v42 = vperm.slane %v13983_v47, %v18491_v43  ;;  %v3365_v47 = vperm.slane %v14021_v56, %v18491_v43 }
 0x6e0   : > { %5301 = vperm.xlu0 %9979, %v4853_v11   ;;  %v18480_v11 = vld [vmem:[#allocation31_spill] sm:$0xff]  ;;  %v5034_v57 = vadd.f32 %v13803_v30, %v4970_v33 }
 0x6e1   : > { %5399 = vperm.xlu2 %9977, %v5045_v4   ;;  %v14039_v39 = vpop.permute.xlu0 %3341  ;;  %v4903_v4 = vadd.f32 %v18481_v61, %v18480_v11  ;;  %v18492_v33 = vld [vmem:[#allocation171_spill] sm:$0xff] }
 0x6e2   : > { %5289 = vperm.xlu1 %9978, %v4849_v13   ;;  %v14050_v13 = vpop.permute.xlu2 %5064 }
 0x6e3   : > { %v4967_v54 = vsub.f32 %v4903_v4, %v18482_v44  ;;  %v18488_v4 = vld [vmem:[#allocation126_spill] sm:$0xff] }
 0x6e5   : > { %v5031_v46 = vadd.f32 %v13786_v2, %v4967_v54  ;;  %v3339_v38 = vpop.permute.xlu1 %3338  ;;  %v5037_v2 = vadd.f32 %v13821_v1, %v4973_v26 }
 0x6e8   : > { %5360 = vperm.xlu0 %9979, %v5032_v24  }
 0x6e9   : > { %9981 = vset.pattern.permute.xlu2 %v18283_v21  ;;  %v3348_v37 = vpop.permute.xlu0 %3347 }
 0x6ea   : > { %5298 = vperm.xlu1 %9978, %v4852_v52   ;;  %v14057_v24 = vpop.permute.xlu2 %5073 }
 0x6ed   : > { %v3345_v11 = vpop.permute.xlu1 %3344 }
 0x6ee   : > { %v3371_v26 = vperm.slane %v3345_v11, %v18491_v43 }
 0x6f0   : > { %5369 = vperm.xlu0 %9979, %v5035_v5   ;;  %v18489_v5 = vld [vmem:[#allocation30_spill] sm:$0xff] }
 0x6f1   : > { %v4912_v44 = vadd.f32 %v18489_v5, %v18488_v4 }
 0x6f2   : > { %5357 = vperm.xlu1 %9978, %v5031_v46   ;;  %v14060_v52 = vpop.permute.xlu0 %5094  ;;  %v14066_v60 = vpop.permute.xlu2 %5079  ;;  %v18490_v46 = vld [vmem:[#allocation212_spill] sm:$0xff] }
 0x6f3   : > { %v4976_v30 = vsub.f32 %v4912_v44, %v13749_v22  ;;  %v3355_v15 = vperm.slane %v13996_v50, %v18490_v46  ;;  %v3358_v1 = vperm.slane %v14019_v48, %v18490_v46  ;;  %v3352_v45 = vperm.slane %v13977_v12, %v18490_v46 }
 0x6f4   : > { %v3353_v22 = vperm.slane %v13947_v6, %v18491_v43  ;;  %v3362_v50 = vperm.slane %v14001_v28, %v18491_v43  ;;  %v3364_v48 = vperm.slane %v3330_v29, %v18490_v46  ;;  %v3368_v6 = vperm.slane %v3339_v38, %v18491_v43 }
 0x6f5   : > { %v5040_v54 = vadd.f32 %v13842_v0, %v4976_v30  ;;  %v3361_v0 = vperm.slane %v3324_v14, %v18490_v46  ;;  %v3351_v35 = vpop.permute.xlu1 %3350  ;;  %v3357_v12 = vsel %vm17773_vm7, %v3356_v32, %v3355_v15  ;;  %v3360_v28 = vsel %vm17773_vm7, %v3359_v42, %v3358_v1 }
 0x6f6   : > { %v3354_v29 = vsel %vm17773_vm7, %v3353_v22, %v3352_v45  ;;  %v3374_v56 = vperm.slane %v3351_v35, %v18491_v43  ;;  %v3366_v38 = vsel %vm17773_vm7, %v3365_v47, %v3364_v48  ;;  %v3370_v44 = vperm.slane %v14039_v39, %v18490_v46  ;;  %v18494_v45 = vld [vmem:[#allocation196_spill] sm:$0xff]  ;;  %v14130_v48 = vld [vmem:[%s11259_s21] sm:$0xff]  ;;  %v18496_v47 = vld [vmem:[#allocation66_spill] sm:$0xff]  ;;  %s10407_s21 = smov 1  }
 0x6f7   : > { %v3363_v4 = vsel %vm17773_vm7, %v3362_v50, %v3361_v0  ;;  %v3376_v5 = vsel %vm17785_vm8, %v3357_v12, %v3354_v29  ;;  %v18497_v35 = vld [vmem:[#allocation139_spill] sm:$0xff] }
 0x6f8   : > { %v3377_v30 = vsel %vm17782_vm9, %v3360_v28, %v3376_v5  ;;  %v3372_v32 = vsel %vm17773_vm7, %v3371_v26, %v3370_v44  ;;  %v18499_v28 = vld [vmem:[#allocation142_spill] sm:$0xff] }
 0x6f9   : > { %v3378_v15 = vsel %vm17735_vm10, %v3363_v4, %v3377_v30  ;;  %v18501_v5 = vld [vmem:[#allocation118_spill] sm:$0xff]  ;;  %v8343_v30 = vrot.slane %v14130_v48, 1 }
 0x6fa   : > { %5366 = vperm.xlu1 %9978, %v5034_v57   ;;  %v14068_v61 = vpop.permute.xlu0 %5103  ;;  %v4915_v57 = vadd.f32 %v18493_v59, %v18492_v33  ;;  %v3336_v20 = vpop.permute.xlu2 %3335  ;;  %v3379_v1 = vsel %vm17683_vm11, %v3366_v38, %v3378_v15  ;;  %v8348_v15 = vrot.slane %v14130_v48, 6 }
 0x6fb   : > { %8352 = vrot.lane.b32.xlu2 %v8343_v30, %s10404_s19 }
 0x6fc   : > { %v4979_v14 = vsub.f32 %v4915_v57, %v13774_v8 }
 0x6fe   : > { %v5043_v8 = vadd.f32 %v13866_v19, %v4979_v14  ;;  %v18495_v19 = vld [vmem:[#allocation80_spill] sm:$0xff] }
 0x6ff   : > { %v4918_v22 = vadd.f32 %v18495_v19, %v18494_v45  ;;  %v18498_v14 = vld [vmem:[#allocation136_spill] sm:$0xff]  ;;  %v8347_v19 = vrot.slane %v14130_v48, 5 }
 0x700   : > { %v4913_v26 = vadd.f32 %v18499_v28, %v18498_v14 }
 0x702   : > { %5375 = vperm.xlu1 %9978, %v5037_v2   ;;  %v14096_v55 = vpop.permute.xlu0 %5161  ;;  %v3367_v2 = vperm.slane %v3336_v20, %v18490_v46 }
 0x704   : > { %v3369_v11 = vsel %vm17773_vm7, %v3368_v6, %v3367_v2  ;;  %v4977_v2 = vsub.f32 %v4913_v26, %v13742_v17 }
 0x705   : > { %v3380_v39 = vsel %vm17682_vm12, %v3369_v11, %v3379_v1  ;;  %v8345_v11 = vrot.slane %v14130_v48, 3  ;;  %v8349_v1 = vrot.slane %v14130_v48, 7 }
 0x706   : > { %v3381_v0 = vsel %vm17681_vm13, %v3372_v32, %v3380_v39  ;;  %v5041_v29 = vadd.f32 %v14017_v63, %v4977_v2  ;;  %v8344_v39 = vrot.slane %v14130_v48, 2 }
 0x70a   : > { %5384 = vperm.xlu1 %9978, %v5040_v54   ;;  %v3373_v54 = vperm.slane %v3348_v37, %v18490_v46  ;;  %v4982_v37 = vsub.f32 %v4918_v22, %v13792_v10  ;;  %v14123_v33 = vpop.permute.xlu0 %5170  ;;  %v4910_v10 = vadd.f32 %v18497_v35, %v18496_v47 }
 0x70c   : > { %v3375_v42 = vsel %vm17773_vm7, %v3374_v56, %v3373_v54  ;;  %v5046_v59 = vadd.f32 %v13887_v36, %v4982_v37  ;;  %v4974_v12 = vsub.f32 %v4910_v10, %v13721_v16  ;;  %v18500_v56 = vld [vmem:[#allocation179_spill] sm:$0xff]  ;;  %v8346_v54 = vrot.slane %v14130_v48, 4 }
 0x70d   : > { %v3382_v50 = vsel %vm17615_vm14, %v3375_v42, %v3381_v0  ;;  %v4916_v38 = vadd.f32 %v18501_v5, %v18500_v56 }
 0x70e   : > { %v3384_v57 = vsel %vm17614_vm15, %v3382_v50, 0.0  ;;  %v5038_v36 = vadd.f32 %v13994_v62, %v4974_v12  ;;  %8358 = vrot.lane.b32.xlu2 %v8346_v54, %s10404_s19 }
 0x70f   : > { %v4980_v16 = vsub.f32 %v4916_v38, %v13764_v9  ;;  %v10155_v9 = vld [vmem:[%s10639_s29] sm:$0xff]  ;;  %s10406_s29 = smov 6  }
 0x711   : > { %v5044_v44 = vadd.f32 %v14036_v27, %v4980_v16  ;;  %v5571_v27 = vsel %vm17614_vm15, %v10155_v9, -inf }
 0x712   : > { %5393 = vperm.xlu1 %9978, %v5043_v8   ;;  %v14127_v20 = vpop.permute.xlu0 %5179 }
 0x716   : > { %8364 = vrot.lane.b32.xlu2 %v8349_v1, %s10404_s19 }
 0x71a   : > { %3385 = vadd.xlane.f32.xlu0 %v3384_v57  ;;  %5402 = vperm.xlu1 %9978, %v5046_v59   ;;  %v14138_v6 = vpop.permute.xlu0 %5188 }
 0x71e   : > { %8386 = vrot.lane.b32.xlu2 %v8344_v39, %s10406_s29 }
 0x722   : > { %8350 = vrot.lane.b32.xlu1 %v14130_v48, %s10404_s19  ;;  %v14145_v4 = vpop.permute.xlu0 %5197 }
 0x723   : > { %9982 = vset.pattern.permute.xlu1 %v18283_v21 }
 0x726   : > { %8392 = vrot.lane.b32.xlu2 %v8347_v19, %s10406_s29 }
 0x72a   : > { %v14151_v62 = vpop.permute.xlu0 %5206  ;;  %8356 = vrot.lane.b32.xlu1 %v8345_v11, %s10404_s19 }
 0x72e   : > { %5378 = vperm.xlu0 %9979, %v5038_v36  }
 0x732   : > { %v14154_v8 = vpop.permute.xlu0 %5265  ;;  %8362 = vrot.lane.b32.xlu1 %v8348_v15, %s10404_s19 }
 0x736   : > { %5387 = vperm.xlu0 %9979, %v5041_v29  }
 0x73a   : > { %v14156_v17 = vpop.permute.xlu0 %5274  ;;  %8384 = vrot.lane.b32.xlu1 %v8343_v30, %s10406_s29 }
 0x73b   : > { %18502 = vst [vmem:[#allocation42_spill] sm:$0xff] %v14156_v17 }
 0x73e   : > { %5396 = vperm.xlu0 %9979, %v5044_v44  }
 0x742   : > { %v14158_v63 = vpop.permute.xlu0 %5283  ;;  %8390 = vrot.lane.b32.xlu1 %v8346_v54, %s10406_s29 }
 0x743   : > { %18503 = vst [vmem:[#allocation67_spill] sm:$0xff] %v14158_v63 }
 0x746   : > { %9980 = vset.pattern.permute.xlu0 %v18283_v21 }
 0x74a   : > { %v14168_v32 = vpop.permute.xlu0 %5292  ;;  %8396 = vrot.lane.b32.xlu1 %v8349_v1, %s10406_s29 }
 0x74b   : > { %18504 = vst [vmem:[#allocation172_spill] sm:$0xff] %v14168_v32 }
 0x752   : > { %v14173_v42 = vpop.permute.xlu0 %5301 }
 0x753   : > { %18505 = vst [vmem:[#allocation178_spill] sm:$0xff] %v14173_v42 }
 0x75a   : > { %v14180_v45 = vpop.permute.xlu0 %5360 }
 0x75b   : > { %18506 = vst [vmem:[#allocation181_spill] sm:$0xff] %v14180_v45 }
 0x762   : > { %v14187_v22 = vpop.permute.xlu0 %5369 }
 0x763   : > { %18507 = vst [vmem:[#allocation106_spill] sm:$0xff] %v14187_v22  ;;  %v18553_v22 = vld [vmem:[#allocation78_spill] sm:$0xff] }
 0x768   : > { %5572 = vmax.xlane.f32.xlu0 %v5571_v27 }
 0x77c   : > { %8354 = vrot.lane.b32.xlu0 %v8344_v39, %s10404_s19 }
 0x784   : > { %8360 = vrot.lane.b32.xlu0 %v8347_v19, %s10404_s19 }
 0x78c   : > { %8382 = vrot.lane.b32.xlu0 %v14130_v48, %s10406_s29  ;;  %v14205_v48 = vpop.permute.xlu1 %5091 }
 0x78d   : > { %v14191_v0 = vpop.xlane.xlu0 %3385 }
 0x78e   : > { %v3389_v50 = vperm.slane %v14191_v0, 1  ;;  %v3388_v37 = vperm.slane %v14191_v0, 0  ;;  %v14196_v59 = vperm.slane %v14191_v0, 2  ;;  %v14199_v57 = vperm.slane %v14191_v0, 3 }
 0x78f   : > { %v14202_v47 = vperm.slane %v14191_v0, 4  ;;  %v14211_v10 = vperm.slane %v14191_v0, 5  ;;  %v14214_v26 = vperm.slane %v14191_v0, 6 }
 0x790   : > { %10122 = vrcp.f32 %v3389_v50  ;;  %v3429_v29 = vand.u32 2147483647, %v3389_v50  ;;  %v3431_v56 = vand.u32 2147483648, %v3389_v50  ;;  %v3413_v44 = vand.u32 2147483647, %v3388_v37 }
 0x791   : > { %10124 = vrcp.f32 %v3388_v37  ;;  %v3415_v30 = vand.u32 2147483648, %v3388_v37  ;;  %vm3425_vm1 = vweird.f32 %v3389_v50  ;;  %vm3409_vm3 = vweird.f32 %v3388_v37 }
 0x792   : > { %10126 = vrcp.f32 %v14196_v59  ;;  %vm3430_vm2 = vcmp.eq.f32.partialorder %v3429_v29, 8.507059e+37  ;;  %vm3414_vm6 = vcmp.eq.f32.partialorder %v3413_v44, 8.507059e+37  ;;  %v3447_v29 = vand.u32 2147483648, %v14196_v59 }
 0x793   : > { %10128 = vrcp.f32 %v14199_v57  ;;  %v3416_v21 = vor.u32 1.1754944e-38, %v3415_v30  ;;  %v18509_v30 = vld [vmem:[#allocation140_spill] sm:$0xff] }
 0x794   : > { %8388 = vrot.lane.b32.xlu0 %v8345_v11, %s10406_s29  ;;  %10130 = vrcp.f32 %v14202_v47 }
 0x795   : > { %10132 = vrcp.f32 %v14211_v10 }
 0x796   : > { %v10123_v35 = vpop.eup %10122  ;;  %10134 = vrcp.f32 %v14214_v26 }
 0x797   : > { %v10125_v12 = vpop.eup %10124  ;;  %v3421_v36 = vmul.f32 %v10123_v35, %v3389_v50  ;;  %vm3426_vm0 = vweird.f32 %v10123_v35 }
 0x798   : > { %v10127_v14 = vpop.eup %10126  ;;  %v3405_v28 = vmul.f32 %v10125_v12, %v3388_v37  ;;  %vm3410_vm4 = vweird.f32 %v10125_v12  ;;  %vm3427_vm5 = vmor %vm3425_vm1, %vm3426_vm0  ;;  %vm3441_vm0 = vweird.f32 %v14196_v59 }
 0x799   : > { %v3422_v2 = vsub.f32 1.0, %v3421_v36  ;;  %v3437_v5 = vmul.f32 %v10127_v14, %v14196_v59  ;;  %v14217_v38 = vpop.eup %10128  ;;  %vm3411_vm15 = vmor %vm3409_vm3, %vm3410_vm4  ;;  %vm3442_vm14 = vweird.f32 %v10127_v14 }
 0x79a   : > { %v3406_v16 = vsub.f32 1.0, %v3405_v28  ;;  %v14220_v11 = vpop.eup %10130  ;;  %v3453_v54 = vmul.f32 %v14217_v38, %v14199_v57  ;;  %v14227_v28 = vpop.permute.xlu1 %5100  ;;  %vm3443_vm1 = vmor %vm3441_vm0, %vm3442_vm14  ;;  %vm3458_vm14 = vweird.f32 %v14217_v38 }
 0x79b   : > { %v3423_v9 = vmul.f32 %v10123_v35, %v3422_v2  ;;  %v3438_v27 = vsub.f32 1.0, %v3437_v5  ;;  %v3469_v39 = vmul.f32 %v14220_v11, %v14202_v47  ;;  %v3432_v2 = vor.u32 1.1754944e-38, %v3431_v56 }
 0x79c   : > { %8394 = vrot.lane.b32.xlu0 %v8348_v15, %s10406_s29  ;;  %v3407_v1 = vmul.f32 %v10125_v12, %v3406_v16  ;;  %v3454_v50 = vsub.f32 1.0, %v3453_v54  ;;  %v14229_v16 = vpop.eup %10132  ;;  %v3445_v56 = vand.u32 2147483647, %v14196_v59  ;;  %vm3474_vm4 = vweird.f32 %v14220_v11  ;;  %s18993_s29 = sld [smem:[#allocation226_spill]] }
 0x79d   : > { %v3424_v19 = vadd.f32 %v10123_v35, %v3423_v9  ;;  %v3439_v36 = vmul.f32 %v10127_v14, %v3438_v27  ;;  %v3470_v37 = vsub.f32 1.0, %v3469_v39 }
 0x79e   : > { %v3408_v5 = vadd.f32 %v10125_v12, %v3407_v1 }
 0x79f   : > { %v3428_v42 = vsel %vm3427_vm5, %v10123_v35, %v3424_v19  ;;  %v3440_v15 = vadd.f32 %v10127_v14, %v3439_v36  ;;  %v18508_v35 = vld [vmem:[#allocation47_spill] sm:$0xff]  ;;  %v3471_v59 = vmul.f32 %v14220_v11, %v3470_v37  ;;  %v3463_v36 = vand.u32 2147483648, %v14199_v57 }
 0x7a0   : > { %v3433_v32 = vsel %vm3430_vm2, %v3432_v2, %v3428_v42  ;;  %v3412_v63 = vsel %vm3411_vm15, %v10125_v12, %v3408_v5  ;;  %vm3457_vm15 = vweird.f32 %v14199_v57  ;;  %vm3473_vm2 = vweird.f32 %v14202_v47 }
 0x7a1   : > { %v14233_v9 = vmul.f32 %v13731_v40, %v3433_v32  ;;  %v3417_v27 = vsel %vm3414_vm6, %v3416_v21, %v3412_v63  ;;  %v3444_v42 = vsel %vm3443_vm1, %v10127_v14, %v3440_v15  ;;  %v3455_v40 = vmul.f32 %v14217_v38, %v3454_v50  ;;  %v14253_v14 = vpop.eup %10134  ;;  %vm14273_vm3 = vmor %vm3457_vm15, %vm3458_vm14 }
 0x7a2   : > { %v14238_v44 = vmul.f32 %v18508_v35, %v3417_v27  ;;  %v14241_v54 = vmul.f32 %v18509_v30, %v3417_v27  ;;  %v3485_v21 = vmul.f32 %v14229_v16, %v14211_v10  ;;  %v3448_v63 = vor.u32 1.1754944e-38, %v3447_v29  ;;  %v14255_v19 = vpop.permute.xlu1 %5109  ;;  %v18510_v29 = vld [vmem:[#allocation52_spill] sm:$0xff]  ;;  %v18511_v27 = vld [vmem:[#allocation71_spill] sm:$0xff]  ;;  %vm3475_vm5 = vmor %vm3473_vm2, %vm3474_vm4 }
 0x7a3   : > { %5482 = vperm.xlu1 %9982, %v14233_v9   ;;  %vm3446_vm6 = vcmp.eq.f32.partialorder %v3445_v56, 8.507059e+37  ;;  %v3456_v1 = vadd.f32 %v14217_v38, %v3455_v40  ;;  %v3472_v2 = vadd.f32 %v14220_v11, %v3471_v59  ;;  %v3461_v15 = vand.u32 2147483647, %v14199_v57 }
 0x7a4   : > { %5479 = vperm.xlu2 %9981, %v14238_v44   ;;  %5476 = vperm.xlu0 %9980, %v14241_v54   ;;  %v3449_v12 = vsel %vm3446_vm6, %v3448_v63, %v3444_v42  ;;  %v3486_v39 = vsub.f32 1.0, %v3485_v21  ;;  %v3479_v50 = vand.u32 2147483648, %v14202_v47  ;;  %v14268_v37 = vmul.f32 %v18510_v29, %v3433_v32 }
 0x7a5   : > { %v14262_v5 = vmul.f32 %v13747_v34, %v3449_v12  ;;  %v14271_v56 = vmul.f32 %v18511_v27, %v3449_v12  ;;  %v3477_v30 = vand.u32 2147483647, %v14202_v47  ;;  %v14279_v34 = vperm.slane %v14191_v0, 7 }
 0x7a6   : > { %v3460_v57 = vsel %vm14273_vm3, %v14217_v38, %v3456_v1  ;;  %v3487_v32 = vmul.f32 %v14229_v16, %v3486_v39  ;;  %v3501_v42 = vmul.f32 %v14253_v14, %v14214_v26  ;;  %v3464_v47 = vor.u32 1.1754944e-38, %v3463_v36  ;;  %v18514_v1 = vld [vmem:[#allocation38_spill] sm:$0xff] }
 0x7a7   : > { %v3476_v0 = vsel %vm3475_vm5, %v14220_v11, %v3472_v2  ;;  %10136 = vrcp.f32 %v14279_v34  ;;  %vm3462_vm0 = vcmp.eq.f32.partialorder %v3461_v15, 8.507059e+37  ;;  %v3480_v40 = vor.u32 1.1754944e-38, %v3479_v50  ;;  %v18515_v15 = vld [vmem:[#allocation72_spill] sm:$0xff] }
 0x7a8   : > { %v3465_v21 = vsel %vm3462_vm0, %v3464_v47, %v3460_v57  ;;  %vm3478_vm1 = vcmp.eq.f32.partialorder %v3477_v30, 8.507059e+37  ;;  %v3488_v63 = vadd.f32 %v14229_v16, %v3487_v32  ;;  %vm3490_vm6 = vweird.f32 %v14229_v16  ;;  %v18516_v47 = vld [vmem:[#allocation135_spill] sm:$0xff] }
 0x7a9   : > { %v3481_v38 = vsel %vm3478_vm1, %v3480_v40, %v3476_v0  ;;  %v3502_v59 = vsub.f32 1.0, %v3501_v42  ;;  %v3495_v12 = vand.u32 2147483648, %v14211_v10  ;;  %v14296_v39 = vmul.f32 %v18514_v1, %v3465_v21 }
 0x7aa   : > { %vm3489_vm14 = vweird.f32 %v14211_v10  ;;  %v3493_v11 = vand.u32 2147483647, %v14211_v10  ;;  %v14300_v2 = vpop.permute.xlu1 %5167  ;;  %v14303_v50 = vmul.f32 %v18515_v15, %v3465_v21  ;;  %v3482_v29 = vmul.f32 %v13783_v23, %v3481_v38 }
 0x7ab   : > { %5488 = vperm.xlu1 %9982, %v14262_v5   ;;  %vm3491_vm15 = vmor %vm3489_vm14, %vm3490_vm6  ;;  %v3503_v35 = vmul.f32 %v14253_v14, %v3502_v59  ;;  %v3496_v10 = vor.u32 1.1754944e-38, %v3495_v12  ;;  %vm3506_vm2 = vweird.f32 %v14253_v14  ;;  %vm3505_vm3 = vweird.f32 %v14214_v26  ;;  %v18517_v59 = vld [vmem:[#allocation87_spill] sm:$0xff] }
 0x7ac   : > { %5485 = vperm.xlu2 %9981, %v14268_v37   ;;  %5491 = vperm.xlu0 %9980, %v14271_v56   ;;  %v3492_v27 = vsel %vm3491_vm15, %v14229_v16, %v3488_v63  ;;  %vm3494_vm4 = vcmp.eq.f32.partialorder %v3493_v11, 8.507059e+37  ;;  %v3511_v16 = vand.u32 2147483648, %v14214_v26  ;;  %v3509_v40 = vand.u32 2147483647, %v14214_v26  ;;  %vm3507_vm0 = vmor %vm3505_vm3, %vm3506_vm2 }
 0x7ad   : > { %v10137_v36 = vpop.eup %10136  ;;  %v3497_v32 = vsel %vm3494_vm4, %v3496_v10, %v3492_v27  ;;  %v3504_v42 = vadd.f32 %v14253_v14, %v3503_v35  ;;  %v3527_v63 = vand.u32 2147483648, %v14279_v34  ;;  %v3483_v12 = vmul.f32 %v18517_v59, %v3481_v38 }
 0x7ae   : > { %v3517_v30 = vmul.f32 %v10137_v36, %v14279_v34  ;;  %vm3522_vm5 = vweird.f32 %v10137_v36  ;;  %v3498_v0 = vmul.f32 %v18516_v47, %v3497_v32  ;;  %v3499_v1 = vmul.f32 %v13798_v25, %v3497_v32 }
 0x7af   : > { %vm3521_vm1 = vweird.f32 %v14279_v34  ;;  %v3525_v11 = vand.u32 2147483647, %v14279_v34  ;;  %v3508_v15 = vsel %vm3507_vm0, %v14253_v14, %v3504_v42  ;;  %v3512_v26 = vor.u32 1.1754944e-38, %v3511_v16 }
 0x7b0   : > { %v3518_v57 = vsub.f32 1.0, %v3517_v30  ;;  %vm3523_vm6 = vmor %vm3521_vm1, %vm3522_vm5  ;;  %vm3510_vm14 = vcmp.eq.f32.partialorder %v3509_v40, 8.507059e+37  ;;  %v3528_v30 = vor.u32 1.1754944e-38, %v3527_v63  ;;  %vm5797_vm4 = vcmask 105520  }
 0x7b1   : > { %v3513_v38 = vsel %vm3510_vm14, %v3512_v26, %v3508_v15  ;;  %vm3526_vm15 = vcmp.eq.f32.partialorder %v3525_v11, 8.507059e+37  ;;  %vm18577_vm2 = vcmask 1047559  }
 0x7b2   : > { %v3519_v23 = vmul.f32 %v10137_v36, %v3518_v57  ;;  %v14323_v27 = vpop.permute.xlu1 %5176  ;;  %v3515_v10 = vmul.f32 %v13813_v7, %v3513_v38  ;;  %v3514_v57 = vmul.f32 %v13790_v18, %v3513_v38  ;;  %v18518_v7 = vld [vmem:[#allocation20_spill] sm:$0xff]  ;;  %v18524_v38 = vmov 1   ;;  %vm18586_vm3 = vmmov %vm18577_vm2 }
 0x7b3   : > { %5497 = vperm.xlu1 %9982, %v14296_v39   ;;  %vm18587_vm5 = vmmov %vm18577_vm2 }
 0x7b4   : > { %5494 = vperm.xlu2 %9981, %v14303_v50   ;;  %5500 = vperm.xlu0 %9980, %v3482_v29   ;;  %v3520_v21 = vadd.f32 %v10137_v36, %v3519_v23  ;;  %vm18592_vm0 = vmmov %vm18577_vm2 }
 0x7b5   : > { %vm18598_vm1 = vmmov %vm18592_vm0 }
 0x7b6   : > { %v3524_v35 = vsel %vm3523_vm6, %v10137_v36, %v3520_v21  ;;  %vm18600_vm6 = vcmask 130048  }
 0x7b7   : > { %v3529_v25 = vsel %vm3526_vm15, %v3528_v30, %v3524_v35 }
 0x7b8   : > { %v3530_v34 = vmul.f32 %v13805_v3, %v3529_v25  ;;  %v3531_v32 = vmul.f32 %v13827_v58, %v3529_v25  ;;  %v18519_v3 = vld [vmem:[#allocation19_spill] sm:$0xff]  ;;  %v14346_v58 = vpop.permute.xlu2 %5088 }
 0x7ba   : > { %v14328_v14 = vpop.permute.xlu1 %5185 }
 0x7bb   : > { %5506 = vperm.xlu1 %9982, %v3498_v0  }
 0x7bc   : > { %5503 = vperm.xlu2 %9981, %v3483_v12   ;;  %5509 = vperm.xlu0 %9980, %v3499_v1  }
 0x7c2   : > { %v14337_v18 = vpop.permute.xlu1 %5194 }
 0x7c3   : > { %5515 = vperm.xlu1 %9982, %v3515_v10  }
 0x7c4   : > { %5512 = vperm.xlu2 %9981, %v3514_v57   ;;  %5518 = vperm.xlu0 %9980, %v3530_v34  }
 0x7cb   : > { %8450 = vrot.lane.b32.xlu1 %v14233_v9, %s10407_s21  ;;  %v14348_v9 = vpop.permute.xlu1 %5203 }
 0x7cc   : > { %5521 = vperm.xlu2 %9981, %v3531_v32   ;;  %8448 = vrot.lane.b32.xlu0 %v14238_v44, %s10407_s21  ;;  %v14355_v44 = vpop.permute.xlu2 %5097 }
 0x7cd   : > { %9983 = vset.pattern.permute.xlu1 %v18518_v7  ;;  %9985 = vset.pattern.permute.xlu0 %v18518_v7 }
 0x7d3   : > { %8456 = vrot.lane.b32.xlu1 %v14271_v56, %s10407_s21  ;;  %v18520_v56 = vld [vmem:[#allocation21_spill] sm:$0xff] }
 0x7d4   : > { %8446 = vrot.lane.b32.xlu2 %v14241_v54, %s10407_s21  ;;  %8454 = vrot.lane.b32.xlu0 %v14262_v5, %s10407_s21  ;;  %v14358_v54 = vpop.permute.xlu1 %5262  ;;  %v14363_v5 = vpop.permute.xlu2 %5106  ;;  %v8537_v36 = vperm.slane %v18520_v56, 2  ;;  %v8524_v42 = vperm.slane %v18520_v56, 1  ;;  %v8576_v40 = vperm.slane %v18520_v56, 5  ;;  %v8563_v63 = vperm.slane %v18520_v56, 4 }
 0x7d5   : > { %9984 = vset.pattern.permute.xlu2 %v18519_v3  ;;  %v8589_v26 = vperm.slane %v18520_v56, 6 }
 0x7db   : > { %8462 = vrot.lane.b32.xlu1 %v3482_v29, %s10407_s21 }
 0x7dc   : > { %8452 = vrot.lane.b32.xlu2 %v14268_v37, %s10407_s21  ;;  %8460 = vrot.lane.b32.xlu0 %v14296_v39, %s10407_s21  ;;  %v14368_v37 = vpop.permute.xlu1 %5271  ;;  %v8511_v39 = vperm.slane %v18520_v56, 0 }
 0x7e3   : > { %8468 = vrot.lane.b32.xlu1 %v3499_v1, %s10407_s21 }
 0x7e4   : > { %8458 = vrot.lane.b32.xlu2 %v14303_v50, %s10407_s21  ;;  %8466 = vrot.lane.b32.xlu0 %v3498_v0, %s10407_s21  ;;  %v14373_v50 = vpop.permute.xlu2 %5164  ;;  %v14375_v29 = vpop.permute.xlu1 %5280  ;;  %v8550_v0 = vperm.slane %v18520_v56, 3 }
 0x7eb   : > { %8474 = vrot.lane.b32.xlu1 %v3530_v34, %s10407_s21 }
 0x7ec   : > { %8464 = vrot.lane.b32.xlu2 %v3483_v12, %s10407_s21  ;;  %8472 = vrot.lane.b32.xlu0 %v3515_v10, %s10407_s21  ;;  %v14380_v23 = vpop.permute.xlu2 %5173  ;;  %v14382_v16 = vpop.permute.xlu1 %5289 }
 0x7ed   : > { %18521 = vst [vmem:[#allocation100_spill] sm:$0xff] %v14382_v16  ;;  %v14413_v10 = vpop.permute.xlu0 %5378 }
 0x7ee   : > { %18526 = vst [vmem:[#allocation88_spill] sm:$0xff] %v14413_v10 }
 0x7f3   : > { %8522 = vperm.xlu1 %9983, %v8511_v39  }
 0x7f4   : > { %8470 = vrot.lane.b32.xlu2 %v3514_v57, %s10407_s21  ;;  %8548 = vperm.xlu0 %9985, %v8537_v36   ;;  %v14385_v47 = vpop.permute.xlu2 %5182  ;;  %v14389_v21 = vpop.permute.xlu1 %5298  ;;  %v17617_v57 = vperm.slane %v18520_v56, 7 }
 0x7f5   : > { %18522 = vst [vmem:[#allocation110_spill] sm:$0xff] %v14389_v21 }
 0x7fb   : > { %8535 = vperm.xlu1 %9983, %v8524_v42  }
 0x7fc   : > { %8476 = vrot.lane.b32.xlu2 %v3531_v32, %s10407_s21  ;;  %9986 = vset.pattern.permute.xlu0 %v18519_v3  ;;  %v14392_v59 = vpop.permute.xlu2 %5191  ;;  %v14395_v12 = vpop.permute.xlu1 %5357 }
 0x803   : > { %9987 = vset.pattern.permute.xlu1 %v18519_v3 }
 0x804   : > { %8529 = vperm.xlu2 %9984, %v8524_v42   ;;  %8516 = vperm.xlu0 %9986, %v8511_v39   ;;  %v14398_v1 = vpop.permute.xlu2 %5200  ;;  %v14400_v11 = vpop.permute.xlu1 %5366 }
 0x805   : > { %v14422_v39 = vpop.permute.xlu0 %5387 }
 0x806   : > { %18528 = vst [vmem:[#allocation114_spill] sm:$0xff] %v14422_v39 }
 0x80b   : > { %8555 = vperm.xlu1 %9987, %v8550_v0  }
 0x80c   : > { %8542 = vperm.xlu2 %9984, %v8537_v36   ;;  %8581 = vperm.xlu0 %9986, %v8576_v40   ;;  %v14402_v15 = vpop.permute.xlu2 %5259  ;;  %v14405_v35 = vpop.permute.xlu1 %5375 }
 0x80d   : > { %18523 = vst [vmem:[#allocation57_spill] sm:$0xff] %v14405_v35 }
 0x813   : > { %8568 = vperm.xlu1 %9987, %v8563_v63  }
 0x814   : > { %9988 = vset.pattern.permute.xlu2 %v18518_v7  ;;  %v14408_v30 = vpop.permute.xlu2 %5268  ;;  %v14411_v25 = vpop.permute.xlu1 %5384 }
 0x815   : > { %18525 = vst [vmem:[#allocation51_spill] sm:$0xff] %v14411_v25 }
 0x81b   : > { %9989 = vset.pattern.permute.xlu1 %v18518_v7 }
 0x81c   : > { %8561 = vperm.xlu2 %9988, %v8550_v0   ;;  %v14416_v34 = vpop.permute.xlu2 %5277  ;;  %v14420_v32 = vpop.permute.xlu1 %5393 }
 0x81d   : > { %18527 = vst [vmem:[#allocation50_spill] sm:$0xff] %v14420_v32  ;;  %v14429_v0 = vpop.permute.xlu0 %5396 }
 0x81e   : > { %18530 = vst [vmem:[#allocation125_spill] sm:$0xff] %v14429_v0 }
 0x823   : > { %8587 = vperm.xlu1 %9989, %v8576_v40  }
 0x824   : > { %8574 = vperm.xlu2 %9988, %v8563_v63   ;;  %v14425_v36 = vpop.permute.xlu2 %5286  ;;  %v14427_v42 = vpop.permute.xlu1 %5402 }
 0x825   : > { %18529 = vst [vmem:[#allocation64_spill] sm:$0xff] %v14427_v42 }
 0x82b   : > { %8600 = vperm.xlu1 %9989, %v8589_v26  }
 0x82c   : > { %9990 = vset.pattern.permute.xlu2 %v18519_v3  ;;  %v14431_v40 = vpop.permute.xlu2 %5295  ;;  %v14433_v63 = vpop.permute.xlu1 %8350 }
 0x82d   : > { %18531 = vst [vmem:[#allocation160_spill] sm:$0xff] %v14433_v63 }
 0x833   : > { %9991 = vset.pattern.permute.xlu1 %v18524_v38 }
 0x834   : > { %8594 = vperm.xlu2 %9990, %v8589_v26   ;;  %v14435_v26 = vpop.xlane.xlu0 %5572  ;;  %v14437_v3 = vpop.permute.xlu2 %5304 }
 0x835   : > { %18532 = vst [vmem:[#allocation141_spill] sm:$0xff] %v14435_v26 }
 0x83c   : > { %8607 = vperm.xlu2 %9990, %v17617_v57   ;;  %v14439_v57 = vpop.permute.xlu1 %8356  ;;  %v14441_v56 = vpop.permute.xlu0 %8354 }
 0x83d   : > { %18533 = vst [vmem:[#allocation70_spill] sm:$0xff] %v14439_v57  ;;  %v14443_v7 = vpop.permute.xlu2 %5363 }
 0x83e   : > { %18534 = vst [vmem:[#allocation59_spill] sm:$0xff] %v14441_v56 }
 0x844   : > { %9992 = vset.pattern.permute.xlu2 %v18524_v38  ;;  %v14445_v38 = vpop.permute.xlu1 %8362  ;;  %v14447_v32 = vpop.permute.xlu0 %8360 }
 0x845   : > { %18535 = vst [vmem:[#allocation170_spill] sm:$0xff] %v14445_v38  ;;  %v14449_v42 = vpop.permute.xlu2 %5372 }
 0x846   : > { %18536 = vst [vmem:[#allocation157_spill] sm:$0xff] %v14447_v32 }
 0x84c   : > { %v14451_v21 = vpop.permute.xlu1 %8384  ;;  %v14453_v0 = vpop.permute.xlu0 %8382 }
 0x84d   : > { %18537 = vst [vmem:[#allocation164_spill] sm:$0xff] %v14451_v21  ;;  %v14455_v63 = vpop.permute.xlu2 %5381 }
 0x84e   : > { %18538 = vst [vmem:[#allocation163_spill] sm:$0xff] %v14453_v0 }
 0x854   : > { %v14457_v26 = vpop.permute.xlu1 %8390  ;;  %v14459_v25 = vpop.permute.xlu0 %8388 }
 0x855   : > { %18539 = vst [vmem:[#allocation180_spill] sm:$0xff] %v14457_v26  ;;  %v14461_v57 = vpop.permute.xlu2 %5390 }
 0x856   : > { %18540 = vst [vmem:[#allocation96_spill] sm:$0xff] %v14459_v25 }
 0x857   : > { %18541 = vst [vmem:[#allocation56_spill] sm:$0xff] %v14461_v57 }
 0x85c   : > { %v14463_v56 = vpop.permute.xlu1 %8396  ;;  %v14465_v39 = vpop.permute.xlu0 %8394 }
 0x85d   : > { %18542 = vst [vmem:[#allocation117_spill] sm:$0xff] %v14463_v56  ;;  %v14467_v38 = vpop.permute.xlu2 %5399 }
 0x85e   : > { %18543 = vst [vmem:[#allocation99_spill] sm:$0xff] %v14465_v39 }
 0x85f   : > { %18544 = vst [vmem:[#allocation81_spill] sm:$0xff] %v14467_v38 }
 0x864   : > { %v14469_v32 = vpop.permute.xlu1 %5482  ;;  %v14471_v16 = vpop.permute.xlu0 %5476 }
 0x865   : > { %18545 = vst [vmem:[#allocation86_spill] sm:$0xff] %v14471_v16  ;;  %v14473_v21 = vpop.permute.xlu2 %8352 }
 0x866   : > { %18546 = vst [vmem:[#allocation35_spill] sm:$0xff] %v14473_v21  ;;  %v18554_v21 = vld [vmem:[#allocation116_spill] sm:$0xff] }
 0x86c   : > { %v14475_v0 = vpop.permute.xlu1 %5488  ;;  %v14477_v35 = vpop.permute.xlu0 %5491 }
 0x86d   : > { %18547 = vst [vmem:[#allocation84_spill] sm:$0xff] %v14475_v0  ;;  %v14479_v26 = vpop.permute.xlu2 %8358 }
 0x86e   : > { %18548 = vst [vmem:[#allocation36_spill] sm:$0xff] %v14477_v35 }
 0x86f   : > { %18549 = vst [vmem:[#allocation49_spill] sm:$0xff] %v14479_v26 }
 0x874   : > { %v14481_v25 = vpop.permute.xlu1 %5497  ;;  %v14483_v57 = vpop.permute.xlu0 %5500 }
 0x875   : > { %18550 = vst [vmem:[#allocation33_spill] sm:$0xff] %v14481_v25  ;;  %v14485_v56 = vpop.permute.xlu2 %8364 }
 0x876   : > { %18551 = vst [vmem:[#allocation40_spill] sm:$0xff] %v14483_v57 }
 0x877   : > { %18552 = vst [vmem:[#allocation138_spill] sm:$0xff] %v14485_v56 }
 0x87c   : > { %v14487_v39 = vpop.permute.xlu1 %5506  ;;  %v14489_v38 = vpop.permute.xlu0 %5509 }
 0x87d   : > { %v5791_v16 = vmul.f32 %v14487_v39, %v18553_v22  ;;  %v5792_v0 = vmul.f32 %v14489_v38, %v18554_v21  ;;  %v14495_v35 = vpop.permute.xlu2 %8386  ;;  %v5115_v22 = vperm.slane %v14057_v24, %v18491_v43  ;;  %v5120_v24 = vperm.slane %v13958_v53, %v18490_v46 }
 0x87e   : > { %18555 = vst [vmem:[#allocation143_spill] sm:$0xff] %v14495_v35  ;;  %v5118_v35 = vperm.slane %v14066_v60, %v18491_v43  ;;  %v5215_v53 = vperm.slane %v14323_v27, %v18491_v43  ;;  %v5214_v27 = vperm.slane %v14380_v23, %v18490_v46 }
 0x87f   : > { %v5843_v26 = vsel %vm5797_vm4, %v5791_v16, 0.0  ;;  %v5844_v25 = vsel %vm5797_vm4, %v5792_v0, 0.0  ;;  %v5114_v16 = vperm.slane %v13907_v49, %v18490_v46  ;;  %v5117_v0 = vperm.slane %v13936_v51, %v18490_v46 }
 0x880   : > { %v14499_v57 = vadd.f32 %v5844_v25, %v5843_v26  ;;  %v5111_v25 = vperm.slane %v14050_v13, %v18490_v46  ;;  %v5112_v26 = vperm.slane %v13918_v31, %v18491_v43  ;;  %v5121_v13 = vperm.slane %v13929_v41, %v18491_v43 }
 0x881   : > { %v5124_v31 = vperm.slane %v14205_v48, %v18491_v43  ;;  %v5212_v41 = vperm.slane %v14123_v33, %v18491_v43  ;;  %v5127_v48 = vperm.slane %v14355_v44, %v18491_v43  ;;  %v5218_v44 = vperm.slane %v14385_v47, %v18491_v43 }
 0x882   : > { %18556 = vst [vmem:[#allocation119_spill] sm:$0xff] %v14499_v57  ;;  %v5119_v57 = vsel %vm17773_vm7, %v5118_v35, %v5117_v0  ;;  %v5113_v60 = vsel %vm17773_vm7, %v5112_v26, %v5111_v25  ;;  %v5122_v35 = vsel %vm17773_vm7, %v5121_v13, %v5120_v24  ;;  %v5216_v23 = vsel %vm17773_vm7, %v5215_v53, %v5214_v27 }
 0x883   : > { %v5220_v0 = vperm.slane %v14328_v14, %v18490_v46  ;;  %v5224_v24 = vperm.slane %v14337_v18, %v18491_v43  ;;  %v5223_v47 = vperm.slane %v14392_v59, %v18490_v46  ;;  %v5221_v14 = vperm.slane %v14138_v6, %v18491_v43 }
 0x884   : > { %v5306_v59 = vperm.slane %v14402_v15, %v18490_v46  ;;  %v5310_v6 = vperm.slane %v14408_v30, %v18491_v43  ;;  %v5319_v30 = vperm.slane %v14425_v36, %v18491_v43  ;;  %v5407_v27 = vperm.slane %v14443_v7, %v18490_v46 }
 0x885   : > { %v14501_v56 = vpop.permute.xlu2 %8392  ;;  %v5225_v53 = vsel %vm17773_vm7, %v5224_v24, %v5223_v47  ;;  %v5416_v7 = vperm.slane %v14455_v63, %v18490_v46  ;;  %v18561_v63 = vld [vmem:[#allocation181_spill] sm:$0xff] }
 0x886   : > { %18557 = vst [vmem:[#allocation156_spill] sm:$0xff] %v14501_v56  ;;  %v5116_v56 = vsel %vm17773_vm7, %v5115_v22, %v5114_v16  ;;  %v5211_v22 = vperm.slane %v14300_v2, %v18490_v46  ;;  %v5123_v16 = vperm.slane %v14346_v58, %v18490_v46  ;;  %v5132_v2 = vperm.slane %v14363_v5, %v18490_v46 }
 0x887   : > { %v5135_v49 = vsel %vm17785_vm8, %v5116_v56, %v5113_v60  ;;  %v5208_v56 = vperm.slane %v14096_v55, %v18490_v46  ;;  %v5209_v58 = vperm.slane %v14373_v50, %v18491_v43  ;;  %v5129_v55 = vperm.slane %v14227_v28, %v18490_v46 }
 0x888   : > { %v5136_v51 = vsel %vm17782_vm9, %v5119_v57, %v5135_v49  ;;  %v5125_v25 = vsel %vm17773_vm7, %v5124_v31, %v5123_v16  ;;  %v5213_v33 = vsel %vm17773_vm7, %v5212_v41, %v5211_v22  ;;  %v5126_v5 = vperm.slane %v14060_v52, %v18490_v46 }
 0x889   : > { %v5137_v57 = vsel %vm17735_vm10, %v5122_v35, %v5136_v51  ;;  %v5130_v50 = vperm.slane %v14068_v61, %v18491_v43  ;;  %v5210_v26 = vsel %vm17773_vm7, %v5209_v58, %v5208_v56  ;;  %v5217_v28 = vperm.slane %v14127_v20, %v18490_v46 }
 0x88a   : > { %v5138_v52 = vsel %vm17683_vm11, %v5125_v25, %v5137_v57  ;;  %v5232_v60 = vsel %vm17785_vm8, %v5213_v33, %v5210_v26  ;;  %v5227_v61 = vperm.slane %v14398_v1, %v18491_v43  ;;  %v5133_v20 = vperm.slane %v14255_v19, %v18491_v43  ;;  %v18559_v33 = vld [vmem:[#allocation53_spill] sm:$0xff] }
 0x88b   : > { %v5131_v49 = vsel %vm17773_vm7, %v5130_v50, %v5129_v55  ;;  %v5233_v18 = vsel %vm17782_vm9, %v5216_v23, %v5232_v60  ;;  %v5128_v51 = vsel %vm17773_vm7, %v5127_v48, %v5126_v5  ;;  %v5222_v31 = vsel %vm17773_vm7, %v5221_v14, %v5220_v0  ;;  %v14635_v5 = vpop.permute.xlu1 %5515  ;;  %v18562_v0 = vld [vmem:[#allocation88_spill] sm:$0xff]  ;;  %v18563_v26 = vld [vmem:[#allocation73_spill] sm:$0xff] }
 0x88c   : > { %v5139_v1 = vsel %vm17682_vm12, %v5128_v51, %v5138_v52  ;;  %v5219_v22 = vsel %vm17773_vm7, %v5218_v44, %v5217_v28  ;;  %v5226_v19 = vperm.slane %v14145_v4, %v18490_v46  ;;  %v5315_v35 = vperm.slane %v14416_v34, %v18490_v46  ;;  %18560 = vst [vmem:[#allocation89_spill] sm:$0xff] %v14635_v5 }
 0x88d   : > { %v14503_v17 = vpop.permute.xlu2 %5479  ;;  %v14600_v15 = vsel %vm17681_vm13, %v5131_v49, %v5139_v1  ;;  %v5234_v16 = vsel %vm17735_vm10, %v5219_v22, %v5233_v18  ;;  %v14606_v56 = vsel %vm17773_vm7, %v5133_v20, %v5132_v2  ;;  %v5324_v41 = vperm.slane %v14431_v40, %v18490_v46  ;;  %v18567_v20 = vld [vmem:[#allocation57_spill] sm:$0xff] }
 0x88e   : > { %v5235_v4 = vsel %vm17683_vm11, %v5222_v31, %v5234_v16  ;;  %v5307_v48 = vperm.slane %v14358_v54, %v18491_v43  ;;  %v5328_v34 = vperm.slane %v14437_v3, %v18491_v43  ;;  %v5408_v2 = vperm.slane %v14400_v11, %v18491_v43  ;;  %v18588_v3 = vld [vmem:[#allocation40_spill] sm:$0xff] }
 0x88f   : > { %v5236_v36 = vsel %vm17682_vm12, %v5225_v53, %v5235_v4  ;;  %v5228_v57 = vsel %vm17773_vm7, %v5227_v61, %v5226_v19  ;;  %v5411_v58 = vperm.slane %v14449_v42, %v18491_v43  ;;  %v5229_v25 = vperm.slane %v14348_v9, %v18490_v46  ;;  %v18569_v19 = vld [vmem:[#allocation100_spill] sm:$0xff]  ;;  %v18570_v4 = vld [vmem:[#allocation114_spill] sm:$0xff] }
 0x890   : > { %v5309_v54 = vperm.slane %v14154_v8, %v18490_v46  ;;  %v5230_v55 = vperm.slane %v14151_v62, %v18491_v43  ;;  %v5404_v11 = vperm.slane %v14395_v12, %v18490_v46  ;;  %v5783_v44 = vmul.f32 %v14469_v32, %v18559_v33 }
 0x891   : > { %v5237_v42 = vsel %vm17681_vm13, %v5228_v57, %v5236_v36  ;;  %v5308_v9 = vsel %vm17773_vm7, %v5307_v48, %v5306_v59  ;;  %v5312_v8 = vperm.slane %v14368_v37, %v18490_v46  ;;  %v5316_v62 = vperm.slane %v14375_v29, %v18491_v43  ;;  %v18564_v37 = vld [vmem:[#allocation42_spill] sm:$0xff] }
 0x892   : > { %v5405_v23 = vperm.slane %v18561_v63, %v18491_v43  ;;  %v5409_v12 = vsel %vm17773_vm7, %v5408_v2, %v5407_v27  ;;  %v5414_v50 = vperm.slane %v18562_v0, %v18491_v43  ;;  %v5231_v24 = vsel %vm17773_vm7, %v5230_v55, %v5229_v25  ;;  %v18565_v29 = vld [vmem:[#allocation106_spill] sm:$0xff]  ;;  %v18571_v2 = vld [vmem:[#allocation51_spill] sm:$0xff]  ;;  %v18572_v25 = vld [vmem:[#allocation125_spill] sm:$0xff] }
 0x893   : > { %v5311_v47 = vsel %vm17773_vm7, %v5310_v6, %v5309_v54  ;;  %v5313_v52 = vperm.slane %v18564_v37, %v18491_v43  ;;  %v5410_v60 = vperm.slane %v18565_v29, %v18490_v46  ;;  %v5413_v18 = vperm.slane %v18567_v20, %v18490_v46  ;;  %v18568_v6 = vld [vmem:[#allocation67_spill] sm:$0xff]  ;;  %v18573_v55 = vld [vmem:[#allocation56_spill] sm:$0xff] }
 0x894   : > { %v5330_v61 = vsel %vm17785_vm8, %v5311_v47, %v5308_v9  ;;  %v5406_v49 = vsel %vm17773_vm7, %v5405_v23, %v5404_v11  ;;  %v5807_v59 = vsel %vm5797_vm4, %v5783_v44, 0.0  ;;  %v5318_v31 = vperm.slane %v18568_v6, %v18490_v46  ;;  %v18574_v9 = vld [vmem:[#allocation110_spill] sm:$0xff]  ;;  %v18578_v47 = vld [vmem:[#allocation81_spill] sm:$0xff] }
 0x895   : > { %v14505_v10 = vpop.permute.xlu2 %5485  ;;  %v5314_v51 = vsel %vm17773_vm7, %v5313_v52, %v5312_v8  ;;  %v5317_v1 = vsel %vm17773_vm7, %v5316_v62, %v5315_v35  ;;  %v5428_v22 = vsel %vm17785_vm8, %v5409_v12, %v5406_v49  ;;  %v5321_v53 = vperm.slane %v18569_v19, %v18490_v46  ;;  %v18576_v12 = vld [vmem:[#allocation50_spill] sm:$0xff] }
 0x896   : > { %v5784_v28 = vmul.f32 %v14505_v10, %v18563_v26  ;;  %v5415_v16 = vsel %vm17773_vm7, %v5414_v50, %v5413_v18  ;;  %v5419_v48 = vperm.slane %v18570_v4, %v18490_v46  ;;  %v5412_v36 = vsel %vm17773_vm7, %v5411_v58, %v5410_v60  ;;  %v18575_v58 = vld [vmem:[#allocation172_spill] sm:$0xff]  ;;  %v14698_v60 = vpop.permute.xlu0 %5518  ;;  %v18582_v19 = vld [vmem:[#allocation86_spill] sm:$0xff] }
 0x897   : > { %v5417_v57 = vperm.slane %v18571_v2, %v18491_v43  ;;  %v5423_v35 = vperm.slane %v18572_v25, %v18491_v43  ;;  %v5420_v11 = vperm.slane %v18573_v55, %v18491_v43  ;;  %v5331_v44 = vsel %vm17782_vm9, %v5314_v51, %v5330_v61  ;;  %18579 = vst [vmem:[#allocation154_spill] sm:$0xff] %v14698_v60  ;;  %v14700_v61 = vpop.permute.xlu1 %8450  ;;  %v18585_v25 = vld [vmem:[#allocation33_spill] sm:$0xff] }
 0x898   : > { %v5808_v27 = vsel %vm5797_vm4, %v5784_v28, 0.0  ;;  %v5325_v8 = vperm.slane %v18574_v9, %v18491_v43  ;;  %v5429_v62 = vsel %vm17782_vm9, %v5412_v36, %v5428_v22  ;;  %v5332_v63 = vsel %vm17735_vm10, %v5317_v1, %v5331_v44 }
 0x899   : > { %v5809_v54 = vadd.f32 %v5808_v27, %v5807_v59  ;;  %v5322_v23 = vperm.slane %v18575_v58, %v18491_v43  ;;  %v5422_v0 = vperm.slane %v18576_v12, %v18490_v46  ;;  %v5430_v50 = vsel %vm17735_vm10, %v5415_v16, %v5429_v62  ;;  %v18584_v27 = vld [vmem:[#allocation36_spill] sm:$0xff] }
 0x89a   : > { %v14692_v28 = vsel %vm18577_vm2, %v5231_v24, %v5237_v42  ;;  %v5425_v37 = vperm.slane %v18578_v47, %v18490_v46  ;;  %v5320_v52 = vsel %vm17773_vm7, %v5319_v30, %v5318_v31  ;;  %v5421_v29 = vsel %vm17773_vm7, %v5420_v11, %v5419_v48  ;;  %v18580_v24 = vld [vmem:[#allocation178_spill] sm:$0xff]  ;;  %v18581_v31 = vld [vmem:[#allocation64_spill] sm:$0xff] }
 0x89b   : > { %v5323_v49 = vsel %vm17773_vm7, %v5322_v23, %v5321_v53  ;;  %v5418_v20 = vsel %vm17773_vm7, %v5417_v57, %v5416_v7  ;;  %v5424_v18 = vsel %vm17773_vm7, %v5423_v35, %v5422_v0  ;;  %v5810_v59 = vrot.slane %v5809_v54, 4 }
 0x89c   : > { %v5333_v42 = vsel %vm17683_vm11, %v5320_v52, %v5332_v63  ;;  %v5327_v51 = vperm.slane %v18580_v24, %v18490_v46  ;;  %v5326_v30 = vsel %vm17773_vm7, %v5325_v8, %v5324_v41  ;;  %v5431_v6 = vsel %vm17683_vm11, %v5418_v20, %v5430_v50  ;;  %v18583_v41 = vld [vmem:[#allocation84_spill] sm:$0xff] }
 0x89d   : > { %v14507_v45 = vpop.permute.xlu2 %5494  ;;  %v5426_v1 = vperm.slane %v18581_v31, %v18491_v43  ;;  %v5432_v7 = vsel %vm17682_vm12, %v5421_v29, %v5431_v6  ;;  %v5526_v22 = vperm.slane %v14469_v32, %v18490_v46  ;;  %v5523_v53 = vperm.slane %v18582_v19, %v18490_v46 }
 0x89e   : > { %v5334_v4 = vsel %vm17682_vm12, %v5323_v49, %v5333_v42  ;;  %v5433_v40 = vsel %vm17681_vm13, %v5424_v18, %v5432_v7  ;;  %v5529_v48 = vperm.slane %v18583_v41, %v18490_v46  ;;  %v5530_v36 = vperm.slane %v18584_v27, %v18491_v43  ;;  %v8449_v49 = vpop.permute.xlu0 %8448  ;;  %v18594_v42 = vld [vmem:[#allocation24_spill] sm:$0xff] }
 0x89f   : > { %v5524_v2 = vperm.slane %v14503_v17, %v18491_v43  ;;  %v5527_v32 = vperm.slane %v14505_v10, %v18491_v43  ;;  %v5811_v57 = vadd.f32 %v5810_v59, %v5809_v54  ;;  %v5533_v35 = vperm.slane %v18585_v25, %v18491_v43  ;;  %v14769_v20 = vpop.permute.xlu1 %8456 }
 0x8a0   : > { %v14737_v55 = vsel %vm18586_vm3, %v14606_v56, %v14600_v15  ;;  %v5329_v11 = vsel %vm17773_vm7, %v5328_v34, %v5327_v51  ;;  %v5335_v44 = vsel %vm17681_vm13, %v5326_v30, %v5334_v4  ;;  %v5427_v9 = vsel %vm17773_vm7, %v5426_v1, %v5425_v37  ;;  %v18589_v34 = vld [vmem:[#allocation26_spill] sm:$0xff]  ;;  %v18590_v37 = vld [vmem:[#allocation41_spill] sm:$0xff]  ;;  %18591 = vst [vmem:[#allocation113_spill] sm:$0xff] %v14769_v20  ;;  %v18595_v51 = vld [vmem:[#allocation32_spill] sm:$0xff] }
 0x8a1   : > { %v5532_v10 = vperm.slane %v14507_v45, %v18490_v46  ;;  %v5528_v54 = vsel %vm17773_vm7, %v5527_v32, %v5526_v22  ;;  %v5525_v8 = vsel %vm17773_vm7, %v5524_v2, %v5523_v53  ;;  %v14750_v62 = vsel %vm18587_vm5, %v5427_v9, %v5433_v40 }
 0x8a2   : > { %v5531_v15 = vsel %vm17773_vm7, %v5530_v36, %v5529_v48  ;;  %v5535_v56 = vperm.slane %v18588_v3, %v18490_v46  ;;  %v5438_v63 = vmul.f32 %v14692_v28, %v18589_v34  ;;  %v5812_v58 = vrot.slane %v5811_v57, 2 }
 0x8a3   : > { %v5534_v23 = vsel %vm17773_vm7, %v5533_v35, %v5532_v10  ;;  %v5538_v12 = vperm.slane %v14487_v39, %v18490_v46  ;;  %v5539_v0 = vperm.slane %v14489_v38, %v18491_v43  ;;  %v5547_v47 = vsel %vm17785_vm8, %v5528_v54, %v5525_v8  ;;  %v18593_v38 = vld [vmem:[#allocation27_spill] sm:$0xff]  ;;  %v18596_v35 = vld [vmem:[#allocation25_spill] sm:$0xff] }
 0x8a4   : > { %v5781_v52 = vmul.f32 %v18582_v19, %v18590_v37  ;;  %v5542_v29 = vperm.slane %v14635_v5, %v18491_v43  ;;  %v14772_v18 = vsel %vm18592_vm0, %v5329_v11, %v5335_v44  ;;  %v5548_v39 = vsel %vm17782_vm9, %v5531_v15, %v5547_v47  ;;  %v18616_v5 = vld [vmem:[#allocation21_spill] sm:$0xff] }
 0x8a5   : > { %v14526_v21 = vpop.permute.xlu2 %5503  ;;  %v5439_v59 = vmul.f32 %v14737_v55, %v18593_v38  ;;  %v5441_v24 = vmul.f32 %v14750_v62, %v18594_v42  ;;  %v5782_v30 = vmul.f32 %v14503_v17, %v18595_v51  ;;  %v5549_v31 = vsel %vm17735_vm10, %v5534_v23, %v5548_v39 }
 0x8a6   : > { %v5536_v50 = vperm.slane %v14526_v21, %v18491_v43  ;;  %v5813_v7 = vadd.f32 %v5812_v58, %v5811_v57  ;;  %v5540_v22 = vsel %vm17773_vm7, %v5539_v0, %v5538_v12  ;;  %v5544_v53 = vperm.slane %v14698_v60, %v18490_v46  ;;  %v14799_v8 = vpop.permute.xlu0 %8454 }
 0x8a7   : > { %v5440_v4 = vadd.f32 %v5439_v59, %v5438_v63  ;;  %v5798_v40 = vsel %vm5797_vm4, %v5781_v52, 0.0  ;;  %v5799_v32 = vsel %vm5797_vm4, %v5782_v30, 0.0  ;;  %v5443_v11 = vmul.f32 %v14772_v18, %v18596_v35  ;;  %v14801_v15 = vpop.permute.xlu1 %8462 }
 0x8a8   : > { %v5537_v1 = vsel %vm17773_vm7, %v5536_v50, %v5535_v56  ;;  %v5814_v44 = vrot.slane %v5813_v7, 1  ;;  %v5800_v9 = vadd.f32 %v5799_v32, %v5798_v40  ;;  %18597 = vst [vmem:[#allocation159_spill] sm:$0xff] %v14801_v15  ;;  %v14826_v40 = vmul.f32 %v8449_v49, %v18595_v51  ;;  %v18610_v51 = vld [vmem:[#allocation46_spill] sm:$0xff] }
 0x8a9   : > { %v5550_v36 = vsel %vm17683_vm11, %v5537_v1, %v5549_v31  ;;  %v5442_v2 = vadd.f32 %v5441_v24, %v5440_v4 }
 0x8aa   : > { %v5551_v57 = vsel %vm17682_vm12, %v5540_v22, %v5550_v36  ;;  %v14806_v58 = vadd.f32 %v5814_v44, %v5813_v7  ;;  %v5801_v23 = vrot.slane %v5800_v9, 4  ;;  %18606 = vst [vmem:[#allocation195_spill] sm:$0xff] %v14826_v40 }
 0x8ab   : > { %v5444_v56 = vsub.f32 %v5442_v2, %v5443_v11 }
 0x8ac   : > { %18599 = vst [vmem:[#allocation133_spill] sm:$0xff] %v14806_v58  ;;  %v6028_v47 = vand.u32 2139095040, %v14806_v58  ;;  %v5802_v52 = vadd.f32 %v5801_v23, %v5800_v9 }
 0x8ad   : > { %v14584_v13 = vpop.permute.xlu2 %5512 }
 0x8ae   : > { %18558 = vst [vmem:[#allocation54_spill] sm:$0xff] %v14584_v13  ;;  %v5541_v6 = vperm.slane %v14584_v13, %v18490_v46  ;;  %v6029_v59 = vshrl.u32 %v6028_v47, 23  ;;  %v5803_v24 = vrot.slane %v5802_v52, 2  ;;  %v18617_v13 = vperm.slane %v18616_v5, 7 }
 0x8af   : > { %v14815_v39 = vpop.permute.xlu1 %8468 }
 0x8b0   : > { %v5543_v48 = vsel %vm17773_vm7, %v5542_v29, %v5541_v6  ;;  %v14813_v29 = vpop.permute.xlu0 %8460  ;;  %18602 = vst [vmem:[#allocation85_spill] sm:$0xff] %v14815_v39  ;;  %v9689_v30 = vadd.s32 4294967169, %v6029_v59  ;;  %v5804_v6 = vadd.f32 %v5803_v24, %v5802_v52 }
 0x8b1   : > { %v5552_v10 = vsel %vm17681_vm13, %v5543_v48, %v5551_v57  ;;  %18601 = vst [vmem:[#allocation182_spill] sm:$0xff] %v14813_v29  ;;  %v18607_v48 = vld [vmem:[#allocation22_spill] sm:$0xff] }
 0x8b2   : > { %v6035_v22 = vadd.s32 1, %v9689_v30  ;;  %v18613_v30 = vld [vmem:[#allocation20_spill] sm:$0xff] }
 0x8b4   : > { %vm6036_vm14 = vcmp.gt.s32.totalorder %v6035_v22, 0 }
 0x8b5   : > { %v14656_v14 = vpop.permute.xlu2 %5521  ;;  %v6037_v57 = vsel %vm6036_vm14, %v6035_v22, 0 }
 0x8b6   : > { %18566 = vst [vmem:[#allocation161_spill] sm:$0xff] %v14656_v14  ;;  %v5545_v17 = vperm.slane %v14656_v14, %v18491_v43  ;;  %v6039_v9 = vand.u32 31, %v6037_v57  ;;  %v5445_v43 = vmul.f32 %v14772_v18, %v18589_v34 }
 0x8b7   : > { %v14821_v7 = vpop.permute.xlu1 %8474 }
 0x8b8   : > { %v5546_v54 = vsel %vm17773_vm7, %v5545_v17, %v5544_v53  ;;  %v14819_v1 = vpop.permute.xlu0 %8466  ;;  %18604 = vst [vmem:[#allocation122_spill] sm:$0xff] %v14821_v7  ;;  %v5805_v53 = vrot.slane %v5804_v6, 1  ;;  %v17644_v17 = vperm.slane %v18607_v48, 2  ;;  %v14846_v47 = vsub.s32 32, %v6039_v9 }
 0x8b9   : > { %v14804_v63 = vsel %vm18598_vm1, %v5546_v54, %v5552_v10  ;;  %18603 = vst [vmem:[#allocation185_spill] sm:$0xff] %v14819_v1  ;;  %v18609_v10 = vld [vmem:[#allocation82_spill] sm:$0xff]  ;;  %v5786_v54 = vmul.f32 %v18584_v27, %v18610_v51 }
 0x8ba   : > { %v5559_v12 = vmul.f32 %v14804_v63, %v5444_v56  ;;  %v14823_v4 = vadd.f32 %v5805_v53, %v5804_v6  ;;  %v5785_v49 = vmul.f32 %v18583_v41, %v18609_v10  ;;  %v17647_v6 = vmov 920167782  }
 0x8bb   : > { %v5817_v24 = vsel %vm5797_vm4, %v5786_v54, 0.0 }
 0x8bc   : > { %v5560_v50 = vsel %vm18600_vm6, %v5559_v12, 0.0  ;;  %18605 = vst [vmem:[#allocation192_spill] sm:$0xff] %v14823_v4  ;;  %v5873_v44 = vand.u32 2139095040, %v14823_v4  ;;  %v5816_v59 = vsel %vm5797_vm4, %v5785_v49, 0.0  ;;  %v6054_v49 = vshll.u32 %v17647_v6, %v6039_v9 }
 0x8bd   : > { %v14720_v16 = vpop.permute.xlu2 %8446  ;;  %5561 = vadd.xlane.f32.xlu0 %v5560_v50  ;;  %v5818_v53 = vadd.f32 %v5817_v24, %v5816_v59 }
 0x8be   : > { %v5874_v56 = vshrl.u32 %v5873_v44, 23 }
 0x8bf   : > { %v8523_v2 = vpop.permute.xlu1 %8522 }
 0x8c0   : > { %v14829_v36 = vpop.permute.xlu0 %8472  ;;  %v8632_v32 = vmul.f32 %v8523_v2, %v14826_v40  ;;  %v9686_v41 = vadd.s32 4294967169, %v5874_v56  ;;  %v14863_v56 = vmul.f32 %v14720_v16, %v18590_v37  ;;  %v17677_v37 = vmov 683565275  }
 0x8c1   : > { %18608 = vst [vmem:[#allocation103_spill] sm:$0xff] %v14829_v36  ;;  %v18618_v40 = vand.u32 2147483647, %v14806_v58  ;;  %v18623_v58 = vmov 2102212464  }
 0x8c2   : > { %8667 = vperm.xlu2 %9992, %v8632_v32   ;;  %v17660_v32 = vmov 2102212464   ;;  %v5880_v54 = vadd.s32 1, %v9686_v41  ;;  %18615 = vst [vmem:[#allocation189_spill] sm:$0xff] %v14863_v56  ;;  %v18624_v36 = vmov 2475754826  }
 0x8c3   : > { %v6051_v44 = vshll.u32 %v17660_v32, %v6039_v9  ;;  %v6049_v24 = vshrl.u32 %v17660_v32, %v14846_v47  ;;  %v6032_v46 = vand.u32 8388607, %v18618_v40  ;;  %v5446_v32 = vmul.f32 %v14750_v62, %v18593_v38 }
 0x8c4   : > { %vm5881_vm15 = vcmp.gt.s32.totalorder %v5880_v54, 0 }
 0x8c5   : > { %v8453_v19 = vpop.permute.xlu2 %8452  ;;  %v5882_v40 = vsel %vm5881_vm15, %v5880_v54, 0 }
 0x8c6   : > { %v14842_v23 = vmul.f32 %v8453_v19, %v18563_v26  ;;  %v6052_v26 = vshrl.u32 %v17647_v6, %v14846_v47  ;;  %v17645_v19 = vmov 1326507024   ;;  %v5884_v54 = vand.u32 31, %v5882_v40 }
 0x8c7   : > { %v8536_v50 = vpop.permute.xlu1 %8535  ;;  %v6055_v22 = vshrl.u32 %v17645_v19, %v14846_v47  ;;  %v17662_v19 = vmov 2131351028  }
 0x8c8   : > { %18611 = vst [vmem:[#allocation128_spill] sm:$0xff] %v14842_v23  ;;  %v14844_v12 = vpop.permute.xlu0 %8548  ;;  %v8634_v52 = vmul.f32 %v8536_v50, %v14842_v23  ;;  %v14865_v50 = vshrl.u32 %v6037_v57, 5  ;;  %v6046_v59 = vshrl.u32 %v17662_v19, %v14846_v47  ;;  %v6053_v6 = vor.u32 %v6052_v26, %v6051_v44 }
 0x8c9   : > { %18612 = vst [vmem:[#allocation186_spill] sm:$0xff] %v14844_v12  ;;  %v6056_v41 = vor.u32 %v6055_v22, %v6054_v49  ;;  %v5819_v23 = vrot.slane %v5818_v53, 4  ;;  %v6042_v57 = vshll.u32 %v17677_v37, %v6039_v9  ;;  %v6048_v60 = vshll.u32 %v17662_v19, %v6039_v9 }
 0x8ca   : > { %8673 = vperm.xlu2 %9992, %v8634_v52   ;;  %v17664_v52 = vmov 2475754826   ;;  %vm6060_vm2 = vcmp.lt.s32.totalorder %v14865_v50, 4  ;;  %vm6057_vm3 = vcmp.lt.s32.totalorder %v14865_v50, 1  ;;  %vm6059_vm5 = vcmp.lt.s32.totalorder %v14865_v50, 3 }
 0x8cb   : > { %v6045_v14 = vshll.u32 %v17664_v52, %v6039_v9  ;;  %v6066_v44 = vsel %vm6060_vm2, %v6053_v6, 920167782  ;;  %v6070_v5 = vsel %vm6060_vm2, %v6056_v41, 1326507024  ;;  %v17658_v9 = vand.u32 2147483647, %v14823_v4 }
 0x8cc   : > { %vm6058_vm0 = vcmp.lt.s32.totalorder %v14865_v50, 2  ;;  %v5890_v1 = vshll.u32 %v18624_v36, %v5884_v54  ;;  %v5447_v12 = vsub.f32 %v5445_v43, %v5446_v32 }
 0x8cd   : > { %v14809_v0 = vpop.permute.xlu2 %8458  ;;  %v14883_v22 = vor.u32 %v6046_v59, %v6045_v14  ;;  %v14898_v14 = vmul.f32 %v14700_v61, %v18559_v33 }
 0x8cf   : > { %18619 = vst [vmem:[#allocation162_spill] sm:$0xff] %v14898_v14 }
 0x8d0   : > { %v8517_v2 = vpop.permute.xlu0 %8516 }
 0x8d1   : > { %8779 = vperm.xlu0 %9986, %v17644_v17   ;;  %v6043_v17 = vshrl.u32 %v17664_v52, %v14846_v47  ;;  %v8631_v16 = vmul.f32 %v8517_v2, %v14863_v56  ;;  %v14885_v2 = vor.u32 %v6049_v24, %v6048_v60  ;;  %v18622_v56 = vmov 2131351028  }
 0x8d2   : > { %v5893_v7 = vshll.u32 %v18622_v56, %v5884_v54 }
 0x8d3   : > { %8664 = vperm.xlu1 %9991, %v8631_v16   ;;  %v14881_v26 = vor.u32 %v6043_v17, %v6042_v57  ;;  %v17659_v17 = vperm.slane %v18607_v48, 0  ;;  %v6033_v16 = vor.u32 8388608, %v6032_v46  ;;  %v6069_v46 = vsel %vm6057_vm3, %v14883_v22, %v14885_v2 }
 0x8d4   : > { %v14929_v57 = vsub.s32 32, %v5884_v54 }
 0x8d5   : > { %v14817_v31 = vpop.permute.xlu2 %8464  ;;  %v6065_v60 = vsel %vm6057_vm3, %v14881_v26, %v14883_v22  ;;  %v14925_v41 = vshll.u32 %v6033_v16, 8 }
 0x8d6   : > { %v5891_v4 = vshrl.u32 %v18622_v56, %v14929_v57 }
 0x8d8   : > { %v14977_v15 = vor.u32 %v5891_v4, %v5890_v1  ;;  %v6062_v4 = vsel %vm6060_vm2, %v14885_v2, 2102212464 }
 0x8d9   : > { %9995 = vset.pattern.permute.xlu0 %v18613_v30  ;;  %v14964_v30 = vshrl.u32 %v5882_v40, 5 }
 0x8db   : > { %vm5905_vm1 = vcmp.lt.s32.totalorder %v14964_v30, 4  ;;  %vm5902_vm15 = vcmp.lt.s32.totalorder %v14964_v30, 1  ;;  %vm5904_vm13 = vcmp.lt.s32.totalorder %v14964_v30, 3  ;;  %vm5903_vm11 = vcmp.lt.s32.totalorder %v14964_v30, 2 }
 0x8dd   : > { %v14832_v11 = vpop.permute.xlu2 %8470 }
 0x8e1   : > { %8613 = vperm.xlu0 %9995, %v18617_v13   ;;  %v5820_v13 = vadd.f32 %v5819_v23, %v5818_v53  ;;  %v6067_v23 = vsel %vm6059_vm5, %v14885_v2, %v6066_v44  ;;  %v6071_v53 = vsel %vm6059_vm5, %v6053_v6, %v6070_v5  ;;  %v5877_v6 = vand.u32 8388607, %v17658_v9 }
 0x8e2   : > { %v14919_v59 = vsel %vm6058_vm0, %v6065_v60, %v6067_v23  ;;  %v14923_v24 = vsel %vm6058_vm0, %v6069_v46, %v6071_v53  ;;  %v17679_v60 = vperm.slane %v18607_v48, 3  ;;  %v6074_v46 = vand.u32 65535, %v14925_v41 }
 0x8e3   : > { %v5821_v33 = vrot.slane %v5820_v13, 2  ;;  %v17674_v5 = vshrl.u32 %v14923_v24, 16  ;;  %v6075_v53 = vshrl.u32 %v14925_v41, 16  ;;  %v5878_v16 = vor.u32 8388608, %v5877_v6 }
 0x8e4   : > { %v5888_v9 = vshrl.u32 %v17664_v52, %v14929_v57  ;;  %v5887_v6 = vshll.u32 %v17677_v37, %v5884_v54  ;;  %v5894_v37 = vshrl.u32 %v18623_v58, %v14929_v57  ;;  %v18634_v2 = vperm.slane %v18607_v48, 6 }
 0x8e5   : > { %v14852_v27 = vpop.permute.xlu2 %8476  ;;  %v5822_v44 = vadd.f32 %v5821_v33, %v5820_v13  ;;  %v18620_v13 = vmov 920167782   ;;  %v14946_v23 = vmul.u32 %v17674_v5, %v6074_v46  ;;  %v5896_v5 = vshll.u32 %v18623_v58, %v5884_v54 }
 0x8e6   : > { %18614 = vst [vmem:[#allocation130_spill] sm:$0xff] %v14852_v27  ;;  %v5897_v33 = vshrl.u32 %v18620_v13, %v14929_v57  ;;  %v5899_v27 = vshll.u32 %v18620_v13, %v5884_v54  ;;  %v14988_v32 = vshll.u32 %v5878_v16, 8 }
 0x8e7   : > { %v6082_v20 = vshll.u32 %v14946_v23, 16 }
 0x8e8   : > { %v5898_v29 = vor.u32 %v5897_v33, %v5896_v5  ;;  %v14983_v5 = vor.u32 %v5894_v37, %v5893_v7  ;;  %v18628_v37 = vperm.slane %v18607_v48, 5 }
 0x8e9   : > { %8759 = vperm.xlu0 %9995, %v17659_v17   ;;  %v5823_v17 = vrot.slane %v5822_v44, 1 }
 0x8ea   : > { %v5911_v43 = vsel %vm5905_vm1, %v5898_v29, 920167782 }
 0x8ed   : > { %v8530_v49 = vpop.permute.xlu2 %8529 }
 0x8ee   : > { %v8633_v61 = vmul.f32 %v8530_v49, %v14898_v14  ;;  %v17676_v49 = vshrl.u32 %v14919_v59, 16  ;;  %v6076_v14 = vand.u32 65535, %v14923_v24 }
 0x8f0   : > { %8670 = vperm.xlu1 %9991, %v8633_v61   ;;  %v14950_v19 = vmul.u32 %v17676_v49, %v6074_v46  ;;  %v18621_v61 = vmov 1326507024   ;;  %v6098_v49 = vand.u32 65535, %v14919_v59  ;;  %v6078_v40 = vmul.u32 %v6076_v14, %v6074_v46 }
 0x8f1   : > { %v5900_v52 = vshrl.u32 %v18621_v61, %v14929_v57  ;;  %8798 = vperm.xlu0 %9995, %v17679_v60   ;;  %v14969_v60 = vor.u32 %v5888_v9, %v5887_v6  ;;  %v14975_v61 = vmul.u32 %v6076_v14, %v6075_v53  ;;  %v5448_v9 = vmul.f32 %v14737_v55, %v18594_v42 }
 0x8f2   : > { %v6104_v51 = vshll.u32 %v14950_v19, 16  ;;  %v6100_v6 = vmul.u32 %v6098_v49, %v6074_v46  ;;  %v14981_v58 = vmul.u32 %v6098_v49, %v6075_v53  ;;  %vm6086_vm6 = vc.u32 %v6078_v40, %v6082_v20 }
 0x8f3   : > { %v5901_v39 = vor.u32 %v5900_v52, %v5899_v27  ;;  %v14990_v27 = vadd.f32 %v5823_v17, %v5822_v44  ;;  %v5449_v52 = vadd.f32 %v5448_v9, %v5447_v12  ;;  %v6088_v1 = vadd.s32 %v6082_v20, %v6078_v40 }
 0x8f4   : > { %vm14992_vm14 = vc.u32 %v6100_v6, %v6104_v51  ;;  %v15000_v14 = vadd.s32 %v6104_v51, %v6100_v6  ;;  %v5450_v12 = vmul.f32 %v14692_v28, %v18596_v35  ;;  %v6084_v20 = vshll.u32 %v14975_v61, 16 }
 0x8f5   : > { %18625 = vst [vmem:[#allocation205_spill] sm:$0xff] %v14990_v27  ;;  %v5915_v7 = vsel %vm5905_vm1, %v5901_v39, 1326507024  ;;  %v17685_v17 = vshll.u32 %v14981_v58, 16  ;;  %v5910_v39 = vsel %vm5902_vm15, %v14969_v60, %v14977_v15  ;;  %v5912_v51 = vsel %vm5904_vm13, %v14983_v5, %v5911_v43  ;;  %v8543_v54 = vpop.permute.xlu2 %8542 }
 0x8f6   : > { %v18629_v44 = vmov 0   ;;  %v5914_v46 = vsel %vm5902_vm15, %v14977_v15, %v14983_v5  ;;  %v5916_v16 = vsel %vm5904_vm13, %v5898_v29, %v5915_v7  ;;  %v5451_v33 = vadd.f32 %v5450_v12, %v5449_v52 }
 0x8f7   : > { %v6087_v49 = vsel %vm6086_vm6, 1, %v18629_v44  ;;  %v18630_v40 = vshrl.u32 %v14923_v24, 16  ;;  %vm6090_vm12 = vc.u32 %v6088_v1, %v6084_v20  ;;  %v6109_v6 = vsel %vm14992_vm14, 1, %v18629_v44 }
 0x8f8   : > { %v18631_v43 = vshrl.u32 %v14919_v59, 16  ;;  %vm6112_vm6 = vc.u32 %v15000_v14, %v17685_v17  ;;  %v15035_v29 = vsel %vm5903_vm11, %v5910_v39, %v5912_v51  ;;  %v5563_v24 = vmul.f32 %v14804_v63, %v5451_v33 }
 0x8f9   : > { %8824 = vperm.xlu0 %9995, %v18628_v37   ;;  %v6081_v9 = vmul.u32 %v18630_v40, %v6075_v53  ;;  %v18632_v52 = vmov 683565275   ;;  %v15045_v59 = vsel %vm5903_vm11, %v5914_v46, %v5916_v16  ;;  %v6091_v20 = vsel %vm6090_vm12, 1, %v18629_v44 }
 0x8fa   : > { %v6103_v37 = vmul.u32 %v18631_v43, %v6075_v53  ;;  %v6041_v1 = vshrl.u32 %v18632_v52, %v14846_v47  ;;  %v18633_v53 = vld [vmem:[#allocation94_spill] sm:$0xff]  ;;  %v6113_v47 = vsel %vm6112_vm6, 1, %v18629_v44  ;;  %v5944_v33 = vshrl.u32 %v15035_v29, 16 }
 0x8fb   : > { %v6089_v7 = vadd.s32 %v6087_v49, %v6081_v9  ;;  %v5787_v12 = vmul.f32 %v14507_v45, %v18633_v53  ;;  %v6063_v49 = vsel %vm6059_vm5, %v14883_v22, %v6062_v4  ;;  %v17684_v45 = vshrl.u32 %v15045_v59, 16 }
 0x8fc   : > { %v6111_v39 = vadd.s32 %v6109_v6, %v6103_v37  ;;  %v6061_v51 = vsel %vm6057_vm3, %v6041_v1, %v14881_v26  ;;  %v6183_v46 = vand.u32 2139095040, %v14990_v27  ;;  %vm18635_vm12 = vcmask 130048   ;;  %v18637_v37 = vld [vmem:[#allocation109_spill] sm:$0xff] }
 0x8fd   : > { %v5564_v16 = vsel %vm18635_vm12, %v5563_v24, 0.0  ;;  %v6093_v40 = vadd.s32 %v6091_v20, %v6089_v7  ;;  %v5919_v26 = vand.u32 65535, %v14988_v32  ;;  %v15064_v9 = vpop.permute.xlu2 %8561  ;;  %v5825_v6 = vsel %vm5797_vm4, %v5787_v12, 0.0 }
 0x8fe   : > { %18636 = vst [vmem:[#allocation145_spill] sm:$0xff] %v15064_v9  ;;  %5565 = vadd.xlane.f32.xlu2 %v5564_v16  ;;  %v6115_v43 = vadd.s32 %v6113_v47, %v6111_v39  ;;  %v15069_v1 = vmul.f32 %v14526_v21, %v18637_v37  ;;  %v15073_v22 = vsel %vm6058_vm0, %v6061_v51, %v6063_v49  ;;  %v6083_v4 = vshrl.u32 %v14946_v23, 16  ;;  %v18639_v49 = vld [vmem:[#allocation43_spill] sm:$0xff] }
 0x8ff   : > { %v15076_v24 = vmul.u32 %v5944_v33, %v5919_v26  ;;  %v5240_v7 = vmul.f32 %v14692_v28, %v18593_v38  ;;  %v6105_v20 = vshrl.u32 %v14950_v19, 16  ;;  %v15083_v12 = vmul.u32 %v17684_v45, %v5919_v26 }
 0x900   : > { %v6184_v39 = vshrl.u32 %v6183_v46, 23  ;;  %v15087_v21 = vmul.f32 %v14799_v8, %v18609_v10  ;;  %v6094_v50 = vadd.s32 %v6093_v40, %v6083_v4  ;;  %v5943_v51 = vand.u32 65535, %v15035_v29 }
 0x901   : > { %8837 = vperm.xlu0 %9995, %v18634_v2   ;;  %v5143_v23 = vmul.f32 %v14737_v55, %v18589_v34  ;;  %v5338_v47 = vmul.f32 %v14772_v18, %v18594_v42  ;;  %v6116_v2 = vadd.s32 %v6115_v43, %v6105_v20  ;;  %v5921_v19 = vand.u32 65535, %v15045_v59 }
 0x902   : > { %18638 = vst [vmem:[#allocation207_spill] sm:$0xff] %v15087_v21  ;;  %v5788_v16 = vmul.f32 %v18585_v25, %v18639_v49  ;;  %v8635_v46 = vmul.f32 %v8543_v54, %v15087_v21  ;;  %v6085_v8 = vshrl.u32 %v14975_v61, 16  ;;  %v5949_v10 = vshll.u32 %v15076_v24, 16 }
 0x903   : > { %v18640_v40 = vmov 1   ;;  %v5241_v29 = vsub.f32 %v5143_v23, %v5240_v7  ;;  %v5436_v4 = vmul.f32 %v14750_v62, %v18596_v35  ;;  %v6107_v45 = vshrl.u32 %v14981_v58, 16 }
 0x904   : > { %v5920_v43 = vshrl.u32 %v14988_v32, 16  ;;  %v5927_v20 = vshll.u32 %v15083_v12, 16  ;;  %v9692_v17 = vadd.s32 4294967169, %v6184_v39  ;;  %v15106_v25 = vadd.s32 %v6094_v50, %v6085_v8 }
 0x905   : > { %v6118_v61 = vmul.u32 %v14925_v41, %v15073_v22  ;;  %v5945_v54 = vmul.u32 %v5943_v51, %v5919_v26  ;;  %v5339_v21 = vsub.f32 %v5241_v29, %v5338_v47  ;;  %v5923_v7 = vmul.u32 %v5921_v19, %v5919_v26  ;;  %v8575_v41 = vpop.permute.xlu2 %8574 }
 0x906   : > { %v15110_v23 = vmul.u32 %v5921_v19, %v5920_v43  ;;  %v5826_v48 = vsel %vm5797_vm4, %v5788_v16, 0.0  ;;  %v18641_v9 = vshll.u32 %v14981_v58, 16  ;;  %v15118_v39 = vmul.u32 %v5943_v51, %v5920_v43 }
 0x907   : > { %vm15120_vm2 = vc.u32 %v5945_v54, %v5949_v10  ;;  %v5437_v22 = vsub.f32 %v5339_v21, %v5436_v4  ;;  %vm5931_vm3 = vc.u32 %v5923_v7, %v5927_v20  ;;  %v6190_v26 = vadd.s32 1, %v9692_v17 }
 0x908   : > { %v15116_v49 = vadd.s32 %v15000_v14, %v18641_v9  ;;  %v15126_v47 = vmul.f32 %v14817_v31, %v18637_v37  ;;  %v15130_v58 = vadd.s32 %v5949_v10, %v5945_v54  ;;  %v5827_v14 = vadd.f32 %v5826_v48, %v5825_v6  ;;  %v18645_v37 = vld [vmem:[#allocation45_spill] sm:$0xff]  ;;  %v8556_v54 = vpop.permute.xlu1 %8555 }
 0x909   : > { %10000 = vset.pattern.permute.xlu0 %v18640_v40  ;;  %v6117_v40 = vadd.s32 %v6116_v2, %v6107_v45  ;;  %v5933_v45 = vadd.s32 %v5927_v20, %v5923_v7  ;;  %v5555_v9 = vmul.f32 %v14804_v63, %v5437_v22  ;;  %v5929_v2 = vshll.u32 %v15110_v23, 16 }
 0x90a   : > { %8676 = vperm.xlu0 %10000, %v8635_v46   ;;  %18644 = vst [vmem:[#allocation166_spill] sm:$0xff] %v15126_v47  ;;  %vm6120_vm5 = vc.u32 %v15106_v25, %v15116_v49  ;;  %v5948_v19 = vmul.u32 %v5944_v33, %v5920_v43  ;;  %v8640_v21 = vmul.f32 %v8575_v41, %v15126_v47  ;;  %v5932_v17 = vsel %vm5931_vm3, 1, %v18629_v44 }
 0x90b   : > { %v6121_v51 = vadd.s32 1, %v6117_v40  ;;  %v5951_v16 = vshll.u32 %v15118_v39, 16  ;;  %v5954_v31 = vsel %vm15120_vm2, 1, %v18629_v44  ;;  %v5789_v46 = vmul.f32 %v18588_v3, %v18645_v37  ;;  %vm18652_vm2 = vmmov %vm18635_vm12 }
 0x90c   : > { %vm15142_vm0 = vc.u32 %v5933_v45, %v5929_v2  ;;  %vm6191_vm14 = vcmp.gt.s32.totalorder %v6190_v26, 0  ;;  %v5452_v33 = vmul.f32 %v14750_v62, %v18589_v34  ;;  %v5453_v6 = vmul.f32 %v14772_v18, %v18593_v38 }
 0x90d   : > { %v18648_v8 = vshrl.u32 %v15045_v59, 16  ;;  %vm5957_vm6 = vc.u32 %v15130_v58, %v5951_v16  ;;  %v5828_v3 = vrot.slane %v5827_v14, 4  ;;  %v5556_v29 = vsel %vm18635_vm12, %v5555_v9, 0.0  ;;  %v8595_v7 = vpop.permute.xlu2 %8594 }
 0x90e   : > { %v6122_v4 = vsel %vm6120_vm5, %v6121_v51, %v6117_v40  ;;  %v5956_v20 = vadd.s32 %v5954_v31, %v5948_v19  ;;  %v5454_v62 = vadd.f32 %v5453_v6, %v5452_v33  ;;  %v5455_v34 = vmul.f32 %v14692_v28, %v18594_v42  ;;  %v18649_v40 = vld [vmem:[#allocation60_spill] sm:$0xff] }
 0x90f   : > { %v5926_v10 = vmul.u32 %v18648_v8, %v5920_v43  ;;  %v5936_v38 = vsel %vm15142_vm0, 1, %v18629_v44  ;;  %v6192_v59 = vsel %vm6191_vm14, %v6190_v26, 0  ;;  %v5834_v43 = vsel %vm5797_vm4, %v5789_v46, 0.0 }
 0x910   : > { %v5958_v50 = vsel %vm5957_vm6, 1, %v18629_v44  ;;  %v15169_v41 = vmul.f32 %v14832_v11, %v18649_v40  ;;  %v5456_v22 = vsub.f32 %v5454_v62, %v5455_v34  ;;  %v5457_v28 = vmul.f32 %v14737_v55, %v18596_v35 }
 0x911   : > { %v5934_v18 = vadd.s32 %v5932_v17, %v5926_v10  ;;  %v15173_v42 = vadd.s32 %v6122_v4, %v6118_v61  ;;  %v5835_v45 = vsel %vm5797_vm4, %v15069_v1, 0.0  ;;  %v5829_v9 = vadd.f32 %v5828_v3, %v5827_v14 }
 0x912   : > { %8691 = vperm.xlu0 %10000, %v8640_v21   ;;  %18650 = vst [vmem:[#allocation209_spill] sm:$0xff] %v15169_v41  ;;  %v15179_v26 = vmul.f32 %v14809_v0, %v18633_v53  ;;  %v6194_v51 = vand.u32 31, %v6192_v59  ;;  %v5836_v2 = vadd.f32 %v5835_v45, %v5834_v43  ;;  %v8643_v19 = vmul.f32 %v8595_v7, %v15169_v41 }
 0x913   : > { %v5458_v11 = vadd.f32 %v5457_v28, %v5456_v22  ;;  %v5938_v21 = vadd.s32 %v5936_v38, %v5934_v18  ;;  %v5960_v17 = vadd.s32 %v5958_v50, %v5956_v20  ;;  %v5886_v35 = vshrl.u32 %v18632_v52, %v14929_v57 }
 0x914   : > { %18651 = vst [vmem:[#allocation211_spill] sm:$0xff] %v15179_v26  ;;  %v8637_v31 = vmul.f32 %v8556_v54, %v15179_v26  ;;  %v5928_v1 = vshrl.u32 %v15083_v12, 16  ;;  %v5950_v0 = vshrl.u32 %v15076_v24, 16  ;;  %v5830_v53 = vrot.slane %v5829_v9, 2  ;;  %v8569_v12 = vpop.permute.xlu1 %8568 }
 0x915   : > { %v5567_v55 = vmul.f32 %v14804_v63, %v5458_v11  ;;  %v6124_v61 = vadd.s32 536870912, %v15173_v42  ;;  %v15189_v14 = vsub.s32 32, %v6194_v51  ;;  %v5837_v46 = vrot.slane %v5836_v2, 4 }
 0x916   : > { %8682 = vperm.xlu2 %9992, %v8637_v31   ;;  %v5939_v33 = vadd.s32 %v5938_v21, %v5928_v1  ;;  %v5961_v6 = vadd.s32 %v5960_v17, %v5950_v0  ;;  %v5906_v63 = vsel %vm5902_vm15, %v5886_v35, %v14969_v60  ;;  %v5907_v57 = vsel %vm5905_vm1, %v14983_v5, 2102212464 }
 0x917   : > { %v5568_v48 = vsel %vm18652_vm2, %v5567_v55, 0.0  ;;  %v17689_v24 = vand.u32 2147483647, %v14990_v27  ;;  %v5930_v8 = vshrl.u32 %v15110_v23, 16  ;;  %v5952_v10 = vshrl.u32 %v15118_v39, 16 }
 0x918   : > { %v5831_v3 = vadd.f32 %v5830_v53, %v5829_v9  ;;  %v15205_v20 = vshrl.u32 %v6124_v61, 30  ;;  %v6207_v60 = vshrl.u32 %v18620_v13, %v15189_v14  ;;  %v18655_v54 = vmov 1326507024   ;;  %v18659_v61 = vld [vmem:[#allocation85_spill] sm:$0xff] }
 0x919   : > { %v6210_v5 = vshrl.u32 %v18655_v54, %v15189_v14  ;;  %v5838_v62 = vadd.f32 %v5837_v46, %v5836_v2  ;;  %v15211_v34 = vadd.s32 %v5939_v33, %v5930_v8  ;;  %v15216_v23 = vadd.s32 %v15130_v58, %v5951_v16 }
 0x91a   : > { %5557 = vadd.xlane.f32.xlu1 %v5556_v29  ;;  %8700 = vperm.xlu0 %10000, %v8643_v19   ;;  %v18653_v29 = vld [vmem:[#allocation159_spill] sm:$0xff]  ;;  %v5962_v18 = vadd.s32 %v5961_v6, %v5952_v10  ;;  %v6198_v38 = vshrl.u32 %v18624_v36, %v15189_v14  ;;  %v6201_v43 = vshrl.u32 %v18622_v56, %v15189_v14  ;;  %v18656_v7 = vmov 2102212464  }
 0x91b   : > { %v15203_v4 = vmul.f32 %v18653_v29, %v18645_v37  ;;  %v6206_v50 = vshll.u32 %v18656_v7, %v6194_v51  ;;  %v6209_v22 = vshll.u32 %v18620_v13, %v6194_v51  ;;  %v15225_v28 = vshrl.u32 %v6192_v59, 5 }
 0x91c   : > { %v6197_v39 = vshll.u32 %v18632_v52, %v6194_v51  ;;  %v6204_v58 = vshrl.u32 %v18656_v7, %v15189_v14  ;;  %v5832_v16 = vrot.slane %v5831_v3, 1  ;;  %v6200_v45 = vshll.u32 %v18624_v36, %v6194_v51  ;;  %v8588_v1 = vpop.permute.xlu1 %8587 }
 0x91d   : > { %18654 = vst [vmem:[#allocation121_spill] sm:$0xff] %v15203_v4  ;;  %v8639_v37 = vmul.f32 %v8569_v12, %v15203_v4  ;;  %v6208_v9 = vor.u32 %v6207_v60, %v6206_v50  ;;  %v6211_v2 = vor.u32 %v6210_v5, %v6209_v22  ;;  %v5839_v19 = vrot.slane %v5838_v62, 2 }
 0x91e   : > { %v6126_v11 = vshll.u32 %v15205_v20, 30  ;;  %v5908_v21 = vsel %vm5904_vm13, %v14977_v15, %v5907_v57  ;;  %v6187_v59 = vand.u32 8388607, %v17689_v24  ;;  %v6203_v17 = vshll.u32 %v18622_v56, %v6194_v51  ;;  %v18658_v15 = vld [vmem:[#allocation116_spill] sm:$0xff] }
 0x91f   : > { %8688 = vperm.xlu2 %9992, %v8639_v37   ;;  %vm5965_vm1 = vc.u32 %v15211_v34, %v15216_v23  ;;  %v5966_v31 = vadd.s32 1, %v5962_v18  ;;  %v15240_v55 = vor.u32 %v6198_v38, %v6197_v39  ;;  %v15242_v35 = vor.u32 %v6201_v43, %v6200_v45  ;;  %v8608_v43 = vpop.permute.xlu2 %8607  ;;  %v18661_v39 = vld [vmem:[#allocation155_spill] sm:$0xff] }
 0x920   : > { %v15244_v0 = vor.u32 %v6204_v58, %v6203_v17  ;;  %vm6215_vm15 = vcmp.lt.s32.totalorder %v15225_v28, 4  ;;  %v15247_v53 = vadd.f32 %v5832_v16, %v5831_v3  ;;  %v15251_v46 = vmul.f32 %v18659_v61, %v18658_v15 }
 0x921   : > { %v6221_v51 = vsel %vm6215_vm15, %v6208_v9, 920167782  ;;  %v5840_v33 = vadd.f32 %v5839_v19, %v5838_v62  ;;  %v15258_v6 = vsub.s32 %v15173_v42, %v6126_v11  ;;  %v5909_v57 = vsel %vm5903_vm11, %v5906_v63, %v5908_v21  ;;  %v18665_v21 = vld [vmem:[#allocation46_spill] sm:$0xff] }
 0x922   : > { %5569 = vadd.xlane.f32.xlu1 %v5568_v48  ;;  %18657 = vst [vmem:[#allocation173_spill] sm:$0xff] %v15247_v53  ;;  %v6225_v48 = vsel %vm6215_vm15, %v6211_v2, 1326507024  ;;  %vm6212_vm13 = vcmp.lt.s32.totalorder %v15225_v28, 1  ;;  %v8642_v12 = vmul.f32 %v8588_v1, %v15251_v46  ;;  %v5967_v8 = vsel %vm5965_vm1, %v5966_v31, %v5962_v18 }
 0x923   : > { %18660 = vst [vmem:[#allocation208_spill] sm:$0xff] %v15251_v46  ;;  %v6188_v10 = vor.u32 8388608, %v6187_v59  ;;  %vm6214_vm3 = vcmp.lt.s32.totalorder %v15225_v28, 3  ;;  %v6220_v42 = vsel %vm6212_vm13, %v15240_v55, %v15242_v35  ;;  %v6224_v63 = vsel %vm6212_vm13, %v15242_v35, %v15244_v0  ;;  %v18666_v59 = vld [vmem:[#allocation113_spill] sm:$0xff] }
 0x924   : > { %v6222_v30 = vsel %vm6214_vm3, %v15244_v0, %v6221_v51  ;;  %v6226_v3 = vsel %vm6214_vm3, %v6208_v9, %v6225_v48  ;;  %v6338_v29 = vand.u32 2139095040, %v15247_v53  ;;  %v5963_v60 = vmul.u32 %v14988_v32, %v5909_v57  ;;  %v18662_v32 = vld [vmem:[#allocation122_spill] sm:$0xff] }
 0x925   : > { %v5841_v5 = vrot.slane %v5840_v33, 1  ;;  %v6129_v62 = vsub.s32 0, %v15258_v6  ;;  %vm6213_vm11 = vcmp.lt.s32.totalorder %v15225_v28, 2  ;;  %vm6128_vm5 = vcmp.lt.s32.totalorder %v15258_v6, 0  ;;  %v18668_v51 = vld [vmem:[#allocation186_spill] sm:$0xff] }
 0x926   : > { %v5968_v18 = vadd.s32 %v5967_v8, %v5963_v60  ;;  %v6223_v37 = vsel %vm6213_vm11, %v6220_v42, %v6222_v30  ;;  %v6227_v38 = vsel %vm6213_vm11, %v6224_v63, %v6226_v3  ;;  %v15290_v50 = vshll.u32 %v6188_v10, 8 }
 0x927   : > { %8697 = vperm.xlu2 %9992, %v8642_v12   ;;  %v6339_v22 = vshrl.u32 %v6338_v29, 23  ;;  %v15294_v58 = vmul.f32 %v18662_v32, %v18661_v39  ;;  %v15296_v16 = vadd.f32 %v5841_v5, %v5840_v33  ;;  %v6130_v45 = vsel %vm6128_vm5, %v6129_v62, %v15258_v6 }
 0x928   : > { %v6232_v9 = vshrl.u32 %v6227_v38, 16  ;;  %v6254_v2 = vshrl.u32 %v6223_v37, 16  ;;  %v5969_v11 = vadd.s32 536870912, %v5968_v18  ;;  %v15302_v17 = vmul.f32 %v18666_v59, %v18665_v21  ;;  %v18674_v59 = vld [vmem:[#allocation145_spill] sm:$0xff] }
 0x929   : > { %18663 = vst [vmem:[#allocation176_spill] sm:$0xff] %v15294_v58  ;;  %v8645_v19 = vmul.f32 %v8608_v43, %v15294_v58  ;;  %v6229_v31 = vand.u32 65535, %v15290_v50  ;;  %v9695_v1 = vadd.s32 4294967169, %v6339_v22  ;;  %v6131_v15 = vclz %v6130_v45  ;;  %v18670_v43 = vld [vmem:[#allocation43_spill] sm:$0xff]  ;;  %v18671_v22 = vld [vmem:[#allocation182_spill] sm:$0xff] }
 0x92a   : > { %18664 = vst [vmem:[#allocation210_spill] sm:$0xff] %v15296_v16  ;;  %v6493_v61 = vand.u32 2139095040, %v15296_v16  ;;  %v8636_v48 = vmul.f32 %v18668_v51, %v15302_v17  ;;  %v15312_v12 = vshrl.u32 %v5969_v11, 30  ;;  %v6253_v8 = vand.u32 65535, %v6223_v37  ;;  %v18673_v11 = vld [vmem:[#allocation19_spill] sm:$0xff] }
 0x92b   : > { %18667 = vst [vmem:[#allocation190_spill] sm:$0xff] %v15302_v17  ;;  %v15308_v33 = vmul.u32 %v6232_v9, %v6229_v31  ;;  %v15310_v57 = vmul.u32 %v6254_v2, %v6229_v31  ;;  %v6231_v10 = vand.u32 65535, %v6227_v38  ;;  %v6345_v42 = vadd.s32 1, %v9695_v1 }
 0x92c   : > { %18669 = vst [vmem:[#allocation104_spill] sm:$0xff] %v15312_v12  ;;  %v9690_v30 = vadd.s32 4294967294, %v6131_v15  ;;  %v6494_v63 = vshrl.u32 %v6493_v61, 23  ;;  %v6230_v3 = vshrl.u32 %v15290_v50, 16  ;;  %v5971_v5 = vshll.u32 %v15312_v12, 30 }
 0x92d   : > { %v6237_v29 = vshll.u32 %v15308_v33, 16  ;;  %v6259_v60 = vshll.u32 %v15310_v57, 16  ;;  %v6255_v62 = vmul.u32 %v6253_v8, %v6229_v31  ;;  %v15320_v32 = vmul.f32 %v18671_v22, %v18670_v43 }
 0x92e   : > { %v6233_v45 = vmul.u32 %v6231_v10, %v6229_v31  ;;  %v15322_v37 = vmul.u32 %v6231_v10, %v6230_v3  ;;  %v15324_v38 = vmul.u32 %v6253_v8, %v6230_v3  ;;  %vm6346_vm0 = vcmp.gt.s32.totalorder %v6345_v42, 0 }
 0x92f   : > { %8706 = vperm.xlu2 %9992, %v8645_v19   ;;  %18672 = vst [vmem:[#allocation183_spill] sm:$0xff] %v15320_v32  ;;  %v8582_v19 = vpop.permute.xlu0 %8581  ;;  %vm9691_vm14 = vcmp.lt.s32.totalorder %v9690_v30, 0  ;;  %v9698_v21 = vadd.s32 4294967169, %v6494_v63  ;;  %v8638_v1 = vmul.f32 %v18674_v59, %v15320_v32  ;;  %vm6263_vm12 = vc.u32 %v6255_v62, %v6259_v60 }
 0x930   : > { %vm6241_vm6 = vc.u32 %v6233_v45, %v6237_v29  ;;  %v6243_v15 = vadd.s32 %v6237_v29, %v6233_v45  ;;  %v15329_v61 = vadd.s32 %v6259_v60, %v6255_v62  ;;  %v6347_v51 = vsel %vm6346_vm0, %v6345_v42, 0  ;;  %v18675_v60 = vld [vmem:[#allocation78_spill] sm:$0xff] }
 0x931   : > { %v15331_v31 = vsel %vm9691_vm14, 0, %v9690_v30  ;;  %v6239_v8 = vshll.u32 %v15322_v37, 16  ;;  %v17690_v10 = vshll.u32 %v15324_v38, 16  ;;  %v6236_v43 = vmul.u32 %v6232_v9, %v6230_v3 }
 0x932   : > { %v6242_v63 = vsel %vm6241_vm6, 1, %v18629_v44  ;;  %v6264_v22 = vsel %vm6263_vm12, 1, %v18629_v44  ;;  %v6500_v59 = vadd.s32 1, %v9698_v21  ;;  %v6258_v29 = vmul.u32 %v6254_v2, %v6230_v3 }
 0x933   : > { %vm6245_vm2 = vc.u32 %v6243_v15, %v6239_v8  ;;  %vm6267_vm1 = vc.u32 %v15329_v61, %v17690_v10  ;;  %v6349_v42 = vand.u32 31, %v6347_v51  ;;  %v6139_v30 = vsub.s32 4294967266, %v15331_v31 }
 0x934   : > { %v6119_v9 = vadd.s32 %v15116_v49, %v15106_v25  ;;  %v6244_v21 = vadd.s32 %v6242_v63, %v6236_v43  ;;  %v6266_v2 = vadd.s32 %v6264_v22, %v6258_v29  ;;  %v6246_v8 = vsel %vm6245_vm2, 1, %v18629_v44 }
 0x935   : > { %v6268_v24 = vsel %vm6267_vm1, 1, %v18629_v44  ;;  %vm6501_vm5 = vcmp.gt.s32.totalorder %v6500_v59, 0  ;;  %v15363_v25 = vadd.s32 127, %v6139_v30  ;;  %v6196_v22 = vshrl.u32 %v18632_v52, %v15189_v14 }
 0x936   : > { %v6248_v29 = vadd.s32 %v6246_v8, %v6244_v21  ;;  %v6502_v10 = vsel %vm6501_vm5, %v6500_v59, 0  ;;  %v6238_v30 = vshrl.u32 %v15308_v33, 16  ;;  %v8601_v59 = vpop.permute.xlu1 %8600  ;;  %v18681_v21 = vld [vmem:[#allocation137_spill] sm:$0xff]  ;;  %v6352_v63 = vshll.u32 %v18632_v52, %v6349_v42 }
 0x937   : > { %9993 = vset.pattern.permute.xlu2 %v18673_v11  ;;  %v15351_v3 = vpop.xlane.xlu0 %5561  ;;  %v6504_v33 = vand.u32 31, %v6502_v10  ;;  %v6355_v43 = vshll.u32 %v18624_v36, %v6349_v42  ;;  %v15397_v58 = vshrl.u32 %v6347_v51, 5  ;;  %v6361_v46 = vshll.u32 %v18656_v7, %v6349_v42 }
 0x938   : > { %18678 = vst [vmem:[#allocation69_spill] sm:$0xff] %v15351_v3 }
 0x939   : > { %v15413_v32 = vsub.s32 32, %v6504_v33  ;;  %v6510_v39 = vshll.u32 %v18624_v36, %v6504_v33  ;;  %v6513_v12 = vshll.u32 %v18622_v56, %v6504_v33  ;;  %vm6368_vm6 = vcmp.lt.s32.totalorder %v15397_v58, 2 }
 0x93b   : > { %8679 = vperm.xlu1 %9991, %v8636_v48   ;;  %v15333_v48 = vsub.s32 %v5968_v18, %v5971_v5  ;;  %v6135_v18 = vsub.s32 32, %v15331_v31  ;;  %v18676_v5 = vld [vmem:[#allocation185_spill] sm:$0xff] }
 0x93c   : > { %v15346_v62 = vmul.f32 %v18676_v5, %v18675_v60  ;;  %v15359_v5 = vsub.s32 32, %v6349_v42 }
 0x93d   : > { %v5974_v45 = vsub.s32 0, %v15333_v48  ;;  %vm5973_vm0 = vcmp.lt.s32.totalorder %v15333_v48, 0  ;;  %v15361_v49 = vshrl.u32 %v6119_v9, %v6135_v18  ;;  %v6217_v18 = vsel %vm6215_vm15, %v15244_v0, 2102212464 }
 0x93e   : > { %18677 = vst [vmem:[#allocation34_spill] sm:$0xff] %v15346_v62  ;;  %v8641_v60 = vmul.f32 %v8582_v19, %v15346_v62  ;;  %v6260_v9 = vshrl.u32 %v15310_v57, 16  ;;  %v6353_v14 = vshrl.u32 %v18624_v36, %v15359_v5  ;;  %v6365_v0 = vshrl.u32 %v18655_v54, %v15359_v5  ;;  %v18682_v57 = vld [vmem:[#allocation103_spill] sm:$0xff] }
 0x93f   : > { %v15370_v19 = vsel %vm5973_vm0, %v5974_v45, %v15333_v48  ;;  %v6362_v45 = vshrl.u32 %v18620_v13, %v15359_v5  ;;  %v6364_v62 = vshll.u32 %v18620_v13, %v6349_v42  ;;  %v6359_v26 = vshrl.u32 %v18656_v7, %v15359_v5 }
 0x940   : > { %vm6367_vm15 = vcmp.lt.s32.totalorder %v15397_v58, 1 }
 0x941   : > { %v6363_v51 = vor.u32 %v6362_v45, %v6361_v46  ;;  %v6366_v4 = vor.u32 %v6365_v0, %v6364_v62  ;;  %v18688_v46 = vshll.u32 %v15324_v38, 16 }
 0x943   : > { %8685 = vperm.xlu1 %9991, %v8638_v1   ;;  %v18679_v1 = vld [vmem:[#allocation22_spill] sm:$0xff]  ;;  %v15393_v41 = vpop.permute.xlu0 %8779  ;;  %v15428_v62 = vadd.s32 %v15329_v61, %v18688_v46  ;;  %v6517_v61 = vshrl.u32 %v18620_v13, %v15413_v32  ;;  %v6516_v46 = vshll.u32 %v18656_v7, %v6504_v33 }
 0x944   : > { %v18680_v15 = vperm.slane %v18679_v1, 0  ;;  %18684 = vst [vmem:[#allocation165_spill] sm:$0xff] %v15393_v41  ;;  %v18685_v47 = vperm.slane %v18679_v1, 1  ;;  %v18696_v41 = vld [vmem:[#allocation212_spill] sm:$0xff]  ;;  %v18699_v28 = vperm.slane %v18679_v1, 1 }
 0x945   : > { %18689 = vst [vmem:[#allocation77_spill] sm:$0xff] %v15428_v62 }
 0x946   : > { %8753 = vperm.xlu2 %9993, %v18680_v15   ;;  %v6270_v15 = vadd.s32 %v6268_v24, %v6266_v2  ;;  %v6356_v24 = vshrl.u32 %v18622_v56, %v15359_v5  ;;  %v15389_v2 = vmul.f32 %v18682_v57, %v18681_v21 }
 0x948   : > { %18683 = vst [vmem:[#allocation193_spill] sm:$0xff] %v15389_v2  ;;  %v6271_v8 = vadd.s32 %v6270_v15, %v6260_v9  ;;  %v8644_v57 = vmul.f32 %v8601_v59, %v15389_v2  ;;  %v15408_v9 = vor.u32 %v6356_v24, %v6355_v43  ;;  %v6218_v43 = vsel %vm6214_vm3, %v15242_v35, %v6217_v18  ;;  %v8668_v18 = vpop.permute.xlu2 %8667 }
 0x949   : > { %v6514_v2 = vshrl.u32 %v18656_v7, %v15413_v32  ;;  %vm6369_vm3 = vcmp.lt.s32.totalorder %v15397_v58, 3 }
 0x94b   : > { %8694 = vperm.xlu1 %9991, %v8641_v60   ;;  %v6240_v60 = vshrl.u32 %v15322_v37, 16  ;;  %v6249_v37 = vadd.s32 %v6248_v29, %v6238_v30  ;;  %v18686_v29 = vand.u32 2147483647, %v15247_v53  ;;  %v15406_v30 = vor.u32 %v6353_v14, %v6352_v63  ;;  %v18695_v53 = vld [vmem:[#allocation213_spill] sm:$0xff] }
 0x94c   : > { %v6358_v63 = vshll.u32 %v18622_v56, %v6349_v42  ;;  %v18690_v42 = vld [vmem:[#allocation152_spill] sm:$0xff]  ;;  %v8712_v17 = vperm.slane %v8668_v18, %v18695_v53 }
 0x94d   : > { %v15404_v15 = vand.u32 8388607, %v18686_v29  ;;  %v6216_v29 = vsel %vm6212_vm13, %v6196_v22, %v15240_v55  ;;  %v15423_v14 = vadd.s32 %v6249_v37, %v6240_v60  ;;  %vm6370_vm13 = vcmp.lt.s32.totalorder %v15397_v58, 4  ;;  %v18691_v22 = vld [vmem:[#allocation130_spill] sm:$0xff]  ;;  %v8665_v60 = vpop.permute.xlu1 %8664 }
 0x94e   : > { %8766 = vperm.xlu2 %9993, %v18685_v47   ;;  %v6262_v47 = vshrl.u32 %v15324_v38, 16  ;;  %v15432_v0 = vor.u32 %v6359_v26, %v6358_v63  ;;  %v6375_v55 = vsel %vm6367_vm15, %v15406_v30, %v15408_v9  ;;  %v6376_v35 = vsel %vm6370_vm13, %v6363_v51, 920167782  ;;  %v18694_v63 = vld [vmem:[#allocation20_spill] sm:$0xff] }
 0x94f   : > { %18687 = vst [vmem:[#allocation198_spill] sm:$0xff] %v15423_v14  ;;  %v6343_v45 = vor.u32 8388608, %v15404_v15  ;;  %v6380_v38 = vsel %vm6370_vm13, %v6366_v4, 1326507024  ;;  %v15447_v26 = vmul.f32 %v18691_v22, %v18690_v42  ;;  %v15450_v37 = vshrl.u32 %v6502_v10, 5 }
 0x950   : > { %v6272_v24 = vadd.s32 %v6271_v8, %v6262_v47  ;;  %v6520_v8 = vshrl.u32 %v18655_v54, %v15413_v32  ;;  %v6508_v4 = vshrl.u32 %v18624_v36, %v15413_v32  ;;  %v6519_v22 = vshll.u32 %v18620_v13, %v6504_v33  ;;  %v15627_v3 = vpop.permute.xlu2 %8673 }
 0x951   : > { %18692 = vst [vmem:[#allocation105_spill] sm:$0xff] %v15447_v26  ;;  %v6511_v10 = vshrl.u32 %v18622_v56, %v15413_v32  ;;  %v8711_v27 = vperm.slane %v8665_v60, %v18696_v41  ;;  %v6379_v42 = vsel %vm6367_vm15, %v15408_v9, %v15432_v0  ;;  %v6377_v53 = vsel %vm6369_vm3, %v15432_v0, %v6376_v35 }
 0x952   : > { %v6521_v18 = vor.u32 %v6520_v8, %v6519_v22  ;;  %v6381_v41 = vsel %vm6369_vm3, %v6363_v51, %v6380_v38  ;;  %vm6525_vm14 = vcmp.lt.s32.totalorder %v15450_v37, 4  ;;  %vm6275_vm12 = vc.u32 %v15423_v14, %v15428_v62 }
 0x953   : > { %8703 = vperm.xlu1 %9991, %v8644_v57   ;;  %v18693_v57 = vld [vmem:[#allocation119_spill] sm:$0xff]  ;;  %v8614_v47 = vpop.permute.xlu0 %8613  ;;  %v15477_v60 = vsel %vm17773_vm7, %v8712_v17, %v8711_v27  ;;  %v15489_v36 = vor.u32 %v6511_v10, %v6510_v39  ;;  %v6219_v27 = vsel %vm6213_vm11, %v6216_v29, %v6218_v43  ;;  %v6276_v17 = vadd.s32 1, %v6272_v24 }
 0x954   : > { %v5846_v15 = vrot.slane %v18693_v57, 4  ;;  %v8646_v59 = vmul.f32 %v8614_v47, %v15447_v26  ;;  %v6507_v47 = vshll.u32 %v18632_v52, %v6504_v33  ;;  %v6518_v26 = vor.u32 %v6517_v61, %v6516_v46  ;;  %18697 = vst [vmem:[#allocation202_spill] sm:$0xff] %v15477_v60 }
 0x955   : > { %v18698_v61 = vand.u32 2147483647, %v15296_v16  ;;  %v15491_v33 = vor.u32 %v6514_v2, %v6513_v12  ;;  %v6378_v39 = vsel %vm6368_vm6, %v6375_v55, %v6377_v53  ;;  %v15503_v35 = vshll.u32 %v6343_v45, 8 }
 0x956   : > { %9994 = vset.pattern.permute.xlu2 %v18694_v63  ;;  %8709 = vperm.xlu0 %10000, %v8646_v59   ;;  %v5847_v46 = vadd.f32 %v5846_v15, %v18693_v57  ;;  %v15487_v7 = vor.u32 %v6508_v4, %v6507_v47  ;;  %v6531_v51 = vsel %vm6525_vm14, %v6518_v26, 920167782  ;;  %v6535_v12 = vsel %vm6525_vm14, %v6521_v18, 1326507024 }
 0x957   : > { %v6497_v59 = vand.u32 8388607, %v18698_v61  ;;  %v15511_v2 = vsel %vm6368_vm6, %v6379_v42, %v6381_v41  ;;  %vm6522_vm11 = vcmp.lt.s32.totalorder %v15450_v37, 1  ;;  %vm6524_vm2 = vcmp.lt.s32.totalorder %v15450_v37, 3 }
 0x958   : > { %v5848_v29 = vrot.slane %v5847_v46, 2  ;;  %v6141_v43 = vshll.u32 %v15363_v25, 23  ;;  %v6530_v45 = vsel %vm6522_vm11, %v15487_v7, %v15489_v36  ;;  %v6532_v55 = vsel %vm6524_vm2, %v15491_v33, %v6531_v51 }
 0x959   : > { %v6498_v53 = vor.u32 8388608, %v6497_v59  ;;  %v6277_v38 = vsel %vm6275_vm12, %v6276_v17, %v6272_v24  ;;  %v6409_v41 = vshrl.u32 %v6378_v39, 16  ;;  %v6534_v42 = vsel %vm6522_vm11, %v15489_v36, %v15491_v33 }
 0x95a   : > { %v6536_v25 = vsel %vm6524_vm2, %v6518_v26, %v6535_v12  ;;  %v18700_v8 = vperm.slane %v18679_v1, 4  ;;  %v18701_v57 = vclz %v15370_v19  ;;  %v6273_v4 = vmul.u32 %v15290_v50, %v6219_v27 }
 0x95b   : > { %9997 = vset.pattern.permute.xlu1 %v18673_v11  ;;  %v17722_v22 = vshrl.u32 %v15511_v2, 16  ;;  %vm6523_vm1 = vcmp.lt.s32.totalorder %v15450_v37, 2  ;;  %v6136_v24 = vshll.u32 %v15258_v6, %v15331_v31  ;;  %v6384_v10 = vand.u32 65535, %v15503_v35  ;;  %v8760_v60 = vpop.permute.xlu0 %8759 }
 0x95c   : > { %v9687_v15 = vadd.s32 4294967294, %v18701_v57  ;;  %v15541_v26 = vsel %vm6523_vm1, %v6530_v45, %v6532_v55  ;;  %v5849_v47 = vadd.f32 %v5848_v29, %v5847_v46  ;;  %v15543_v18 = vadd.s32 %v6277_v38, %v6273_v4 }
 0x95d   : > { %v15547_v19 = vsel %vm6523_vm1, %v6534_v42, %v6536_v25  ;;  %v15549_v50 = vshll.u32 %v6498_v53, 8  ;;  %v15552_v61 = vor.u32 %v15361_v49, %v6136_v24  ;;  %v15554_v59 = vor.u32 4788187, %v6141_v43 }
 0x95e   : > { %8772 = vperm.xlu2 %9994, %v18699_v28   ;;  %v15556_v6 = vmul.u32 %v6409_v41, %v6384_v10  ;;  %vm9688_vm5 = vcmp.lt.s32.totalorder %v9687_v15, 0  ;;  %v15560_v31 = vmul.u32 %v17722_v22, %v6384_v10  ;;  %v6408_v46 = vand.u32 65535, %v6378_v39 }
 0x95f   : > { %18702 = vst [vmem:[#allocation29_spill] sm:$0xff] %v15549_v50  ;;  %v17725_v27 = vshrl.u32 %v15541_v26, 16  ;;  %v18703_v17 = vperm.slane %v18679_v1, 2  ;;  %v6386_v51 = vand.u32 65535, %v15511_v2  ;;  %v17727_v49 = vshrl.u32 %v15547_v19, 16 }
 0x960   : > { %v5850_v12 = vrot.slane %v5849_v47, 1  ;;  %v17721_v28 = vperm.slane %v18679_v1, 7  ;;  %v6279_v29 = vadd.s32 536870912, %v15543_v18  ;;  %v6539_v43 = vand.u32 65535, %v15549_v50 }
 0x961   : > { %v6145_v39 = vcvt.s32.f32 %v15552_v61  ;;  %v15572_v55 = vsel %vm9688_vm5, 0, %v9687_v15  ;;  %v6385_v38 = vshrl.u32 %v15503_v35, 16  ;;  %v6414_v42 = vshll.u32 %v15556_v6, 16 }
 0x962   : > { %v6143_v25 = vand.u32 2147483647, %v15554_v59  ;;  %v6410_v57 = vmul.u32 %v6408_v46, %v6384_v10  ;;  %v15582_v4 = vmul.u32 %v17725_v27, %v6539_v43  ;;  %v15590_v61 = vmul.u32 %v17727_v49, %v6539_v43 }
 0x963   : > { %8805 = vperm.xlu1 %9997, %v18700_v8   ;;  %v6392_v8 = vshll.u32 %v15560_v31, 16  ;;  %v15584_v24 = vmul.u32 %v6386_v51, %v6385_v38  ;;  %v15586_v15 = vmul.u32 %v6408_v46, %v6385_v38  ;;  %v5984_v45 = vsub.s32 4294967266, %v15572_v55 }
 0x964   : > { %v15595_v59 = vshrl.u32 %v6279_v29, 30  ;;  %v6563_v22 = vand.u32 65535, %v15541_v26  ;;  %v6413_v16 = vmul.u32 %v6409_v41, %v6385_v38  ;;  %vm6418_vm0 = vc.u32 %v6410_v57, %v6414_v42 }
 0x965   : > { %v15598_v27 = vadd.s32 %v6414_v42, %v6410_v57  ;;  %v6541_v46 = vand.u32 65535, %v15547_v19  ;;  %v6540_v49 = vshrl.u32 %v15549_v50, 16  ;;  %v6547_v41 = vshll.u32 %v15590_v61, 16 }
 0x966   : > { %8785 = vperm.xlu2 %9994, %v18703_v17   ;;  %v15592_v17 = vadd.f32 %v5850_v12, %v5849_v47  ;;  %18706 = vst [vmem:[#allocation39_spill] sm:$0xff] %v15595_v59  ;;  %v6569_v47 = vshll.u32 %v15582_v4, 16  ;;  %v6394_v12 = vshll.u32 %v15584_v24, 16  ;;  %v6419_v29 = vsel %vm6418_vm0, 1, %v18629_v44 }
 0x967   : > { %v6565_v42 = vmul.u32 %v6563_v22, %v6539_v43  ;;  %v15609_v57 = vmul.u32 %v6563_v22, %v6540_v49  ;;  %v15620_v13 = vmul.u32 %v6541_v46, %v6540_v49  ;;  %v18711_v54 = vshrl.u32 %v15511_v2, 16 }
 0x968   : > { %18705 = vst [vmem:[#allocation93_spill] sm:$0xff] %v15592_v17  ;;  %v5985_v21 = vadd.s32 127, %v5984_v45  ;;  %v18712_v45 = vshrl.u32 %v15541_v26, 16  ;;  %v18713_v56 = vperm.slane %v18679_v1, 3 }
 0x969   : > { %v6391_v22 = vmul.u32 %v18711_v54, %v6385_v38  ;;  %vm6573_vm10 = vc.u32 %v6565_v42, %v6569_v47  ;;  %v17738_v2 = vshll.u32 %v15609_v57, 16  ;;  %v6281_v54 = vshll.u32 %v15595_v59, 30 }
 0x96a   : > { %v6549_v38 = vshll.u32 %v15620_v13, 16 }
 0x96b   : > { %8844 = vperm.xlu1 %9997, %v17721_v28   ;;  %v6388_v28 = vmul.u32 %v6386_v51, %v6384_v10  ;;  %v17737_v10 = vshll.u32 %v15586_v15, 16  ;;  %v6648_v51 = vand.u32 2139095040, %v15592_v17  ;;  %v18710_v17 = vmov 1  }
 0x96c   : > { %v15649_v26 = vsub.s32 %v15543_v18, %v6281_v54 }
 0x96d   : > { %vm6396_vm12 = vc.u32 %v6388_v28, %v6392_v8  ;;  %v6398_v62 = vadd.s32 %v6392_v8, %v6388_v28  ;;  %v18707_v28 = vld [vmem:[#allocation195_spill] sm:$0xff]  ;;  %vm15616_vm5 = vc.u32 %v15598_v27, %v17737_v10  ;;  %v6649_v10 = vshrl.u32 %v6648_v51, 23 }
 0x96e   : > { %9996 = vset.pattern.permute.xlu2 %v18673_v11  ;;  %v8869_v8 = vmul.f32 %v8760_v60, %v18707_v28  ;;  %v6397_v14 = vsel %vm6396_vm12, 1, %v18629_v44  ;;  %v6543_v11 = vmul.u32 %v6541_v46, %v6539_v43  ;;  %v15625_v60 = vadd.s32 %v6569_v47, %v6565_v42 }
 0x96f   : > { %vm6400_vm0 = vc.u32 %v6398_v62, %v6394_v12  ;;  %v6421_v28 = vadd.s32 %v6419_v29, %v6413_v16  ;;  %v6399_v43 = vadd.s32 %v6397_v14, %v6391_v22  ;;  %v6423_v46 = vsel %vm15616_vm5, 1, %v18629_v44 }
 0x970   : > { %vm6551_vm12 = vc.u32 %v6543_v11, %v6547_v41  ;;  %v6553_v50 = vadd.s32 %v6547_v41, %v6543_v11  ;;  %v6401_v62 = vsel %vm6400_vm0, 1, %v18629_v44  ;;  %v6574_v16 = vsel %vm6573_vm10, 1, %v18629_v44 }
 0x971   : > { %v6146_v11 = vmul.f32 %v6145_v39, %v6143_v25  ;;  %v6552_v47 = vsel %vm6551_vm12, 1, %v18629_v44  ;;  %v6568_v14 = vmul.u32 %v18712_v45, %v6540_v49  ;;  %vm6577_vm5 = vc.u32 %v15625_v60, %v17738_v2 }
 0x972   : > { %v6425_v12 = vadd.s32 %v6423_v46, %v6421_v28  ;;  %v18714_v41 = vshrl.u32 %v15547_v19, 16  ;;  %vm6555_vm0 = vc.u32 %v6553_v50, %v6549_v38  ;;  %v9701_v29 = vadd.s32 4294967169, %v6649_v10  ;;  %v15659_v46 = vpop.xlane.xlu2 %5565 }
 0x973   : > { %10002 = vset.pattern.permute.xlu1 %v18710_v17  ;;  %v5980_v39 = vsub.s32 32, %v15572_v55  ;;  %v5986_v25 = vshll.u32 %v5985_v21, 23  ;;  %v6403_v42 = vadd.s32 %v6401_v62, %v6399_v43  ;;  %v6415_v22 = vshrl.u32 %v15556_v6, 16  ;;  %v18715_v21 = vld [vmem:[#allocation133_spill] sm:$0xff] }
 0x974   : > { %8904 = vperm.xlu1 %10002, %v8869_v8   ;;  %v6546_v51 = vmul.u32 %v18714_v41, %v6540_v49  ;;  %v6576_v8 = vadd.s32 %v6574_v16, %v6568_v14  ;;  %v6578_v2 = vsel %vm6577_vm5, 1, %v18629_v44  ;;  %v5964_v28 = vadd.s32 %v15216_v23, %v15211_v34 }
 0x975   : > { %v6393_v19 = vshrl.u32 %v15560_v31, 16  ;;  %v6556_v50 = vsel %vm6555_vm0, 1, %v18629_v44  ;;  %vm6027_vm10 = vcmp.lt.s32.totalorder %v18715_v21, 0  ;;  %v6147_v10 = vxor.u32 2147483648, %v6146_v11 }
 0x976   : > { %8792 = vperm.xlu2 %9996, %v18713_v56   ;;  %v6554_v45 = vadd.s32 %v6552_v47, %v6546_v51  ;;  %v6426_v43 = vadd.s32 %v6425_v12, %v6415_v22  ;;  %v6655_v18 = vadd.s32 1, %v9701_v29  ;;  %v5981_v6 = vshll.u32 %v15333_v48, %v15572_v55  ;;  %v15698_v22 = vpop.permute.xlu1 %8670 }
 0x977   : > { %v5982_v54 = vshrl.u32 %v5964_v28, %v5980_v39  ;;  %v6404_v62 = vadd.s32 %v6403_v42, %v6393_v19  ;;  %v6580_v38 = vadd.s32 %v6578_v2, %v6576_v8  ;;  %v5987_v34 = vor.u32 4788187, %v5986_v25 }
 0x978   : > { %v6284_v23 = vsub.s32 0, %v15649_v26  ;;  %v6417_v31 = vshrl.u32 %v15586_v15, 16  ;;  %v6558_v16 = vadd.s32 %v6556_v50, %v6554_v45  ;;  %vm6283_vm12 = vcmp.lt.s32.totalorder %v15649_v26, 0 }
 0x979   : > { %v6351_v47 = vshrl.u32 %v18632_v52, %v15359_v5  ;;  %v6395_v14 = vshrl.u32 %v15584_v24, 16  ;;  %v6570_v56 = vshrl.u32 %v15582_v4, 16  ;;  %v6372_v48 = vsel %vm6370_vm13, %v15432_v0, 2102212464 }
 0x97a   : > { %v6427_v55 = vadd.s32 %v6426_v43, %v6417_v31  ;;  %v6548_v2 = vshrl.u32 %v15590_v61, 16  ;;  %vm6656_vm5 = vcmp.gt.s32.totalorder %v6655_v18, 0  ;;  %v18716_v12 = vand.u32 2147483647, %v18715_v21 }
 0x97b   : > { %v6148_v5 = vsel %vm6027_vm10, %v6147_v10, %v6146_v11  ;;  %v15683_v4 = vadd.s32 %v6404_v62, %v6395_v14  ;;  %v6581_v24 = vadd.s32 %v6580_v38, %v6570_v56  ;;  %v5983_v51 = vor.u32 %v5982_v54, %v5981_v6  ;;  %v15717_v6 = vpop.permute.xlu2 %8682  ;;  %v18721_v62 = vld [vmem:[#allocation54_spill] sm:$0xff] }
 0x97c   : > { %vm15677_vm0 = vcmp.le.f32.partialorder %v18716_v12, 0.7853982  ;;  %v6285_v29 = vsel %vm6283_vm12, %v6284_v23, %v15649_v26  ;;  %v6371_v0 = vsel %vm6367_vm15, %v6351_v47, %v15406_v30  ;;  %v6559_v61 = vadd.s32 %v6558_v16, %v6548_v2  ;;  %v18727_v2 = vld [vmem:[#allocation137_spill] sm:$0xff] }
 0x97d   : > { %v6373_v39 = vsel %vm6369_vm3, %v15408_v9, %v6372_v48  ;;  %v18719_v25 = vshll.u32 %v15586_v15, 16  ;;  %v6572_v11 = vshrl.u32 %v15609_v57, 16  ;;  %v6657_v8 = vsel %vm6656_vm5, %v6655_v18, 0  ;;  %v18728_v12 = vld [vmem:[#allocation89_spill] sm:$0xff] }
 0x97e   : > { %9998 = vset.pattern.permute.xlu2 %v18694_v63  ;;  %v15703_v45 = vsel %vm15677_vm0, %v18715_v21, %v6148_v5  ;;  %v5988_v30 = vand.u32 2147483647, %v5987_v34  ;;  %v6431_v28 = vadd.s32 1, %v6427_v55  ;;  %v6550_v19 = vshrl.u32 %v15620_v13, 16 }
 0x97f   : > { %v15695_v42 = vadd.s32 %v15598_v27, %v18719_v25  ;;  %18720 = vst [vmem:[#allocation204_spill] sm:$0xff] %v15703_v45  ;;  %v6286_v9 = vclz %v6285_v29  ;;  %v6527_v27 = vsel %vm6525_vm14, %v15491_v33, 2102212464  ;;  %v6582_v15 = vadd.s32 %v6581_v24, %v6572_v11  ;;  %v18730_v25 = vld [vmem:[#allocation69_spill] sm:$0xff] }
 0x980   : > { %v6374_v50 = vsel %vm6368_vm6, %v6371_v0, %v6373_v39  ;;  %v6506_v10 = vshrl.u32 %v18632_v52, %v15413_v32  ;;  %v15715_v43 = vadd.s32 %v6559_v61, %v6550_v19  ;;  %v6659_v18 = vand.u32 31, %v6657_v8 }
 0x981   : > { %vm6430_vm15 = vc.u32 %v15683_v4, %v15695_v42  ;;  %v6149_v13 = vsub.s32 4, %v15205_v20  ;;  %v5990_v54 = vcvt.s32.f32 %v5983_v51  ;;  %v5793_v38 = vmul.f32 %v18721_v62, %v18649_v40 }
 0x982   : > { %v18722_v33 = vperm.slane %v18679_v1, 4  ;;  %v6432_v34 = vsel %vm6430_vm15, %v6431_v28, %v6427_v55  ;;  %v6526_v32 = vsel %vm6522_vm11, %v6506_v10, %v15487_v7  ;;  %v6528_v23 = vsel %vm6524_vm2, %v15489_v36, %v6527_v27  ;;  %v18734_v10 = vld [vmem:[#allocation93_spill] sm:$0xff] }
 0x983   : > { %v18723_v31 = vshll.u32 %v15609_v57, 16  ;;  %v15738_v40 = vmul.f32 %v15703_v45, %v15703_v45  ;;  %v15740_v47 = vmul.f32 %v5990_v54, %v5988_v30  ;;  %v6428_v14 = vmul.u32 %v15503_v35, %v6374_v50  ;;  %v18726_v57 = vld [vmem:[#allocation141_spill] sm:$0xff] }
 0x984   : > { %v6586_v56 = vadd.s32 1, %v6582_v15  ;;  %v9693_v48 = vadd.s32 4294967294, %v6286_v9  ;;  %v15745_v7 = vsub.s32 32, %v6659_v18  ;;  %vm5574_vm3 = vcmp.gt.f32.partialorder %v18726_v57, -5e+08  ;;  %v18732_v30 = vld [vmem:[#allocation29_spill] sm:$0xff] }
 0x985   : > { %v15734_v16 = vadd.s32 %v15625_v60, %v18723_v31  ;;  %18725 = vst [vmem:[#allocation74_spill] sm:$0xff] %v15738_v40  ;;  %v15749_v60 = vadd.s32 %v6432_v34, %v6428_v14  ;;  %v6529_v55 = vsel %vm6523_vm1, %v6526_v32, %v6528_v23  ;;  %v5794_v5 = vmul.f32 %v18728_v12, %v18727_v2  ;;  %v15792_v31 = vpop.permute.xlu2 %8688 }
 0x986   : > { %8811 = vperm.xlu2 %9998, %v18722_v33   ;;  %v15758_v24 = vsel %vm6027_vm10, %v6149_v13, %v15205_v20  ;;  %v5852_v51 = vsel %vm5797_vm4, %v5793_v38, 0.0  ;;  %v6161_v37 = vmul.f32 -0.00019511016, %v15738_v40  ;;  %v5992_v61 = vxor.u32 2147483648, %v15740_v47  ;;  %v18731_v20 = vld [vmem:[#allocation192_spill] sm:$0xff]  ;;  %v18736_v38 = vld [vmem:[#allocation19_spill] sm:$0xff] }
 0x987   : > { %18724 = vst [vmem:[#allocation107_spill] sm:$0xff] %v15734_v16  ;;  %vm6585_vm13 = vc.u32 %v15715_v43, %v15734_v16  ;;  %v15771_v11 = vsel %vm5574_vm3, %v18730_v25, 0.0  ;;  %vm5872_vm14 = vcmp.lt.s32.totalorder %v18731_v20, 0  ;;  %vm9694_vm6 = vcmp.lt.s32.totalorder %v9693_v48, 0 }
 0x988   : > { %v6587_v39 = vsel %vm6585_vm13, %v6586_v56, %v6582_v15  ;;  %v6583_v28 = vmul.u32 %v18732_v30, %v6529_v55  ;;  %v18733_v19 = vmov 1326507024   ;;  %v6434_v50 = vadd.s32 536870912, %v15749_v60 }
 0x989   : > { %v6675_v9 = vshrl.u32 %v18733_v19, %v15745_v7  ;;  %v18735_v13 = vmov 920167782   ;;  %v5853_v62 = vsel %vm5797_vm4, %v5794_v5, 0.0  ;;  %v15787_v34 = vshrl.u32 %v6657_v8, 5  ;;  %v15799_v5 = vpop.permute.xlu0 %8798 }
 0x98a   : > { %v6672_v54 = vshrl.u32 %v18735_v13, %v15745_v7  ;;  %v15785_v33 = vadd.s32 %v6587_v39, %v6583_v28  ;;  %v6674_v32 = vshll.u32 %v18735_v13, %v6659_v18  ;;  %v5580_v23 = vmul.f32 %v15771_v11, %v15771_v11 }
 0x98b   : > { %v18737_v14 = vmov 2131351028   ;;  %v18738_v55 = vmov 2102212464   ;;  %v15804_v8 = vsel %vm5574_vm3, %v15659_v46, 0.0  ;;  %v5854_v30 = vadd.f32 %v5853_v62, %v5852_v51 }
 0x98c   : > { %v6666_v56 = vshrl.u32 %v18737_v14, %v15745_v7  ;;  %v6669_v2 = vshrl.u32 %v18738_v55, %v15745_v7  ;;  %v6671_v12 = vshll.u32 %v18738_v55, %v6659_v18  ;;  %18739 = vst [vmem:[#allocation191_spill] sm:$0xff] %v15804_v8  ;;  %v6676_v25 = vor.u32 %v6675_v9, %v6674_v32 }
 0x98d   : > { %v5558_v35 = vpop.xlane.xlu1 %5557  ;;  %v15808_v0 = vshrl.u32 %v6434_v50, 30  ;;  %v6668_v58 = vshll.u32 %v18737_v14, %v6659_v18  ;;  %v6589_v15 = vadd.s32 536870912, %v15785_v33  ;;  %v6662_v46 = vshll.u32 %v18632_v52, %v6659_v18 }
 0x98e   : > { %v15763_v29 = vsel %vm5574_vm3, %v5558_v35, 1.0  ;;  %9999 = vset.pattern.permute.xlu2 %v18736_v38  ;;  %v18740_v35 = vmov 2475754826   ;;  %v6673_v49 = vor.u32 %v6672_v54, %v6671_v12  ;;  %v5582_v38 = vmul.f32 %v15804_v8, %v15804_v8 }
 0x98f   : > { %18729 = vst [vmem:[#allocation146_spill] sm:$0xff] %v15763_v29  ;;  %v5579_v27 = vmul.f32 %v15763_v29, %v15763_v29  ;;  %v6663_v39 = vshrl.u32 %v18740_v35, %v15745_v7  ;;  %v6665_v36 = vshll.u32 %v18740_v35, %v6659_v18  ;;  %v18742_v29 = vand.u32 2147483647, %v18734_v10  ;;  %v18753_v10 = vld [vmem:[#allocation77_spill] sm:$0xff] }
 0x990   : > { %18741 = vst [vmem:[#allocation216_spill] sm:$0xff] %v15808_v0  ;;  %vm6680_vm11 = vcmp.lt.s32.totalorder %v15787_v34, 4  ;;  %v6162_v32 = vadd.f32 0.008332121, %v6161_v37  ;;  %vm6677_vm2 = vcmp.lt.s32.totalorder %v15787_v34, 1  ;;  %vm6679_vm1 = vcmp.lt.s32.totalorder %v15787_v34, 3 }
 0x991   : > { %v5581_v28 = vadd.f32 %v5580_v23, %v5579_v27  ;;  %v6652_v21 = vand.u32 8388607, %v18742_v29  ;;  %v15818_v51 = vor.u32 %v6666_v56, %v6665_v36  ;;  %v15820_v27 = vor.u32 %v6669_v2, %v6668_v58 }
 0x992   : > { %v15827_v54 = vor.u32 %v6663_v39, %v6662_v46  ;;  %v6690_v29 = vsel %vm6680_vm11, %v6676_v25, 1326507024  ;;  %v5993_v58 = vsel %vm5872_vm14, %v5992_v61, %v15740_v47  ;;  %v6289_v36 = vsel %vm9694_vm6, 0, %v9693_v48  ;;  %v18752_v46 = vld [vmem:[#allocation198_spill] sm:$0xff] }
 0x993   : > { %v5583_v18 = vadd.f32 %v5582_v38, %v5581_v28  ;;  %v6686_v57 = vsel %vm6680_vm11, %v6673_v49, 920167782  ;;  %v18744_v23 = vperm.slane %v18679_v1, 5  ;;  %v5855_v38 = vrot.slane %v5854_v30, 4  ;;  %v15874_v28 = vpop.permute.xlu0 %8824 }
 0x994   : > { %v6436_v37 = vshll.u32 %v15808_v0, 30  ;;  %v6653_v2 = vor.u32 8388608, %v6652_v21  ;;  %v6689_v47 = vsel %vm6677_vm2, %v15818_v51, %v15820_v27  ;;  %v6691_v48 = vsel %vm6679_vm1, %v6673_v49, %v6690_v29  ;;  %v15861_v21 = vpop.permute.xlu2 %8697  ;;  %18749 = vst [vmem:[#allocation101_spill] sm:$0xff] %v15874_v28 }
 0x995   : > { %v5570_v9 = vpop.xlane.xlu1 %5569  ;;  %v15852_v61 = vshrl.u32 %v6589_v15, 30  ;;  %v6685_v12 = vsel %vm6677_vm2, %v15827_v54, %v15818_v51  ;;  %v6687_v39 = vsel %vm6679_vm1, %v15820_v27, %v6686_v57  ;;  %v6152_v25 = vsel %vm15677_vm0, 0, %v15758_v24 }
 0x996   : > { %v15825_v50 = vsel %vm5574_vm3, %v5570_v9, 0.0  ;;  %8818 = vperm.xlu2 %9999, %v18744_v23   ;;  %v18746_v49 = vand.u32 2147483647, %v18731_v20  ;;  %vm6678_vm12 = vcmp.lt.s32.totalorder %v15787_v34, 2  ;;  %v18750_v9 = vld [vmem:[#allocation104_spill] sm:$0xff]  ;;  %v6163_v24 = vmul.f32 %v6162_v32, %v15738_v40 }
 0x997   : > { %18743 = vst [vmem:[#allocation62_spill] sm:$0xff] %v15825_v50  ;;  %v5584_v62 = vmul.f32 %v15825_v50, %v15825_v50  ;;  %v5994_v29 = vsub.s32 4, %v18750_v9  ;;  %v15880_v41 = vsel %vm6678_vm12, %v6689_v47, %v6691_v48  ;;  %v15890_v23 = vsel %vm6678_vm12, %v6685_v12, %v6687_v39 }
 0x998   : > { %18745 = vst [vmem:[#allocation132_spill] sm:$0xff] %v15852_v61  ;;  %vm15869_vm10 = vcmp.le.f32.partialorder %v18746_v49, 0.7853982  ;;  %v15892_v49 = vshll.u32 %v6653_v2, 8  ;;  %v6274_v0 = vadd.s32 %v18753_v10, %v18752_v46  ;;  %v15897_v28 = vsub.s32 %v15749_v60, %v6436_v37 }
 0x999   : > { %v15843_v56 = vadd.f32 %v5584_v62, %v5583_v18  ;;  %v6290_v18 = vsub.s32 32, %v6289_v36  ;;  %v6294_v62 = vsub.s32 4294967266, %v6289_v36  ;;  %v15886_v57 = vsel %vm15869_vm10, %v18731_v20, %v5993_v58 }
 0x99a   : > { %18751 = vst [vmem:[#allocation131_spill] sm:$0xff] %v15886_v57  ;;  %v6591_v47 = vshll.u32 %v15852_v61, 30  ;;  %v5856_v32 = vadd.f32 %v5855_v38, %v5854_v30  ;;  %v15900_v48 = vadd.s32 3, %v6152_v25  ;;  %v15902_v8 = vand.u32 3, %v6152_v25 }
 0x99b   : > { %10138 = vrsqrt.f32 %v15843_v56  ;;  %18754 = vst [vmem:[#allocation65_spill] sm:$0xff] %v15897_v28  ;;  %v18756_v12 = vperm.slane %v18679_v1, 6  ;;  %v15911_v60 = vsel %vm5872_vm14, %v5994_v29, %v18750_v9  ;;  %v6292_v10 = vshrl.u32 %v6274_v0, %v6290_v18 }
 0x99c   : > { %18755 = vst [vmem:[#allocation111_spill] sm:$0xff] %v15902_v8  ;;  %v6295_v37 = vadd.s32 127, %v6294_v62  ;;  %v15914_v38 = vadd.f32 -0.16666654, %v6163_v24  ;;  %v15918_v25 = vmul.f32 %v15886_v57, %v15886_v57  ;;  %v6694_v46 = vand.u32 65535, %v15892_v49  ;;  %v18759_v62 = vld [vmem:[#allocation155_spill] sm:$0xff]  ;;  %v15942_v59 = vpop.permute.xlu2 %8706 }
 0x99d   : > { %v6291_v2 = vshll.u32 %v15649_v26, %v6289_v36  ;;  %v6439_v58 = vsub.s32 0, %v15897_v28  ;;  %v15925_v9 = vsub.s32 %v15785_v33, %v6591_v47  ;;  %v5857_v0 = vrot.slane %v5856_v32, 2  ;;  %v18760_v24 = vld [vmem:[#allocation154_spill] sm:$0xff]  ;;  %v18761_v26 = vld [vmem:[#allocation152_spill] sm:$0xff]  ;;  %v18762_v36 = vld [vmem:[#allocation161_spill] sm:$0xff]  ;;  %18764 = vst [vmem:[#allocation134_spill] sm:$0xff] %v15942_v59 }
 0x99e   : > { %8831 = vperm.xlu2 %9999, %v18756_v12   ;;  %vm6438_vm5 = vcmp.lt.s32.totalorder %v15897_v28, 0  ;;  %v18758_v29 = vshrl.u32 %v15880_v41, 16  ;;  %v5795_v30 = vmul.f32 %v18760_v24, %v18759_v62  ;;  %v6296_v53 = vshll.u32 %v6295_v37, 23 }
 0x99f   : > { %18757 = vst [vmem:[#allocation44_spill] sm:$0xff] %v15925_v9  ;;  %v15934_v61 = vor.u32 %v6292_v10, %v6291_v2  ;;  %v5796_v20 = vmul.f32 %v18762_v36, %v18761_v26  ;;  %v18763_v33 = vshrl.u32 %v15890_v23, 16  ;;  %v15945_v57 = vmul.f32 -0.001358992, %v15918_v25  ;;  %v15951_v2 = vpop.permute.xlu0 %8837 }
 0x9a0   : > { %v15930_v18 = vmul.u32 %v18758_v29, %v6694_v46  ;;  %v15948_v29 = vmul.f32 -0.00019511016, %v15918_v25  ;;  %18765 = vst [vmem:[#allocation37_spill] sm:$0xff] %v15951_v2  ;;  %v6440_v37 = vsel %vm6438_vm5, %v6439_v58, %v15897_v28  ;;  %v6594_v62 = vsub.s32 0, %v15925_v9 }
 0x9a1   : > { %v10139_v39 = vpop.eup %10138  ;;  %v15940_v47 = vmul.u32 %v18763_v33, %v6694_v46  ;;  %v6718_v24 = vand.u32 65535, %v15890_v23  ;;  %v5858_v26 = vadd.f32 %v5857_v0, %v5856_v32  ;;  %vm6593_vm0 = vcmp.lt.s32.totalorder %v15925_v9, 0 }
 0x9a2   : > { %v5587_v12 = vmul.f32 %v10139_v39, %v15843_v56  ;;  %v6702_v36 = vshll.u32 %v15930_v18, 16  ;;  %v5861_v33 = vsel %vm5797_vm4, %v5795_v30, 0.0  ;;  %v6297_v35 = vor.u32 4788187, %v6296_v53  ;;  %v18776_v53 = vld [vmem:[#allocation205_spill] sm:$0xff] }
 0x9a3   : > { %v6300_v2 = vcvt.s32.f32 %v15934_v61  ;;  %v6724_v58 = vshll.u32 %v15940_v47, 16  ;;  %v6441_v55 = vclz %v6440_v37  ;;  %v6695_v13 = vshrl.u32 %v15892_v49, 16 }
 0x9a4   : > { %v5588_v8 = vmul.f32 %v10139_v39, %v5587_v12  ;;  %v6696_v12 = vand.u32 65535, %v15880_v41  ;;  %v6595_v14 = vsel %vm6593_vm0, %v6594_v62, %v15925_v9  ;;  %v6720_v19 = vmul.u32 %v6718_v24, %v6694_v46 }
 0x9a5   : > { %v5859_v45 = vrot.slane %v5858_v26, 1  ;;  %v15971_v61 = vmul.u32 %v6718_v24, %v6695_v13  ;;  %vm5593_vm13 = vcmp.eq.f32.partialorder %v15843_v56, inf  ;;  %vm5595_vm3 = vcmp.eq.f32.partialorder %v15843_v56, 0.0  ;;  %v18770_v24 = vld [vmem:[#allocation189_spill] sm:$0xff] }
 0x9a6   : > { %v5589_v10 = vmul.f32 0.5, %v5588_v8  ;;  %10001 = vset.pattern.permute.xlu2 %v18694_v63  ;;  %v5862_v8 = vsel %vm5797_vm4, %v5796_v20, 0.0  ;;  %v6698_v32 = vmul.u32 %v6696_v12, %v6694_v46  ;;  %vm15974_vm4 = vc.u32 %v6720_v19, %v6724_v58 }
 0x9a7   : > { %v5863_v30 = vadd.f32 %v5862_v8, %v5861_v33  ;;  %v9696_v8 = vadd.s32 4294967294, %v6441_v55  ;;  %v6596_v9 = vclz %v6595_v14  ;;  %v6726_v28 = vshll.u32 %v15971_v61, 16  ;;  %v15991_v16 = vpop.permute.xlu0 %8676 }
 0x9a8   : > { %v5590_v50 = vsub.f32 1.5, %v5589_v10  ;;  %v15965_v10 = vmul.u32 %v6696_v12, %v6695_v13  ;;  %vm15967_vm15 = vc.u32 %v6698_v32, %v6702_v36  ;;  %v6708_v37 = vadd.s32 %v6702_v36, %v6698_v32 }
 0x9a9   : > { %v15982_v12 = vadd.s32 %v6724_v58, %v6720_v19  ;;  %v6298_v36 = vand.u32 2147483647, %v6297_v35  ;;  %v15987_v32 = vadd.f32 %v5859_v45, %v5858_v26  ;;  %v18772_v58 = vperm.slane %v18679_v1, 7 }
 0x9aa   : > { %v5591_v0 = vmul.f32 %v10139_v39, %v5590_v50  ;;  %v5596_v50 = vand.u32 2147483648, %v15843_v56  ;;  %v8754_v39 = vpop.permute.xlu2 %8753  ;;  %v6704_v59 = vshll.u32 %v15965_v10, 16  ;;  %v6707_v45 = vsel %vm15967_vm15, 1, %v18629_v44 }
 0x9ab   : > { %v8868_v33 = vmul.f32 %v8754_v39, %v18770_v24  ;;  %18771 = vst [vmem:[#allocation91_spill] sm:$0xff] %v15987_v32  ;;  %v6729_v14 = vsel %vm15974_vm4, 1, %v18629_v44  ;;  %v5864_v55 = vrot.slane %v5863_v30, 4  ;;  %v18774_v26 = vshrl.u32 %v15890_v23, 16 }
 0x9ac   : > { %v5592_v20 = vmul.f32 %v5591_v0, %v15843_v56  ;;  %vm6710_vm14 = vc.u32 %v6708_v37, %v6704_v59  ;;  %vm6732_vm6 = vc.u32 %v15982_v12, %v6726_v28  ;;  %v6165_v1 = vmul.f32 %v15914_v38, %v15738_v40 }
 0x9ad   : > { %v15980_v46 = vpop.permute.xlu1 %8679  ;;  %8901 = vperm.xlu0 %10000, %v8868_v33   ;;  %v5997_v63 = vsel %vm15869_vm10, 0, %v15911_v60  ;;  %v6301_v59 = vmul.f32 %v6300_v2, %v6298_v36  ;;  %vm6182_vm5 = vcmp.lt.s32.totalorder %v18776_v53, 0  ;;  %vm9697_vm0 = vcmp.lt.s32.totalorder %v9696_v8, 0 }
 0x9ae   : > { %v5594_v62 = vsel %vm5593_vm13, %v15843_v56, %v5592_v20  ;;  %8850 = vperm.xlu2 %10001, %v18772_v58   ;;  %v18773_v56 = vshrl.u32 %v15880_v41, 16  ;;  %v6723_v20 = vmul.u32 %v18774_v26, %v6695_v13  ;;  %v16014_v41 = vand.u32 3, %v15900_v48 }
 0x9af   : > { %v5597_v0 = vsel %vm5595_vm3, %v5596_v50, %v5594_v62  ;;  %v6803_v37 = vand.u32 2139095040, %v15987_v32  ;;  %v9699_v50 = vadd.s32 4294967294, %v6596_v9  ;;  %v6711_v39 = vsel %vm6710_vm14, 1, %v18629_v44 }
 0x9b0   : > { %v15993_v19 = vmax.f32 %v5597_v0, 1e-12  ;;  %v6701_v35 = vmul.u32 %v18773_v56, %v6695_v13  ;;  %18775 = vst [vmem:[#allocation61_spill] sm:$0xff] %v16014_v41  ;;  %v6731_v23 = vadd.s32 %v6729_v14, %v6723_v20  ;;  %v6733_v38 = vsel %vm6732_vm6, 1, %v18629_v44  ;;  %v18777_v56 = vld [vmem:[#allocation162_spill] sm:$0xff] }
 0x9b1   : > { %v5865_v62 = vadd.f32 %v5864_v55, %v5863_v30  ;;  %v6000_v15 = vadd.f32 0.041655596, %v15945_v57  ;;  %v6007_v60 = vadd.f32 0.008332121, %v15948_v29  ;;  %v16027_v2 = vadd.s32 3, %v5997_v63 }
 0x9b2   : > { %10140 = vrcp.f32 %v15993_v19  ;;  %v6709_v13 = vadd.s32 %v6707_v45, %v6701_v35  ;;  %v8767_v48 = vpop.permute.xlu2 %8766  ;;  %v16029_v36 = vand.u32 3, %v5997_v63  ;;  %v16031_v0 = vadd.f32 1.0, %v6165_v1 }
 0x9b3   : > { %v6302_v58 = vxor.u32 2147483648, %v6301_v59  ;;  %v16034_v9 = vsel %vm9697_vm0, 0, %v9696_v8  ;;  %v8870_v35 = vmul.f32 %v8767_v48, %v18777_v56  ;;  %v6682_v57 = vsel %vm6680_vm11, %v15820_v27, 2102212464 }
 0x9b4   : > { %v6713_v45 = vadd.s32 %v6711_v39, %v6709_v13  ;;  %v6735_v29 = vadd.s32 %v6733_v38, %v6731_v23  ;;  %v6804_v14 = vshrl.u32 %v6803_v37, 23  ;;  %vm9700_vm10 = vcmp.lt.s32.totalorder %v9699_v50, 0  ;;  %v16055_v13 = vpop.permute.xlu0 %8691 }
 0x9b5   : > { %v16023_v33 = vpop.permute.xlu1 %8685  ;;  %v6661_v55 = vshrl.u32 %v18632_v52, %v15745_v7  ;;  %v5866_v26 = vrot.slane %v5865_v62, 2  ;;  %v16048_v20 = vmul.f32 %v6000_v15, %v15918_v25  ;;  %v16051_v1 = vmul.f32 %v6007_v60, %v15918_v25 }
 0x9b6   : > { %10003 = vset.pattern.permute.xlu2 %v18710_v17  ;;  %v6703_v27 = vshrl.u32 %v15930_v18, 16  ;;  %v6725_v63 = vshrl.u32 %v15940_v47, 16  ;;  %v6449_v23 = vsub.s32 4294967266, %v16034_v9  ;;  %v6683_v37 = vsel %vm6679_vm1, %v15818_v51, %v6682_v57 }
 0x9b7   : > { %8907 = vperm.xlu2 %10003, %v8870_v35   ;;  %v6681_v7 = vsel %vm6677_vm2, %v6661_v55, %v15827_v54  ;;  %v16064_v38 = vsel %vm9700_vm10, 0, %v9699_v50  ;;  %v9704_v18 = vadd.s32 4294967169, %v6804_v14  ;;  %v16068_v47 = vsel %vm6182_vm5, %v6302_v58, %v6301_v59  ;;  %v18780_v14 = vld [vmem:[#allocation165_spill] sm:$0xff] }
 0x9b8   : > { %v16037_v30 = vpop.eup %10140  ;;  %v6714_v48 = vadd.s32 %v6713_v45, %v6703_v27  ;;  %v6736_v15 = vadd.s32 %v6735_v29, %v6725_v63  ;;  %v16072_v60 = vadd.s32 %v15695_v42, %v15683_v4  ;;  %v5867_v35 = vadd.f32 %v5866_v26, %v5865_v62  ;;  %v18778_v29 = vld [vmem:[#allocation212_spill] sm:$0xff]  ;;  %v18779_v62 = vld [vmem:[#allocation207_spill] sm:$0xff]  ;;  %v18781_v63 = vld [vmem:[#allocation213_spill] sm:$0xff] }
 0x9b9   : > { %v5600_v8 = vmul.f32 %v16037_v30, %v15993_v19  ;;  %v6705_v57 = vshrl.u32 %v15965_v10, 16  ;;  %v6727_v45 = vshrl.u32 %v15971_v61, 16  ;;  %v8714_v59 = vperm.slane %v15698_v22, %v18778_v29 }
 0x9ba   : > { %v16075_v55 = vpop.permute.xlu2 %8772  ;;  %v16082_v58 = vadd.s32 127, %v6449_v23  ;;  %v6604_v4 = vsub.s32 4294967266, %v16064_v38  ;;  %v16087_v42 = vsel %vm6678_vm12, %v6681_v7, %v6683_v37  ;;  %v8872_v26 = vmul.f32 %v18780_v14, %v18779_v62 }
 0x9bb   : > { %v5601_v39 = vsub.f32 1.0, %v5600_v8  ;;  %v16091_v8 = vadd.s32 %v6714_v48, %v6705_v57  ;;  %v6737_v27 = vadd.s32 %v6736_v15, %v6727_v45  ;;  %v6810_v10 = vadd.s32 1, %v9704_v18  ;;  %v18785_v18 = vld [vmem:[#allocation202_spill] sm:$0xff] }
 0x9bc   : > { %v5868_v50 = vrot.slane %v5867_v35, 1  ;;  %vm5605_vm11 = vweird.f32 %v16037_v30  ;;  %v8718_v34 = vperm.slane %v15980_v46, %v18781_v63  ;;  %v16102_v23 = vadd.s32 %v15982_v12, %v6726_v28  ;;  %v8701_v61 = vpop.permute.xlu0 %8700 }
 0x9bd   : > { %v5602_v54 = vmul.f32 %v16037_v30, %v5601_v39  ;;  %v8695_v51 = vpop.permute.xlu1 %8694  ;;  %v8715_v39 = vperm.slane %v15627_v3, %v18781_v63  ;;  %v5610_v37 = vand.u32 2147483648, %v15993_v19  ;;  %v8721_v3 = vperm.slane %v16023_v33, %v18781_v63 }
 0x9be   : > { %v16108_v48 = vadd.s32 127, %v6604_v4  ;;  %v8717_v15 = vperm.slane %v15991_v16, %v18778_v29  ;;  %vm5604_vm2 = vweird.f32 %v15993_v19  ;;  %v5608_v46 = vand.u32 2147483647, %v15993_v19 }
 0x9bf   : > { %v5603_v22 = vadd.f32 %v16037_v30, %v5602_v54  ;;  %8913 = vperm.xlu2 %10003, %v8872_v26   ;;  %v8716_v7 = vsel %vm17773_vm7, %v8715_v39, %v8714_v59  ;;  %vm6740_vm1 = vc.u32 %v16091_v8, %v16102_v23  ;;  %v6741_v28 = vadd.s32 1, %v6737_v27  ;;  %vm16120_vm15 = vmor %vm5604_vm2, %vm5605_vm11  ;;  %v18789_v26 = vld [vmem:[#allocation190_spill] sm:$0xff] }
 0x9c0   : > { %vm6811_vm12 = vcmp.gt.s32.totalorder %v6810_v10, 0  ;;  %v8720_v12 = vperm.slane %v15717_v6, %v18778_v29  ;;  %v16124_v16 = vadd.f32 %v5868_v50, %v5867_v35  ;;  %v8735_v19 = vsel %vm17785_vm8, %v8716_v7, %v18785_v18  ;;  %v18790_v7 = vld [vmem:[#allocation183_spill] sm:$0xff] }
 0x9c1   : > { %v5607_v54 = vsel %vm16120_vm15, %v16037_v30, %v5603_v22  ;;  %v8719_v57 = vsel %vm17773_vm7, %v8718_v34, %v8717_v15  ;;  %v18786_v6 = vand.u32 2147483647, %v18776_v53  ;;  %v5611_v14 = vor.u32 1.1754944e-38, %v5610_v37 }
 0x9c2   : > { %18784 = vst [vmem:[#allocation149_spill] sm:$0xff] %v16124_v16  ;;  %v8786_v45 = vpop.permute.xlu2 %8785  ;;  %v8722_v35 = vsel %vm17773_vm7, %v8721_v3, %v8720_v12  ;;  %v8726_v50 = vperm.slane %v8695_v51, %v18778_v29  ;;  %v8875_v30 = vmul.f32 %v15799_v5, %v18790_v7  ;;  %v8723_v22 = vperm.slane %v15792_v31, %v18778_v29 }
 0x9c3   : > { %vm16134_vm4 = vcmp.le.f32.partialorder %v18786_v6, 0.7853982  ;;  %v8873_v39 = vmul.f32 %v8786_v45, %v18789_v26  ;;  %vm5609_vm13 = vcmp.eq.f32.partialorder %v5608_v46, 8.507059e+37  ;;  %v6812_v15 = vsel %vm6811_vm12, %v6810_v10, 0 }
 0x9c4   : > { %v8727_v37 = vperm.slane %v15861_v21, %v18781_v63  ;;  %v16149_v33 = vsel %vm5609_vm13, %v5611_v14, %v5607_v54  ;;  %v8736_v51 = vsel %vm17782_vm9, %v8719_v57, %v8735_v19  ;;  %v6958_v3 = vand.u32 2139095040, %v16124_v16 }
 0x9c5   : > { %v8704_v59 = vpop.permute.xlu1 %8703  ;;  %18791 = vst [vmem:[#allocation102_spill] sm:$0xff] %v16149_v33  ;;  %8916 = vperm.xlu0 %10000, %v8873_v39   ;;  %v8724_v5 = vperm.slane %v16055_v13, %v18781_v63  ;;  %v8729_v31 = vperm.slane %v8701_v61, %v18778_v29  ;;  %vm18792_vm3 = vcmask 1043459   ;;  %v6600_v10 = vsub.s32 32, %v16064_v38 }
 0x9c6   : > { %v8730_v34 = vperm.slane %v8704_v59, %v18781_v63  ;;  %v8737_v46 = vsel %vm18792_vm3, %v8722_v35, %v8736_v51  ;;  %v6738_v21 = vmul.u32 %v15892_v49, %v16087_v42  ;;  %v6742_v12 = vsel %vm6740_vm1, %v6741_v28, %v6737_v27  ;;  %v18795_v28 = vld [vmem:[#allocation107_spill] sm:$0xff] }
 0x9c7   : > { %8922 = vperm.xlu2 %10003, %v8875_v30   ;;  %v8728_v18 = vsel %vm17773_vm7, %v8727_v37, %v8726_v50  ;;  %v16164_v19 = vand.u32 31, %v6812_v15  ;;  %v8725_v13 = vsel %vm17773_vm7, %v8724_v5, %v8723_v22  ;;  %v5614_v54 = vmul.f32 %v16149_v33, %v15771_v11  ;;  %v18797_v50 = vld [vmem:[#allocation65_spill] sm:$0xff]  ;;  %v16197_v37 = vld [vmem:[%s10661_s15] sm:$0xff] }
 0x9c8   : > { %v8731_v61 = vsel %vm17773_vm7, %v8730_v34, %v8729_v31  ;;  %v18793_v57 = vsub.s32 32, %v16034_v9  ;;  %v6451_v49 = vshll.u32 %v16082_v58, 23  ;;  %v6606_v42 = vshll.u32 %v16108_v48, 23  ;;  %v8710_v35 = vpop.permute.xlu0 %8709 }
 0x9c9   : > { %vm18794_vm14 = vcmask 1044484   ;;  %v6584_v59 = vadd.s32 %v18795_v28, %v15715_v43  ;;  %v16178_v6 = vadd.s32 %v6742_v12, %v6738_v21  ;;  %v6959_v14 = vshrl.u32 %v6958_v3, 23 }
 0x9ca   : > { %v6447_v45 = vshrl.u32 %v16072_v60, %v18793_v57  ;;  %v8738_v27 = vsel %vm18794_vm14, %v8725_v13, %v8737_v46  ;;  %vm18796_vm6 = vcmask 1045509   ;;  %v6446_v39 = vshll.u32 %v18797_v50, %v16034_v9  ;;  %v18798_v60 = vld [vmem:[#allocation134_spill] sm:$0xff]  ;;  %v18800_v46 = vld [vmem:[#allocation44_spill] sm:$0xff] }
 0x9cb   : > { %v8739_v11 = vsel %vm18796_vm6, %v8728_v18, %v8738_v27  ;;  %v8732_v30 = vperm.slane %v18798_v60, %v18778_v29  ;;  %v8733_v58 = vperm.slane %v8710_v35, %v18781_v63  ;;  %vm18799_vm0 = vcmask 1046534   ;;  %v18802_v18 = vld [vmem:[#allocation204_spill] sm:$0xff] }
 0x9cc   : > { %v8740_v48 = vsel %vm18799_vm0, %v8731_v61, %v8739_v11  ;;  %v16191_v43 = vsel %vm16134_vm4, %v18776_v53, %v16068_v47  ;;  %v6602_v22 = vshrl.u32 %v6584_v59, %v6600_v10  ;;  %v16194_v34 = vsub.s32 32, %v16164_v19  ;;  %v18826_v63 = vld [vmem:[#allocation128_spill] sm:$0xff] }
 0x9cd   : > { %v5618_v9 = vmul.f32 %v16197_v37, %v5614_v54  ;;  %v6448_v51 = vor.u32 %v6447_v45, %v6446_v39  ;;  %v6452_v3 = vor.u32 4788187, %v6451_v49  ;;  %v6607_v5 = vor.u32 4788187, %v6606_v42 }
 0x9ce   : > { %v8734_v31 = vsel %vm17773_vm7, %v8733_v58, %v8732_v30  ;;  %v6601_v21 = vshll.u32 %v18800_v46, %v16064_v38  ;;  %v6744_v12 = vadd.s32 536870912, %v16178_v6  ;;  %v9707_v47 = vadd.s32 4294967169, %v6959_v14 }
 0x9cf   : > { %vm18801_vm10 = vcmask 1047559   ;;  %5620 = vrot.lane.b32.xlu2 %v5618_v9, %s10404_s19  ;;  %v16208_v13 = vmul.f32 %v16031_v0, %v18802_v18  ;;  %v6002_v61 = vadd.f32 -0.4999988, %v16048_v20  ;;  %v16212_v54 = vand.u32 3, %v16027_v2 }
 0x9d0   : > { %v8741_v10 = vsel %vm18801_vm10, %v8734_v31, %v8740_v48  ;;  %vm18803_vm11 = vcmask 130048   ;;  %v6009_v38 = vadd.f32 -0.16666654, %v16051_v1  ;;  %v16218_v45 = vmul.f32 %v16191_v43, %v16191_v43 }
 0x9d1   : > { %v8743_v57 = vsel %vm18803_vm11, %v8741_v10, 0.0  ;;  %v6603_v49 = vor.u32 %v6602_v22, %v6601_v21  ;;  %v18804_v42 = vmov 1326507024   ;;  %v6453_v0 = vand.u32 2147483647, %v6452_v3  ;;  %v18809_v22 = vld [vmem:[#allocation121_spill] sm:$0xff] }
 0x9d2   : > { %v6830_v27 = vshrl.u32 %v18804_v42, %v16194_v34  ;;  %8744 = vadd.xlane.f32.xlu1 %v8743_v57  ;;  %v6455_v28 = vcvt.s32.f32 %v6448_v51  ;;  %v6608_v59 = vand.u32 2147483647, %v6607_v5  ;;  %v17763_v20 = vand.u32 2147483647, %v15987_v32 }
 0x9d3   : > { %v16223_v2 = vshrl.u32 %v6744_v12, 30  ;;  %v18806_v14 = vmov 2131351028   ;;  %v18807_v1 = vmov 920167782   ;;  %v6965_v50 = vadd.s32 1, %v9707_v47 }
 0x9d4   : > { %v6821_v35 = vshrl.u32 %v18806_v14, %v16194_v34  ;;  %v6829_v11 = vshll.u32 %v18807_v1, %v16164_v19  ;;  %v16229_v60 = vshrl.u32 %v6812_v15, 5  ;;  %v18808_v30 = vmov 2102212464  }
 0x9d5   : > { %18805 = vst [vmem:[#allocation129_spill] sm:$0xff] %v16223_v2  ;;  %v8806_v39 = vpop.permute.xlu1 %8805  ;;  %v6824_v58 = vshrl.u32 %v18808_v30, %v16194_v34  ;;  %v6827_v48 = vshrl.u32 %v18807_v1, %v16194_v34  ;;  %v6316_v3 = vmul.f32 -0.00019511016, %v16218_v45  ;;  %v6610_v5 = vcvt.s32.f32 %v6603_v49 }
 0x9d6   : > { %v8876_v51 = vmul.f32 %v8806_v39, %v18809_v22  ;;  %v18810_v31 = vmov 2475754826   ;;  %v6831_v21 = vor.u32 %v6830_v27, %v6829_v11  ;;  %v6456_v12 = vmul.f32 %v6455_v28, %v6453_v0  ;;  %v18811_v0 = vld [vmem:[#allocation62_spill] sm:$0xff]  ;;  %v18824_v22 = vld [vmem:[#allocation39_spill] sm:$0xff] }
 0x9d7   : > { %v6820_v46 = vshll.u32 %v18810_v31, %v16164_v19  ;;  %v6807_v15 = vand.u32 8388607, %v17763_v20  ;;  %v6823_v47 = vshll.u32 %v18806_v14, %v16164_v19  ;;  %v6826_v10 = vshll.u32 %v18808_v30, %v16164_v19  ;;  %5636 = vrot.lane.b32.xlu2 %v5618_v9, %s10407_s21 }
 0x9d8   : > { %8925 = vperm.xlu0 %10000, %v8876_v51   ;;  %v6611_v18 = vmul.f32 %v6610_v5, %v6608_v59  ;;  %v6746_v57 = vshll.u32 %v16223_v2, 30  ;;  %vm6966_vm2 = vcmp.gt.s32.totalorder %v6965_v50, 0  ;;  %vm6835_vm1 = vcmp.lt.s32.totalorder %v16229_v60, 4 }
 0x9d9   : > { %v16246_v39 = vor.u32 %v6821_v35, %v6820_v46  ;;  %v16249_v49 = vor.u32 %v6824_v58, %v6823_v47  ;;  %v6828_v27 = vor.u32 %v6827_v48, %v6826_v10  ;;  %v5616_v28 = vmul.f32 %v16149_v33, %v18811_v0 }
 0x9da   : > { %v6003_v11 = vmul.f32 %v6002_v61, %v15918_v25  ;;  %v6010_v51 = vmul.f32 %v6009_v38, %v15918_v25  ;;  %v6818_v59 = vshrl.u32 %v18810_v31, %v16194_v34  ;;  %v6845_v35 = vsel %vm6835_vm1, %v6831_v21, 1326507024 }
 0x9db   : > { %v6317_v5 = vadd.f32 0.008332121, %v6316_v3  ;;  %v6457_v9 = vxor.u32 2147483648, %v6456_v12  ;;  %v6808_v58 = vor.u32 8388608, %v6807_v15  ;;  %v6967_v46 = vsel %vm6966_vm2, %v6965_v50, 0  ;;  %v18812_v3 = vld [vmem:[#allocation173_spill] sm:$0xff] }
 0x9dc   : > { %v16261_v48 = vsub.s32 %v16178_v6, %v6746_v57  ;;  %v6817_v47 = vshll.u32 %v18632_v52, %v16164_v19  ;;  %vm6832_vm12 = vcmp.lt.s32.totalorder %v16229_v60, 1  ;;  %vm6834_vm15 = vcmp.lt.s32.totalorder %v16229_v60, 3 }
 0x9dd   : > { %v6612_v25 = vxor.u32 2147483648, %v6611_v18  ;;  %v6844_v61 = vsel %vm6832_vm12, %v16246_v39, %v16249_v49  ;;  %v6846_v38 = vsel %vm6834_vm15, %v6828_v27, %v6845_v35  ;;  %v16274_v50 = vmul.f32 %v16197_v37, %v5616_v28  ;;  %v18813_v28 = vld [vmem:[#allocation210_spill] sm:$0xff] }
 0x9de   : > { %v16276_v6 = vadd.f32 1.0, %v6003_v11  ;;  %vm6337_vm13 = vcmp.lt.s32.totalorder %v18812_v3, 0  ;;  %v6819_v19 = vor.u32 %v6818_v59, %v6817_v47  ;;  %v16279_v21 = vand.u32 31, %v6967_v46 }
 0x9df   : > { %v6011_v15 = vadd.f32 1.0, %v6010_v51  ;;  %v6458_v10 = vsel %vm6337_vm13, %v6457_v9, %v6456_v12  ;;  %vm6833_vm3 = vcmp.lt.s32.totalorder %v16229_v60, 2  ;;  %v6841_v57 = vsel %vm6835_vm1, %v6828_v27, 920167782  ;;  %5649 = vrot.lane.b32.xlu2 %v16274_v50, %s10407_s21 }
 0x9e0   : > { %5632 = vrot.lane.b32.xlu0 %v16274_v50, %s10405_s1  ;;  %v6318_v0 = vmul.f32 %v6317_v5, %v16218_v45  ;;  %vm17786_vm14 = vcmp.lt.s32.totalorder %v18813_v28, 0  ;;  %v6749_v11 = vsub.s32 0, %v16261_v48  ;;  %v6847_v51 = vsel %vm6833_vm3, %v6844_v61, %v6846_v38  ;;  %v16306_v5 = vpop.permute.xlu2 %8792 }
 0x9e1   : > { %v18814_v12 = vand.u32 2147483647, %v18812_v3  ;;  %v18815_v59 = vmov 0  ;;  %v6613_v27 = vsel %vm17786_vm14, %v6612_v25, %v6611_v18  ;;  %vm6748_vm0 = vcmp.lt.s32.totalorder %v16261_v48, 0 }
 0x9e2   : > { %v16304_v35 = vshll.u32 %v6808_v58, 8  ;;  %v6840_v47 = vsel %vm6832_vm12, %v6819_v19, %v16246_v39  ;;  %v6842_v61 = vsel %vm6834_vm15, %v16249_v49, %v6841_v57  ;;  %v16320_v18 = vsub.s32 32, %v16279_v21  ;;  %v18819_v58 = vld [vmem:[#allocation131_spill] sm:$0xff] }
 0x9e3   : > { %vm16297_vm6 = vcmp.le.f32.partialorder %v18814_v12, 0.7853982  ;;  %v16323_v25 = vmul.f32 %v6011_v15, %v18819_v58  ;;  %v18820_v12 = vand.u32 2147483647, %v18813_v28  ;;  %v6852_v20 = vshrl.u32 %v6847_v51, 16 }
 0x9e4   : > { %v18816_v59 = vsel %vm16297_vm6, 4294967295, %v18815_v59  ;;  %v16311_v9 = vsel %vm16297_vm6, %v18812_v3, %v6458_v10  ;;  %v18821_v10 = vmov 0  ;;  %v16333_v26 = vadd.f32 -0.16666654, %v6318_v0 }
 0x9e5   : > { %18817 = vst [vmem:[#allocation97_spill] sm:$0xff] %v18816_v59  ;;  %vm16328_vm10 = vcmp.le.f32.partialorder %v18820_v12, 0.7853982  ;;  %v6750_v15 = vsel %vm6748_vm0, %v6749_v11, %v16261_v48  ;;  %v16343_v58 = vmul.f32 %v16311_v9, %v16311_v9  ;;  %v16347_v12 = vsel %vm6833_vm3, %v6840_v47, %v6842_v61 }
 0x9e6   : > { %18818 = vst [vmem:[#allocation175_spill] sm:$0xff] %v16311_v9  ;;  %v18822_v10 = vsel %vm16328_vm10, 4294967295, %v18821_v10  ;;  %v16338_v57 = vsel %vm16328_vm10, %v18813_v28, %v6613_v27  ;;  %v6849_v38 = vand.u32 65535, %v16304_v35  ;;  %v6816_v7 = vshrl.u32 %v18632_v52, %v16194_v34 }
 0x9e7   : > { %18823 = vst [vmem:[#allocation120_spill] sm:$0xff] %v18822_v10  ;;  %v16354_v27 = vshrl.u32 %v16304_v35, 16  ;;  %v6851_v62 = vand.u32 65535, %v6847_v51  ;;  %v6985_v11 = vshrl.u32 %v18804_v42, %v16320_v18  ;;  %v16360_v56 = vmul.f32 %v16338_v57, %v16338_v57 }
 0x9e8   : > { %18825 = vst [vmem:[#allocation177_spill] sm:$0xff] %v16338_v57  ;;  %v6751_v47 = vclz %v6750_v15  ;;  %v16362_v61 = vmul.u32 %v6852_v20, %v6849_v38  ;;  %v6982_v0 = vshrl.u32 %v18807_v1, %v16320_v18  ;;  %5641 = vrot.lane.b32.xlu0 %v16274_v50, %s10404_s19  ;;  %v16370_v34 = vsel %vm6832_vm12, %v6816_v7, %v6819_v19  ;;  %v16386_v7 = vpop.permute.xlu2 %8811 }
 0x9e9   : > { %v16375_v42 = vsel %vm6835_vm1, %v16249_v49, 2102212464  ;;  %v6873_v51 = vand.u32 65535, %v16347_v12  ;;  %v6984_v15 = vshll.u32 %v18807_v1, %v16279_v21  ;;  %v16380_v24 = vshrl.u32 %v6967_v46, 5 }
 0x9ea   : > { %v6981_v29 = vshll.u32 %v18808_v30, %v16279_v21  ;;  %v8871_v17 = vmul.f32 %v16075_v55, %v18826_v63  ;;  %v18827_v19 = vand.u32 2147483647, %v16124_v16  ;;  %v6853_v49 = vmul.u32 %v6851_v62, %v6849_v38 }
 0x9eb   : > { %v16391_v57 = vmul.u32 %v6851_v62, %v16354_v27  ;;  %v6874_v9 = vshrl.u32 %v16347_v12, 16  ;;  %v6986_v1 = vor.u32 %v6985_v11, %v6984_v15  ;;  %v9702_v46 = vadd.s32 4294967294, %v6751_v47 }
 0x9ec   : > { %v6962_v41 = vand.u32 8388607, %v18827_v19  ;;  %v6857_v2 = vshll.u32 %v16362_v61, 16  ;;  %v6983_v10 = vor.u32 %v6982_v0, %v6981_v29  ;;  %8910 = vperm.xlu1 %10002, %v8871_v17   ;;  %v6975_v55 = vshll.u32 %v18810_v31, %v16279_v21 }
 0x9ed   : > { %v6973_v63 = vshrl.u32 %v18810_v31, %v16320_v18  ;;  %v6976_v19 = vshrl.u32 %v18806_v14, %v16320_v18  ;;  %v6978_v62 = vshll.u32 %v18806_v14, %v16279_v21  ;;  %v6979_v12 = vshrl.u32 %v18808_v30, %v16320_v18 }
 0x9ee   : > { %v6856_v11 = vmul.u32 %v6852_v20, %v16354_v27  ;;  %vm6990_vm11 = vcmp.lt.s32.totalorder %v16380_v24, 4  ;;  %v6963_v17 = vor.u32 8388608, %v6962_v41  ;;  %v6972_v29 = vshll.u32 %v18632_v52, %v16279_v21 }
 0x9ef   : > { %v6875_v0 = vmul.u32 %v6873_v51, %v6849_v38  ;;  %v7000_v31 = vsel %vm6990_vm11, %v6986_v1, 1326507024  ;;  %v16411_v47 = vor.u32 %v6976_v19, %v6975_v55  ;;  %v16413_v15 = vor.u32 %v6979_v12, %v6978_v62  ;;  %v18831_v12 = vld [vmem:[#allocation34_spill] sm:$0xff] }
 0x9f0   : > { %vm16415_vm2 = vc.u32 %v6853_v49, %v6857_v2  ;;  %v16419_v30 = vmul.u32 %v6874_v9, %v6849_v38  ;;  %5654 = vrot.lane.b32.xlu0 %v16274_v50, %s10414_s10  ;;  %v16423_v41 = vor.u32 %v6973_v63, %v6972_v29  ;;  %vm6987_vm1 = vcmp.lt.s32.totalorder %v16380_v24, 1  ;;  %v18830_v38 = vld [vmem:[#allocation211_spill] sm:$0xff]  ;;  %v8819_v55 = vpop.permute.xlu2 %8818 }
 0x9f1   : > { %vm9703_vm12 = vcmp.lt.s32.totalorder %v9702_v46, 0  ;;  %v6996_v20 = vsel %vm6990_vm11, %v6983_v10, 920167782  ;;  %vm6989_vm0 = vcmp.lt.s32.totalorder %v16380_v24, 3  ;;  %v6999_v21 = vsel %vm6987_vm1, %v16411_v47, %v16413_v15 }
 0x9f2   : > { %v8874_v1 = vmul.f32 %v16306_v5, %v18830_v38  ;;  %vm6988_vm7 = vcmp.lt.s32.totalorder %v16380_v24, 2  ;;  %v7001_v63 = vsel %vm6989_vm0, %v6983_v10, %v7000_v31  ;;  %v16438_v50 = vshll.u32 %v6963_v17, 8  ;;  %v18832_v38 = vld [vmem:[#allocation191_spill] sm:$0xff] }
 0x9f3   : > { %v6859_v19 = vshll.u32 %v16391_v57, 16  ;;  %v6862_v62 = vsel %vm16415_vm2, 1, %v18629_v44  ;;  %v8878_v29 = vmul.f32 %v8819_v55, %v18831_v12  ;;  %v7002_v16 = vsel %vm6988_vm7, %v6999_v21, %v7001_v63  ;;  %v8845_v21 = vpop.permute.xlu1 %8844  ;;  %v18834_v12 = vld [vmem:[#allocation101_spill] sm:$0xff] }
 0x9f4   : > { %v16447_v5 = vsel %vm9703_vm12, 0, %v9702_v46  ;;  %8919 = vperm.xlu1 %10002, %v8874_v1   ;;  %v5615_v32 = vmul.f32 %v16149_v33, %v18832_v38  ;;  %v6995_v10 = vsel %vm6987_vm1, %v16423_v41, %v16411_v47  ;;  %v6997_v17 = vsel %vm6989_vm0, %v16413_v15, %v6996_v20  ;;  %v18833_v38 = vld [vmem:[#allocation208_spill] sm:$0xff] }
 0x9f5   : > { %v6877_v31 = vmul.u32 %v6873_v51, %v16354_v27  ;;  %v6878_v14 = vmul.u32 %v6874_v9, %v16354_v27  ;;  %8931 = vperm.xlu2 %10003, %v8878_v29   ;;  %v7006_v46 = vand.u32 65535, %v7002_v16  ;;  %v7007_v1 = vshrl.u32 %v7002_v16, 16  ;;  %v18835_v16 = vld [vmem:[#allocation193_spill] sm:$0xff] }
 0x9f6   : > { %v6863_v55 = vadd.s32 %v6857_v2, %v6853_v49  ;;  %v6864_v63 = vadd.s32 %v6862_v62, %v6856_v11  ;;  %v8879_v33 = vmul.f32 %v18834_v12, %v18833_v38  ;;  %v16463_v59 = vand.u32 65535, %v16438_v50  ;;  %v18836_v2 = vld [vmem:[#allocation37_spill] sm:$0xff]  ;;  %v18837_v49 = vld [vmem:[#allocation176_spill] sm:$0xff] }
 0x9f7   : > { %v6759_v28 = vsub.s32 4294967266, %v16447_v5  ;;  %v6879_v20 = vshll.u32 %v16419_v30, 16  ;;  %v16469_v51 = vsel %vm6988_vm7, %v6995_v10, %v6997_v17  ;;  %v16472_v9 = vshrl.u32 %v16438_v50, 16 }
 0x9f8   : > { %v8881_v27 = vmul.f32 %v18836_v2, %v18835_v16  ;;  %v8882_v11 = vmul.f32 %v8845_v21, %v18837_v49  ;;  %v5624_v62 = vmul.f32 %v16197_v37, %v5615_v32  ;;  %8934 = vperm.xlu0 %10000, %v8879_v33   ;;  %v16479_v12 = vmul.u32 %v7007_v1, %v16463_v59 }
 0x9f9   : > { %v6881_v29 = vshll.u32 %v6877_v31, 16  ;;  %vm6883_vm2 = vc.u32 %v6875_v0, %v6879_v20  ;;  %v6885_v38 = vadd.s32 %v6879_v20, %v6875_v0  ;;  %v16482_v10 = vmul.u32 %v7006_v46, %v16472_v9 }
 0x9fa   : > { %v6884_v17 = vsel %vm6883_vm2, 1, %v18629_v44  ;;  %v7008_v3 = vmul.u32 %v7006_v46, %v16463_v59  ;;  %v7012_v2 = vshll.u32 %v16479_v12, 16  ;;  %v7029_v21 = vshrl.u32 %v16469_v51, 16 }
 0x9fb   : > { %vm6865_vm12 = vc.u32 %v6863_v55, %v6859_v19  ;;  %v6886_v32 = vadd.s32 %v6884_v17, %v6878_v14  ;;  %vm6887_vm9 = vc.u32 %v6885_v38, %v6881_v29  ;;  %v7028_v33 = vand.u32 65535, %v16469_v51 }
 0x9fc   : > { %5626 = vrot.lane.b32.xlu1 %v5624_v62, %s10403_s22  ;;  %v6858_v37 = vshrl.u32 %v16362_v61, 16  ;;  %v6866_v0 = vsel %vm6865_vm12, 1, %v18629_v44  ;;  %v6888_v20 = vsel %vm6887_vm9, 1, %v18629_v44  ;;  %vm7016_vm2 = vc.u32 %v7008_v3, %v7012_v2 }
 0x9fd   : > { %8940 = vperm.xlu2 %10003, %v8881_v27   ;;  %v6868_v46 = vadd.s32 %v6866_v0, %v6864_v63  ;;  %v6880_v49 = vshrl.u32 %v16419_v30, 16  ;;  %v7011_v16 = vmul.u32 %v7007_v1, %v16472_v9  ;;  %v7014_v19 = vshll.u32 %v16482_v10, 16 }
 0x9fe   : > { %v6890_v14 = vadd.s32 %v6888_v20, %v6886_v32  ;;  %v7017_v55 = vsel %vm7016_vm2, 1, %v18629_v44  ;;  %v7018_v51 = vadd.s32 %v7012_v2, %v7008_v3  ;;  %v16498_v17 = vmul.u32 %v7029_v21, %v16463_v59 }
 0x9ff   : > { %v6838_v61 = vsel %vm6834_vm15, %v16246_v39, %v16375_v42  ;;  %v6860_v63 = vshrl.u32 %v16391_v57, 16  ;;  %v6869_v27 = vadd.s32 %v6868_v46, %v6858_v37  ;;  %v7019_v30 = vadd.s32 %v7017_v55, %v7011_v16  ;;  %v18838_v37 = vld [vmem:[#allocation19_spill] sm:$0xff] }
 0xa00   : > { %v6760_v0 = vadd.s32 127, %v6759_v28  ;;  %8943 = vperm.xlu0 %10000, %v8882_v11   ;;  %v6882_v1 = vshrl.u32 %v6877_v31, 16  ;;  %v6891_v40 = vadd.s32 %v6890_v14, %v6880_v49  ;;  %vm7020_vm9 = vc.u32 %v7018_v51, %v7014_v19 }
 0xa01   : > { %v6755_v32 = vsub.s32 32, %v16447_v5  ;;  %v16506_v3 = vadd.s32 %v6869_v27, %v6860_v63  ;;  %v16508_v2 = vadd.s32 %v6885_v38, %v6881_v29  ;;  %v7021_v20 = vsel %vm7020_vm9, 1, %v18629_v44  ;;  %v18839_v63 = vld [vmem:[#allocation166_spill] sm:$0xff] }
 0xa02   : > { %v6839_v39 = vsel %vm6833_vm3, %v16370_v34, %v6838_v61  ;;  %v6892_v57 = vadd.s32 %v6891_v40, %v6882_v1  ;;  %v7032_v42 = vmul.u32 %v7028_v33, %v16472_v9  ;;  %v7034_v28 = vshll.u32 %v16498_v17, 16 }
 0xa03   : > { %vm6020_vm15 = vcmp.eq.s32.totalorder %v16212_v54, 2  ;;  %v6471_v31 = vmul.f32 -0.00019511016, %v16343_v58  ;;  %v6739_v16 = vadd.s32 %v16102_v23, %v16091_v8  ;;  %vm6895_vm12 = vc.u32 %v16506_v3, %v16508_v2 }
 0xa04   : > { %v7023_v38 = vadd.s32 %v7021_v20, %v7019_v30  ;;  %vm7259_vm2 = vcmp.eq.s32.totalorder %v16029_v36, 2  ;;  %v6626_v60 = vmul.f32 -0.00019511016, %v16360_v56  ;;  %v6761_v40 = vshll.u32 %v6760_v0, 23  ;;  %5645 = vrot.lane.b32.xlu1 %v5624_v62, %s10415_s23  ;;  %v18841_v20 = vld [vmem:[#allocation192_spill] sm:$0xff] }
 0xa05   : > { %v6896_v34 = vadd.s32 1, %v6892_v57  ;;  %v7030_v49 = vmul.u32 %v7028_v33, %v16463_v59  ;;  %v6757_v11 = vshrl.u32 %v6739_v16, %v6755_v32  ;;  %v6893_v29 = vmul.u32 %v16304_v35, %v6839_v39  ;;  %10008 = vset.pattern.permute.xlu2 %v18838_v37 }
 0xa06   : > { %v7013_v8 = vshrl.u32 %v16479_v12, 16  ;;  %v7033_v23 = vmul.u32 %v7029_v21, %v16472_v9  ;;  %v7036_v19 = vshll.u32 %v7032_v42, 16  ;;  %vm6017_vm9 = vcmp.eq.s32.totalorder %v16212_v54, 0 }
 0xa07   : > { %v6897_v46 = vsel %vm6895_vm12, %v6896_v34, %v6892_v57  ;;  %vm7038_vm3 = vc.u32 %v7030_v49, %v7034_v28  ;;  %v7040_v14 = vadd.s32 %v7034_v28, %v7030_v49  ;;  %vm7256_vm8 = vcmp.eq.s32.totalorder %v16029_v36, 0 }
 0xa08   : > { %v6756_v59 = vshll.u32 %v16261_v48, %v16447_v5  ;;  %v6898_v62 = vadd.s32 %v6897_v46, %v6893_v29  ;;  %v7024_v33 = vadd.s32 %v7023_v38, %v7013_v8  ;;  %v7039_v35 = vsel %vm7038_vm3, 1, %v18629_v44  ;;  %10004 = vset.pattern.permute.xlu0 %v18838_v37  ;;  %v8832_v29 = vpop.permute.xlu2 %8831  ;;  %v18844_v8 = vld [vmem:[#allocation23_spill] sm:$0xff] }
 0xa09   : > { %v6762_v55 = vor.u32 4788187, %v6761_v40  ;;  %v6992_v9 = vsel %vm6990_vm11, %v16413_v15, 2102212464  ;;  %v7041_v12 = vadd.s32 %v7039_v35, %v7033_v23  ;;  %vm7042_vm12 = vc.u32 %v7040_v14, %v7036_v19 }
 0xa0a   : > { %v6899_v21 = vadd.s32 536870912, %v6898_v62  ;;  %v6971_v51 = vshrl.u32 %v18632_v52, %v16320_v18  ;;  %v7015_v61 = vshrl.u32 %v16482_v10, 16  ;;  %v7043_v48 = vsel %vm7042_vm12, 1, %v18629_v44 }
 0xa0b   : > { %vm6016_vm14 = vcmp.lt.s32.totalorder %v16212_v54, 2  ;;  %v6758_v5 = vor.u32 %v6757_v11, %v6756_v59  ;;  %v8877_v27 = vmul.f32 %v16386_v7, %v18839_v63  ;;  %v7035_v30 = vshrl.u32 %v16498_v17, 16  ;;  %v18846_v59 = vld [vmem:[#allocation209_spill] sm:$0xff] }
 0xa0c   : > { %v7045_v0 = vadd.s32 %v7043_v48, %v7041_v12  ;;  %vm7255_vm11 = vcmp.lt.s32.totalorder %v16029_v36, 2  ;;  %v16548_v15 = vshrl.u32 %v6899_v21, 30  ;;  %v6991_v52 = vsel %vm6987_vm1, %v6971_v51, %v16423_v41  ;;  %v18848_v48 = vld [vmem:[#allocation132_spill] sm:$0xff] }
 0xa0d   : > { %v6993_v44 = vsel %vm6989_vm0, %v16411_v47, %v6992_v9  ;;  %v16556_v18 = vadd.s32 %v7024_v33, %v7015_v61  ;;  %v6018_v10 = vxor.u32 2147483648, %v16323_v25  ;;  %v18840_v7 = vxor.u32 2147483648, %v16276_v6  ;;  %8928 = vperm.xlu1 %10002, %v8877_v27  }
 0xa0e   : > { %v7037_v1 = vshrl.u32 %v7032_v42, 16  ;;  %v7046_v32 = vadd.s32 %v7045_v0, %v7035_v30  ;;  %vm6013_vm3 = vweird.f32 %v18841_v20  ;;  %v6320_v39 = vmul.f32 %v16333_v26, %v16218_v45 }
 0xa0f   : > { %v6022_v17 = vsel %vm6020_vm15, %v18840_v7, %v16323_v25  ;;  %v18842_v41 = vmov %v18840_v7  ;;  %v6763_v57 = vand.u32 2147483647, %v6762_v55  ;;  %v16572_v28 = vadd.s32 %v7040_v14, %v7036_v19 }
 0xa10   : > { %v7261_v47 = vsel %vm7259_vm2, %v18842_v41, %v16323_v25  ;;  %v18843_v16 = vsub.s32 4, %v18824_v22  ;;  %v6901_v38 = vshll.u32 %v16548_v15, 30  ;;  %v6994_v40 = vsel %vm6988_vm7, %v6991_v52, %v6993_v44  ;;  %v18849_v44 = vld [vmem:[#allocation74_spill] sm:$0xff] }
 0xa11   : > { %v7047_v34 = vadd.s32 %v7046_v32, %v7037_v1  ;;  %v6472_v49 = vadd.f32 0.008332121, %v6471_v31  ;;  %v6627_v25 = vadd.f32 0.008332121, %v6626_v60  ;;  %v6765_v11 = vcvt.s32.f32 %v6758_v5  ;;  %v8851_v1 = vpop.permute.xlu2 %8850 }
 0xa12   : > { %v6305_v42 = vsel %vm6182_vm5, %v18843_v16, %v18824_v22  ;;  %vm7050_vm1 = vc.u32 %v16556_v18, %v16572_v28  ;;  %v6019_v26 = vsel %vm6017_vm9, %v16276_v6, %v6018_v10  ;;  %v7258_v22 = vsel %vm7256_vm8, %v16276_v6, %v6018_v10  ;;  %v18850_v16 = vld [vmem:[#allocation93_spill] sm:$0xff] }
 0xa13   : > { %v18845_v23 = vperm.slane %v18844_v8, 0  ;;  %v16592_v24 = vsub.s32 %v6898_v62, %v6901_v38  ;;  %v7051_v31 = vadd.s32 1, %v7047_v34  ;;  %v6307_v60 = vsel %vm16134_vm4, 0, %v6305_v42  ;;  %v18852_v42 = vld [vmem:[#allocation173_spill] sm:$0xff] }
 0xa14   : > { %v6321_v46 = vadd.f32 1.0, %v6320_v39  ;;  %v6766_v19 = vmul.f32 %v6765_v11, %v6763_v57  ;;  %v7048_v14 = vmul.u32 %v16438_v50, %v6994_v40  ;;  %v8880_v33 = vmul.f32 %v8832_v29, %v18846_v59  ;;  %v18847_v50 = vld [vmem:[#allocation216_spill] sm:$0xff]  ;;  %v18853_v40 = vld [vmem:[#allocation210_spill] sm:$0xff] }
 0xa15   : > { %8990 = vperm.xlu0 %10004, %v18845_v23   ;;  %vm6903_vm7 = vcmp.lt.s32.totalorder %v16592_v24, 0  ;;  %v6904_v35 = vsub.s32 0, %v16592_v24  ;;  %v7052_v6 = vsel %vm7050_vm1, %v7051_v31, %v7047_v34  ;;  %v6023_v55 = vsel %vm6016_vm14, %v6019_v26, %v6022_v17 }
 0xa16   : > { %v6473_v62 = vmul.f32 %v6472_v49, %v16343_v58  ;;  %v6628_v9 = vmul.f32 %v6627_v25, %v16360_v56  ;;  %v7053_v4 = vadd.s32 %v7052_v6, %v7048_v14  ;;  %v7262_v12 = vsel %vm7255_vm11, %v7258_v22, %v7261_v47  ;;  %8937 = vperm.xlu1 %10002, %v8880_v33   ;;  %v18855_v49 = vld [vmem:[#allocation105_spill] sm:$0xff] }
 0xa17   : > { %v6324_v21 = vadd.s32 3, %v6307_v60  ;;  %v6459_v51 = vsub.s32 4, %v18847_v50  ;;  %v6905_v61 = vsel %vm6903_vm7, %v6904_v35, %v16592_v24  ;;  %v6614_v5 = vsub.s32 4, %v18848_v48  ;;  %v18860_v35 = vld [vmem:[#allocation91_spill] sm:$0xff] }
 0xa18   : > { %v6767_v27 = vxor.u32 2147483648, %v6766_v19  ;;  %v6906_v30 = vclz %v6905_v61  ;;  %v7054_v54 = vadd.s32 536870912, %v7053_v4  ;;  %v6173_v0 = vxor.u32 2147483648, %v16208_v13 }
 0xa19   : > { %v16612_v52 = vsel %vm6013_vm3, nan, %v6023_v55  ;;  %v16615_v36 = vmul.f32 %v6321_v46, %v16191_v43  ;;  %v6154_v10 = vmul.f32 -0.001358992, %v18849_v44  ;;  %v6474_v7 = vadd.f32 -0.16666654, %v6473_v62 }
 0xa1a   : > { %v6629_v17 = vadd.f32 -0.16666654, %v6628_v9  ;;  %v9705_v32 = vadd.s32 4294967294, %v6906_v30  ;;  %v16618_v41 = vshrl.u32 %v7054_v54, 30  ;;  %v16622_v47 = vsel %vm6013_vm3, nan, %v7262_v12  ;;  %v18862_v9 = vld [vmem:[#allocation129_spill] sm:$0xff] }
 0xa1b   : > { %v16624_v39 = vand.u32 3, %v6324_v21  ;;  %v16626_v57 = vand.u32 3, %v6307_v60  ;;  %vm6647_vm8 = vcmp.lt.s32.totalorder %v18850_v16, 0  ;;  %v18851_v43 = vperm.slane %v18844_v8, 3 }
 0xa1c   : > { %v6460_v38 = vsel %vm6337_vm13, %v6459_v51, %v18847_v50  ;;  %vm18854_vm5 = vcmp.lt.s32.totalorder %v18853_v40, 0  ;;  %v6768_v20 = vsel %vm6647_vm8, %v6767_v27, %v6766_v19  ;;  %vm9706_vm4 = vcmp.lt.s32.totalorder %v9705_v32, 0 }
 0xa1d   : > { %9029 = vperm.xlu0 %10004, %v18851_v43   ;;  %v6615_v34 = vsel %vm18854_vm5, %v6614_v5, %v18848_v48  ;;  %v8883_v25 = vmul.f32 %v8851_v1, %v18855_v49  ;;  %v6155_v11 = vadd.f32 0.041655596, %v6154_v10  ;;  %v6909_v29 = vsel %vm9706_vm4, 0, %v9705_v32 }
 0xa1e   : > { %v7056_v26 = vshll.u32 %v16618_v41, 30  ;;  %v6328_v22 = vxor.u32 2147483648, %v16615_v36  ;;  %v6475_v23 = vmul.f32 %v6474_v7, %v16343_v58  ;;  %v6630_v31 = vmul.f32 %v6629_v17, %v16360_v56 }
 0xa1f   : > { %v6910_v60 = vsub.s32 32, %v6909_v29  ;;  %v16646_v14 = vsel %vm16297_vm6, 0, %v6460_v38  ;;  %v18857_v19 = vand.u32 2147483647, %v18850_v16  ;;  %vm6802_vm14 = vcmp.lt.s32.totalorder %v18860_v35, 0  ;;  %8946 = vperm.xlu1 %10002, %v8883_v25   ;;  %v18864_v25 = vld [vmem:[#allocation175_spill] sm:$0xff] }
 0xa20   : > { %v6894_v6 = vadd.s32 %v16508_v2, %v16506_v3  ;;  %v16659_v62 = vsel %vm16328_vm10, 0, %v6615_v34  ;;  %v6769_v12 = vsub.s32 4, %v18862_v9  ;;  %v6914_v50 = vsub.s32 4294967266, %v6909_v29 }
 0xa21   : > { %vm16650_vm13 = vcmp.le.f32.partialorder %v18857_v19, 0.7853982  ;;  %v6156_v51 = vmul.f32 %v6155_v11, %v18849_v44  ;;  %v6309_v61 = vmul.f32 -0.001358992, %v16218_v45  ;;  %v16669_v5 = vsub.s32 %v7053_v4, %v7056_v26  ;;  %v18869_v19 = vld [vmem:[#allocation20_spill] sm:$0xff] }
 0xa22   : > { %v16665_v21 = vsel %vm16650_vm13, %v18850_v16, %v6768_v20  ;;  %v6912_v48 = vshrl.u32 %v6894_v6, %v6910_v60  ;;  %v6476_v3 = vadd.f32 1.0, %v6475_v23  ;;  %v6631_v2 = vadd.f32 1.0, %v6630_v31  ;;  %v18868_v60 = vld [vmem:[#allocation177_spill] sm:$0xff] }
 0xa23   : > { %v6464_v27 = vmul.f32 -0.001358992, %v16343_v58  ;;  %v6915_v30 = vadd.s32 127, %v6914_v50  ;;  %v18863_v54 = vperm.slane %v18844_v8, 5  ;;  %v6619_v10 = vmul.f32 -0.001358992, %v16360_v56 }
 0xa24   : > { %v6911_v7 = vshll.u32 %v16592_v24, %v6909_v29  ;;  %vm7058_vm6 = vcmp.lt.s32.totalorder %v16669_v5, 0  ;;  %v7059_v17 = vsub.s32 0, %v16669_v5  ;;  %v6770_v4 = vsel %vm6647_vm8, %v6769_v12, %v18862_v9 }
 0xa25   : > { %9055 = vperm.xlu0 %10004, %v18863_v54   ;;  %v16683_v1 = vmul.f32 %v16665_v21, %v16665_v21  ;;  %v6916_v32 = vshll.u32 %v6915_v30, 23  ;;  %v6924_v43 = vsub.s32 4, %v16548_v15  ;;  %v6157_v38 = vadd.f32 -0.4999988, %v6156_v51 }
 0xa26   : > { %v6310_v34 = vadd.f32 0.041655596, %v6309_v61  ;;  %v6913_v20 = vor.u32 %v6912_v48, %v6911_v7  ;;  %v7060_v24 = vsel %vm7058_vm6, %v7059_v17, %v16669_v5  ;;  %v16688_v11 = vmul.f32 %v6476_v3, %v18864_v25 }
 0xa27   : > { %v18865_v29 = vand.u32 2147483647, %v18860_v35  ;;  %v6917_v23 = vor.u32 4788187, %v6916_v32  ;;  %v7061_v31 = vclz %v7060_v24  ;;  %v16697_v46 = vmul.f32 %v6631_v2, %v18868_v60  ;;  %10005 = vset.pattern.permute.xlu1 %v18869_v19 }
 0xa28   : > { %v6465_v6 = vadd.f32 0.041655596, %v6464_v27  ;;  %v6620_v55 = vadd.f32 0.041655596, %v6619_v10  ;;  %v6772_v9 = vsel %vm16650_vm13, 0, %v6770_v4  ;;  %v6479_v12 = vadd.s32 3, %v16646_v14 }
 0xa29   : > { %vm16692_vm10 = vcmp.le.f32.partialorder %v18865_v29, 0.7853982  ;;  %v6634_v50 = vadd.s32 3, %v16659_v62  ;;  %v6781_v51 = vmul.f32 -0.00019511016, %v16683_v1  ;;  %v6925_v61 = vsel %vm6802_vm14, %v6924_v43, %v16548_v15  ;;  %v18872_v29 = vld [vmem:[#allocation111_spill] sm:$0xff] }
 0xa2a   : > { %v6158_v48 = vmul.f32 %v6157_v38, %v18849_v44  ;;  %v6311_v3 = vmul.f32 %v6310_v34, %v16218_v45  ;;  %v6918_v2 = vand.u32 2147483647, %v6917_v23  ;;  %v6920_v27 = vcvt.s32.f32 %v6913_v20  ;;  %v18871_v44 = vld [vmem:[#allocation61_spill] sm:$0xff] }
 0xa2b   : > { %v6774_v30 = vmul.f32 -0.001358992, %v16683_v1  ;;  %v6782_v33 = vadd.f32 0.008332121, %v6781_v51  ;;  %v6789_v54 = vadd.s32 3, %v6772_v9  ;;  %v9708_v10 = vadd.s32 4294967294, %v7061_v31 }
 0xa2c   : > { %v18870_v7 = vperm.slane %v18844_v8, 6  ;;  %v6466_v17 = vmul.f32 %v6465_v6, %v16343_v58  ;;  %v6621_v4 = vmul.f32 %v6620_v55, %v16360_v56  ;;  %v6921_v32 = vmul.f32 %v6920_v27, %v6918_v2  ;;  %v18873_v23 = vld [vmem:[#allocation149_spill] sm:$0xff] }
 0xa2d   : > { %v6927_v15 = vsel %vm16692_vm10, 0, %v6925_v61  ;;  %vm6175_vm0 = vcmp.eq.s32.totalorder %v18871_v44, 2  ;;  %v16718_v43 = vand.u32 3, %v6479_v12  ;;  %v6783_v38 = vmul.f32 %v6782_v33, %v16683_v1 }
 0xa2e   : > { %9068 = vperm.xlu0 %10004, %v18870_v7   ;;  %vm9709_vm15 = vcmp.lt.s32.totalorder %v9708_v10, 0  ;;  %v16721_v34 = vadd.f32 1.0, %v6158_v48  ;;  %v6312_v20 = vadd.f32 -0.4999988, %v6311_v3  ;;  %v16723_v24 = vand.u32 3, %v6634_v50 }
 0xa2f   : > { %v6922_v25 = vxor.u32 2147483648, %v6921_v32  ;;  %vm7413_vm2 = vcmp.eq.s32.totalorder %v18872_v29, 2  ;;  %vm17787_vm9 = vcmp.lt.s32.totalorder %v18873_v23, 0  ;;  %v6775_v31 = vadd.f32 0.041655596, %v6774_v30 }
 0xa30   : > { %v6944_v60 = vadd.s32 3, %v6927_v15  ;;  %v7049_v6 = vadd.s32 %v16572_v28, %v16556_v18  ;;  %v7064_v55 = vsel %vm9709_vm15, 0, %v9708_v10  ;;  %v18874_v12 = vperm.slane %v18844_v8, 0 }
 0xa31   : > { %v6467_v51 = vadd.f32 -0.4999988, %v6466_v17  ;;  %v6622_v61 = vadd.f32 -0.4999988, %v6621_v4  ;;  %v16731_v48 = vand.u32 3, %v6789_v54  ;;  %v16734_v50 = vand.u32 3, %v16646_v14 }
 0xa32   : > { %8996 = vperm.xlu1 %10005, %v18874_v12   ;;  %vm6172_vm12 = vcmp.eq.s32.totalorder %v18871_v44, 0  ;;  %v6784_v3 = vadd.f32 -0.16666654, %v6783_v38  ;;  %v6923_v2 = vsel %vm6802_vm14, %v6922_v25, %v6921_v32  ;;  %v16740_v27 = vand.u32 3, %v16659_v62 }
 0xa33   : > { %v16742_v18 = vand.u32 3, %v6772_v9  ;;  %v6176_v28 = vxor.u32 2147483648, %v16721_v34  ;;  %v6313_v30 = vmul.f32 %v6312_v20, %v16218_v45  ;;  %v16749_v14 = vsel %vm16692_vm10, %v18860_v35, %v6923_v2 }
 0xa34   : > { %v18875_v33 = vand.u32 2147483647, %v18873_v23  ;;  %v7065_v10 = vsub.s32 32, %v7064_v55  ;;  %vm6327_vm3 = vcmp.eq.s32.totalorder %v16624_v39, 0  ;;  %v6776_v62 = vmul.f32 %v6775_v31, %v16683_v1 }
 0xa35   : > { %v16761_v9 = vmul.f32 %v16749_v14, %v16749_v14  ;;  %v16763_v45 = vand.u32 3, %v6944_v60  ;;  %v7069_v26 = vsub.s32 4294967266, %v7064_v55  ;;  %v6468_v7 = vmul.f32 %v6467_v51, %v16343_v58 }
 0xa36   : > { %vm16753_vm11 = vcmp.le.f32.partialorder %v18875_v33, 0.7853982  ;;  %10009 = vset.pattern.permute.xlu0 %v18869_v19  ;;  %v6623_v17 = vmul.f32 %v6622_v61, %v16360_v56  ;;  %v7067_v4 = vshrl.u32 %v7049_v6, %v7065_v10  ;;  %v7079_v32 = vsub.s32 4, %v16618_v41 }
 0xa37   : > { %vm6171_vm1 = vcmp.lt.s32.totalorder %v18871_v44, 2  ;;  %vm6330_vm7 = vcmp.eq.s32.totalorder %v16624_v39, 2  ;;  %vm6482_vm8 = vcmp.eq.s32.totalorder %v16718_v43, 0  ;;  %v6785_v38 = vmul.f32 %v6784_v3, %v16683_v1 }
 0xa38   : > { %v6929_v20 = vmul.f32 -0.001358992, %v16761_v9  ;;  %v6936_v25 = vmul.f32 -0.00019511016, %v16761_v9  ;;  %v7070_v31 = vadd.s32 127, %v7069_v26  ;;  %v6177_v56 = vsel %vm6175_vm0, %v6176_v28, %v16208_v13 }
 0xa39   : > { %v16778_v58 = vadd.f32 1.0, %v6313_v30  ;;  %vm6637_vm5 = vcmp.eq.s32.totalorder %v16723_v24, 0  ;;  %v7066_v60 = vshll.u32 %v16669_v5, %v7064_v55  ;;  %vm7410_vm4 = vcmp.eq.s32.totalorder %v18872_v29, 0  ;;  %v18878_v30 = vld [vmem:[#allocation133_spill] sm:$0xff] }
 0xa3a   : > { %v16783_v6 = vand.u32 3, %v6927_v15  ;;  %vm6326_vm13 = vcmp.lt.s32.totalorder %v16624_v39, 2  ;;  %vm6485_vm14 = vcmp.eq.s32.totalorder %v16718_v43, 2  ;;  %v6777_v12 = vadd.f32 -0.4999988, %v6776_v62  ;;  %10006 = vset.pattern.permute.xlu1 %v18838_v37 }
 0xa3b   : > { %v6930_v51 = vadd.f32 0.041655596, %v6929_v20  ;;  %v6937_v61 = vadd.f32 0.008332121, %v6936_v25  ;;  %v16790_v3 = vsel %vm7413_vm2, %v6176_v28, %v16208_v13  ;;  %v16793_v2 = vadd.f32 1.0, %v6468_v7 }
 0xa3c   : > { %vm6481_vm6 = vcmp.lt.s32.totalorder %v16718_v43, 2  ;;  %v7068_v5 = vor.u32 %v7067_v4, %v7066_v60  ;;  %v7071_v15 = vshll.u32 %v7070_v31, 23  ;;  %v7080_v55 = vsel %vm17787_vm9, %v7079_v32, %v16618_v41 }
 0xa3d   : > { %vm6168_vm0 = vweird.f32 %v18878_v30  ;;  %v16801_v33 = vadd.f32 1.0, %v6623_v17  ;;  %vm6636_vm15 = vcmp.lt.s32.totalorder %v16723_v24, 2  ;;  %v6786_v28 = vadd.f32 1.0, %v6785_v38 }
 0xa3e   : > { %v6931_v37 = vmul.f32 %v6930_v51, %v16761_v9  ;;  %v6938_v10 = vmul.f32 %v6937_v61, %v16761_v9  ;;  %vm7409_vm2 = vcmp.lt.s32.totalorder %v18872_v29, 2  ;;  %v6174_v41 = vsel %vm6172_vm12, %v16721_v34, %v6173_v0 }
 0xa3f   : > { %v6331_v62 = vxor.u32 2147483648, %v16778_v58  ;;  %v6483_v26 = vxor.u32 2147483648, %v16688_v11  ;;  %v7072_v7 = vor.u32 4788187, %v7071_v15  ;;  %v6638_v17 = vxor.u32 2147483648, %v16697_v46 }
 0xa40   : > { %v6778_v4 = vmul.f32 %v6777_v12, %v16683_v1  ;;  %v6939_v32 = vadd.f32 -0.16666654, %v6938_v10  ;;  %v16820_v38 = vsel %vm16753_vm11, 0, %v7080_v55  ;;  %v18879_v20 = vperm.slane %v18844_v8, 1  ;;  %v16840_v55 = vpop.permute.xlu0 %8901 }
 0xa41   : > { %v6329_v25 = vsel %vm6327_vm3, %v16778_v58, %v6328_v22  ;;  %v6486_v31 = vxor.u32 2147483648, %v16793_v2  ;;  %vm6633_vm12 = vweird.f32 %v18853_v40  ;;  %v7073_v1 = vand.u32 2147483647, %v7072_v7 }
 0xa42   : > { %9009 = vperm.xlu0 %10009, %v18879_v20   ;;  %v7075_v60 = vcvt.s32.f32 %v7068_v5  ;;  %v6641_v12 = vxor.u32 2147483648, %v16801_v33  ;;  %v16835_v51 = vmul.f32 %v6786_v28, %v16665_v21  ;;  %v6932_v61 = vadd.f32 -0.4999988, %v6931_v37 }
 0xa43   : > { %v6940_v15 = vmul.f32 %v6939_v32, %v16761_v9  ;;  %v6178_v10 = vsel %vm6171_vm1, %v6174_v41, %v6177_v56  ;;  %v6332_v5 = vsel %vm6330_vm7, %v6331_v62, %v16615_v36  ;;  %v6484_v21 = vsel %vm6482_vm8, %v16793_v2, %v6483_v26 }
 0xa44   : > { %vm6795_vm10 = vcmp.eq.s32.totalorder %v16731_v48, 2  ;;  %v7076_v28 = vmul.f32 %v7075_v60, %v7073_v1  ;;  %vm7563_vm3 = vcmp.lt.s32.totalorder %v16626_v57, 2  ;;  %vm7872_vm9 = vcmp.eq.s32.totalorder %v16740_v27, 0 }
 0xa45   : > { %v6639_v44 = vsel %vm6637_vm5, %v16801_v33, %v6638_v17  ;;  %v16862_v56 = vadd.f32 1.0, %v6778_v4  ;;  %vm6791_vm1 = vcmp.lt.s32.totalorder %v16731_v48, 2  ;;  %v6941_v37 = vadd.f32 1.0, %v6940_v15 }
 0xa46   : > { %v7412_v41 = vsel %vm7410_vm4, %v16721_v34, %v6173_v0  ;;  %vm7721_vm7 = vcmp.eq.s32.totalorder %v16734_v50, 2  ;;  %v18880_v7 = vmov %v18879_v20  ;;  %v6333_v32 = vsel %vm6326_vm13, %v6329_v25, %v6332_v5 }
 0xa47   : > { %9003 = vperm.xlu1 %10006, %v18880_v7   ;;  %v6487_v4 = vsel %vm6485_vm14, %v6486_v31, %v16688_v11  ;;  %v7077_v20 = vxor.u32 2147483648, %v7076_v28  ;;  %v7099_v13 = vadd.s32 3, %v16820_v38  ;;  %vm7717_vm8 = vcmp.lt.s32.totalorder %v16734_v50, 2 }
 0xa48   : > { %vm7875_vm5 = vcmp.eq.s32.totalorder %v16740_v27, 2  ;;  %v6488_v0 = vsel %vm6481_vm6, %v6484_v21, %v6487_v4  ;;  %vm18881_vm13 = vcmp.eq.s32.totalorder %v16723_v24, 2  ;;  %v6793_v34 = vxor.u32 2147483648, %v16835_v51 }
 0xa49   : > { %v6642_v39 = vsel %vm18881_vm13, %v6641_v12, %v16697_v46  ;;  %v6933_v25 = vmul.f32 %v6932_v61, %v16761_v9  ;;  %v16896_v1 = vsel %vm6168_vm0, nan, %v6178_v10  ;;  %vm6947_vm6 = vcmp.eq.s32.totalorder %v16763_v45, 0 }
 0xa4a   : > { %v6643_v43 = vsel %vm6636_vm15, %v6639_v44, %v6642_v39  ;;  %vm18882_vm4 = vcmp.lt.s32.totalorder %v18873_v23, 0  ;;  %v7416_v15 = vsel %vm7409_vm2, %v7412_v41, %v16790_v3  ;;  %vm8029_vm13 = vcmp.eq.s32.totalorder %v16742_v18, 2  ;;  %v16949_v41 = vpop.permute.xlu2 %8907 }
 0xa4b   : > { %v7078_v60 = vsel %vm18882_vm4, %v7077_v20, %v7076_v28  ;;  %vm18883_vm14 = vweird.f32 %v18776_v53  ;;  %v6796_v61 = vxor.u32 2147483648, %v16862_v56  ;;  %v6942_v24 = vmul.f32 %v6941_v37, %v16749_v14 }
 0xa4c   : > { %v16909_v9 = vsel %vm18883_vm14, nan, %v6333_v32  ;;  %v16916_v10 = vsel %vm16753_vm11, %v18873_v23, %v7078_v60  ;;  %vm8025_vm15 = vcmp.lt.s32.totalorder %v16742_v18, 2  ;;  %v18884_v29 = vperm.slane %v18844_v8, 7 }
 0xa4d   : > { %vm18885_vm2 = vweird.f32 %v18852_v42  ;;  %v7083_v14 = vmul.f32 %v16916_v10, %v16916_v10  ;;  %v16929_v5 = vand.u32 3, %v7099_v13  ;;  %vm18886_vm11 = vcmp.eq.s32.totalorder %v16626_v57, 0 }
 0xa4e   : > { %9087 = vperm.xlu0 %10009, %v18884_v29   ;;  %v16923_v3 = vsel %vm18885_vm2, nan, %v6488_v0  ;;  %v7566_v54 = vsel %vm18886_vm11, %v16778_v58, %v6328_v22  ;;  %v16938_v21 = vsel %vm6633_vm12, nan, %v6643_v43  ;;  %vm18887_vm2 = vcmp.eq.s32.totalorder %v16731_v48, 0  ;;  %v16951_v22 = vpop.permute.xlu0 %8916 }
 0xa4f   : > { %v6794_v28 = vsel %vm18887_vm2, %v16862_v56, %v6793_v34  ;;  %v6934_v44 = vadd.f32 1.0, %v6933_v25  ;;  %vm6946_vm14 = vcmp.lt.s32.totalorder %v16763_v45, 2  ;;  %v16946_v37 = vsel %vm6168_vm0, nan, %v7416_v15 }
 0xa50   : > { %vm8179_vm4 = vcmp.lt.s32.totalorder %v16783_v6, 2  ;;  %v7084_v7 = vmul.f32 -0.001358992, %v7083_v14  ;;  %v7091_v32 = vmul.f32 -0.00019511016, %v7083_v14  ;;  %vm18888_vm11 = vcmp.eq.s32.totalorder %v16626_v57, 2 }
 0xa51   : > { %v7569_v4 = vsel %vm18888_vm11, %v6331_v62, %v16615_v36  ;;  %vm18889_vm0 = vcmp.eq.s32.totalorder %v16734_v50, 0  ;;  %v6797_v20 = vsel %vm6795_vm10, %v6796_v61, %v16835_v51  ;;  %v6948_v13 = vxor.u32 2147483648, %v6942_v24 }
 0xa52   : > { %v7720_v30 = vsel %vm18889_vm0, %v16793_v2, %v6483_v26  ;;  %v7570_v0 = vsel %vm7563_vm3, %v7566_v54, %v7569_v4  ;;  %v7874_v36 = vsel %vm7872_vm9, %v16801_v33, %v6638_v17  ;;  %v18890_v58 = vperm.slane %v18844_v8, 2  ;;  %v18902_v4 = vld [vmem:[#allocation35_spill] sm:$0xff] }
 0xa53   : > { %v6798_v62 = vsel %vm6791_vm1, %v6794_v28, %v6797_v20  ;;  %vm6943_vm2 = vweird.f32 %v18860_v35  ;;  %v7085_v26 = vadd.f32 0.041655596, %v7084_v7  ;;  %v7092_v39 = vadd.f32 0.008332121, %v7091_v32  ;;  %v17053_v20 = vpop.permute.xlu1 %8904  ;;  %v18905_v35 = vld [vmem:[#allocation49_spill] sm:$0xff] }
 0xa54   : > { %9016 = vperm.xlu1 %10006, %v18890_v58   ;;  %v7723_v57 = vsel %vm7721_vm7, %v6486_v31, %v16688_v11  ;;  %v6951_v25 = vxor.u32 2147483648, %v6934_v44  ;;  %v7877_v48 = vsel %vm7875_vm5, %v6641_v12, %v16697_v46  ;;  %vm18891_vm9 = vcmp.eq.s32.totalorder %v16742_v18, 0  ;;  %v18904_v58 = vld [vmem:[#allocation70_spill] sm:$0xff] }
 0xa55   : > { %v7724_v17 = vsel %vm7717_vm8, %v7720_v30, %v7723_v57  ;;  %v8028_v43 = vsel %vm18891_vm9, %v16862_v56, %v6793_v34  ;;  %v7086_v60 = vmul.f32 %v7085_v26, %v7083_v14  ;;  %v7093_v15 = vmul.f32 %v7092_v39, %v7083_v14  ;;  %v18906_v39 = vld [vmem:[#allocation157_spill] sm:$0xff] }
 0xa56   : > { %vm18892_vm10 = vcmp.lt.s32.totalorder %v16740_v27, 2  ;;  %vm8180_vm3 = vcmp.eq.s32.totalorder %v16783_v6, 0  ;;  %v6949_v11 = vsel %vm6947_vm6, %v6934_v44, %v6948_v13  ;;  %vm7105_vm1 = vcmp.eq.s32.totalorder %v16929_v5, 2 }
 0xa57   : > { %v7878_v2 = vsel %vm18892_vm10, %v7874_v36, %v7877_v48  ;;  %v8031_v46 = vsel %vm8029_vm13, %v6796_v61, %v16835_v51  ;;  %v8182_v50 = vsel %vm8180_vm3, %v6934_v44, %v6948_v13  ;;  %v8332_v33 = vand.u32 3, %v16820_v38  ;;  %v17018_v61 = vpop.permute.xlu0 %8925  ;;  %v18908_v48 = vld [vmem:[#allocation164_spill] sm:$0xff] }
 0xa58   : > { %v18893_v31 = vmov 1   ;;  %v7087_v12 = vadd.f32 -0.4999988, %v7086_v60  ;;  %v7094_v56 = vadd.f32 -0.16666654, %v7093_v15  ;;  %v8032_v27 = vsel %vm8025_vm15, %v8028_v43, %v8031_v46  ;;  %v18910_v46 = vld [vmem:[#allocation143_spill] sm:$0xff] }
 0xa59   : > { %10012 = vset.pattern.permute.xlu0 %v18893_v31  ;;  %vm8183_vm7 = vcmp.eq.s32.totalorder %v16783_v6, 2  ;;  %vm18894_vm8 = vweird.f32 %v18850_v16  ;;  %vm18895_vm5 = vcmp.eq.s32.totalorder %v16763_v45, 2  ;;  %vm7102_vm6 = vcmp.eq.s32.totalorder %v16929_v5, 0  ;;  %v18901_v16 = vld [vmem:[#allocation160_spill] sm:$0xff] }
 0xa5a   : > { %v17009_v34 = vsel %vm18894_vm8, nan, %v6798_v62  ;;  %v6952_v29 = vsel %vm18895_vm5, %v6951_v25, %v6942_v24  ;;  %vm18896_vm13 = vweird.f32 %v18776_v53  ;;  %v8185_v51 = vsel %vm8183_vm7, %v6951_v25, %v6942_v24  ;;  %vm18898_vm9 = vmmov %vm18894_vm8  ;;  %v18907_v25 = vld [vmem:[#allocation163_spill] sm:$0xff] }
 0xa5b   : > { %v17016_v38 = vsel %vm18896_vm13, nan, %v7570_v0  ;;  %v6953_v18 = vsel %vm6946_vm14, %v6949_v11, %v6952_v29  ;;  %v7088_v54 = vmul.f32 %v7087_v12, %v7083_v14  ;;  %v7095_v28 = vmul.f32 %v7094_v56, %v7083_v14  ;;  %v17038_v14 = vpop.permute.xlu2 %8913  ;;  %v18903_v0 = vld [vmem:[#allocation59_spill] sm:$0xff]  ;;  %v18911_v12 = vld [vmem:[#allocation96_spill] sm:$0xff] }
 0xa5c   : > { %vm7101_vm15 = vcmp.lt.s32.totalorder %v16929_v5, 2  ;;  %v8186_v44 = vsel %vm8179_vm4, %v8182_v50, %v8185_v51  ;;  %vm7098_vm11 = vweird.f32 %v18873_v23  ;;  %vm18897_vm0 = vweird.f32 %v18852_v42  ;;  %10007 = vset.pattern.permute.xlu1 %v18869_v19  ;;  %v18913_v51 = vld [vmem:[#allocation156_spill] sm:$0xff]  ;;  %v18916_v5 = vld [vmem:[#allocation138_spill] sm:$0xff] }
 0xa5d   : > { %v17028_v53 = vsel %vm18897_vm0, nan, %v7724_v17  ;;  %v17032_v24 = vsel %vm6633_vm12, nan, %v7878_v2  ;;  %v17036_v45 = vsel %vm18898_vm9, nan, %v8032_v27  ;;  %vm8333_vm14 = vcmp.lt.s32.totalorder %v8332_v33, 2  ;;  %v18909_v2 = vld [vmem:[#allocation170_spill] sm:$0xff]  ;;  %v18912_v27 = vld [vmem:[#allocation180_spill] sm:$0xff] }
 0xa5e   : > { %18899 = vst [vmem:[#allocation115_spill] sm:$0xff] %v17036_v45  ;;  %v7089_v6 = vadd.f32 1.0, %v7088_v54  ;;  %v7096_v7 = vadd.f32 1.0, %v7095_v28  ;;  %vm8334_vm4 = vcmp.eq.s32.totalorder %v8332_v33, 0  ;;  %vm8337_vm10 = vcmp.eq.s32.totalorder %v8332_v33, 2  ;;  %v18917_v33 = vld [vmem:[#allocation117_spill] sm:$0xff] }
 0xa5f   : > { %v17043_v42 = vsel %vm6943_vm2, nan, %v6953_v18  ;;  %v17047_v40 = vsel %vm6943_vm2, nan, %v8186_v44  ;;  %v8422_v32 = vmul.f32 %v18901_v16, %v16622_v47  ;;  %v8423_v30 = vmul.f32 %v18902_v4, %v16946_v37  ;;  %v5633_v54 = vpop.permute.xlu0 %5632 }
 0xa60   : > { %18900 = vst [vmem:[#allocation63_spill] sm:$0xff] %v17047_v40  ;;  %v7097_v19 = vmul.f32 %v7096_v7, %v16916_v10  ;;  %v7106_v13 = vxor.u32 2147483648, %v7089_v6  ;;  %v8424_v36 = vmul.f32 %v18903_v0, %v17016_v38  ;;  %v8425_v62 = vmul.f32 %v18904_v58, %v17028_v53  ;;  %v18914_v7 = vld [vmem:[#allocation99_spill] sm:$0xff] }
 0xa61   : > { %v8426_v26 = vmul.f32 %v18905_v35, %v17032_v24  ;;  %v8427_v57 = vmul.f32 %v18906_v39, %v17036_v45  ;;  %v8430_v17 = vmul.f32 %v18907_v25, %v16612_v52  ;;  %v8431_v43 = vmul.f32 %v18908_v48, %v16896_v1 }
 0xa62   : > { %v7103_v10 = vxor.u32 2147483648, %v7097_v19  ;;  %v7107_v60 = vsel %vm7105_vm1, %v7106_v13, %v7097_v19  ;;  %v8339_v15 = vsel %vm8337_vm10, %v7106_v13, %v7097_v19  ;;  %v8428_v11 = vmul.f32 %v18909_v2, %v17047_v40 }
 0xa63   : > { %v8432_v50 = vmul.f32 %v18910_v46, %v16909_v9  ;;  %v8433_v56 = vmul.f32 %v18911_v12, %v16923_v3  ;;  %v8434_v29 = vmul.f32 %v18912_v27, %v16938_v21  ;;  %v8435_v18 = vmul.f32 %v18913_v51, %v17009_v34 }
 0xa64   : > { %v7104_v28 = vsel %vm7102_vm6, %v7089_v6, %v7103_v10  ;;  %v8336_v44 = vsel %vm8334_vm4, %v7089_v6, %v7103_v10  ;;  %v8436_v19 = vmul.f32 %v18914_v7, %v17043_v42  ;;  %v8438_v13 = vsub.f32 %v8422_v32, %v8430_v17 }
 0xa65   : > { %v7108_v40 = vsel %vm7101_vm15, %v7104_v28, %v7107_v60  ;;  %v8340_v2 = vsel %vm8333_vm14, %v8336_v44, %v8339_v15  ;;  %v8439_v45 = vsub.f32 %v8423_v30, %v8431_v43  ;;  %v8440_v39 = vsub.f32 %v8424_v36, %v8432_v50  ;;  %v17103_v36 = vpop.permute.xlu2 %8922  ;;  %v17105_v43 = vpop.xlane.xlu1 %8744 }
 0xa66   : > { %v18915_v27 = vperm.slane %v18844_v8, 2  ;;  %v17093_v51 = vsel %vm7098_vm11, nan, %v7108_v40  ;;  %v17097_v6 = vsel %vm7098_vm11, nan, %v8340_v2  ;;  %v8441_v10 = vsub.f32 %v8425_v62, %v8433_v56 }
 0xa67   : > { %v8442_v32 = vsub.f32 %v8426_v26, %v8434_v29  ;;  %v8429_v17 = vmul.f32 %v18916_v5, %v17097_v6  ;;  %v8437_v30 = vmul.f32 %v18917_v33, %v17093_v51  ;;  %v8443_v60 = vsub.f32 %v8427_v57, %v8435_v18 }
 0xa68   : > { %9022 = vperm.xlu1 %10007, %v18915_v27   ;;  %v8444_v15 = vsub.f32 %v8428_v11, %v8436_v19  ;;  %v9272_v40 = vrot.slane %v8439_v45, 7  ;;  %v9274_v50 = vrot.slane %v8440_v39, 6  ;;  %v9276_v23 = vrot.slane %v8441_v10, 5  ;;  %v5642_v45 = vpop.permute.xlu0 %5641 }
 0xa69   : > { %v8445_v27 = vsub.f32 %v8429_v17, %v8437_v30  ;;  %v9278_v2 = vrot.slane %v8442_v32, 4  ;;  %vm18918_vm12 = vcmask 1041409   ;;  %v9280_v26 = vrot.slane %v8443_v60, 3  ;;  %v18926_v30 = vld [vmem:[#allocation146_spill] sm:$0xff] }
 0xa6a   : > { %v9273_v62 = vsel %vm18918_vm12, %v9272_v40, %v8438_v13  ;;  %vm18919_vm2 = vcmask 1042434   ;;  %v9282_v29 = vrot.slane %v8444_v15, 2  ;;  %vm18920_vm3 = vcmask 1043459   ;;  %v18927_v60 = vld [vmem:[#allocation102_spill] sm:$0xff]  ;;  %vm18935_vm15 = vmmov %vm18918_vm12 }
 0xa6b   : > { %v9275_v56 = vsel %vm18919_vm2, %v9274_v50, %v9273_v62  ;;  %v9284_v44 = vrot.slane %v8445_v27, 1  ;;  %vm18921_vm1 = vcmask 1044484   ;;  %v18922_v57 = vperm.slane %v18844_v8, 3  ;;  %v17124_v50 = vld [vmem:[%s10661_s15] sm:$0xff]  ;;  %vm18939_vm14 = vmmov %vm18919_vm2  ;;  %s10416_s15 = smov 124  }
 0xa6c   : > { %v9277_v28 = vsel %vm18920_vm3, %v9276_v23, %v9275_v56  ;;  %vm18923_vm7 = vcmask 1045509   ;;  %vm18924_vm8 = vcmask 1046534   ;;  %vm18925_vm5 = vcmask 1047559   ;;  %vm18940_vm4 = vmmov %vm18920_vm3 }
 0xa6d   : > { %v9279_v33 = vsel %vm18921_vm1, %v9278_v2, %v9277_v28  ;;  %v8911_v18 = vpop.permute.xlu1 %8910  ;;  %v5621_v13 = vpop.permute.xlu2 %5620  ;;  %v9037_v10 = vperm.slane %v18844_v8, 4  ;;  %v5613_v15 = vmul.f32 %v18927_v60, %v18926_v30  ;;  %v18928_v27 = vperm.slane %v18844_v8, 5  ;;  %vm18941_vm10 = vmmov %vm18921_vm1 }
 0xa6e   : > { %v9281_v39 = vsel %vm18923_vm7, %v9280_v26, %v9279_v33  ;;  %vm18933_vm6 = vcmask 130112   ;;  %vm18944_vm3 = vmmov %vm18923_vm7 }
 0xa6f   : > { %v9283_v11 = vsel %vm18924_vm8, %v9282_v29, %v9281_v39  ;;  %v5617_v33 = vmul.f32 %v17124_v50, %v5613_v15  ;;  %vm18934_vm13 = vmmov %vm18933_vm6 }
 0xa70   : > { %9035 = vperm.xlu1 %10007, %v18922_v57   ;;  %v17116_v19 = vsel %vm18925_vm5, %v9284_v44, %v9283_v11  ;;  %v5655_v17 = vpop.permute.xlu0 %5654  ;;  %v18929_v57 = vperm.slane %v18844_v8, 6  ;;  %vm18936_vm11 = vmmov %vm18933_vm6 }
 0xa71   : > { %v5623_v23 = vsub.f32 %v5617_v33, %v5621_v13  ;;  %vm18937_vm0 = vmmov %vm18933_vm6 }
 0xa72   : > { %vm18938_vm9 = vmmov %vm18937_vm0 }
 0xa73   : > { %vm18942_vm12 = vmmov %vm18937_vm0 }
 0xa74   : > { %vm18943_vm2 = vmmov %vm18937_vm0 }
 0xa75   : > { %v8920_v32 = vpop.permute.xlu1 %8919  ;;  %v5637_v40 = vpop.permute.xlu2 %5636  ;;  %vm18945_vm1 = vmmov %vm18937_vm0 }
 0xa76   : > { %v5639_v2 = vadd.f32 %v5637_v40, %v5617_v33  ;;  %vm18946_vm7 = vmmov %vm18924_vm8 }
 0xa77   : > { %vm18947_vm8 = vmmov %vm18925_vm5  ;;  %vm18948_vm5 = vcmask 130048  }
 0xa78   : > { %9048 = vperm.xlu1 %10007, %v9037_v10   ;;  %v8935_v29 = vpop.permute.xlu0 %8934 }
 0xa7d   : > { %v5627_v62 = vpop.permute.xlu1 %5626  ;;  %v5650_v11 = vpop.permute.xlu2 %5649 }
 0xa7e   : > { %v5629_v26 = vsub.f32 %v5623_v23, %v5627_v62  ;;  %v5640_v56 = vadd.f32 %v5639_v2, %v5627_v62 }
 0xa80   : > { %9061 = vperm.xlu1 %10007, %v18928_v27   ;;  %v17129_v28 = vsub.f32 %v5629_v26, %v5633_v54  ;;  %v17131_v44 = vsub.f32 %v5640_v56, %v5642_v45  ;;  %v8944_v13 = vpop.permute.xlu0 %8943  ;;  %v18930_v54 = vld [vmem:[#allocation213_spill] sm:$0xff]  ;;  %v18931_v26 = vld [vmem:[#allocation212_spill] sm:$0xff] }
 0xa81   : > { %v8952_v62 = vperm.slane %v8911_v18, %v18930_v54  ;;  %v8951_v56 = vperm.slane %v16949_v41, %v18931_v26  ;;  %v8955_v18 = vperm.slane %v16951_v22, %v18930_v54 }
 0xa85   : > { %v5646_v39 = vpop.permute.xlu1 %5645  ;;  %v8932_v33 = vpop.permute.xlu2 %8931 }
 0xa86   : > { %v5648_v30 = vadd.f32 %v5646_v39, %v5623_v23  ;;  %v5653_v60 = vsub.f32 %v5639_v2, %v5646_v39  ;;  %v18932_v23 = vld [vmem:[#allocation189_spill] sm:$0xff]  ;;  %v8953_v39 = vsel %vm18933_vm6, %v8952_v62, %v8951_v56  ;;  %vm18962_vm6 = vmmov %vm18937_vm0 }
 0xa88   : > { %9074 = vperm.xlu1 %10007, %v18929_v57   ;;  %v17135_v15 = vadd.f32 %v5650_v11, %v5648_v30  ;;  %v17137_v27 = vadd.f32 %v5655_v17, %v5653_v60  ;;  %v8991_v45 = vpop.permute.xlu0 %8990  ;;  %v8948_v57 = vperm.slane %v16840_v55, %v18931_v26  ;;  %v8949_v17 = vperm.slane %v17053_v20, %v18930_v54 }
 0xa89   : > { %v9105_v2 = vmul.f32 %v8991_v45, %v18932_v23  ;;  %v8957_v11 = vperm.slane %v8920_v32, %v18931_v26  ;;  %v8958_v55 = vperm.slane %v17103_v36, %v18930_v54  ;;  %v8954_v45 = vperm.slane %v17038_v14, %v18931_v26 }
 0xa8a   : > { %v8950_v41 = vsel %vm18934_vm13, %v8949_v17, %v8948_v57  ;;  %v8960_v20 = vperm.slane %v17018_v61, %v18931_v26  ;;  %v8964_v36 = vperm.slane %v8935_v29, %v18930_v54  ;;  %v8963_v61 = vperm.slane %v8932_v33, %v18931_v26  ;;  %vm18963_vm13 = vmmov %vm18937_vm0 }
 0xa8b   : > { %v8972_v32 = vsel %vm18935_vm15, %v8953_v39, %v8950_v41  ;;  %v8959_v56 = vsel %vm18936_vm11, %v8958_v55, %v8957_v11  ;;  %v8956_v22 = vsel %vm18937_vm0, %v8955_v18, %v8954_v45  ;;  %vm18964_vm11 = vmmov %vm18937_vm0 }
 0xa8c   : > { %v8973_v23 = vsel %vm18939_vm14, %v8956_v22, %v8972_v32  ;;  %v8965_v18 = vsel %vm18943_vm2, %v8964_v36, %v8963_v61  ;;  %vm18965_vm0 = vmmov %vm18939_vm14 }
 0xa8d   : > { %v8929_v40 = vpop.permute.xlu1 %8928  ;;  %v8941_v62 = vpop.permute.xlu2 %8940  ;;  %vm18967_vm14 = vmmov %vm18940_vm4 }
 0xa8e   : > { %v8961_v30 = vperm.slane %v8929_v40, %v18930_v54  ;;  %v8967_v14 = vperm.slane %v8941_v62, %v18930_v54  ;;  %vm18969_vm2 = vmmov %vm18945_vm1 }
 0xa90   : > { %10010 = vset.pattern.permute.xlu1 %v18893_v31  ;;  %v8962_v40 = vsel %vm18938_vm9, %v8961_v30, %v8960_v20  ;;  %v8969_v30 = vperm.slane %v8944_v13, %v18931_v26  ;;  %v9030_v20 = vpop.permute.xlu0 %9029  ;;  %vm18966_vm9 = vmmov %vm18945_vm1 }
 0xa91   : > { %9138 = vperm.xlu1 %10010, %v9105_v2   ;;  %v8974_v2 = vsel %vm18940_vm4, %v8959_v56, %v8973_v23  ;;  %v18949_v56 = vld [vmem:[#allocation162_spill] sm:$0xff]  ;;  %v18951_v23 = vld [vmem:[#allocation207_spill] sm:$0xff] }
 0xa92   : > { %v8975_v17 = vsel %vm18941_vm10, %v8962_v40, %v8974_v2  ;;  %v18950_v40 = vperm.slane %v18844_v8, 7  ;;  %v18952_v2 = vld [vmem:[#allocation195_spill] sm:$0xff] }
 0xa93   : > { %v8976_v41 = vsel %vm18944_vm3, %v8965_v18, %v8975_v17  ;;  %v18954_v18 = vld [vmem:[#allocation190_spill] sm:$0xff]  ;;  %vm18970_vm3 = vcmask 1044484  }
 0xa95   : > { %v8938_v60 = vpop.permute.xlu1 %8937 }
 0xa96   : > { %v8966_v57 = vperm.slane %v8938_v60, %v18931_v26 }
 0xa98   : > { %v8968_v39 = vsel %vm18942_vm12, %v8967_v14, %v8966_v57  ;;  %v9056_v62 = vpop.permute.xlu0 %9055  ;;  %vm18968_vm12 = vmmov %vm18945_vm1 }
 0xa99   : > { %v8977_v55 = vsel %vm18946_vm7, %v8968_v39, %v8976_v41  ;;  %v18953_v39 = vld [vmem:[#allocation128_spill] sm:$0xff]  ;;  %vm18972_vm7 = vmmov %vm18969_vm2 }
 0xa9d   : > { %v8947_v11 = vpop.permute.xlu1 %8946 }
 0xa9e   : > { %v8970_v60 = vperm.slane %v8947_v11, %v18930_v54 }
 0xaa0   : > { %v8971_v29 = vsel %vm18945_vm1, %v8970_v60, %v8969_v30  ;;  %v9069_v14 = vpop.permute.xlu0 %9068  ;;  %v18955_v60 = vld [vmem:[#allocation211_spill] sm:$0xff]  ;;  %vm18971_vm1 = vcmask 1045509  }
 0xaa1   : > { %v8978_v45 = vsel %vm18947_vm8, %v8971_v29, %v8977_v55  ;;  %v9111_v41 = vmul.f32 %v9030_v20, %v18955_v60  ;;  %v18956_v55 = vld [vmem:[#allocation183_spill] sm:$0xff]  ;;  %vm18973_vm8 = vmmov %vm18969_vm2 }
 0xaa2   : > { %v8980_v33 = vsel %vm18948_vm5, %v8978_v45, 0.0  ;;  %v5665_v45 = vmul.f32 %v17135_v15, %v17135_v15  ;;  %vm18974_vm5 = vcmask 1046534  }
 0xaa3   : > { %8981 = vadd.xlane.f32.xlu2 %v8980_v33 }
 0xaa5   : > { %v8997_v32 = vpop.permute.xlu1 %8996 }
 0xaa6   : > { %v9106_v61 = vmul.f32 %v8997_v32, %v18952_v2  ;;  %v5659_v32 = vmul.f32 %v17131_v44, %v17131_v44  ;;  %v18958_v2 = vld [vmem:[#allocation193_spill] sm:$0xff] }
 0xab4   : > { %v9010_v17 = vpop.permute.xlu0 %9009 }
 0xab5   : > { %v9108_v11 = vmul.f32 %v9010_v17, %v18953_v39  ;;  %v18959_v17 = vld [vmem:[#allocation121_spill] sm:$0xff] }
 0xab9   : > { %v9004_v13 = vpop.permute.xlu1 %9003 }
 0xaba   : > { %v9107_v22 = vmul.f32 %v9004_v13, %v18949_v56  ;;  %v18957_v56 = vld [vmem:[#allocation34_spill] sm:$0xff] }
 0xabb   : > { %9042 = vperm.xlu2 %10008, %v9037_v10   ;;  %v5671_v10 = vmul.f32 %v17137_v27, %v17137_v27 }
 0xabc   : > { %9144 = vperm.xlu1 %10010, %v9107_v22   ;;  %v9115_v22 = vmul.f32 %v9056_v62, %v18957_v56 }
 0xac3   : > { %9081 = vperm.xlu2 %10008, %v18950_v40   ;;  %v9117_v40 = vmul.f32 %v9069_v14, %v18846_v59 }
 0xac6   : > { %v9017_v57 = vpop.permute.xlu1 %9016 }
 0xac7   : > { %v9109_v36 = vmul.f32 %v9017_v57, %v18951_v23  ;;  %v9088_v57 = vpop.permute.xlu0 %9087 }
 0xac9   : > { %9150 = vperm.xlu0 %10012, %v9109_v36   ;;  %v9120_v36 = vmul.f32 %v9088_v57, %v18855_v49 }
 0xacb   : > { %10011 = vset.pattern.permute.xlu2 %v18893_v31 }
 0xacc   : > { %9141 = vperm.xlu2 %10011, %v9106_v61  }
 0xad1   : > { %5673 = vrot.lane.b32.xlu0 %v5671_v10, %s10405_s1  ;;  %s10417_s1 = smov 21  }
 0xad4   : > { %9147 = vperm.xlu2 %10011, %v9108_v11  }
 0xada   : > { %v9023_v8 = vpop.permute.xlu1 %9022 }
 0xadb   : > { %v9110_v30 = vmul.f32 %v9023_v8, %v18954_v18  ;;  %v18960_v8 = vld [vmem:[#allocation208_spill] sm:$0xff] }
 0xadc   : > { %9156 = vperm.xlu2 %10011, %v9111_v41  }
 0xadd   : > { %9153 = vperm.xlu1 %10010, %v9110_v30   ;;  %v18961_v30 = vld [vmem:[#allocation176_spill] sm:$0xff] }
 0xae2   : > { %v9036_v29 = vpop.permute.xlu1 %9035 }
 0xae3   : > { %v9112_v31 = vmul.f32 %v9036_v29, %v18956_v55 }
 0xae4   : > { %5667 = vrot.lane.b32.xlu2 %v5665_v45, %s10403_s22 }
 0xae5   : > { %9159 = vperm.xlu1 %10010, %v9112_v31   ;;  %v8746_v31 = vadd.f32 %v17124_v50, %v17105_v43 }
 0xaea   : > { %v9049_v33 = vpop.permute.xlu1 %9048 }
 0xaeb   : > { %v9114_v13 = vmul.f32 %v9049_v33, %v18839_v63 }
 0xaed   : > { %9165 = vperm.xlu0 %10012, %v9114_v13   ;;  %5661 = vrot.lane.b32.xlu1 %v5659_v32, %s10404_s19  ;;  %s18991_s19 = sld [smem:[#allocation225_spill]] }
 0xaf2   : > { %v9062_v20 = vpop.permute.xlu1 %9061 }
 0xaf3   : > { %v9116_v62 = vmul.f32 %v9062_v20, %v18960_v8 }
 0xaf5   : > { %9168 = vperm.xlu1 %10010, %v9115_v22   ;;  %9174 = vperm.xlu0 %10012, %v9117_v40  }
 0xafa   : > { %v9075_v23 = vpop.permute.xlu1 %9074 }
 0xafb   : > { %v9118_v61 = vmul.f32 %v9075_v23, %v18958_v2 }
 0xafd   : > { %9177 = vperm.xlu1 %10010, %v9118_v61   ;;  %9183 = vperm.xlu0 %10012, %v9120_v36  }
 0xb03   : > { %v9139_v59 = vpop.permute.xlu1 %9138 }
 0xb04   : > { %v9185_v18 = vperm.slane %v9139_v59, %v18931_v26 }
 0xb16   : > { %v8982_v10 = vpop.xlane.xlu2 %8981 }
 0xb1e   : > { %v9043_v63 = vpop.permute.xlu2 %9042 }
 0xb1f   : > { %v9113_v39 = vmul.f32 %v9043_v63, %v18959_v17 }
 0xb21   : > { %9162 = vperm.xlu2 %10011, %v9113_v39   ;;  %v5658_v39 = vmul.f32 %v17129_v28, %v17129_v28 }
 0xb26   : > { %v9082_v11 = vpop.permute.xlu2 %9081 }
 0xb27   : > { %v9119_v60 = vmul.f32 %v9082_v11, %v18961_v30 }
 0xb29   : > { %9171 = vperm.xlu2 %10011, %v9116_v62  }
 0xb2e   : > { %v9142_v14 = vpop.permute.xlu2 %9141  ;;  %v9145_v29 = vpop.permute.xlu1 %9144 }
 0xb2f   : > { %v9186_v49 = vperm.slane %v9142_v14, %v18930_v54  ;;  %v9188_v45 = vperm.slane %v9145_v29, %v18931_v26 }
 0xb31   : > { %v9187_v41 = vsel %vm18962_vm6, %v9186_v49, %v9185_v18  ;;  %9180 = vperm.xlu2 %10011, %v9119_v60   ;;  %vm18975_vm6 = vcmask 1047559  }
 0xb36   : > { %v9148_v55 = vpop.permute.xlu2 %9147 }
 0xb37   : > { %v9189_v33 = vperm.slane %v9148_v55, %v18930_v54 }
 0xb39   : > { %v9190_v32 = vsel %vm18963_vm13, %v9189_v33, %v9188_v45  ;;  %9222 = vrot.lane.b32.xlu2 %v8746_v31, %s10416_s15  ;;  %vm18976_vm13 = vcmask 130048  }
 0xb3a   : > { %v9209_v13 = vsel %vm18935_vm15, %v9190_v32, %v9187_v41 }
 0xb3b   : > { %v9151_v20 = vpop.permute.xlu0 %9150 }
 0xb3c   : > { %v9191_v22 = vperm.slane %v9151_v20, %v18931_v26 }
 0xb3e   : > { %v9157_v23 = vpop.permute.xlu2 %9156 }
 0xb3f   : > { %v9194_v2 = vperm.slane %v9157_v23, %v18931_v26 }
 0xb43   : > { %v5674_v14 = vpop.permute.xlu0 %5673 }
 0xb46   : > { %v5668_v62 = vpop.permute.xlu2 %5667 }
 0xb4f   : > { %v9154_v56 = vpop.permute.xlu1 %9153 }
 0xb50   : > { %v9192_v40 = vperm.slane %v9154_v56, %v18930_v54 }
 0xb52   : > { %v9193_v57 = vsel %vm18964_vm11, %v9192_v40, %v9191_v22 }
 0xb53   : > { %v9210_v43 = vsel %vm18965_vm0, %v9193_v57, %v9209_v13  ;;  %v8983_v13 = vadd.f32 %v17124_v50, %v8982_v10 }
 0xb57   : > { %v9160_v36 = vpop.permute.xlu1 %9159 }
 0xb58   : > { %v9195_v61 = vperm.slane %v9160_v36, %v18930_v54 }
 0xb5a   : > { %v9196_v63 = vsel %vm18966_vm9, %v9195_v61, %v9194_v2 }
 0xb5b   : > { %v9211_v17 = vsel %vm18967_vm14, %v9196_v63, %v9210_v43 }
 0xb5f   : > { %v5662_v11 = vpop.permute.xlu1 %5661  ;;  %v9166_v56 = vpop.permute.xlu0 %9165 }
 0xb60   : > { %v5664_v8 = vadd.f32 %v5662_v11, %v5658_v39  ;;  %v9198_v36 = vperm.slane %v9166_v56, %v18930_v54 }
 0xb62   : > { %v5670_v59 = vadd.f32 %v5668_v62, %v5664_v8 }
 0xb64   : > { %v5676_v18 = vadd.f32 %v5674_v14, %v5670_v59 }
 0xb66   : > { %10142 = vrsqrt.f32 %v5676_v18  ;;  %vm5684_vm4 = vcmp.eq.f32.partialorder %v5676_v18, inf  ;;  %v5687_v45 = vand.u32 2147483648, %v5676_v18  ;;  %vm5686_vm10 = vcmp.eq.f32.partialorder %v5676_v18, 0.0 }
 0xb67   : > { %v9169_v40 = vpop.permute.xlu1 %9168  ;;  %v9175_v57 = vpop.permute.xlu0 %9174 }
 0xb68   : > { %v9200_v61 = vperm.slane %v9169_v40, %v18931_v26 }
 0xb6c   : > { %v10143_v30 = vpop.eup %10142 }
 0xb6d   : > { %v5678_v60 = vmul.f32 %v10143_v30, %v5676_v18 }
 0xb6f   : > { %v5679_v49 = vmul.f32 %v10143_v30, %v5678_v60  ;;  %v9178_v63 = vpop.permute.xlu1 %9177  ;;  %v9184_v39 = vpop.permute.xlu0 %9183 }
 0xb70   : > { %v9204_v62 = vperm.slane %v9178_v63, %v18930_v54  ;;  %v9207_v59 = vperm.slane %v9184_v39, %v18930_v54 }
 0xb71   : > { %v5680_v41 = vmul.f32 0.5, %v5679_v49 }
 0xb73   : > { %v5681_v29 = vsub.f32 1.5, %v5680_v41 }
 0xb75   : > { %v5682_v55 = vmul.f32 %v10143_v30, %v5681_v29 }
 0xb77   : > { %v5683_v31 = vmul.f32 %v5682_v55, %v5676_v18 }
 0xb79   : > { %v5685_v33 = vsel %vm5684_vm4, %v5676_v18, %v5683_v31  ;;  %v9203_v18 = vperm.slane %v9175_v57, %v18931_v26 }
 0xb7a   : > { %v5688_v32 = vsel %vm5686_vm10, %v5687_v45, %v5685_v33 }
 0xb7b   : > { %5741 = vrot.lane.b32.xlu0 %v5688_v32, %s10414_s10  ;;  %5723 = vrot.lane.b32.xlu2 %v5688_v32, %s10415_s23  ;;  %v9163_v20 = vpop.permute.xlu2 %9162  ;;  %v9205_v49 = vsel %vm18973_vm8, %v9204_v62, %v9203_v18  ;;  %10144 = vrcp.f32 %v5688_v32  ;;  %v5700_v56 = vand.u32 2147483648, %v5688_v32  ;;  %vm5694_vm11 = vweird.f32 %v5688_v32  ;;  %s9314_s10 = scalar_lea.hbm %s18993_s29, %s9735_s18  ;;  %s699_s23 = scalar_lea.vmem [#allocation11], %s9473_s25 }
 0xb7c   : > { %5705 = vrot.lane.b32.xlu1 %v5688_v32, %s10407_s21  ;;  %v9197_v43 = vperm.slane %v9163_v20, %v18931_v26  ;;  %v5698_v40 = vand.u32 2147483647, %v5688_v32  ;;  %v8376_v18 = vmul.f32 %v18903_v0, %v16909_v9  ;;  %v18977_v9 = vld [vmem:[#allocation180_spill] sm:$0xff]  ;;  %vm18987_vm8 = vcmask 1044484   ;;  %s9318_s0 = sshll.u32 %s9314_s10, 4  ;;  %s9319_s0 = int_to_ptr.hbm [resolvable:$true] %s9318_s0 }
 0xb7d   : > { %v8410_v0 = vmul.f32 %v18977_v9, %v17032_v24  ;;  %v8381_v24 = vmul.f32 %v18916_v5, %v17093_v51  ;;  %s10322_s22 = sshra.s32 %s9319_s0, 4  ;;  %s10323_s22 = int_to_ptr.hbm [resolvable:$true] %s10322_s22 }
 0xb7e   : > { %v9199_v10 = vsel %vm18968_vm12, %v9198_v36, %v9197_v43  ;;  %vm5699_vm4 = vcmp.eq.f32.partialorder %v5698_v40, 8.507059e+37 }
 0xb7f   : > { %v9212_v14 = vsel %vm18970_vm3, %v9199_v10, %v9211_v17  ;;  %vm18984_vm3 = vcmask 1041409  }
 0xb81   : > { %v10145_v31 = vpop.eup %10144 }
 0xb82   : > { %vm5695_vm15 = vweird.f32 %v10145_v31 }
 0xb83   : > { %9226 = vrot.lane.b32.xlu0 %v8983_v13, %s10416_s15  ;;  %v9172_v22 = vpop.permute.xlu2 %9171  ;;  %vm5696_vm0 = vmor %vm5694_vm11, %vm5695_vm15 }
 0xb84   : > { %v9201_v23 = vperm.slane %v9172_v22, %v18930_v54  ;;  %v5690_v54 = vmul.f32 %v10145_v31, %v5688_v32 }
 0xb86   : > { %v9202_v11 = vsel %vm18969_vm2, %v9201_v23, %v9200_v61  ;;  %v5691_v17 = vsub.f32 1.0, %v5690_v54  ;;  %vm5759_vm2 = vcmask 7168  }
 0xb87   : > { %v9213_v30 = vsel %vm18971_vm1, %v9202_v11, %v9212_v14  ;;  %v8407_v14 = vmul.f32 %v18908_v48, %v16946_v37  ;;  %v8378_v37 = vmul.f32 %v18905_v35, %v16938_v21  ;;  %v18978_v48 = vld [vmem:[#allocation157_spill] sm:$0xff]  ;;  %vm18985_vm1 = vcmask 1042434  }
 0xb88   : > { %v9214_v41 = vsel %vm18974_vm5, %v9205_v49, %v9213_v30  ;;  %v8408_v30 = vmul.f32 %v18910_v46, %v17016_v38  ;;  %v18980_v46 = vld [vmem:[#allocation156_spill] sm:$0xff]  ;;  %v18982_v49 = vld [vmem:[#allocation63_spill] sm:$0xff]  ;;  %vm18988_vm5 = vcmask 1045509  }
 0xb89   : > { %v8418_v21 = vadd.f32 %v8410_v0, %v8378_v37 }
 0xb8a   : > { %v8416_v38 = vadd.f32 %v8408_v30, %v8376_v18 }
 0xb8b   : > { %v9181_v2 = vpop.permute.xlu2 %9180 }
 0xb8c   : > { %v9206_v8 = vperm.slane %v9181_v2, %v18931_v26  ;;  %v5692_v26 = vmul.f32 %v10145_v31, %v5691_v17  ;;  %v5701_v2 = vor.u32 1.1754944e-38, %v5700_v56  ;;  %v9249_v35 = vrot.slane %v8416_v38, 6 }
 0xb8e   : > { %v9208_v60 = vsel %vm18972_vm7, %v9207_v59, %v9206_v8  ;;  %v5693_v20 = vadd.f32 %v10145_v31, %v5692_v26  ;;  %v8375_v59 = vmul.f32 %v18902_v4, %v16896_v1  ;;  %v8406_v1 = vmul.f32 %v18907_v25, %v16622_v47 }
 0xb8f   : > { %v9215_v29 = vsel %vm18975_vm6, %v9208_v60, %v9214_v41  ;;  %v8374_v60 = vmul.f32 %v18901_v16, %v16612_v52  ;;  %v18981_v52 = vld [vmem:[#allocation170_spill] sm:$0xff]  ;;  %v8412_v47 = vmul.f32 %v18914_v7, %v18982_v49  ;;  %v9253_v26 = vrot.slane %v8418_v21, 4 }
 0xb90   : > { %v9217_v55 = vsel %vm18976_vm13, %v9215_v29, 0.0  ;;  %v5697_v36 = vsel %vm5696_vm0, %v10145_v31, %v5693_v20  ;;  %v8415_v4 = vadd.f32 %v8407_v14, %v8375_v59  ;;  %v8380_v16 = vmul.f32 %v18981_v52, %v17043_v42  ;;  %v18983_v29 = vld [vmem:[#allocation117_spill] sm:$0xff] }
 0xb91   : > { %v5702_v39 = vsel %vm5699_vm4, %v5701_v2, %v5697_v36  ;;  %v8414_v25 = vadd.f32 %v8406_v1, %v8374_v60  ;;  %vm18986_vm7 = vcmask 1043459   ;;  %vm18989_vm6 = vcmask 1046534  }
 0xb92   : > { %v5703_v8 = vmul.f32 %v5702_v39, %v17129_v28  ;;  %v8377_v28 = vmul.f32 %v18904_v58, %v16923_v3  ;;  %v8379_v3 = vmul.f32 %v18978_v48, %v17009_v34  ;;  %v18979_v58 = vld [vmem:[#allocation115_spill] sm:$0xff]  ;;  %v9247_v41 = vrot.slane %v8415_v4, 7 }
 0xb93   : > { %v8413_v34 = vmul.f32 %v18983_v29, %v17097_v6  ;;  %v8420_v54 = vadd.f32 %v8412_v47, %v8380_v16  ;;  %vm18990_vm13 = vcmask 1047559  }
 0xb94   : > { %v9248_v17 = vsel %vm18984_vm3, %v9247_v41, %v8414_v25 }
 0xb95   : > { %v9250_v7 = vsel %vm18985_vm1, %v9249_v35, %v9248_v17  ;;  %v9257_v51 = vrot.slane %v8420_v54, 2  ;;  %vm5763_vm1 = vcmask 23552  }
 0xba6   : > { %9218 = vadd.xlane.f32.xlu1 %v9217_v55 }
 0xbed   : > { %v5742_v2 = vpop.permute.xlu0 %5741 }
 0xbee   : > { %v5706_v45 = vpop.permute.xlu1 %5705  ;;  %v5755_v60 = vand.u32 2147483648, %v5742_v2  ;;  %v5753_v4 = vand.u32 2147483647, %v5742_v2  ;;  %vm5749_vm4 = vweird.f32 %v5742_v2 }
 0xbef   : > { %10146 = vrcp.f32 %v5706_v45  ;;  %v5719_v57 = vand.u32 2147483648, %v5706_v45  ;;  %v5717_v23 = vand.u32 2147483647, %v5706_v45  ;;  %vm5713_vm14 = vweird.f32 %v5706_v45 }
 0xbf0   : > { %v5756_v9 = vor.u32 1.1754944e-38, %v5755_v60  ;;  %vm5754_vm3 = vcmp.eq.f32.partialorder %v5753_v4, 8.507059e+37 }
 0xbf1   : > { %v5720_v63 = vor.u32 1.1754944e-38, %v5719_v57  ;;  %vm5718_vm12 = vcmp.eq.f32.partialorder %v5717_v23, 8.507059e+37  ;;  %v18992_v57 = vld [vmem:[#allocation148_spill] sm:$0xff]  ;;  %v9223_v23 = vpop.permute.xlu2 %9222 }
 0xbf5   : > { %v10147_v33 = vpop.eup %10146 }
 0xbf6   : > { %v5709_v13 = vmul.f32 %v10147_v33, %v5706_v45  ;;  %vm5714_vm9 = vweird.f32 %v10147_v33 }
 0xbf7   : > { %vm5715_vm10 = vmor %vm5713_vm14, %vm5714_vm9 }
 0xbf8   : > { %v5710_v22 = vsub.f32 1.0, %v5709_v13 }
 0xbf9   : > { %v5724_v36 = vpop.permute.xlu2 %5723 }
 0xbfa   : > { %v5711_v43 = vmul.f32 %v10147_v33, %v5710_v22  ;;  %10148 = vrcp.f32 %v5724_v36  ;;  %v5737_v14 = vand.u32 2147483648, %v5724_v36  ;;  %vm5731_vm11 = vweird.f32 %v5724_v36 }
 0xbfb   : > { %10150 = vrcp.f32 %v5742_v2  ;;  %v5735_v18 = vand.u32 2147483647, %v5724_v36 }
 0xbfc   : > { %v5712_v61 = vadd.f32 %v10147_v33, %v5711_v43 }
 0xbfd   : > { %vm5736_vm9 = vcmp.eq.f32.partialorder %v5735_v18, 8.507059e+37 }
 0xbfe   : > { %v5716_v10 = vsel %vm5715_vm10, %v10147_v33, %v5712_v61  ;;  %v8421_v33 = vadd.f32 %v8413_v34, %v8381_v24 }
 0xbff   : > { %v5721_v11 = vsel %vm5718_vm12, %v5720_v63, %v5716_v10  ;;  %vm5761_vm12 = vcmask 15360  }
 0xc00   : > { %v5722_v32 = vmul.f32 %v5721_v11, %v17131_v44  ;;  %v8409_v44 = vmul.f32 %v18911_v12, %v17028_v53  ;;  %v8411_v53 = vmul.f32 %v18980_v46, %v18979_v58  ;;  %v9259_v56 = vrot.slane %v8421_v33, 1  ;;  %v10149_v61 = vpop.eup %10148 }
 0xc01   : > { %v5727_v63 = vmul.f32 %v10149_v61, %v5724_v36  ;;  %v10151_v39 = vpop.eup %10150  ;;  %vm5732_vm15 = vweird.f32 %v10149_v61 }
 0xc02   : > { %v17254_v62 = vsel %vm5759_vm2, %v5703_v8, %v5722_v32  ;;  %v8417_v12 = vadd.f32 %v8409_v44, %v8377_v28  ;;  %v8419_v55 = vadd.f32 %v8411_v53, %v8379_v3  ;;  %v5745_v11 = vmul.f32 %v10151_v39, %v5742_v2  ;;  %vm5733_vm0 = vmor %vm5731_vm11, %vm5732_vm15  ;;  %v9227_v53 = vpop.permute.xlu0 %9226 }
 0xc03   : > { %v5728_v10 = vsub.f32 1.0, %v5727_v63  ;;  %v5738_v44 = vor.u32 1.1754944e-38, %v5737_v14  ;;  %vm5750_vm14 = vweird.f32 %v10151_v39 }
 0xc04   : > { %v9251_v31 = vrot.slane %v8417_v12, 5  ;;  %v9255_v20 = vrot.slane %v8419_v55, 3  ;;  %v5746_v32 = vsub.f32 1.0, %v5745_v11  ;;  %vm5751_vm10 = vmor %vm5749_vm4, %vm5750_vm14  ;;  %v9233_v12 = vsel %vm5759_vm2, %v9223_v23, %v9227_v53 }
 0xc05   : > { %v5729_v8 = vmul.f32 %v10149_v61, %v5728_v10  ;;  %vm9300_vm2 = vcmask 695296  }
 0xc06   : > { %v9252_v13 = vsel %vm18986_vm7, %v9251_v31, %v9250_v7  ;;  %v5747_v30 = vmul.f32 %v10151_v39, %v5746_v32  ;;  %vm9293_vm7 = vcmask 31744  }
 0xc07   : > { %v9254_v6 = vsel %vm18987_vm8, %v9253_v26, %v9252_v13  ;;  %v5730_v59 = vadd.f32 %v10149_v61, %v5729_v8  ;;  %vm9295_vm8 = vcmask 56320  }
 0xc08   : > { %v9256_v5 = vsel %vm18988_vm5, %v9255_v20, %v9254_v6  ;;  %v5748_v1 = vadd.f32 %v10151_v39, %v5747_v30  ;;  %vm9298_vm5 = vcmask 171008  }
 0xc09   : > { %v9258_v22 = vsel %vm18989_vm6, %v9257_v51, %v9256_v5  ;;  %v5734_v28 = vsel %vm5733_vm0, %v10149_v61, %v5730_v59  ;;  %vm18995_vm6 = vcmask 113664  }
 0xc0a   : > { %v9260_v40 = vsel %vm18990_vm13, %v9259_v56, %v9258_v22  ;;  %v5739_v37 = vsel %vm5736_vm9, %v5738_v44, %v5734_v28  ;;  %v5752_v38 = vsel %vm5751_vm10, %v10151_v39, %v5748_v1 }
 0xc0b   : > { %v5740_v0 = vmul.f32 %v5739_v37, %v17135_v15  ;;  %v5757_v48 = vsel %vm5754_vm3, %v5756_v9, %v5752_v38 }
 0xc0c   : > { %v5758_v3 = vmul.f32 %v5757_v48, %v17137_v27 }
 0xc0d   : > { %v5762_v58 = vsel %vm5761_vm12, %v17254_v62, %v5740_v0 }
 0xc0e   : > { %v5764_v46 = vsel %vm5763_vm1, %v5762_v58, %v5758_v3 }
 0xc19   : > { %v9219_v45 = vpop.xlane.xlu1 %9218 }
 0xc1a   : > { %v9220_v42 = vadd.f32 %v17124_v50, %v9219_v45  ;;  %v10017_v50 = vld [vmem:[%s18991_s19] ss:$0 sm:$0xff]  ;;  %s10324_s19 = scalar_lea.hbm %s10323_s22, 8 }
 0xc1b   : > { %v3784_v43 = vadd.f32 %v10017_v50, %v18992_v57  ;;  %p10325_p1 = scmp.ne.s32.totalorder %s10323_s22, %s10324_s19 }
 0xc1c   : > { %9230 = vrot.lane.b32.xlu2 %v9220_v42, %s10416_s15  ;;  %s9316_s15 = sshll.u32 %s699_s23, 4  ;;  %s9317_s15 = int_to_ptr.vmem [resolvable:$true] %s9316_s15 }
 0xc1d   : > { %p10326_p5 = pnand %p10325_p1, %p10602_p4 }
 0xc1f   : > { %p10327_p12 = pneg %p10326_p5 }
 0xc24   : > { %9261 = vrot.lane.b32.xlu2 %v9260_v40, %s10407_s21  ;;  %s18994_s21 = smov %s18993_s29 }
 0xc25   : > { %p10329_p7 = scmp.lt.s32.totalorder %s10323_s22, %s18994_s21 }
 0xc2c   : > { %9290 = vrot.lane.b32.xlu2 %v3784_v43, %s10417_s1 }
 0xc76   : > { %v9231_v52 = vpop.permute.xlu2 %9230 }
 0xc77   : > { %v9234_v16 = vsel %vm5761_vm12, %v9233_v12, %v9231_v52 }
 0xc78   : > { %9236 = vrot.lane.b32.xlu0 %v9234_v16, %s10418_s6  ;;  %s10328_s6 = scalar_lea.hbm %s18994_s21, 16 }
 0xc79   : > { %p10330_p8 = scmp.lt.s32.totalorder %s10328_s6, %s10324_s19 }
 0xc7b   : > { %p10331_p9 = por %p10330_p8, %p10329_p7 }
 0xc7d   : > { %p10332_p10 = pnand %p10331_p9, %p10327_p12 }
 0xc7e   : > { %v9262_v15 = vpop.permute.xlu2 %9261 }
 0xc80   : > { %9286 = vrot.lane.b32.xlu0 %v17116_v19, %s10419_s2 }
 0xc86   : > { %v9291_v47 = vpop.permute.xlu2 %9290 }
 0xcea   : > { %v9237_v49 = vpop.permute.xlu0 %9236 }
 0xceb   : > { %v9294_v27 = vsel %vm9293_vm7, %v5764_v46, %v9237_v49 }
 0xcec   : > { %v9296_v62 = vsel %vm9295_vm8, %v9294_v27, %v9262_v15 }
 0xcf2   : > { %v9287_v19 = vpop.permute.xlu0 %9286 }
 0xcf3   : > { %v9297_v25 = vsel %vm18995_vm6, %v9296_v62, %v9287_v19 }
 0xcf4   : > { %v9299_v41 = vsel %vm9298_vm5, %v9297_v25, %v9291_v47 }
 0xcf5   : > { %v9301_v21 = vsel %vm9300_vm2, %v9299_v41, 0.0 }
 0xcf6   : > { %9302 = vst [vmem:[%s699_s23] sm:$0xff] %v9301_v21 }
 0xcf7   : > { %10335 = shalt.err (!%p10332_p10)
}
 0xcf8   : > { %9809 = dma.vmem_to_hbm [thread:$0]  (%p10602_p4), %s9317_s15, 128, %s9319_s0, %s9304_s20  }
 0xcf9 PF: > { %s9330_s17 = sand.u32 1, %s10370_s27   ;;  %p18996_p13 = scmp.ge.s32.totalorder %s10382_s30, 2 }
 0xcfa   : > { %s9331_s24 = scalar_lea.sflag [#allocation4], %s9330_s17 }
 0xcfb   : > { %p9829_p11 = pnand %p18996_p13, %p10606_p6 }
 0xcfd   : > { %p9830_p0 = pneg %p9829_p11 }
 0xcff   : > { %10365 = dma.done.wait (%p9830_p0), %s9331_s24, 128  }
 0xd00   : > { %10367 = vsyncadd (%p9830_p0), %s9331_s24, 4294967168  ;;  %s18997_s30 = sld [smem:[#allocation17_spill]]  ;;  %s19000_s27 = smov %s10374_s28 }
 0xd01   : > { %s18998_s16 = sld [smem:[#allocation16_spill]] }
 0xd02   : > { %s18999_s29 = sld [smem:[#allocation18_spill]] }
 0xd06   : > { %p33_p2 = scmp.ge.s32.totalorder %s18997_s30, 4  }
 0xd07   : > { %s19001_s28 = smov %s18998_s16 }
 0xd08   :  { %35 = sbr.rel (!%p33_p2) target bundleno = 18 (0x12), region = 162 }
 0xd0d   :  { %9337 = vsyncpa [#allocation3], 1 }
 0xd0e   :  { %9339 = vsyncpa [#allocation3 + $0x1], 1 }
 0xd0f   :  { %9340 = vsyncpa [#allocation6], 1 }
 0xd10   :  { %9341 = vsyncpa [#allocation9], 1 }
 0xd11   :  { %9342 = vsyncpa [#allocation4], 1 }
 0xd12   :  { %9344 = vsyncpa [#allocation4 + $0x1], 1 }

</bundles_post_ra>
